<compile_context>
chip_gen: v7x
topology: tpu7x:2x2x1
jax: 0.10.0
libtpu: 0.0.40
codegen_flags: <defaults>
</compile_context>

<pallas_src>
import jax
import jax.numpy as jnp
from jax.experimental import pallas as pl
from jax.experimental.pallas import tpu as pltpu

# ----------------------------- model config ---------------------------------
BATCH = 2
N_CHANNELS = 3
IMG = 32
PATCH = 16
LATENT = 96
NUM_HEADS = 12
HEAD = LATENT // NUM_HEADS              # 8
NUM_LAYERS = 12
NUM_PATCHES = (IMG // PATCH) ** 2       # 4
SEQ = NUM_PATCHES + 1                   # 5 (class token + patches)
PATCH_DIM = N_CHANNELS * PATCH * PATCH  # 768
HIDDEN = 4 * LATENT                     # 384

# lane/sublane-dense padded layout
D_PAD = 128                             # LATENT 96 -> 128 lanes
S_PAD = 8                               # SEQ 5 -> 8 sublanes
ROWS = BATCH * S_PAD                    # 16 token rows carried through the stack
QROWS = NUM_HEADS * S_PAD               # 96 sublane-batched attention query rows
CONST_ROWS = QROWS + 8                  # 104 (head mask + lane mask + key bias + pad)

L_BLK = 4                               # encoder layers processed per grid step
GRID_STEPS = NUM_LAYERS // L_BLK        # 3

LN_EPS = 1e-5
_INV_SQRT2 = 0.7071067811865476
_NEG_INF = -1e30
SCALE = HEAD ** -0.5


# ----------------------------- in-kernel math --------------------------------
def _erf(x):
    # Abramowitz & Stegun 7.1.26 polynomial erf (max abs err ~1.5e-7).
    a1, a2, a3, a4, a5 = 0.254829592, -0.284496736, 1.421413741, -1.453152027, 1.061405429
    p = 0.3275911
    sgn = jnp.where(x >= 0.0, 1.0, -1.0)
    ax = jnp.abs(x)
    # divide moved to the EUP slot (approx reciprocal) -- frees VALU in the MLP epilogue
    t = pl.reciprocal(1.0 + p * ax, approx=True)
    poly = ((((a5 * t + a4) * t + a3) * t + a2) * t + a1) * t
    return sgn * (1.0 - poly * jnp.exp(-ax * ax))


def _gelu_exact(x):
    return 0.5 * x * (1.0 + _erf(x * _INV_SQRT2))


def _layernorm_masked(z, g, b, lane_mask):
    # Padded lanes (>= LATENT) of z are zero by construction, so the plain sum
    # divided by LATENT is the true mean; variance uses masked centered values.
    mu = jnp.sum(z, axis=-1, keepdims=True) * (1.0 / LATENT)
    c = (z - mu) * lane_mask
    var = jnp.sum(c * c, axis=-1, keepdims=True) * (1.0 / LATENT)
    # g/b are zero-padded beyond LATENT -> padded output lanes stay exactly 0.
    return c * jax.lax.rsqrt(var + LN_EPS) * g + b


# ----------------------------- the fused kernel -------------------------------
def vit_kernel(patches_ref, wp_ref, base_ref, consts_ref,
               vecs_ref, wqkv_ref, wo_ref, w1_ref, w2_ref,
               tok_ref):
    step = pl.program_id(0)

    # ---- step 0: fused patch embedding (Conv2d k=16,s=16 as one bf16 matmul) ----
    # base_ref carries cls-token, position embedding and conv bias at the right
    # (batch, seq) rows; padded rows/lanes are zero.
    @pl.when(step == 0)
    def _embed():
        proj = jnp.dot(patches_ref[...], wp_ref[...],
                       preferred_element_type=jnp.float32)             # (16,128) f32
        tok_ref[...] = proj + base_ref[...]

    # ---- host-precomputed constants (constant block index -> fetched once) ----
    hmask = consts_ref[0:QROWS, :]                         # (96,128) block-diag head mask
    lane_mask = consts_ref[QROWS:QROWS + 1, :]             # (1,128) valid-latent lanes
    # key_bias masks padded key positions (seq 5..7).  NOTE: this is what keeps
    # the garbage in padded sublane rows from ever contaminating real rows —
    # everything else is row-local.  Do not remove.
    key_bias = consts_ref[QROWS + 1:QROWS + 2, 0:S_PAD]    # (1,8): 0 or -1e30

    tok = tok_ref[...]                                     # (16,128) f32, VMEM-resident

    for ll in range(L_BLK):                                # static unroll: L_BLK layers/step
        vec = vecs_ref[ll]                                 # (8,384) packed small params
        g = vec[0:1, 0:D_PAD]                              # shared LayerNorm gamma
        beta = vec[0:1, D_PAD:2 * D_PAD]                   # shared LayerNorm beta
        bo = vec[0:1, 2 * D_PAD:3 * D_PAD]                 # attn out-proj bias
        b2 = vec[1:2, 0:D_PAD]                             # MLP down-proj bias
        b1 = vec[2:3, :]                                   # (1,384) MLP up-proj bias

        # ---- attention on batch element 0 only (the module's `[0]` quirk) ----
        x0 = tok[:S_PAD, :]
        n1 = _layernorm_masked(x0, g, beta, lane_mask)     # (8,128) f32
        n1b = n1.astype(jnp.bfloat16)

        # fused Q|K|V: single (8,128)@(128,384) bf16 MXU matmul, lane-aligned slices
        qkv = jnp.dot(n1b, wqkv_ref[ll], preferred_element_type=jnp.float32)  # (8,384)
        q = qkv[:, 0:D_PAD]
        k = qkv[:, D_PAD:2 * D_PAD]
        v = qkv[:, 2 * D_PAD:3 * D_PAD]

        # sublane-batched multi-head attention: all 12 heads in 2 matmuls + 1 softmax
        qexp = jnp.concatenate([q] * NUM_HEADS, axis=0) * hmask            # (96,128)
        s = jax.lax.dot_general(qexp, k, (((1,), (1,)), ((), ())),
                                preferred_element_type=jnp.float32) * SCALE  # (96,8)
        s = s + key_bias                                   # mask padded key positions
        s = s - jnp.max(s, axis=-1, keepdims=True)
        e = jnp.exp(s)
        w = e * pl.reciprocal(jnp.sum(e, axis=-1, keepdims=True), approx=True)
        # Dropout on `w` is identity at inference.
        att_all = jnp.dot(w, v, preferred_element_type=jnp.float32)        # (96,128)
        att_m = att_all * hmask
        # disjoint head lanes -> masked 12-block sublane sum assembles the concat
        att_cat = att_m[0:S_PAD, :]
        for h in range(1, NUM_HEADS):
            att_cat = att_cat + att_m[h * S_PAD:(h + 1) * S_PAD, :]        # (8,128)

        # single full-width output projection for all heads
        att = jnp.dot(att_cat.astype(jnp.bfloat16), wo_ref[ll],
                      preferred_element_type=jnp.float32) + bo             # (8,128)

        # broadcast batch-0 attention to every batch element + residual
        fa = tok + jnp.concatenate([att] * BATCH, axis=0)                  # (16,128)

        # ---- MLP fused over all batch rows ----
        n2 = _layernorm_masked(fa, g, beta, lane_mask)
        h1 = jnp.dot(n2.astype(jnp.bfloat16), w1_ref[ll],
                     preferred_element_type=jnp.float32) + b1              # (16,384)
        h1 = _gelu_exact(h1)
        ff = jnp.dot(h1.astype(jnp.bfloat16), w2_ref[ll],
                     preferred_element_type=jnp.float32) + b2              # (16,128)
        tok = ff + fa

    tok_ref[...] = tok            # lane-dense full-block store, stays resident


# ----------------------------- wrapper ----------------------------------------
def _pad2(w, rows, cols):
    out = jnp.zeros((rows, cols), w.dtype)
    return out.at[:w.shape[0], :w.shape[1]].set(w)


def vit_forward(x, params):
    B, C, H, W = x.shape
    gh, gw = H // PATCH, W // PATCH

    # --- XLA glue: patch extraction (im2col rows for the in-kernel matmul) ---
    patches = (x.reshape(B, C, gh, PATCH, gw, PATCH)
                 .transpose(0, 2, 4, 1, 3, 5)
                 .reshape(B, gh * gw, PATCH_DIM))                          # (B,N,768)
    patches_pad = jnp.zeros((B, S_PAD, PATCH_DIM), jnp.float32)
    patches_pad = patches_pad.at[:, 1:1 + NUM_PATCHES, :].set(patches)
    patches_pad = patches_pad.reshape(ROWS, PATCH_DIM).astype(jnp.bfloat16)

    # --- token base: cls token (s=0), position embedding (s=0..N), conv bias ---
    base = jnp.zeros((B, S_PAD, D_PAD), jnp.float32)
    base = base.at[:, 0, :LATENT].set(params['cls'][:, 0, :] + params['pos'][:, 0, :])
    base = base.at[:, 1:SEQ, :LATENT].set(
        (params['pos'][:, 0, :] + params['bp'][None, :])[:, None, :])
    base = base.reshape(ROWS, D_PAD)

    wp = _pad2(params['Wp'], PATCH_DIM, D_PAD).astype(jnp.bfloat16)

    # --- host-precomputed masks packed into one small VMEM constant ---
    lane = jnp.arange(D_PAD)
    hrow = jnp.arange(QROWS) // S_PAD                      # head id per batched row
    hmask = ((lane[None, :] >= hrow[:, None] * HEAD) &
             (lane[None, :] < (hrow[:, None] + 1) * HEAD)).astype(jnp.float32)   # (96,128)
    lane_mask = (lane < LATENT).astype(jnp.float32)[None, :]                     # (1,128)
    key_bias = jnp.where(lane < SEQ, 0.0, _NEG_INF).astype(jnp.float32)[None, :]  # (1,128)
    consts = jnp.concatenate(
        [hmask, lane_mask, key_bias,
         jnp.zeros((CONST_ROWS - QROWS - 2, D_PAD), jnp.float32)], axis=0)        # (104,128)

    Ls = params['layers']

    def stk(name, rows, cols, dtype):
        return jnp.stack([_pad2(L[name], rows, cols) for L in Ls]).astype(dtype)

    # packed Q|K|V weight: one DMA + one MXU matmul per layer
    def pack_qkv(L):
        w = jnp.zeros((D_PAD, 3 * D_PAD), jnp.float32)
        w = w.at[:LATENT, 0:LATENT].set(L['wq'])
        w = w.at[:LATENT, D_PAD:D_PAD + LATENT].set(L['wk'])
        w = w.at[:LATENT, 2 * D_PAD:2 * D_PAD + LATENT].set(L['wv'])
        return w
    wqkv_s = jnp.stack([pack_qkv(L) for L in Ls]).astype(jnp.bfloat16)     # (12,128,384)

    # five tiny per-layer vectors packed into one (8,384) f32 tile per layer
    def pack_vecs(L):
        v = jnp.zeros((S_PAD, HIDDEN), jnp.float32)
        v = v.at[0, 0:LATENT].set(L['ln_g'][0])
        v = v.at[0, D_PAD:D_PAD + LATENT].set(L['ln_b'][0])
        v = v.at[0, 2 * D_PAD:2 * D_PAD + LATENT].set(L['bo'][0])
        v = v.at[1, 0:LATENT].set(L['b2'][0])
        v = v.at[2, 0:HIDDEN].set(L['b1'][0])
        return v
    vecs_s = jnp.stack([pack_vecs(L) for L in Ls])                          # (12,8,384) f32

    wo_s = stk('wo', D_PAD, D_PAD, jnp.bfloat16)                            # (12,128,128)
    w1_s = stk('w1', D_PAD, HIDDEN, jnp.bfloat16)                           # (12,128,384)
    w2_s = stk('w2', HIDDEN, D_PAD, jnp.bfloat16)                           # (12,384,128)

    def whole(shape):                       # fetched once (constant block index)
        return pl.BlockSpec(shape, lambda l, _n=len(shape): (0,) * _n)

    def per_block(shape):                   # L_BLK layers streamed per step, dbl-buffered
        return pl.BlockSpec((L_BLK,) + shape, lambda l: (l, 0, 0))

    out16 = pl.pallas_call(
        vit_kernel,
        out_shape=jax.ShapeDtypeStruct((ROWS, D_PAD), jnp.float32),
        grid=(GRID_STEPS,),
        in_specs=[
            whole((ROWS, PATCH_DIM)),        # patches (im2col rows), bf16
            whole((PATCH_DIM, D_PAD)),       # patcher weight, bf16
            whole((ROWS, D_PAD)),            # cls/pos/bias token base, f32
            whole((CONST_ROWS, D_PAD)),      # packed masks (head/lane/key), f32
            per_block((S_PAD, HIDDEN)),      # packed ln_g|ln_b|bo|b2|b1
            per_block((D_PAD, 3 * D_PAD)),   # packed wq|wk|wv
            per_block((D_PAD, D_PAD)),       # wo
            per_block((D_PAD, HIDDEN)),      # w1
            per_block((HIDDEN, D_PAD)),      # w2
        ],
        out_specs=pl.BlockSpec((ROWS, D_PAD), lambda l: (0, 0)),  # resident accumulator
        compiler_params=pltpu.CompilerParams(dimension_semantics=("arbitrary",)),
    )(patches_pad, wp, base, consts,
      vecs_s, wqkv_s, wo_s, w1_s, w2_s)

    return out16.reshape(B, S_PAD, D_PAD)[:, :SEQ, :LATENT]


# ----------------------------- pure-JAX reference -----------------------------
def vit_reference(x, params):
    B, C, H, W = x.shape
    gh, gw = H // PATCH, W // PATCH
    patches = (x.reshape(B, C, gh, PATCH, gw, PATCH)
                 .transpose(0, 2, 4, 1, 3, 5)
                 .reshape(B, gh * gw, PATCH_DIM))
    tok = patches @ params['Wp'] + params['bp']
    tok = jnp.concatenate([params['cls'], tok], axis=1) + params['pos']
    for L in params['layers']:
        g, beta = L['ln_g'][0], L['ln_b'][0]

        def ln(z):
            mu = z.mean(-1, keepdims=True)
            var = ((z - mu) ** 2).mean(-1, keepdims=True)
            return (z - mu) / jnp.sqrt(var + LN_EPS) * g + beta

        n1 = ln(tok)
        heads = []
        for h in range(NUM_HEADS):
            sl = slice(h * HEAD, (h + 1) * HEAD)
            k = n1 @ L['wk'][:, sl]
            q = n1 @ L['wq'][:, sl]
            v = n1 @ L['wv'][:, sl]
            wei = jax.nn.softmax(q @ jnp.swapaxes(k, -1, -2) * HEAD ** -0.5, axis=-1)
            heads.append(wei @ v)
        att = jnp.concatenate(heads, axis=-1) @ L['wo'] + L['bo'][0]
        fa = att[0] + tok                                  # the [0] quirk
        n2 = ln(fa)
        h1 = jax.nn.gelu(n2 @ L['w1'] + L['b1'][0], approximate=False)
        ff = h1 @ L['w2'] + L['b2'][0]
        tok = ff + fa
    return tok


# ----------------------------- parameter init ---------------------------------
def init_params(key):
    keys = jax.random.split(key, 4 + NUM_LAYERS)

    def nrm(k, shape, scale=0.02):
        return (scale * jax.random.normal(k, shape)).astype(jnp.float32)

    params = {
        'Wp': nrm(keys[0], (PATCH_DIM, LATENT)),   # conv weight, flattened + transposed
        'bp': nrm(keys[1], (LATENT,)),             # conv bias
        'cls': nrm(keys[2], (BATCH, 1, LATENT), 1.0),
        'pos': nrm(keys[3], (BATCH, 1, LATENT), 1.0),
        'layers': [],
    }
    for l in range(NUM_LAYERS):
        lk = jax.random.split(keys[4 + l], 9)
        params['layers'].append(dict(
            ln_g=jnp.ones((1, LATENT), jnp.float32),
            ln_b=jnp.zeros((1, LATENT), jnp.float32),
            wk=nrm(lk[0], (LATENT, LATENT)),
            wq=nrm(lk[1], (LATENT, LATENT)),
            wv=nrm(lk[2], (LATENT, LATENT)),
            wo=nrm(lk[3], (LATENT, LATENT)),
            bo=nrm(lk[4], (1, LATENT)),
            w1=nrm(lk[5], (LATENT, HIDDEN)),
            b1=nrm(lk[6], (1, HIDDEN)),
            w2=nrm(lk[7], (HIDDEN, LATENT)),
            b2=nrm(lk[8], (1, LATENT)),
        ))
    return params


# ----------------------------- main -------------------------------------------
if __name__ == "__main__":
    key = jax.random.PRNGKey(0)
    pkey, xkey = jax.random.split(key)
    params = init_params(pkey)
    x = jax.random.normal(xkey, (BATCH, N_CHANNELS, IMG, IMG), jnp.float32)

    out = jax.jit(vit_forward)(x, params)
    out = jax.block_until_ready(out)

    ref = vit_reference(x, params)
    assert out.shape == (BATCH, SEQ, LATENT)
    assert bool(jnp.all(jnp.isfinite(out)))
    # bf16 encoder weights / patch-embed inputs + approx EUP reciprocals (softmax
    # denominator and erf divide) vs. the pure-f32 reference.
    assert bool(jnp.allclose(out, ref, atol=2e-2, rtol=2e-2))
    print("KERNEL_OK")
</pallas_src>

<mosaic_0001>
module attributes {stable_mosaic.version = 11 : i64} {
  func.func @vit_kernel(%arg0: i32, %arg1: memref<16x768xbf16, #tpu.memory_space<vmem>>, %arg2: memref<768x128xbf16, #tpu.memory_space<vmem>>, %arg3: memref<16x128xf32, #tpu.memory_space<vmem>>, %arg4: memref<104x128xf32, #tpu.memory_space<vmem>>, %arg5: memref<4x8x384xf32, #tpu.memory_space<vmem>>, %arg6: memref<4x128x384xbf16, #tpu.memory_space<vmem>>, %arg7: memref<4x128x128xbf16, #tpu.memory_space<vmem>>, %arg8: memref<4x128x384xbf16, #tpu.memory_space<vmem>>, %arg9: memref<4x384x128xbf16, #tpu.memory_space<vmem>>, %arg10: memref<16x128xf32, #tpu.memory_space<vmem>>) attributes {dimension_semantics = [#tpu.dimension_semantics<arbitrary>], iteration_bounds = array<i64: 3>, scalar_prefetch = 0 : i64, scratch_operands = 0 : i64, tpu.core_type = #tpu.core_type<tc>, window_params = [{pipeline_mode = #tpu.pipeline_mode<synchronous>, transform_indices = @transform_0, window_bounds = array<i64: 16, 768>}, {pipeline_mode = #tpu.pipeline_mode<synchronous>, transform_indices = @transform_1, window_bounds = array<i64: 768, 128>}, {pipeline_mode = #tpu.pipeline_mode<synchronous>, transform_indices = @transform_2, window_bounds = array<i64: 16, 128>}, {pipeline_mode = #tpu.pipeline_mode<synchronous>, transform_indices = @transform_3, window_bounds = array<i64: 104, 128>}, {transform_indices = @transform_4, window_bounds = array<i64: 4, 8, 384>}, {transform_indices = @transform_5, window_bounds = array<i64: 4, 128, 384>}, {transform_indices = @transform_6, window_bounds = array<i64: 4, 128, 128>}, {transform_indices = @transform_7, window_bounds = array<i64: 4, 128, 384>}, {transform_indices = @transform_8, window_bounds = array<i64: 4, 384, 128>}, {pipeline_mode = #tpu.pipeline_mode<synchronous>, transform_indices = @transform_9, window_bounds = array<i64: 16, 128>}]} {
    %c0_i32 = arith.constant 0 : i32
    %0 = arith.cmpi eq, %arg0, %c0_i32 : i32
    %1 = arith.extui %0 : i1 to i32
    %c0_i32_0 = arith.constant 0 : i32
    %2 = arith.cmpi ne, %1, %c0_i32_0 : i32
    scf.if %2 {
      %c0_200 = arith.constant 0 : index
      %c0_201 = arith.constant 0 : index
      %656 = vector.load %arg1[%c0_200, %c0_201] : memref<16x768xbf16, #tpu.memory_space<vmem>>, vector<16x768xbf16>
      %c0_202 = arith.constant 0 : index
      %c0_203 = arith.constant 0 : index
      %657 = vector.load %arg2[%c0_202, %c0_203] : memref<768x128xbf16, #tpu.memory_space<vmem>>, vector<768x128xbf16>
      %cst_204 = arith.constant dense<0.000000e+00> : vector<16x128xf32>
      %658 = tpu.matmul %656, %657, %cst_204 {dimension_numbers = #tpu.dot_dimension_numbers<[1], [0], [0], [1], [0, 0, 1, 1], [], []>} : vector<16x768xbf16>, vector<768x128xbf16>, vector<16x128xf32> -> vector<16x128xf32>
      %c0_205 = arith.constant 0 : index
      %c0_206 = arith.constant 0 : index
      %659 = vector.load %arg3[%c0_205, %c0_206] : memref<16x128xf32, #tpu.memory_space<vmem>>, vector<16x128xf32>
      %660 = arith.addf %658, %659 : vector<16x128xf32>
      %c0_207 = arith.constant 0 : index
      %c0_208 = arith.constant 0 : index
      %661 = vector.load %arg10[%c0_207, %c0_208] : memref<16x128xf32, #tpu.memory_space<vmem>>, vector<16x128xf32>
      tpu.vector_store %arg10[%c0_207, %c0_208], %660 {strides = array<i32>} : memref<16x128xf32, #tpu.memory_space<vmem>>, vector<16x128xf32>,
    } else {
    }
    %c0 = arith.constant 0 : index
    %c0_1 = arith.constant 0 : index
    %3 = vector.load %arg4[%c0, %c0_1] : memref<104x128xf32, #tpu.memory_space<vmem>>, vector<96x128xf32>
    %c96 = arith.constant 96 : index
    %c0_2 = arith.constant 0 : index
    %4 = vector.load %arg4[%c96, %c0_2] : memref<104x128xf32, #tpu.memory_space<vmem>>, vector<1x128xf32>
    %c97 = arith.constant 97 : index
    %c0_3 = arith.constant 0 : index
    %5 = vector.load %arg4[%c97, %c0_3] : memref<104x128xf32, #tpu.memory_space<vmem>>, vector<1x8xf32>
    %c0_4 = arith.constant 0 : index
    %c0_5 = arith.constant 0 : index
    %6 = vector.load %arg10[%c0_4, %c0_5] : memref<16x128xf32, #tpu.memory_space<vmem>>, vector<16x128xf32>
    %c0_6 = arith.constant 0 : index
    %c0_7 = arith.constant 0 : index
    %c0_8 = arith.constant 0 : index
    %7 = vector.load %arg5[%c0_6, %c0_7, %c0_8] : memref<4x8x384xf32, #tpu.memory_space<vmem>>, vector<1x8x384xf32>
    %8 = vector.shape_cast %7 : vector<1x8x384xf32> to vector<8x384xf32>
    %9 = vector.extract_strided_slice %8 {offsets = [0, 0], sizes = [1, 128], strides = [1, 1]} : vector<8x384xf32> to vector<1x128xf32>
    %10 = vector.extract_strided_slice %8 {offsets = [0, 128], sizes = [1, 128], strides = [1, 1]} : vector<8x384xf32> to vector<1x128xf32>
    %11 = vector.extract_strided_slice %8 {offsets = [0, 256], sizes = [1, 128], strides = [1, 1]} : vector<8x384xf32> to vector<1x128xf32>
    %12 = vector.extract_strided_slice %8 {offsets = [1, 0], sizes = [1, 128], strides = [1, 1]} : vector<8x384xf32> to vector<1x128xf32>
    %13 = vector.extract_strided_slice %8 {offsets = [2, 0], sizes = [1, 384], strides = [1, 1]} : vector<8x384xf32> to vector<1x384xf32>
    %14 = vector.extract_strided_slice %6 {offsets = [0, 0], sizes = [8, 128], strides = [1, 1]} : vector<16x128xf32> to vector<8x128xf32>
    %cst = arith.constant dense<0.000000e+00> : vector<8xf32>
    %15 = vector.multi_reduction <add>, %14, %cst [1] : vector<8x128xf32> to vector<8xf32>
    %16 = vector.shape_cast %15 : vector<8xf32> to vector<8x1xf32>
    %cst_9 = arith.constant 0.010416667 : f32
    %17 = vector.broadcast %cst_9 : f32 to vector<8x1xf32>
    %18 = arith.mulf %16, %17 : vector<8x1xf32>
    %19 = vector.broadcast %18 : vector<8x1xf32> to vector<8x128xf32>
    %20 = arith.subf %14, %19 : vector<8x128xf32>
    %21 = vector.broadcast %4 : vector<1x128xf32> to vector<8x128xf32>
    %22 = arith.mulf %20, %21 : vector<8x128xf32>
    %23 = arith.mulf %22, %22 : vector<8x128xf32>
    %cst_10 = arith.constant dense<0.000000e+00> : vector<8xf32>
    %24 = vector.multi_reduction <add>, %23, %cst_10 [1] : vector<8x128xf32> to vector<8xf32>
    %25 = vector.shape_cast %24 : vector<8xf32> to vector<8x1xf32>
    %cst_11 = arith.constant 0.010416667 : f32
    %26 = vector.broadcast %cst_11 : f32 to vector<8x1xf32>
    %27 = arith.mulf %25, %26 : vector<8x1xf32>
    %cst_12 = arith.constant 9.99999974E-6 : f32
    %28 = vector.broadcast %cst_12 : f32 to vector<8x1xf32>
    %29 = arith.addf %27, %28 : vector<8x1xf32>
    %30 = math.rsqrt %29 : vector<8x1xf32>
    %31 = vector.broadcast %30 : vector<8x1xf32> to vector<8x128xf32>
    %32 = arith.mulf %22, %31 : vector<8x128xf32>
    %33 = vector.broadcast %9 : vector<1x128xf32> to vector<8x128xf32>
    %34 = arith.mulf %32, %33 : vector<8x128xf32>
    %35 = vector.broadcast %10 : vector<1x128xf32> to vector<8x128xf32>
    %36 = arith.addf %34, %35 : vector<8x128xf32>
    %37 = arith.truncf %36 : vector<8x128xf32> to vector<8x128xbf16>
    %c0_13 = arith.constant 0 : index
    %c0_14 = arith.constant 0 : index
    %c0_15 = arith.constant 0 : index
    %38 = vector.load %arg6[%c0_13, %c0_14, %c0_15] : memref<4x128x384xbf16, #tpu.memory_space<vmem>>, vector<1x128x384xbf16>
    %39 = vector.shape_cast %38 : vector<1x128x384xbf16> to vector<128x384xbf16>
    %cst_16 = arith.constant dense<0.000000e+00> : vector<8x384xf32>
    %40 = tpu.matmul %37, %39, %cst_16 {dimension_numbers = #tpu.dot_dimension_numbers<[1], [0], [0], [1], [0, 0, 1, 1], [], []>} : vector<8x128xbf16>, vector<128x384xbf16>, vector<8x384xf32> -> vector<8x384xf32>
    %41 = vector.extract_strided_slice %40 {offsets = [0, 0], sizes = [8, 128], strides = [1, 1]} : vector<8x384xf32> to vector<8x128xf32>
    %42 = vector.extract_strided_slice %40 {offsets = [0, 128], sizes = [8, 128], strides = [1, 1]} : vector<8x384xf32> to vector<8x128xf32>
    %43 = vector.extract_strided_slice %40 {offsets = [0, 256], sizes = [8, 128], strides = [1, 1]} : vector<8x384xf32> to vector<8x128xf32>
    %44 = tpu.concatenate %41, %41, %41, %41, %41, %41, %41, %41, %41, %41, %41, %41 in 0 : vector<8x128xf32>, vector<8x128xf32>, vector<8x128xf32>, vector<8x128xf32>, vector<8x128xf32>, vector<8x128xf32>, vector<8x128xf32>, vector<8x128xf32>, vector<8x128xf32>, vector<8x128xf32>, vector<8x128xf32>, vector<8x128xf32> -> vector<96x128xf32>
    %45 = arith.mulf %44, %3 : vector<96x128xf32>
    %cst_17 = arith.constant dense<0.000000e+00> : vector<96x8xf32>
    %46 = tpu.matmul %45, %42, %cst_17 {dimension_numbers = #tpu.dot_dimension_numbers<[1], [1], [0], [0], [0, 0, 1, 0], [], []>} : vector<96x128xf32>, vector<8x128xf32>, vector<96x8xf32> -> vector<96x8xf32>
    %cst_18 = arith.constant 0.353553385 : f32
    %47 = vector.broadcast %cst_18 : f32 to vector<96x8xf32>
    %48 = arith.mulf %46, %47 : vector<96x8xf32>
    %49 = vector.broadcast %5 : vector<1x8xf32> to vector<96x8xf32>
    %50 = arith.addf %48, %49 : vector<96x8xf32>
    %cst_19 = arith.constant dense<0xFF800000> : vector<96xf32>
    %51 = vector.multi_reduction <maximumf>, %50, %cst_19 [1] : vector<96x8xf32> to vector<96xf32>
    %52 = vector.shape_cast %51 : vector<96xf32> to vector<96x1xf32>
    %53 = vector.broadcast %52 : vector<96x1xf32> to vector<96x8xf32>
    %54 = arith.subf %50, %53 : vector<96x8xf32>
    %55 = math.exp %54 : vector<96x8xf32>
    %cst_20 = arith.constant dense<0.000000e+00> : vector<96xf32>
    %56 = vector.multi_reduction <add>, %55, %cst_20 [1] : vector<96x8xf32> to vector<96xf32>
    %57 = vector.shape_cast %56 : vector<96xf32> to vector<96x1xf32>
    %58 = tpu.reciprocal %57 {approx = true} : vector<96x1xf32> -> vector<96x1xf32>
    %59 = vector.broadcast %58 : vector<96x1xf32> to vector<96x8xf32>
    %60 = arith.mulf %55, %59 : vector<96x8xf32>
    %cst_21 = arith.constant dense<0.000000e+00> : vector<96x128xf32>
    %61 = tpu.matmul %60, %43, %cst_21 {dimension_numbers = #tpu.dot_dimension_numbers<[1], [0], [0], [1], [0, 0, 1, 1], [], []>} : vector<96x8xf32>, vector<8x128xf32>, vector<96x128xf32> -> vector<96x128xf32>
    %62 = arith.mulf %61, %3 : vector<96x128xf32>
    %63 = vector.extract_strided_slice %62 {offsets = [0, 0], sizes = [8, 128], strides = [1, 1]} : vector<96x128xf32> to vector<8x128xf32>
    %64 = vector.extract_strided_slice %62 {offsets = [8, 0], sizes = [8, 128], strides = [1, 1]} : vector<96x128xf32> to vector<8x128xf32>
    %65 = arith.addf %63, %64 : vector<8x128xf32>
    %66 = vector.extract_strided_slice %62 {offsets = [16, 0], sizes = [8, 128], strides = [1, 1]} : vector<96x128xf32> to vector<8x128xf32>
    %67 = arith.addf %65, %66 : vector<8x128xf32>
    %68 = vector.extract_strided_slice %62 {offsets = [24, 0], sizes = [8, 128], strides = [1, 1]} : vector<96x128xf32> to vector<8x128xf32>
    %69 = arith.addf %67, %68 : vector<8x128xf32>
    %70 = vector.extract_strided_slice %62 {offsets = [32, 0], sizes = [8, 128], strides = [1, 1]} : vector<96x128xf32> to vector<8x128xf32>
    %71 = arith.addf %69, %70 : vector<8x128xf32>
    %72 = vector.extract_strided_slice %62 {offsets = [40, 0], sizes = [8, 128], strides = [1, 1]} : vector<96x128xf32> to vector<8x128xf32>
    %73 = arith.addf %71, %72 : vector<8x128xf32>
    %74 = vector.extract_strided_slice %62 {offsets = [48, 0], sizes = [8, 128], strides = [1, 1]} : vector<96x128xf32> to vector<8x128xf32>
    %75 = arith.addf %73, %74 : vector<8x128xf32>
    %76 = vector.extract_strided_slice %62 {offsets = [56, 0], sizes = [8, 128], strides = [1, 1]} : vector<96x128xf32> to vector<8x128xf32>
    %77 = arith.addf %75, %76 : vector<8x128xf32>
    %78 = vector.extract_strided_slice %62 {offsets = [64, 0], sizes = [8, 128], strides = [1, 1]} : vector<96x128xf32> to vector<8x128xf32>
    %79 = arith.addf %77, %78 : vector<8x128xf32>
    %80 = vector.extract_strided_slice %62 {offsets = [72, 0], sizes = [8, 128], strides = [1, 1]} : vector<96x128xf32> to vector<8x128xf32>
    %81 = arith.addf %79, %80 : vector<8x128xf32>
    %82 = vector.extract_strided_slice %62 {offsets = [80, 0], sizes = [8, 128], strides = [1, 1]} : vector<96x128xf32> to vector<8x128xf32>
    %83 = arith.addf %81, %82 : vector<8x128xf32>
    %84 = vector.extract_strided_slice %62 {offsets = [88, 0], sizes = [8, 128], strides = [1, 1]} : vector<96x128xf32> to vector<8x128xf32>
    %85 = arith.addf %83, %84 : vector<8x128xf32>
    %86 = arith.truncf %85 : vector<8x128xf32> to vector<8x128xbf16>
    %c0_22 = arith.constant 0 : index
    %c0_23 = arith.constant 0 : index
    %c0_24 = arith.constant 0 : index
    %87 = vector.load %arg7[%c0_22, %c0_23, %c0_24] : memref<4x128x128xbf16, #tpu.memory_space<vmem>>, vector<1x128x128xbf16>
    %88 = vector.shape_cast %87 : vector<1x128x128xbf16> to vector<128x128xbf16>
    %cst_25 = arith.constant dense<0.000000e+00> : vector<8x128xf32>
    %89 = tpu.matmul %86, %88, %cst_25 {dimension_numbers = #tpu.dot_dimension_numbers<[1], [0], [0], [1], [0, 0, 1, 1], [], []>} : vector<8x128xbf16>, vector<128x128xbf16>, vector<8x128xf32> -> vector<8x128xf32>
    %90 = vector.broadcast %11 : vector<1x128xf32> to vector<8x128xf32>
    %91 = arith.addf %89, %90 : vector<8x128xf32>
    %92 = tpu.concatenate %91, %91 in 0 : vector<8x128xf32>, vector<8x128xf32> -> vector<16x128xf32>
    %93 = arith.addf %6, %92 : vector<16x128xf32>
    %cst_26 = arith.constant dense<0.000000e+00> : vector<16xf32>
    %94 = vector.multi_reduction <add>, %93, %cst_26 [1] : vector<16x128xf32> to vector<16xf32>
    %95 = vector.shape_cast %94 : vector<16xf32> to vector<16x1xf32>
    %cst_27 = arith.constant 0.010416667 : f32
    %96 = vector.broadcast %cst_27 : f32 to vector<16x1xf32>
    %97 = arith.mulf %95, %96 : vector<16x1xf32>
    %98 = vector.broadcast %97 : vector<16x1xf32> to vector<16x128xf32>
    %99 = arith.subf %93, %98 : vector<16x128xf32>
    %100 = vector.broadcast %4 : vector<1x128xf32> to vector<16x128xf32>
    %101 = arith.mulf %99, %100 : vector<16x128xf32>
    %102 = arith.mulf %101, %101 : vector<16x128xf32>
    %cst_28 = arith.constant dense<0.000000e+00> : vector<16xf32>
    %103 = vector.multi_reduction <add>, %102, %cst_28 [1] : vector<16x128xf32> to vector<16xf32>
    %104 = vector.shape_cast %103 : vector<16xf32> to vector<16x1xf32>
    %cst_29 = arith.constant 0.010416667 : f32
    %105 = vector.broadcast %cst_29 : f32 to vector<16x1xf32>
    %106 = arith.mulf %104, %105 : vector<16x1xf32>
    %cst_30 = arith.constant 9.99999974E-6 : f32
    %107 = vector.broadcast %cst_30 : f32 to vector<16x1xf32>
    %108 = arith.addf %106, %107 : vector<16x1xf32>
    %109 = math.rsqrt %108 : vector<16x1xf32>
    %110 = vector.broadcast %109 : vector<16x1xf32> to vector<16x128xf32>
    %111 = arith.mulf %101, %110 : vector<16x128xf32>
    %112 = vector.broadcast %9 : vector<1x128xf32> to vector<16x128xf32>
    %113 = arith.mulf %111, %112 : vector<16x128xf32>
    %114 = vector.broadcast %10 : vector<1x128xf32> to vector<16x128xf32>
    %115 = arith.addf %113, %114 : vector<16x128xf32>
    %116 = arith.truncf %115 : vector<16x128xf32> to vector<16x128xbf16>
    %c0_31 = arith.constant 0 : index
    %c0_32 = arith.constant 0 : index
    %c0_33 = arith.constant 0 : index
    %117 = vector.load %arg8[%c0_31, %c0_32, %c0_33] : memref<4x128x384xbf16, #tpu.memory_space<vmem>>, vector<1x128x384xbf16>
    %118 = vector.shape_cast %117 : vector<1x128x384xbf16> to vector<128x384xbf16>
    %cst_34 = arith.constant dense<0.000000e+00> : vector<16x384xf32>
    %119 = tpu.matmul %116, %118, %cst_34 {dimension_numbers = #tpu.dot_dimension_numbers<[1], [0], [0], [1], [0, 0, 1, 1], [], []>} : vector<16x128xbf16>, vector<128x384xbf16>, vector<16x384xf32> -> vector<16x384xf32>
    %120 = vector.broadcast %13 : vector<1x384xf32> to vector<16x384xf32>
    %121 = arith.addf %119, %120 : vector<16x384xf32>
    %cst_35 = arith.constant 5.000000e-01 : f32
    %122 = vector.broadcast %cst_35 : f32 to vector<16x384xf32>
    %123 = arith.mulf %122, %121 : vector<16x384xf32>
    %cst_36 = arith.constant 0.707106769 : f32
    %124 = vector.broadcast %cst_36 : f32 to vector<16x384xf32>
    %125 = arith.mulf %121, %124 : vector<16x384xf32>
    %cst_37 = arith.constant 0.000000e+00 : f32
    %126 = vector.broadcast %cst_37 : f32 to vector<16x384xf32>
    %127 = arith.cmpf oge, %125, %126 : vector<16x384xf32>
    %cst_38 = arith.constant 1.000000e+00 : f32
    %cst_39 = arith.constant -1.000000e+00 : f32
    %128 = vector.broadcast %cst_38 : f32 to vector<16x384xf32>
    %129 = vector.broadcast %cst_39 : f32 to vector<16x384xf32>
    %130 = arith.select %127, %128, %129 : vector<16x384xi1>, vector<16x384xf32>
    %131 = math.absf %125 : vector<16x384xf32>
    %cst_40 = arith.constant 0.327591091 : f32
    %132 = vector.broadcast %cst_40 : f32 to vector<16x384xf32>
    %133 = arith.mulf %132, %131 : vector<16x384xf32>
    %cst_41 = arith.constant 1.000000e+00 : f32
    %134 = vector.broadcast %cst_41 : f32 to vector<16x384xf32>
    %135 = arith.addf %134, %133 : vector<16x384xf32>
    %136 = tpu.reciprocal %135 {approx = true} : vector<16x384xf32> -> vector<16x384xf32>
    %cst_42 = arith.constant 1.06140542 : f32
    %137 = vector.broadcast %cst_42 : f32 to vector<16x384xf32>
    %138 = arith.mulf %137, %136 : vector<16x384xf32>
    %cst_43 = arith.constant -1.45315206 : f32
    %139 = vector.broadcast %cst_43 : f32 to vector<16x384xf32>
    %140 = arith.addf %138, %139 : vector<16x384xf32>
    %141 = arith.mulf %140, %136 : vector<16x384xf32>
    %cst_44 = arith.constant 1.42141378 : f32
    %142 = vector.broadcast %cst_44 : f32 to vector<16x384xf32>
    %143 = arith.addf %141, %142 : vector<16x384xf32>
    %144 = arith.mulf %143, %136 : vector<16x384xf32>
    %cst_45 = arith.constant -0.284496725 : f32
    %145 = vector.broadcast %cst_45 : f32 to vector<16x384xf32>
    %146 = arith.addf %144, %145 : vector<16x384xf32>
    %147 = arith.mulf %146, %136 : vector<16x384xf32>
    %cst_46 = arith.constant 0.254829586 : f32
    %148 = vector.broadcast %cst_46 : f32 to vector<16x384xf32>
    %149 = arith.addf %147, %148 : vector<16x384xf32>
    %150 = arith.mulf %149, %136 : vector<16x384xf32>
    %cst_47 = arith.constant 0.000000e+00 : f32
    %151 = vector.broadcast %cst_47 : f32 to vector<16x384xf32>
    %152 = arith.subf %151, %131 : vector<16x384xf32>
    %153 = arith.mulf %152, %131 : vector<16x384xf32>
    %154 = math.exp %153 : vector<16x384xf32>
    %155 = arith.mulf %150, %154 : vector<16x384xf32>
    %cst_48 = arith.constant 1.000000e+00 : f32
    %156 = vector.broadcast %cst_48 : f32 to vector<16x384xf32>
    %157 = arith.subf %156, %155 : vector<16x384xf32>
    %158 = arith.mulf %130, %157 : vector<16x384xf32>
    %cst_49 = arith.constant 1.000000e+00 : f32
    %159 = vector.broadcast %cst_49 : f32 to vector<16x384xf32>
    %160 = arith.addf %159, %158 : vector<16x384xf32>
    %161 = arith.mulf %123, %160 : vector<16x384xf32>
    %162 = arith.truncf %161 : vector<16x384xf32> to vector<16x384xbf16>
    %c0_50 = arith.constant 0 : index
    %c0_51 = arith.constant 0 : index
    %c0_52 = arith.constant 0 : index
    %163 = vector.load %arg9[%c0_50, %c0_51, %c0_52] : memref<4x384x128xbf16, #tpu.memory_space<vmem>>, vector<1x384x128xbf16>
    %164 = vector.shape_cast %163 : vector<1x384x128xbf16> to vector<384x128xbf16>
    %cst_53 = arith.constant dense<0.000000e+00> : vector<16x128xf32>
    %165 = tpu.matmul %162, %164, %cst_53 {dimension_numbers = #tpu.dot_dimension_numbers<[1], [0], [0], [1], [0, 0, 1, 1], [], []>} : vector<16x384xbf16>, vector<384x128xbf16>, vector<16x128xf32> -> vector<16x128xf32>
    %166 = vector.broadcast %12 : vector<1x128xf32> to vector<16x128xf32>
    %167 = arith.addf %165, %166 : vector<16x128xf32>
    %168 = arith.addf %167, %93 : vector<16x128xf32>
    %c1 = arith.constant 1 : index
    %c0_54 = arith.constant 0 : index
    %c0_55 = arith.constant 0 : index
    %169 = vector.load %arg5[%c1, %c0_54, %c0_55] : memref<4x8x384xf32, #tpu.memory_space<vmem>>, vector<1x8x384xf32>
    %170 = vector.shape_cast %169 : vector<1x8x384xf32> to vector<8x384xf32>
    %171 = vector.extract_strided_slice %170 {offsets = [0, 0], sizes = [1, 128], strides = [1, 1]} : vector<8x384xf32> to vector<1x128xf32>
    %172 = vector.extract_strided_slice %170 {offsets = [0, 128], sizes = [1, 128], strides = [1, 1]} : vector<8x384xf32> to vector<1x128xf32>
    %173 = vector.extract_strided_slice %170 {offsets = [0, 256], sizes = [1, 128], strides = [1, 1]} : vector<8x384xf32> to vector<1x128xf32>
    %174 = vector.extract_strided_slice %170 {offsets = [1, 0], sizes = [1, 128], strides = [1, 1]} : vector<8x384xf32> to vector<1x128xf32>
    %175 = vector.extract_strided_slice %170 {offsets = [2, 0], sizes = [1, 384], strides = [1, 1]} : vector<8x384xf32> to vector<1x384xf32>
    %176 = vector.extract_strided_slice %168 {offsets = [0, 0], sizes = [8, 128], strides = [1, 1]} : vector<16x128xf32> to vector<8x128xf32>
    %cst_56 = arith.constant dense<0.000000e+00> : vector<8xf32>
    %177 = vector.multi_reduction <add>, %176, %cst_56 [1] : vector<8x128xf32> to vector<8xf32>
    %178 = vector.shape_cast %177 : vector<8xf32> to vector<8x1xf32>
    %cst_57 = arith.constant 0.010416667 : f32
    %179 = vector.broadcast %cst_57 : f32 to vector<8x1xf32>
    %180 = arith.mulf %178, %179 : vector<8x1xf32>
    %181 = vector.broadcast %180 : vector<8x1xf32> to vector<8x128xf32>
    %182 = arith.subf %176, %181 : vector<8x128xf32>
    %183 = vector.broadcast %4 : vector<1x128xf32> to vector<8x128xf32>
    %184 = arith.mulf %182, %183 : vector<8x128xf32>
    %185 = arith.mulf %184, %184 : vector<8x128xf32>
    %cst_58 = arith.constant dense<0.000000e+00> : vector<8xf32>
    %186 = vector.multi_reduction <add>, %185, %cst_58 [1] : vector<8x128xf32> to vector<8xf32>
    %187 = vector.shape_cast %186 : vector<8xf32> to vector<8x1xf32>
    %cst_59 = arith.constant 0.010416667 : f32
    %188 = vector.broadcast %cst_59 : f32 to vector<8x1xf32>
    %189 = arith.mulf %187, %188 : vector<8x1xf32>
    %cst_60 = arith.constant 9.99999974E-6 : f32
    %190 = vector.broadcast %cst_60 : f32 to vector<8x1xf32>
    %191 = arith.addf %189, %190 : vector<8x1xf32>
    %192 = math.rsqrt %191 : vector<8x1xf32>
    %193 = vector.broadcast %192 : vector<8x1xf32> to vector<8x128xf32>
    %194 = arith.mulf %184, %193 : vector<8x128xf32>
    %195 = vector.broadcast %171 : vector<1x128xf32> to vector<8x128xf32>
    %196 = arith.mulf %194, %195 : vector<8x128xf32>
    %197 = vector.broadcast %172 : vector<1x128xf32> to vector<8x128xf32>
    %198 = arith.addf %196, %197 : vector<8x128xf32>
    %199 = arith.truncf %198 : vector<8x128xf32> to vector<8x128xbf16>
    %c1_61 = arith.constant 1 : index
    %c0_62 = arith.constant 0 : index
    %c0_63 = arith.constant 0 : index
    %200 = vector.load %arg6[%c1_61, %c0_62, %c0_63] : memref<4x128x384xbf16, #tpu.memory_space<vmem>>, vector<1x128x384xbf16>
    %201 = vector.shape_cast %200 : vector<1x128x384xbf16> to vector<128x384xbf16>
    %cst_64 = arith.constant dense<0.000000e+00> : vector<8x384xf32>
    %202 = tpu.matmul %199, %201, %cst_64 {dimension_numbers = #tpu.dot_dimension_numbers<[1], [0], [0], [1], [0, 0, 1, 1], [], []>} : vector<8x128xbf16>, vector<128x384xbf16>, vector<8x384xf32> -> vector<8x384xf32>
    %203 = vector.extract_strided_slice %202 {offsets = [0, 0], sizes = [8, 128], strides = [1, 1]} : vector<8x384xf32> to vector<8x128xf32>
    %204 = vector.extract_strided_slice %202 {offsets = [0, 128], sizes = [8, 128], strides = [1, 1]} : vector<8x384xf32> to vector<8x128xf32>
    %205 = vector.extract_strided_slice %202 {offsets = [0, 256], sizes = [8, 128], strides = [1, 1]} : vector<8x384xf32> to vector<8x128xf32>
    %206 = tpu.concatenate %203, %203, %203, %203, %203, %203, %203, %203, %203, %203, %203, %203 in 0 : vector<8x128xf32>, vector<8x128xf32>, vector<8x128xf32>, vector<8x128xf32>, vector<8x128xf32>, vector<8x128xf32>, vector<8x128xf32>, vector<8x128xf32>, vector<8x128xf32>, vector<8x128xf32>, vector<8x128xf32>, vector<8x128xf32> -> vector<96x128xf32>
    %207 = arith.mulf %206, %3 : vector<96x128xf32>
    %cst_65 = arith.constant dense<0.000000e+00> : vector<96x8xf32>
    %208 = tpu.matmul %207, %204, %cst_65 {dimension_numbers = #tpu.dot_dimension_numbers<[1], [1], [0], [0], [0, 0, 1, 0], [], []>} : vector<96x128xf32>, vector<8x128xf32>, vector<96x8xf32> -> vector<96x8xf32>
    %cst_66 = arith.constant 0.353553385 : f32
    %209 = vector.broadcast %cst_66 : f32 to vector<96x8xf32>
    %210 = arith.mulf %208, %209 : vector<96x8xf32>
    %211 = vector.broadcast %5 : vector<1x8xf32> to vector<96x8xf32>
    %212 = arith.addf %210, %211 : vector<96x8xf32>
    %cst_67 = arith.constant dense<0xFF800000> : vector<96xf32>
    %213 = vector.multi_reduction <maximumf>, %212, %cst_67 [1] : vector<96x8xf32> to vector<96xf32>
    %214 = vector.shape_cast %213 : vector<96xf32> to vector<96x1xf32>
    %215 = vector.broadcast %214 : vector<96x1xf32> to vector<96x8xf32>
    %216 = arith.subf %212, %215 : vector<96x8xf32>
    %217 = math.exp %216 : vector<96x8xf32>
    %cst_68 = arith.constant dense<0.000000e+00> : vector<96xf32>
    %218 = vector.multi_reduction <add>, %217, %cst_68 [1] : vector<96x8xf32> to vector<96xf32>
    %219 = vector.shape_cast %218 : vector<96xf32> to vector<96x1xf32>
    %220 = tpu.reciprocal %219 {approx = true} : vector<96x1xf32> -> vector<96x1xf32>
    %221 = vector.broadcast %220 : vector<96x1xf32> to vector<96x8xf32>
    %222 = arith.mulf %217, %221 : vector<96x8xf32>
    %cst_69 = arith.constant dense<0.000000e+00> : vector<96x128xf32>
    %223 = tpu.matmul %222, %205, %cst_69 {dimension_numbers = #tpu.dot_dimension_numbers<[1], [0], [0], [1], [0, 0, 1, 1], [], []>} : vector<96x8xf32>, vector<8x128xf32>, vector<96x128xf32> -> vector<96x128xf32>
    %224 = arith.mulf %223, %3 : vector<96x128xf32>
    %225 = vector.extract_strided_slice %224 {offsets = [0, 0], sizes = [8, 128], strides = [1, 1]} : vector<96x128xf32> to vector<8x128xf32>
    %226 = vector.extract_strided_slice %224 {offsets = [8, 0], sizes = [8, 128], strides = [1, 1]} : vector<96x128xf32> to vector<8x128xf32>
    %227 = arith.addf %225, %226 : vector<8x128xf32>
    %228 = vector.extract_strided_slice %224 {offsets = [16, 0], sizes = [8, 128], strides = [1, 1]} : vector<96x128xf32> to vector<8x128xf32>
    %229 = arith.addf %227, %228 : vector<8x128xf32>
    %230 = vector.extract_strided_slice %224 {offsets = [24, 0], sizes = [8, 128], strides = [1, 1]} : vector<96x128xf32> to vector<8x128xf32>
    %231 = arith.addf %229, %230 : vector<8x128xf32>
    %232 = vector.extract_strided_slice %224 {offsets = [32, 0], sizes = [8, 128], strides = [1, 1]} : vector<96x128xf32> to vector<8x128xf32>
    %233 = arith.addf %231, %232 : vector<8x128xf32>
    %234 = vector.extract_strided_slice %224 {offsets = [40, 0], sizes = [8, 128], strides = [1, 1]} : vector<96x128xf32> to vector<8x128xf32>
    %235 = arith.addf %233, %234 : vector<8x128xf32>
    %236 = vector.extract_strided_slice %224 {offsets = [48, 0], sizes = [8, 128], strides = [1, 1]} : vector<96x128xf32> to vector<8x128xf32>
    %237 = arith.addf %235, %236 : vector<8x128xf32>
    %238 = vector.extract_strided_slice %224 {offsets = [56, 0], sizes = [8, 128], strides = [1, 1]} : vector<96x128xf32> to vector<8x128xf32>
    %239 = arith.addf %237, %238 : vector<8x128xf32>
    %240 = vector.extract_strided_slice %224 {offsets = [64, 0], sizes = [8, 128], strides = [1, 1]} : vector<96x128xf32> to vector<8x128xf32>
    %241 = arith.addf %239, %240 : vector<8x128xf32>
    %242 = vector.extract_strided_slice %224 {offsets = [72, 0], sizes = [8, 128], strides = [1, 1]} : vector<96x128xf32> to vector<8x128xf32>
    %243 = arith.addf %241, %242 : vector<8x128xf32>
    %244 = vector.extract_strided_slice %224 {offsets = [80, 0], sizes = [8, 128], strides = [1, 1]} : vector<96x128xf32> to vector<8x128xf32>
    %245 = arith.addf %243, %244 : vector<8x128xf32>
    %246 = vector.extract_strided_slice %224 {offsets = [88, 0], sizes = [8, 128], strides = [1, 1]} : vector<96x128xf32> to vector<8x128xf32>
    %247 = arith.addf %245, %246 : vector<8x128xf32>
    %248 = arith.truncf %247 : vector<8x128xf32> to vector<8x128xbf16>
    %c1_70 = arith.constant 1 : index
    %c0_71 = arith.constant 0 : index
    %c0_72 = arith.constant 0 : index
    %249 = vector.load %arg7[%c1_70, %c0_71, %c0_72] : memref<4x128x128xbf16, #tpu.memory_space<vmem>>, vector<1x128x128xbf16>
    %250 = vector.shape_cast %249 : vector<1x128x128xbf16> to vector<128x128xbf16>
    %cst_73 = arith.constant dense<0.000000e+00> : vector<8x128xf32>
    %251 = tpu.matmul %248, %250, %cst_73 {dimension_numbers = #tpu.dot_dimension_numbers<[1], [0], [0], [1], [0, 0, 1, 1], [], []>} : vector<8x128xbf16>, vector<128x128xbf16>, vector<8x128xf32> -> vector<8x128xf32>
    %252 = vector.broadcast %173 : vector<1x128xf32> to vector<8x128xf32>
    %253 = arith.addf %251, %252 : vector<8x128xf32>
    %254 = tpu.concatenate %253, %253 in 0 : vector<8x128xf32>, vector<8x128xf32> -> vector<16x128xf32>
    %255 = arith.addf %168, %254 : vector<16x128xf32>
    %cst_74 = arith.constant dense<0.000000e+00> : vector<16xf32>
    %256 = vector.multi_reduction <add>, %255, %cst_74 [1] : vector<16x128xf32> to vector<16xf32>
    %257 = vector.shape_cast %256 : vector<16xf32> to vector<16x1xf32>
    %cst_75 = arith.constant 0.010416667 : f32
    %258 = vector.broadcast %cst_75 : f32 to vector<16x1xf32>
    %259 = arith.mulf %257, %258 : vector<16x1xf32>
    %260 = vector.broadcast %259 : vector<16x1xf32> to vector<16x128xf32>
    %261 = arith.subf %255, %260 : vector<16x128xf32>
    %262 = vector.broadcast %4 : vector<1x128xf32> to vector<16x128xf32>
    %263 = arith.mulf %261, %262 : vector<16x128xf32>
    %264 = arith.mulf %263, %263 : vector<16x128xf32>
    %cst_76 = arith.constant dense<0.000000e+00> : vector<16xf32>
    %265 = vector.multi_reduction <add>, %264, %cst_76 [1] : vector<16x128xf32> to vector<16xf32>
    %266 = vector.shape_cast %265 : vector<16xf32> to vector<16x1xf32>
    %cst_77 = arith.constant 0.010416667 : f32
    %267 = vector.broadcast %cst_77 : f32 to vector<16x1xf32>
    %268 = arith.mulf %266, %267 : vector<16x1xf32>
    %cst_78 = arith.constant 9.99999974E-6 : f32
    %269 = vector.broadcast %cst_78 : f32 to vector<16x1xf32>
    %270 = arith.addf %268, %269 : vector<16x1xf32>
    %271 = math.rsqrt %270 : vector<16x1xf32>
    %272 = vector.broadcast %271 : vector<16x1xf32> to vector<16x128xf32>
    %273 = arith.mulf %263, %272 : vector<16x128xf32>
    %274 = vector.broadcast %171 : vector<1x128xf32> to vector<16x128xf32>
    %275 = arith.mulf %273, %274 : vector<16x128xf32>
    %276 = vector.broadcast %172 : vector<1x128xf32> to vector<16x128xf32>
    %277 = arith.addf %275, %276 : vector<16x128xf32>
    %278 = arith.truncf %277 : vector<16x128xf32> to vector<16x128xbf16>
    %c1_79 = arith.constant 1 : index
    %c0_80 = arith.constant 0 : index
    %c0_81 = arith.constant 0 : index
    %279 = vector.load %arg8[%c1_79, %c0_80, %c0_81] : memref<4x128x384xbf16, #tpu.memory_space<vmem>>, vector<1x128x384xbf16>
    %280 = vector.shape_cast %279 : vector<1x128x384xbf16> to vector<128x384xbf16>
    %cst_82 = arith.constant dense<0.000000e+00> : vector<16x384xf32>
    %281 = tpu.matmul %278, %280, %cst_82 {dimension_numbers = #tpu.dot_dimension_numbers<[1], [0], [0], [1], [0, 0, 1, 1], [], []>} : vector<16x128xbf16>, vector<128x384xbf16>, vector<16x384xf32> -> vector<16x384xf32>
    %282 = vector.broadcast %175 : vector<1x384xf32> to vector<16x384xf32>
    %283 = arith.addf %281, %282 : vector<16x384xf32>
    %cst_83 = arith.constant 5.000000e-01 : f32
    %284 = vector.broadcast %cst_83 : f32 to vector<16x384xf32>
    %285 = arith.mulf %284, %283 : vector<16x384xf32>
    %cst_84 = arith.constant 0.707106769 : f32
    %286 = vector.broadcast %cst_84 : f32 to vector<16x384xf32>
    %287 = arith.mulf %283, %286 : vector<16x384xf32>
    %cst_85 = arith.constant 0.000000e+00 : f32
    %288 = vector.broadcast %cst_85 : f32 to vector<16x384xf32>
    %289 = arith.cmpf oge, %287, %288 : vector<16x384xf32>
    %cst_86 = arith.constant 1.000000e+00 : f32
    %cst_87 = arith.constant -1.000000e+00 : f32
    %290 = vector.broadcast %cst_86 : f32 to vector<16x384xf32>
    %291 = vector.broadcast %cst_87 : f32 to vector<16x384xf32>
    %292 = arith.select %289, %290, %291 : vector<16x384xi1>, vector<16x384xf32>
    %293 = math.absf %287 : vector<16x384xf32>
    %cst_88 = arith.constant 0.327591091 : f32
    %294 = vector.broadcast %cst_88 : f32 to vector<16x384xf32>
    %295 = arith.mulf %294, %293 : vector<16x384xf32>
    %cst_89 = arith.constant 1.000000e+00 : f32
    %296 = vector.broadcast %cst_89 : f32 to vector<16x384xf32>
    %297 = arith.addf %296, %295 : vector<16x384xf32>
    %298 = tpu.reciprocal %297 {approx = true} : vector<16x384xf32> -> vector<16x384xf32>
    %cst_90 = arith.constant 1.06140542 : f32
    %299 = vector.broadcast %cst_90 : f32 to vector<16x384xf32>
    %300 = arith.mulf %299, %298 : vector<16x384xf32>
    %cst_91 = arith.constant -1.45315206 : f32
    %301 = vector.broadcast %cst_91 : f32 to vector<16x384xf32>
    %302 = arith.addf %300, %301 : vector<16x384xf32>
    %303 = arith.mulf %302, %298 : vector<16x384xf32>
    %cst_92 = arith.constant 1.42141378 : f32
    %304 = vector.broadcast %cst_92 : f32 to vector<16x384xf32>
    %305 = arith.addf %303, %304 : vector<16x384xf32>
    %306 = arith.mulf %305, %298 : vector<16x384xf32>
    %cst_93 = arith.constant -0.284496725 : f32
    %307 = vector.broadcast %cst_93 : f32 to vector<16x384xf32>
    %308 = arith.addf %306, %307 : vector<16x384xf32>
    %309 = arith.mulf %308, %298 : vector<16x384xf32>
    %cst_94 = arith.constant 0.254829586 : f32
    %310 = vector.broadcast %cst_94 : f32 to vector<16x384xf32>
    %311 = arith.addf %309, %310 : vector<16x384xf32>
    %312 = arith.mulf %311, %298 : vector<16x384xf32>
    %cst_95 = arith.constant 0.000000e+00 : f32
    %313 = vector.broadcast %cst_95 : f32 to vector<16x384xf32>
    %314 = arith.subf %313, %293 : vector<16x384xf32>
    %315 = arith.mulf %314, %293 : vector<16x384xf32>
    %316 = math.exp %315 : vector<16x384xf32>
    %317 = arith.mulf %312, %316 : vector<16x384xf32>
    %cst_96 = arith.constant 1.000000e+00 : f32
    %318 = vector.broadcast %cst_96 : f32 to vector<16x384xf32>
    %319 = arith.subf %318, %317 : vector<16x384xf32>
    %320 = arith.mulf %292, %319 : vector<16x384xf32>
    %cst_97 = arith.constant 1.000000e+00 : f32
    %321 = vector.broadcast %cst_97 : f32 to vector<16x384xf32>
    %322 = arith.addf %321, %320 : vector<16x384xf32>
    %323 = arith.mulf %285, %322 : vector<16x384xf32>
    %324 = arith.truncf %323 : vector<16x384xf32> to vector<16x384xbf16>
    %c1_98 = arith.constant 1 : index
    %c0_99 = arith.constant 0 : index
    %c0_100 = arith.constant 0 : index
    %325 = vector.load %arg9[%c1_98, %c0_99, %c0_100] : memref<4x384x128xbf16, #tpu.memory_space<vmem>>, vector<1x384x128xbf16>
    %326 = vector.shape_cast %325 : vector<1x384x128xbf16> to vector<384x128xbf16>
    %cst_101 = arith.constant dense<0.000000e+00> : vector<16x128xf32>
    %327 = tpu.matmul %324, %326, %cst_101 {dimension_numbers = #tpu.dot_dimension_numbers<[1], [0], [0], [1], [0, 0, 1, 1], [], []>} : vector<16x384xbf16>, vector<384x128xbf16>, vector<16x128xf32> -> vector<16x128xf32>
    %328 = vector.broadcast %174 : vector<1x128xf32> to vector<16x128xf32>
    %329 = arith.addf %327, %328 : vector<16x128xf32>
    %330 = arith.addf %329, %255 : vector<16x128xf32>
    %c2 = arith.constant 2 : index
    %c0_102 = arith.constant 0 : index
    %c0_103 = arith.constant 0 : index
    %331 = vector.load %arg5[%c2, %c0_102, %c0_103] : memref<4x8x384xf32, #tpu.memory_space<vmem>>, vector<1x8x384xf32>
    %332 = vector.shape_cast %331 : vector<1x8x384xf32> to vector<8x384xf32>
    %333 = vector.extract_strided_slice %332 {offsets = [0, 0], sizes = [1, 128], strides = [1, 1]} : vector<8x384xf32> to vector<1x128xf32>
    %334 = vector.extract_strided_slice %332 {offsets = [0, 128], sizes = [1, 128], strides = [1, 1]} : vector<8x384xf32> to vector<1x128xf32>
    %335 = vector.extract_strided_slice %332 {offsets = [0, 256], sizes = [1, 128], strides = [1, 1]} : vector<8x384xf32> to vector<1x128xf32>
    %336 = vector.extract_strided_slice %332 {offsets = [1, 0], sizes = [1, 128], strides = [1, 1]} : vector<8x384xf32> to vector<1x128xf32>
    %337 = vector.extract_strided_slice %332 {offsets = [2, 0], sizes = [1, 384], strides = [1, 1]} : vector<8x384xf32> to vector<1x384xf32>
    %338 = vector.extract_strided_slice %330 {offsets = [0, 0], sizes = [8, 128], strides = [1, 1]} : vector<16x128xf32> to vector<8x128xf32>
    %cst_104 = arith.constant dense<0.000000e+00> : vector<8xf32>
    %339 = vector.multi_reduction <add>, %338, %cst_104 [1] : vector<8x128xf32> to vector<8xf32>
    %340 = vector.shape_cast %339 : vector<8xf32> to vector<8x1xf32>
    %cst_105 = arith.constant 0.010416667 : f32
    %341 = vector.broadcast %cst_105 : f32 to vector<8x1xf32>
    %342 = arith.mulf %340, %341 : vector<8x1xf32>
    %343 = vector.broadcast %342 : vector<8x1xf32> to vector<8x128xf32>
    %344 = arith.subf %338, %343 : vector<8x128xf32>
    %345 = vector.broadcast %4 : vector<1x128xf32> to vector<8x128xf32>
    %346 = arith.mulf %344, %345 : vector<8x128xf32>
    %347 = arith.mulf %346, %346 : vector<8x128xf32>
    %cst_106 = arith.constant dense<0.000000e+00> : vector<8xf32>
    %348 = vector.multi_reduction <add>, %347, %cst_106 [1] : vector<8x128xf32> to vector<8xf32>
    %349 = vector.shape_cast %348 : vector<8xf32> to vector<8x1xf32>
    %cst_107 = arith.constant 0.010416667 : f32
    %350 = vector.broadcast %cst_107 : f32 to vector<8x1xf32>
    %351 = arith.mulf %349, %350 : vector<8x1xf32>
    %cst_108 = arith.constant 9.99999974E-6 : f32
    %352 = vector.broadcast %cst_108 : f32 to vector<8x1xf32>
    %353 = arith.addf %351, %352 : vector<8x1xf32>
    %354 = math.rsqrt %353 : vector<8x1xf32>
    %355 = vector.broadcast %354 : vector<8x1xf32> to vector<8x128xf32>
    %356 = arith.mulf %346, %355 : vector<8x128xf32>
    %357 = vector.broadcast %333 : vector<1x128xf32> to vector<8x128xf32>
    %358 = arith.mulf %356, %357 : vector<8x128xf32>
    %359 = vector.broadcast %334 : vector<1x128xf32> to vector<8x128xf32>
    %360 = arith.addf %358, %359 : vector<8x128xf32>
    %361 = arith.truncf %360 : vector<8x128xf32> to vector<8x128xbf16>
    %c2_109 = arith.constant 2 : index
    %c0_110 = arith.constant 0 : index
    %c0_111 = arith.constant 0 : index
    %362 = vector.load %arg6[%c2_109, %c0_110, %c0_111] : memref<4x128x384xbf16, #tpu.memory_space<vmem>>, vector<1x128x384xbf16>
    %363 = vector.shape_cast %362 : vector<1x128x384xbf16> to vector<128x384xbf16>
    %cst_112 = arith.constant dense<0.000000e+00> : vector<8x384xf32>
    %364 = tpu.matmul %361, %363, %cst_112 {dimension_numbers = #tpu.dot_dimension_numbers<[1], [0], [0], [1], [0, 0, 1, 1], [], []>} : vector<8x128xbf16>, vector<128x384xbf16>, vector<8x384xf32> -> vector<8x384xf32>
    %365 = vector.extract_strided_slice %364 {offsets = [0, 0], sizes = [8, 128], strides = [1, 1]} : vector<8x384xf32> to vector<8x128xf32>
    %366 = vector.extract_strided_slice %364 {offsets = [0, 128], sizes = [8, 128], strides = [1, 1]} : vector<8x384xf32> to vector<8x128xf32>
    %367 = vector.extract_strided_slice %364 {offsets = [0, 256], sizes = [8, 128], strides = [1, 1]} : vector<8x384xf32> to vector<8x128xf32>
    %368 = tpu.concatenate %365, %365, %365, %365, %365, %365, %365, %365, %365, %365, %365, %365 in 0 : vector<8x128xf32>, vector<8x128xf32>, vector<8x128xf32>, vector<8x128xf32>, vector<8x128xf32>, vector<8x128xf32>, vector<8x128xf32>, vector<8x128xf32>, vector<8x128xf32>, vector<8x128xf32>, vector<8x128xf32>, vector<8x128xf32> -> vector<96x128xf32>
    %369 = arith.mulf %368, %3 : vector<96x128xf32>
    %cst_113 = arith.constant dense<0.000000e+00> : vector<96x8xf32>
    %370 = tpu.matmul %369, %366, %cst_113 {dimension_numbers = #tpu.dot_dimension_numbers<[1], [1], [0], [0], [0, 0, 1, 0], [], []>} : vector<96x128xf32>, vector<8x128xf32>, vector<96x8xf32> -> vector<96x8xf32>
    %cst_114 = arith.constant 0.353553385 : f32
    %371 = vector.broadcast %cst_114 : f32 to vector<96x8xf32>
    %372 = arith.mulf %370, %371 : vector<96x8xf32>
    %373 = vector.broadcast %5 : vector<1x8xf32> to vector<96x8xf32>
    %374 = arith.addf %372, %373 : vector<96x8xf32>
    %cst_115 = arith.constant dense<0xFF800000> : vector<96xf32>
    %375 = vector.multi_reduction <maximumf>, %374, %cst_115 [1] : vector<96x8xf32> to vector<96xf32>
    %376 = vector.shape_cast %375 : vector<96xf32> to vector<96x1xf32>
    %377 = vector.broadcast %376 : vector<96x1xf32> to vector<96x8xf32>
    %378 = arith.subf %374, %377 : vector<96x8xf32>
    %379 = math.exp %378 : vector<96x8xf32>
    %cst_116 = arith.constant dense<0.000000e+00> : vector<96xf32>
    %380 = vector.multi_reduction <add>, %379, %cst_116 [1] : vector<96x8xf32> to vector<96xf32>
    %381 = vector.shape_cast %380 : vector<96xf32> to vector<96x1xf32>
    %382 = tpu.reciprocal %381 {approx = true} : vector<96x1xf32> -> vector<96x1xf32>
    %383 = vector.broadcast %382 : vector<96x1xf32> to vector<96x8xf32>
    %384 = arith.mulf %379, %383 : vector<96x8xf32>
    %cst_117 = arith.constant dense<0.000000e+00> : vector<96x128xf32>
    %385 = tpu.matmul %384, %367, %cst_117 {dimension_numbers = #tpu.dot_dimension_numbers<[1], [0], [0], [1], [0, 0, 1, 1], [], []>} : vector<96x8xf32>, vector<8x128xf32>, vector<96x128xf32> -> vector<96x128xf32>
    %386 = arith.mulf %385, %3 : vector<96x128xf32>
    %387 = vector.extract_strided_slice %386 {offsets = [0, 0], sizes = [8, 128], strides = [1, 1]} : vector<96x128xf32> to vector<8x128xf32>
    %388 = vector.extract_strided_slice %386 {offsets = [8, 0], sizes = [8, 128], strides = [1, 1]} : vector<96x128xf32> to vector<8x128xf32>
    %389 = arith.addf %387, %388 : vector<8x128xf32>
    %390 = vector.extract_strided_slice %386 {offsets = [16, 0], sizes = [8, 128], strides = [1, 1]} : vector<96x128xf32> to vector<8x128xf32>
    %391 = arith.addf %389, %390 : vector<8x128xf32>
    %392 = vector.extract_strided_slice %386 {offsets = [24, 0], sizes = [8, 128], strides = [1, 1]} : vector<96x128xf32> to vector<8x128xf32>
    %393 = arith.addf %391, %392 : vector<8x128xf32>
    %394 = vector.extract_strided_slice %386 {offsets = [32, 0], sizes = [8, 128], strides = [1, 1]} : vector<96x128xf32> to vector<8x128xf32>
    %395 = arith.addf %393, %394 : vector<8x128xf32>
    %396 = vector.extract_strided_slice %386 {offsets = [40, 0], sizes = [8, 128], strides = [1, 1]} : vector<96x128xf32> to vector<8x128xf32>
    %397 = arith.addf %395, %396 : vector<8x128xf32>
    %398 = vector.extract_strided_slice %386 {offsets = [48, 0], sizes = [8, 128], strides = [1, 1]} : vector<96x128xf32> to vector<8x128xf32>
    %399 = arith.addf %397, %398 : vector<8x128xf32>
    %400 = vector.extract_strided_slice %386 {offsets = [56, 0], sizes = [8, 128], strides = [1, 1]} : vector<96x128xf32> to vector<8x128xf32>
    %401 = arith.addf %399, %400 : vector<8x128xf32>
    %402 = vector.extract_strided_slice %386 {offsets = [64, 0], sizes = [8, 128], strides = [1, 1]} : vector<96x128xf32> to vector<8x128xf32>
    %403 = arith.addf %401, %402 : vector<8x128xf32>
    %404 = vector.extract_strided_slice %386 {offsets = [72, 0], sizes = [8, 128], strides = [1, 1]} : vector<96x128xf32> to vector<8x128xf32>
    %405 = arith.addf %403, %404 : vector<8x128xf32>
    %406 = vector.extract_strided_slice %386 {offsets = [80, 0], sizes = [8, 128], strides = [1, 1]} : vector<96x128xf32> to vector<8x128xf32>
    %407 = arith.addf %405, %406 : vector<8x128xf32>
    %408 = vector.extract_strided_slice %386 {offsets = [88, 0], sizes = [8, 128], strides = [1, 1]} : vector<96x128xf32> to vector<8x128xf32>
    %409 = arith.addf %407, %408 : vector<8x128xf32>
    %410 = arith.truncf %409 : vector<8x128xf32> to vector<8x128xbf16>
    %c2_118 = arith.constant 2 : index
    %c0_119 = arith.constant 0 : index
    %c0_120 = arith.constant 0 : index
    %411 = vector.load %arg7[%c2_118, %c0_119, %c0_120] : memref<4x128x128xbf16, #tpu.memory_space<vmem>>, vector<1x128x128xbf16>
    %412 = vector.shape_cast %411 : vector<1x128x128xbf16> to vector<128x128xbf16>
    %cst_121 = arith.constant dense<0.000000e+00> : vector<8x128xf32>
    %413 = tpu.matmul %410, %412, %cst_121 {dimension_numbers = #tpu.dot_dimension_numbers<[1], [0], [0], [1], [0, 0, 1, 1], [], []>} : vector<8x128xbf16>, vector<128x128xbf16>, vector<8x128xf32> -> vector<8x128xf32>
    %414 = vector.broadcast %335 : vector<1x128xf32> to vector<8x128xf32>
    %415 = arith.addf %413, %414 : vector<8x128xf32>
    %416 = tpu.concatenate %415, %415 in 0 : vector<8x128xf32>, vector<8x128xf32> -> vector<16x128xf32>
    %417 = arith.addf %330, %416 : vector<16x128xf32>
    %cst_122 = arith.constant dense<0.000000e+00> : vector<16xf32>
    %418 = vector.multi_reduction <add>, %417, %cst_122 [1] : vector<16x128xf32> to vector<16xf32>
    %419 = vector.shape_cast %418 : vector<16xf32> to vector<16x1xf32>
    %cst_123 = arith.constant 0.010416667 : f32
    %420 = vector.broadcast %cst_123 : f32 to vector<16x1xf32>
    %421 = arith.mulf %419, %420 : vector<16x1xf32>
    %422 = vector.broadcast %421 : vector<16x1xf32> to vector<16x128xf32>
    %423 = arith.subf %417, %422 : vector<16x128xf32>
    %424 = vector.broadcast %4 : vector<1x128xf32> to vector<16x128xf32>
    %425 = arith.mulf %423, %424 : vector<16x128xf32>
    %426 = arith.mulf %425, %425 : vector<16x128xf32>
    %cst_124 = arith.constant dense<0.000000e+00> : vector<16xf32>
    %427 = vector.multi_reduction <add>, %426, %cst_124 [1] : vector<16x128xf32> to vector<16xf32>
    %428 = vector.shape_cast %427 : vector<16xf32> to vector<16x1xf32>
    %cst_125 = arith.constant 0.010416667 : f32
    %429 = vector.broadcast %cst_125 : f32 to vector<16x1xf32>
    %430 = arith.mulf %428, %429 : vector<16x1xf32>
    %cst_126 = arith.constant 9.99999974E-6 : f32
    %431 = vector.broadcast %cst_126 : f32 to vector<16x1xf32>
    %432 = arith.addf %430, %431 : vector<16x1xf32>
    %433 = math.rsqrt %432 : vector<16x1xf32>
    %434 = vector.broadcast %433 : vector<16x1xf32> to vector<16x128xf32>
    %435 = arith.mulf %425, %434 : vector<16x128xf32>
    %436 = vector.broadcast %333 : vector<1x128xf32> to vector<16x128xf32>
    %437 = arith.mulf %435, %436 : vector<16x128xf32>
    %438 = vector.broadcast %334 : vector<1x128xf32> to vector<16x128xf32>
    %439 = arith.addf %437, %438 : vector<16x128xf32>
    %440 = arith.truncf %439 : vector<16x128xf32> to vector<16x128xbf16>
    %c2_127 = arith.constant 2 : index
    %c0_128 = arith.constant 0 : index
    %c0_129 = arith.constant 0 : index
    %441 = vector.load %arg8[%c2_127, %c0_128, %c0_129] : memref<4x128x384xbf16, #tpu.memory_space<vmem>>, vector<1x128x384xbf16>
    %442 = vector.shape_cast %441 : vector<1x128x384xbf16> to vector<128x384xbf16>
    %cst_130 = arith.constant dense<0.000000e+00> : vector<16x384xf32>
    %443 = tpu.matmul %440, %442, %cst_130 {dimension_numbers = #tpu.dot_dimension_numbers<[1], [0], [0], [1], [0, 0, 1, 1], [], []>} : vector<16x128xbf16>, vector<128x384xbf16>, vector<16x384xf32> -> vector<16x384xf32>
    %444 = vector.broadcast %337 : vector<1x384xf32> to vector<16x384xf32>
    %445 = arith.addf %443, %444 : vector<16x384xf32>
    %cst_131 = arith.constant 5.000000e-01 : f32
    %446 = vector.broadcast %cst_131 : f32 to vector<16x384xf32>
    %447 = arith.mulf %446, %445 : vector<16x384xf32>
    %cst_132 = arith.constant 0.707106769 : f32
    %448 = vector.broadcast %cst_132 : f32 to vector<16x384xf32>
    %449 = arith.mulf %445, %448 : vector<16x384xf32>
    %cst_133 = arith.constant 0.000000e+00 : f32
    %450 = vector.broadcast %cst_133 : f32 to vector<16x384xf32>
    %451 = arith.cmpf oge, %449, %450 : vector<16x384xf32>
    %cst_134 = arith.constant 1.000000e+00 : f32
    %cst_135 = arith.constant -1.000000e+00 : f32
    %452 = vector.broadcast %cst_134 : f32 to vector<16x384xf32>
    %453 = vector.broadcast %cst_135 : f32 to vector<16x384xf32>
    %454 = arith.select %451, %452, %453 : vector<16x384xi1>, vector<16x384xf32>
    %455 = math.absf %449 : vector<16x384xf32>
    %cst_136 = arith.constant 0.327591091 : f32
    %456 = vector.broadcast %cst_136 : f32 to vector<16x384xf32>
    %457 = arith.mulf %456, %455 : vector<16x384xf32>
    %cst_137 = arith.constant 1.000000e+00 : f32
    %458 = vector.broadcast %cst_137 : f32 to vector<16x384xf32>
    %459 = arith.addf %458, %457 : vector<16x384xf32>
    %460 = tpu.reciprocal %459 {approx = true} : vector<16x384xf32> -> vector<16x384xf32>
    %cst_138 = arith.constant 1.06140542 : f32
    %461 = vector.broadcast %cst_138 : f32 to vector<16x384xf32>
    %462 = arith.mulf %461, %460 : vector<16x384xf32>
    %cst_139 = arith.constant -1.45315206 : f32
    %463 = vector.broadcast %cst_139 : f32 to vector<16x384xf32>
    %464 = arith.addf %462, %463 : vector<16x384xf32>
    %465 = arith.mulf %464, %460 : vector<16x384xf32>
    %cst_140 = arith.constant 1.42141378 : f32
    %466 = vector.broadcast %cst_140 : f32 to vector<16x384xf32>
    %467 = arith.addf %465, %466 : vector<16x384xf32>
    %468 = arith.mulf %467, %460 : vector<16x384xf32>
    %cst_141 = arith.constant -0.284496725 : f32
    %469 = vector.broadcast %cst_141 : f32 to vector<16x384xf32>
    %470 = arith.addf %468, %469 : vector<16x384xf32>
    %471 = arith.mulf %470, %460 : vector<16x384xf32>
    %cst_142 = arith.constant 0.254829586 : f32
    %472 = vector.broadcast %cst_142 : f32 to vector<16x384xf32>
    %473 = arith.addf %471, %472 : vector<16x384xf32>
    %474 = arith.mulf %473, %460 : vector<16x384xf32>
    %cst_143 = arith.constant 0.000000e+00 : f32
    %475 = vector.broadcast %cst_143 : f32 to vector<16x384xf32>
    %476 = arith.subf %475, %455 : vector<16x384xf32>
    %477 = arith.mulf %476, %455 : vector<16x384xf32>
    %478 = math.exp %477 : vector<16x384xf32>
    %479 = arith.mulf %474, %478 : vector<16x384xf32>
    %cst_144 = arith.constant 1.000000e+00 : f32
    %480 = vector.broadcast %cst_144 : f32 to vector<16x384xf32>
    %481 = arith.subf %480, %479 : vector<16x384xf32>
    %482 = arith.mulf %454, %481 : vector<16x384xf32>
    %cst_145 = arith.constant 1.000000e+00 : f32
    %483 = vector.broadcast %cst_145 : f32 to vector<16x384xf32>
    %484 = arith.addf %483, %482 : vector<16x384xf32>
    %485 = arith.mulf %447, %484 : vector<16x384xf32>
    %486 = arith.truncf %485 : vector<16x384xf32> to vector<16x384xbf16>
    %c2_146 = arith.constant 2 : index
    %c0_147 = arith.constant 0 : index
    %c0_148 = arith.constant 0 : index
    %487 = vector.load %arg9[%c2_146, %c0_147, %c0_148] : memref<4x384x128xbf16, #tpu.memory_space<vmem>>, vector<1x384x128xbf16>
    %488 = vector.shape_cast %487 : vector<1x384x128xbf16> to vector<384x128xbf16>
    %cst_149 = arith.constant dense<0.000000e+00> : vector<16x128xf32>
    %489 = tpu.matmul %486, %488, %cst_149 {dimension_numbers = #tpu.dot_dimension_numbers<[1], [0], [0], [1], [0, 0, 1, 1], [], []>} : vector<16x384xbf16>, vector<384x128xbf16>, vector<16x128xf32> -> vector<16x128xf32>
    %490 = vector.broadcast %336 : vector<1x128xf32> to vector<16x128xf32>
    %491 = arith.addf %489, %490 : vector<16x128xf32>
    %492 = arith.addf %491, %417 : vector<16x128xf32>
    %c3 = arith.constant 3 : index
    %c0_150 = arith.constant 0 : index
    %c0_151 = arith.constant 0 : index
    %493 = vector.load %arg5[%c3, %c0_150, %c0_151] : memref<4x8x384xf32, #tpu.memory_space<vmem>>, vector<1x8x384xf32>
    %494 = vector.shape_cast %493 : vector<1x8x384xf32> to vector<8x384xf32>
    %495 = vector.extract_strided_slice %494 {offsets = [0, 0], sizes = [1, 128], strides = [1, 1]} : vector<8x384xf32> to vector<1x128xf32>
    %496 = vector.extract_strided_slice %494 {offsets = [0, 128], sizes = [1, 128], strides = [1, 1]} : vector<8x384xf32> to vector<1x128xf32>
    %497 = vector.extract_strided_slice %494 {offsets = [0, 256], sizes = [1, 128], strides = [1, 1]} : vector<8x384xf32> to vector<1x128xf32>
    %498 = vector.extract_strided_slice %494 {offsets = [1, 0], sizes = [1, 128], strides = [1, 1]} : vector<8x384xf32> to vector<1x128xf32>
    %499 = vector.extract_strided_slice %494 {offsets = [2, 0], sizes = [1, 384], strides = [1, 1]} : vector<8x384xf32> to vector<1x384xf32>
    %500 = vector.extract_strided_slice %492 {offsets = [0, 0], sizes = [8, 128], strides = [1, 1]} : vector<16x128xf32> to vector<8x128xf32>
    %cst_152 = arith.constant dense<0.000000e+00> : vector<8xf32>
    %501 = vector.multi_reduction <add>, %500, %cst_152 [1] : vector<8x128xf32> to vector<8xf32>
    %502 = vector.shape_cast %501 : vector<8xf32> to vector<8x1xf32>
    %cst_153 = arith.constant 0.010416667 : f32
    %503 = vector.broadcast %cst_153 : f32 to vector<8x1xf32>
    %504 = arith.mulf %502, %503 : vector<8x1xf32>
    %505 = vector.broadcast %504 : vector<8x1xf32> to vector<8x128xf32>
    %506 = arith.subf %500, %505 : vector<8x128xf32>
    %507 = vector.broadcast %4 : vector<1x128xf32> to vector<8x128xf32>
    %508 = arith.mulf %506, %507 : vector<8x128xf32>
    %509 = arith.mulf %508, %508 : vector<8x128xf32>
    %cst_154 = arith.constant dense<0.000000e+00> : vector<8xf32>
    %510 = vector.multi_reduction <add>, %509, %cst_154 [1] : vector<8x128xf32> to vector<8xf32>
    %511 = vector.shape_cast %510 : vector<8xf32> to vector<8x1xf32>
    %cst_155 = arith.constant 0.010416667 : f32
    %512 = vector.broadcast %cst_155 : f32 to vector<8x1xf32>
    %513 = arith.mulf %511, %512 : vector<8x1xf32>
    %cst_156 = arith.constant 9.99999974E-6 : f32
    %514 = vector.broadcast %cst_156 : f32 to vector<8x1xf32>
    %515 = arith.addf %513, %514 : vector<8x1xf32>
    %516 = math.rsqrt %515 : vector<8x1xf32>
    %517 = vector.broadcast %516 : vector<8x1xf32> to vector<8x128xf32>
    %518 = arith.mulf %508, %517 : vector<8x128xf32>
    %519 = vector.broadcast %495 : vector<1x128xf32> to vector<8x128xf32>
    %520 = arith.mulf %518, %519 : vector<8x128xf32>
    %521 = vector.broadcast %496 : vector<1x128xf32> to vector<8x128xf32>
    %522 = arith.addf %520, %521 : vector<8x128xf32>
    %523 = arith.truncf %522 : vector<8x128xf32> to vector<8x128xbf16>
    %c3_157 = arith.constant 3 : index
    %c0_158 = arith.constant 0 : index
    %c0_159 = arith.constant 0 : index
    %524 = vector.load %arg6[%c3_157, %c0_158, %c0_159] : memref<4x128x384xbf16, #tpu.memory_space<vmem>>, vector<1x128x384xbf16>
    %525 = vector.shape_cast %524 : vector<1x128x384xbf16> to vector<128x384xbf16>
    %cst_160 = arith.constant dense<0.000000e+00> : vector<8x384xf32>
    %526 = tpu.matmul %523, %525, %cst_160 {dimension_numbers = #tpu.dot_dimension_numbers<[1], [0], [0], [1], [0, 0, 1, 1], [], []>} : vector<8x128xbf16>, vector<128x384xbf16>, vector<8x384xf32> -> vector<8x384xf32>
    %527 = vector.extract_strided_slice %526 {offsets = [0, 0], sizes = [8, 128], strides = [1, 1]} : vector<8x384xf32> to vector<8x128xf32>
    %528 = vector.extract_strided_slice %526 {offsets = [0, 128], sizes = [8, 128], strides = [1, 1]} : vector<8x384xf32> to vector<8x128xf32>
    %529 = vector.extract_strided_slice %526 {offsets = [0, 256], sizes = [8, 128], strides = [1, 1]} : vector<8x384xf32> to vector<8x128xf32>
    %530 = tpu.concatenate %527, %527, %527, %527, %527, %527, %527, %527, %527, %527, %527, %527 in 0 : vector<8x128xf32>, vector<8x128xf32>, vector<8x128xf32>, vector<8x128xf32>, vector<8x128xf32>, vector<8x128xf32>, vector<8x128xf32>, vector<8x128xf32>, vector<8x128xf32>, vector<8x128xf32>, vector<8x128xf32>, vector<8x128xf32> -> vector<96x128xf32>
    %531 = arith.mulf %530, %3 : vector<96x128xf32>
    %cst_161 = arith.constant dense<0.000000e+00> : vector<96x8xf32>
    %532 = tpu.matmul %531, %528, %cst_161 {dimension_numbers = #tpu.dot_dimension_numbers<[1], [1], [0], [0], [0, 0, 1, 0], [], []>} : vector<96x128xf32>, vector<8x128xf32>, vector<96x8xf32> -> vector<96x8xf32>
    %cst_162 = arith.constant 0.353553385 : f32
    %533 = vector.broadcast %cst_162 : f32 to vector<96x8xf32>
    %534 = arith.mulf %532, %533 : vector<96x8xf32>
    %535 = vector.broadcast %5 : vector<1x8xf32> to vector<96x8xf32>
    %536 = arith.addf %534, %535 : vector<96x8xf32>
    %cst_163 = arith.constant dense<0xFF800000> : vector<96xf32>
    %537 = vector.multi_reduction <maximumf>, %536, %cst_163 [1] : vector<96x8xf32> to vector<96xf32>
    %538 = vector.shape_cast %537 : vector<96xf32> to vector<96x1xf32>
    %539 = vector.broadcast %538 : vector<96x1xf32> to vector<96x8xf32>
    %540 = arith.subf %536, %539 : vector<96x8xf32>
    %541 = math.exp %540 : vector<96x8xf32>
    %cst_164 = arith.constant dense<0.000000e+00> : vector<96xf32>
    %542 = vector.multi_reduction <add>, %541, %cst_164 [1] : vector<96x8xf32> to vector<96xf32>
    %543 = vector.shape_cast %542 : vector<96xf32> to vector<96x1xf32>
    %544 = tpu.reciprocal %543 {approx = true} : vector<96x1xf32> -> vector<96x1xf32>
    %545 = vector.broadcast %544 : vector<96x1xf32> to vector<96x8xf32>
    %546 = arith.mulf %541, %545 : vector<96x8xf32>
    %cst_165 = arith.constant dense<0.000000e+00> : vector<96x128xf32>
    %547 = tpu.matmul %546, %529, %cst_165 {dimension_numbers = #tpu.dot_dimension_numbers<[1], [0], [0], [1], [0, 0, 1, 1], [], []>} : vector<96x8xf32>, vector<8x128xf32>, vector<96x128xf32> -> vector<96x128xf32>
    %548 = arith.mulf %547, %3 : vector<96x128xf32>
    %549 = vector.extract_strided_slice %548 {offsets = [0, 0], sizes = [8, 128], strides = [1, 1]} : vector<96x128xf32> to vector<8x128xf32>
    %550 = vector.extract_strided_slice %548 {offsets = [8, 0], sizes = [8, 128], strides = [1, 1]} : vector<96x128xf32> to vector<8x128xf32>
    %551 = arith.addf %549, %550 : vector<8x128xf32>
    %552 = vector.extract_strided_slice %548 {offsets = [16, 0], sizes = [8, 128], strides = [1, 1]} : vector<96x128xf32> to vector<8x128xf32>
    %553 = arith.addf %551, %552 : vector<8x128xf32>
    %554 = vector.extract_strided_slice %548 {offsets = [24, 0], sizes = [8, 128], strides = [1, 1]} : vector<96x128xf32> to vector<8x128xf32>
    %555 = arith.addf %553, %554 : vector<8x128xf32>
    %556 = vector.extract_strided_slice %548 {offsets = [32, 0], sizes = [8, 128], strides = [1, 1]} : vector<96x128xf32> to vector<8x128xf32>
    %557 = arith.addf %555, %556 : vector<8x128xf32>
    %558 = vector.extract_strided_slice %548 {offsets = [40, 0], sizes = [8, 128], strides = [1, 1]} : vector<96x128xf32> to vector<8x128xf32>
    %559 = arith.addf %557, %558 : vector<8x128xf32>
    %560 = vector.extract_strided_slice %548 {offsets = [48, 0], sizes = [8, 128], strides = [1, 1]} : vector<96x128xf32> to vector<8x128xf32>
    %561 = arith.addf %559, %560 : vector<8x128xf32>
    %562 = vector.extract_strided_slice %548 {offsets = [56, 0], sizes = [8, 128], strides = [1, 1]} : vector<96x128xf32> to vector<8x128xf32>
    %563 = arith.addf %561, %562 : vector<8x128xf32>
    %564 = vector.extract_strided_slice %548 {offsets = [64, 0], sizes = [8, 128], strides = [1, 1]} : vector<96x128xf32> to vector<8x128xf32>
    %565 = arith.addf %563, %564 : vector<8x128xf32>
    %566 = vector.extract_strided_slice %548 {offsets = [72, 0], sizes = [8, 128], strides = [1, 1]} : vector<96x128xf32> to vector<8x128xf32>
    %567 = arith.addf %565, %566 : vector<8x128xf32>
    %568 = vector.extract_strided_slice %548 {offsets = [80, 0], sizes = [8, 128], strides = [1, 1]} : vector<96x128xf32> to vector<8x128xf32>
    %569 = arith.addf %567, %568 : vector<8x128xf32>
    %570 = vector.extract_strided_slice %548 {offsets = [88, 0], sizes = [8, 128], strides = [1, 1]} : vector<96x128xf32> to vector<8x128xf32>
    %571 = arith.addf %569, %570 : vector<8x128xf32>
    %572 = arith.truncf %571 : vector<8x128xf32> to vector<8x128xbf16>
    %c3_166 = arith.constant 3 : index
    %c0_167 = arith.constant 0 : index
    %c0_168 = arith.constant 0 : index
    %573 = vector.load %arg7[%c3_166, %c0_167, %c0_168] : memref<4x128x128xbf16, #tpu.memory_space<vmem>>, vector<1x128x128xbf16>
    %574 = vector.shape_cast %573 : vector<1x128x128xbf16> to vector<128x128xbf16>
    %cst_169 = arith.constant dense<0.000000e+00> : vector<8x128xf32>
    %575 = tpu.matmul %572, %574, %cst_169 {dimension_numbers = #tpu.dot_dimension_numbers<[1], [0], [0], [1], [0, 0, 1, 1], [], []>} : vector<8x128xbf16>, vector<128x128xbf16>, vector<8x128xf32> -> vector<8x128xf32>
    %576 = vector.broadcast %497 : vector<1x128xf32> to vector<8x128xf32>
    %577 = arith.addf %575, %576 : vector<8x128xf32>
    %578 = tpu.concatenate %577, %577 in 0 : vector<8x128xf32>, vector<8x128xf32> -> vector<16x128xf32>
    %579 = arith.addf %492, %578 : vector<16x128xf32>
    %cst_170 = arith.constant dense<0.000000e+00> : vector<16xf32>
    %580 = vector.multi_reduction <add>, %579, %cst_170 [1] : vector<16x128xf32> to vector<16xf32>
    %581 = vector.shape_cast %580 : vector<16xf32> to vector<16x1xf32>
    %cst_171 = arith.constant 0.010416667 : f32
    %582 = vector.broadcast %cst_171 : f32 to vector<16x1xf32>
    %583 = arith.mulf %581, %582 : vector<16x1xf32>
    %584 = vector.broadcast %583 : vector<16x1xf32> to vector<16x128xf32>
    %585 = arith.subf %579, %584 : vector<16x128xf32>
    %586 = vector.broadcast %4 : vector<1x128xf32> to vector<16x128xf32>
    %587 = arith.mulf %585, %586 : vector<16x128xf32>
    %588 = arith.mulf %587, %587 : vector<16x128xf32>
    %cst_172 = arith.constant dense<0.000000e+00> : vector<16xf32>
    %589 = vector.multi_reduction <add>, %588, %cst_172 [1] : vector<16x128xf32> to vector<16xf32>
    %590 = vector.shape_cast %589 : vector<16xf32> to vector<16x1xf32>
    %cst_173 = arith.constant 0.010416667 : f32
    %591 = vector.broadcast %cst_173 : f32 to vector<16x1xf32>
    %592 = arith.mulf %590, %591 : vector<16x1xf32>
    %cst_174 = arith.constant 9.99999974E-6 : f32
    %593 = vector.broadcast %cst_174 : f32 to vector<16x1xf32>
    %594 = arith.addf %592, %593 : vector<16x1xf32>
    %595 = math.rsqrt %594 : vector<16x1xf32>
    %596 = vector.broadcast %595 : vector<16x1xf32> to vector<16x128xf32>
    %597 = arith.mulf %587, %596 : vector<16x128xf32>
    %598 = vector.broadcast %495 : vector<1x128xf32> to vector<16x128xf32>
    %599 = arith.mulf %597, %598 : vector<16x128xf32>
    %600 = vector.broadcast %496 : vector<1x128xf32> to vector<16x128xf32>
    %601 = arith.addf %599, %600 : vector<16x128xf32>
    %602 = arith.truncf %601 : vector<16x128xf32> to vector<16x128xbf16>
    %c3_175 = arith.constant 3 : index
    %c0_176 = arith.constant 0 : index
    %c0_177 = arith.constant 0 : index
    %603 = vector.load %arg8[%c3_175, %c0_176, %c0_177] : memref<4x128x384xbf16, #tpu.memory_space<vmem>>, vector<1x128x384xbf16>
    %604 = vector.shape_cast %603 : vector<1x128x384xbf16> to vector<128x384xbf16>
    %cst_178 = arith.constant dense<0.000000e+00> : vector<16x384xf32>
    %605 = tpu.matmul %602, %604, %cst_178 {dimension_numbers = #tpu.dot_dimension_numbers<[1], [0], [0], [1], [0, 0, 1, 1], [], []>} : vector<16x128xbf16>, vector<128x384xbf16>, vector<16x384xf32> -> vector<16x384xf32>
    %606 = vector.broadcast %499 : vector<1x384xf32> to vector<16x384xf32>
    %607 = arith.addf %605, %606 : vector<16x384xf32>
    %cst_179 = arith.constant 5.000000e-01 : f32
    %608 = vector.broadcast %cst_179 : f32 to vector<16x384xf32>
    %609 = arith.mulf %608, %607 : vector<16x384xf32>
    %cst_180 = arith.constant 0.707106769 : f32
    %610 = vector.broadcast %cst_180 : f32 to vector<16x384xf32>
    %611 = arith.mulf %607, %610 : vector<16x384xf32>
    %cst_181 = arith.constant 0.000000e+00 : f32
    %612 = vector.broadcast %cst_181 : f32 to vector<16x384xf32>
    %613 = arith.cmpf oge, %611, %612 : vector<16x384xf32>
    %cst_182 = arith.constant 1.000000e+00 : f32
    %cst_183 = arith.constant -1.000000e+00 : f32
    %614 = vector.broadcast %cst_182 : f32 to vector<16x384xf32>
    %615 = vector.broadcast %cst_183 : f32 to vector<16x384xf32>
    %616 = arith.select %613, %614, %615 : vector<16x384xi1>, vector<16x384xf32>
    %617 = math.absf %611 : vector<16x384xf32>
    %cst_184 = arith.constant 0.327591091 : f32
    %618 = vector.broadcast %cst_184 : f32 to vector<16x384xf32>
    %619 = arith.mulf %618, %617 : vector<16x384xf32>
    %cst_185 = arith.constant 1.000000e+00 : f32
    %620 = vector.broadcast %cst_185 : f32 to vector<16x384xf32>
    %621 = arith.addf %620, %619 : vector<16x384xf32>
    %622 = tpu.reciprocal %621 {approx = true} : vector<16x384xf32> -> vector<16x384xf32>
    %cst_186 = arith.constant 1.06140542 : f32
    %623 = vector.broadcast %cst_186 : f32 to vector<16x384xf32>
    %624 = arith.mulf %623, %622 : vector<16x384xf32>
    %cst_187 = arith.constant -1.45315206 : f32
    %625 = vector.broadcast %cst_187 : f32 to vector<16x384xf32>
    %626 = arith.addf %624, %625 : vector<16x384xf32>
    %627 = arith.mulf %626, %622 : vector<16x384xf32>
    %cst_188 = arith.constant 1.42141378 : f32
    %628 = vector.broadcast %cst_188 : f32 to vector<16x384xf32>
    %629 = arith.addf %627, %628 : vector<16x384xf32>
    %630 = arith.mulf %629, %622 : vector<16x384xf32>
    %cst_189 = arith.constant -0.284496725 : f32
    %631 = vector.broadcast %cst_189 : f32 to vector<16x384xf32>
    %632 = arith.addf %630, %631 : vector<16x384xf32>
    %633 = arith.mulf %632, %622 : vector<16x384xf32>
    %cst_190 = arith.constant 0.254829586 : f32
    %634 = vector.broadcast %cst_190 : f32 to vector<16x384xf32>
    %635 = arith.addf %633, %634 : vector<16x384xf32>
    %636 = arith.mulf %635, %622 : vector<16x384xf32>
    %cst_191 = arith.constant 0.000000e+00 : f32
    %637 = vector.broadcast %cst_191 : f32 to vector<16x384xf32>
    %638 = arith.subf %637, %617 : vector<16x384xf32>
    %639 = arith.mulf %638, %617 : vector<16x384xf32>
    %640 = math.exp %639 : vector<16x384xf32>
    %641 = arith.mulf %636, %640 : vector<16x384xf32>
    %cst_192 = arith.constant 1.000000e+00 : f32
    %642 = vector.broadcast %cst_192 : f32 to vector<16x384xf32>
    %643 = arith.subf %642, %641 : vector<16x384xf32>
    %644 = arith.mulf %616, %643 : vector<16x384xf32>
    %cst_193 = arith.constant 1.000000e+00 : f32
    %645 = vector.broadcast %cst_193 : f32 to vector<16x384xf32>
    %646 = arith.addf %645, %644 : vector<16x384xf32>
    %647 = arith.mulf %609, %646 : vector<16x384xf32>
    %648 = arith.truncf %647 : vector<16x384xf32> to vector<16x384xbf16>
    %c3_194 = arith.constant 3 : index
    %c0_195 = arith.constant 0 : index
    %c0_196 = arith.constant 0 : index
    %649 = vector.load %arg9[%c3_194, %c0_195, %c0_196] : memref<4x384x128xbf16, #tpu.memory_space<vmem>>, vector<1x384x128xbf16>
    %650 = vector.shape_cast %649 : vector<1x384x128xbf16> to vector<384x128xbf16>
    %cst_197 = arith.constant dense<0.000000e+00> : vector<16x128xf32>
    %651 = tpu.matmul %648, %650, %cst_197 {dimension_numbers = #tpu.dot_dimension_numbers<[1], [0], [0], [1], [0, 0, 1, 1], [], []>} : vector<16x384xbf16>, vector<384x128xbf16>, vector<16x128xf32> -> vector<16x128xf32>
    %652 = vector.broadcast %498 : vector<1x128xf32> to vector<16x128xf32>
    %653 = arith.addf %651, %652 : vector<16x128xf32>
    %654 = arith.addf %653, %579 : vector<16x128xf32>
    %c0_198 = arith.constant 0 : index
    %c0_199 = arith.constant 0 : index
    %655 = vector.load %arg10[%c0_198, %c0_199] : memref<16x128xf32, #tpu.memory_space<vmem>>, vector<16x128xf32>
    tpu.vector_store %arg10[%c0_198, %c0_199], %654 {strides = array<i32>} : memref<16x128xf32, #tpu.memory_space<vmem>>, vector<16x128xf32>,
    return
  }
  func.func @transform_0(%arg0: i32) -> (i32, i32) {
    %c0_i32 = arith.constant 0 : i32
    %c0_i32_0 = arith.constant 0 : i32
    %c0_i32_1 = arith.constant 0 : i32
    return %c0_i32, %c0_i32_0 : i32, i32
  }
  func.func @transform_1(%arg0: i32) -> (i32, i32) {
    %c0_i32 = arith.constant 0 : i32
    %c0_i32_0 = arith.constant 0 : i32
    %c0_i32_1 = arith.constant 0 : i32
    return %c0_i32, %c0_i32_0 : i32, i32
  }
  func.func @transform_2(%arg0: i32) -> (i32, i32) {
    %c0_i32 = arith.constant 0 : i32
    %c0_i32_0 = arith.constant 0 : i32
    %c0_i32_1 = arith.constant 0 : i32
    return %c0_i32, %c0_i32_0 : i32, i32
  }
  func.func @transform_3(%arg0: i32) -> (i32, i32) {
    %c0_i32 = arith.constant 0 : i32
    %c0_i32_0 = arith.constant 0 : i32
    %c0_i32_1 = arith.constant 0 : i32
    return %c0_i32, %c0_i32_0 : i32, i32
  }
  func.func @transform_4(%arg0: i32) -> (i32, i32, i32) {
    %c0_i32 = arith.constant 0 : i32
    %c0_i32_0 = arith.constant 0 : i32
    %c0_i32_1 = arith.constant 0 : i32
    return %arg0, %c0_i32, %c0_i32_0 : i32, i32, i32
  }
  func.func @transform_5(%arg0: i32) -> (i32, i32, i32) {
    %c0_i32 = arith.constant 0 : i32
    %c0_i32_0 = arith.constant 0 : i32
    %c0_i32_1 = arith.constant 0 : i32
    return %arg0, %c0_i32, %c0_i32_0 : i32, i32, i32
  }
  func.func @transform_6(%arg0: i32) -> (i32, i32, i32) {
    %c0_i32 = arith.constant 0 : i32
    %c0_i32_0 = arith.constant 0 : i32
    %c0_i32_1 = arith.constant 0 : i32
    return %arg0, %c0_i32, %c0_i32_0 : i32, i32, i32
  }
  func.func @transform_7(%arg0: i32) -> (i32, i32, i32) {
    %c0_i32 = arith.constant 0 : i32
    %c0_i32_0 = arith.constant 0 : i32
    %c0_i32_1 = arith.constant 0 : i32
    return %arg0, %c0_i32, %c0_i32_0 : i32, i32, i32
  }
  func.func @transform_8(%arg0: i32) -> (i32, i32, i32) {
    %c0_i32 = arith.constant 0 : i32
    %c0_i32_0 = arith.constant 0 : i32
    %c0_i32_1 = arith.constant 0 : i32
    return %arg0, %c0_i32, %c0_i32_0 : i32, i32, i32
  }
  func.func @transform_9(%arg0: i32) -> (i32, i32) {
    %c0_i32 = arith.constant 0 : i32
    %c0_i32_0 = arith.constant 0 : i32
    %c0_i32_1 = arith.constant 0 : i32
    return %c0_i32, %c0_i32_0 : i32, i32
  }
}

</mosaic_0001>

<bundles_post_ra>
// kernel: vit_forward.1
= control target key start
LH: loop header
LB: loop body
LE: loop exit
PB: predicated region body
PF: predicated region fallthrough
CT: control target
= control target key end

     0   :  { %s10004_s30 = smov 0   ;;  %s12002_s0 = inlined_call_operand.vmem [shape: bf16[16,768], index: 0, kind: input, shape index: {}]   ;;  %s12003_s1 = inlined_call_operand.vmem [shape: bf16[768,128], index: 1, kind: input, shape index: {}]   ;;  %s12004_s2 = inlined_call_operand.vmem [shape: f32[16,128], index: 2, kind: input, shape index: {}]   ;;  %s12005_s3 = inlined_call_operand.vmem [shape: f32[104,128], index: 3, kind: input, shape index: {}]   ;;  %s12006_s4 = inlined_call_operand.vmem [shape: f32[12,8,384], index: 4, kind: input, shape index: {}]   ;;  %s12007_s5 = inlined_call_operand.vmem [shape: bf16[12,128,384], index: 5, kind: input, shape index: {}]   ;;  %s12008_s6 = inlined_call_operand.vmem [shape: bf16[12,128,128], index: 6, kind: input, shape index: {}]   ;;  %s12009_s7 = inlined_call_operand.vmem [shape: bf16[12,128,384], index: 7, kind: input, shape index: {}]   ;;  %s12010_s8 = inlined_call_operand.vmem [shape: bf16[12,384,128], index: 8, kind: input, shape index: {}]   ;;  %s12011_s9 = inlined_call_operand.vmem [shape: f32[16,128], index: 9, kind: output, shape index: {}]  }
   0x1 LB: > { %s7409_s10 = sadd.s32 4294967295, %s9948_s30   ;;  %p7412_p0 = scmp.ge.s32.totalorder %s9948_s30, 1  ;;  %s9948_s30 = sphi %s10004_s30, %s19_s30  }
   0x2   : > { %p332_p1 = scmp.lt.s32.totalorder %s9948_s30, 4 }
   0x4   : > { %p333_p2 = pnand %p7412_p0, %p332_p1 }
   0x5   : > { %s7413_s11 = sshll.u32 (!%p333_p2), %s7409_s10, 2  ;;  %p7424_p4 = scmp.ne.s32.totalorder (!%p333_p2), %s7409_s10, 0 }
   0x6   : > { %336 = sbr.rel (%p333_p2) target bundleno = 9626 (0x259a), region = 56  ;;  %p389_p3 = scmp.lt.s32.totalorder (!%p333_p2), %s7413_s11, 11 }
   0xd   : > { %s12013_s11 = smov (!%p389_p3, %s7413_s11), 11  ;;  %427 = sbr.rel (%p7424_p4) target bundleno = 299 (0x12b), region = 60 }
   0xe   : > { %s9127_s12 = smul.u32 24, %s12013_s11  ;;  %s8244_s13 = sshll.u32 %s12013_s11, 6  ;;  %v9141_v0 = vld [vmem:[%s12003_s1 + $0x40] sm:$0xff] (!%p7424_p4)   ;;  %v9145_v4 = vld [vmem:[%s12003_s1 + $0x48] sm:$0xff] (!%p7424_p4)   ;;  %v9149_v8 = vld [vmem:[%s12003_s1 + $0x50] sm:$0xff] (!%p7424_p4)  }
   0xf   : > { %s9128_s14 = smul.u32 192, %s12013_s11  ;;  %s10015_s17 = scalar_lea.vmem %s12008_s6, %s8244_s13  ;;  %v9142_v1 = vld [vmem:[%s12003_s1] sm:$0xff] (!%p7424_p4)   ;;  %8245 = vmatprep.subr.bf16.mxu0 (!%p7424_p4), %v9141_v0  ;;  %v9146_v5 = vld [vmem:[%s12003_s1 + $0x8] sm:$0xff] (!%p7424_p4)   ;;  %v9150_v9 = vld [vmem:[%s12003_s1 + $0x10] sm:$0xff] (!%p7424_p4)  }
  0x10   : > { %s10020_s20 = scalar_lea.vmem %s12006_s4, %s9127_s12  ;;  %v9143_v2 = vld [vmem:[%s12003_s1 + $0xc0] sm:$0xff] (!%p7424_p4)   ;;  %8246 = vmatpush3.bf16.msra.mxu0 (!%p7424_p4), %v9142_v1  ;;  %v9147_v6 = vld [vmem:[%s12003_s1 + $0xc8] sm:$0xff] (!%p7424_p4)   ;;  %v9151_v10 = vld [vmem:[%s12003_s1 + $0xd0] sm:$0xff] (!%p7424_p4)  }
  0x11   : > { %s10025_s23 = scalar_lea.vmem %s12007_s5, %s9128_s14  ;;  %s10030_s26 = scalar_lea.vmem %s12009_s7, %s9128_s14  ;;  %v9144_v3 = vld [vmem:[%s12003_s1 + $0x80] sm:$0xff] (!%p7424_p4)   ;;  %8267 = vmatprep.subr.bf16.mxu1 (!%p7424_p4), %v9143_v2  ;;  %8247 = vmatprep.subr.bf16.mxu0 (!%p7424_p4), %v9145_v4  ;;  %v9148_v7 = vld [vmem:[%s12003_s1 + $0x88] sm:$0xff] (!%p7424_p4)   ;;  %v9152_v11 = vld [vmem:[%s12003_s1 + $0x90] sm:$0xff] (!%p7424_p4)  }
  0x12   : > { %s10035_s29 = scalar_lea.vmem %s12010_s8, %s9128_s14  ;;  %8268 = vmatpush3.bf16.msra.mxu1 (!%p7424_p4), %v9144_v3  ;;  %v9153_v12 = vld [vmem:[%s12003_s1 + $0x58] sm:$0xff] (!%p7424_p4)   ;;  %v9157_v16 = vld [vmem:[%s12003_s1 + $0x60] sm:$0xff] (!%p7424_p4)   ;;  %v9161_v20 = vld [vmem:[%s12003_s1 + $0x68] sm:$0xff] (!%p7424_p4)  }
  0x13   : > { %8269 = vmatprep.subr.bf16.mxu1 (!%p7424_p4), %v9147_v6  ;;  %v9154_v13 = vld [vmem:[%s12003_s1 + $0x18] sm:$0xff] (!%p7424_p4)   ;;  %v9158_v17 = vld [vmem:[%s12003_s1 + $0x20] sm:$0xff] (!%p7424_p4)   ;;  %v9162_v21 = vld [vmem:[%s12003_s1 + $0x28] sm:$0xff] (!%p7424_p4)  }
  0x14   : > { %8248 = vmatpush3.bf16.msra.mxu0 %v9146_v5  ;;  %v9155_v14 = vld [vmem:[%s12003_s1 + $0xd8] sm:$0xff]   ;;  %v9159_v18 = vld [vmem:[%s12003_s1 + $0xe0] sm:$0xff]   ;;  %v9163_v22 = vld [vmem:[%s12003_s1 + $0xe8] sm:$0xff]  }
  0x15   : > { %8249 = vmatprep.subr.bf16.mxu0 %v9149_v8  ;;  %v9156_v15 = vld [vmem:[%s12003_s1 + $0x98] sm:$0xff]   ;;  %v9160_v19 = vld [vmem:[%s12003_s1 + $0xa0] sm:$0xff]   ;;  %v9164_v23 = vld [vmem:[%s12003_s1 + $0xa8] sm:$0xff]  }
  0x16   : > { %8270 = vmatpush3.bf16.msra.mxu1 %v9148_v7  ;;  %v9165_v24 = vld [vmem:[%s12003_s1 + $0x70] sm:$0xff]   ;;  %v9169_v28 = vld [vmem:[%s12003_s1 + $0x78] sm:$0xff]   ;;  %v9176_v34 = vld [vmem:[%s12003_s1 + $0x140] sm:$0xff]  }
  0x17   : > { %8271 = vmatprep.subr.bf16.mxu1 %v9151_v10  ;;  %v9166_v25 = vld [vmem:[%s12003_s1 + $0x30] sm:$0xff]   ;;  %v9170_v29 = vld [vmem:[%s12003_s1 + $0x38] sm:$0xff]   ;;  %v9177_v35 = vld [vmem:[%s12002_s0 + $0x8] ss:$24 sps:$4 sm:$0xff]  }
  0x18   : > { %8250 = vmatpush3.bf16.msra.mxu0 %v9150_v9  ;;  %v9167_v26 = vld [vmem:[%s12003_s1 + $0xf0] sm:$0xff]   ;;  %v9171_v30 = vld [vmem:[%s12003_s1 + $0xf8] sm:$0xff]   ;;  %v9179_v36 = vld [vmem:[%s12002_s0 + $0xc] ss:$24 sps:$4 sm:$0xff]  }
  0x19   : > { %8251 = vmatprep.subr.bf16.mxu0 %v9153_v12  ;;  %v9168_v27 = vld [vmem:[%s12003_s1 + $0xb0] sm:$0xff]   ;;  %v9172_v31 = vld [vmem:[%s12002_s0] ss:$24 sps:$4 sm:$0xff]   ;;  %v9174_v32 = vld [vmem:[%s12002_s0 + $0x4] ss:$24 sps:$4 sm:$0xff]   ;;  %923 = vmatprep.mubr.bf16.mxu1 %v9179_v36 }
  0x1a   : > { %8272 = vmatpush3.bf16.msra.mxu1 %v9152_v11  ;;  %v9175_v33 = vld [vmem:[%s12003_s1 + $0xb8] sm:$0xff]   ;;  %882 = vmatprep.mubr.bf16.mxu0 %v9174_v32  ;;  %v9180_v37 = vld [vmem:[%s12003_s1 + $0x100] sm:$0xff]   ;;  %v9181_v38 = vld [vmem:[%s12003_s1 + $0x148] sm:$0xff]  }
  0x1b   : > { %8273 = vmatprep.subr.bf16.mxu1 %v9155_v14  ;;  %v9182_v39 = vld [vmem:[%s12003_s1 + $0x108] sm:$0xff]   ;;  %v9183_v40 = vld [vmem:[%s12003_s1 + $0x150] sm:$0xff]   ;;  %v9185_v42 = vld [vmem:[%s12003_s1 + $0x158] sm:$0xff]  }
  0x1c   : > { %8252 = vmatpush3.bf16.msra.mxu0 %v9154_v13  ;;  %v9184_v41 = vld [vmem:[%s12003_s1 + $0x110] sm:$0xff]   ;;  %v9186_v43 = vld [vmem:[%s12003_s1 + $0x118] sm:$0xff]   ;;  %v9187_v44 = vld [vmem:[%s12003_s1 + $0x160] sm:$0xff]  }
  0x1d   : > { %8253 = vmatprep.subr.bf16.mxu0 %v9157_v16  ;;  %v9188_v45 = vld [vmem:[%s12003_s1 + $0x120] sm:$0xff]   ;;  %v9189_v46 = vld [vmem:[%s12003_s1 + $0x168] sm:$0xff]   ;;  %v9191_v49 = vld [vmem:[%s12003_s1 + $0x170] sm:$0xff]  }
  0x1e   : > { %8274 = vmatpush3.bf16.msra.mxu1 %v9156_v15  ;;  %v9197_v47 = vld [vmem:[%s12002_s0 + $0x14] ss:$24 sps:$4 sm:$0xff]   ;;  %v9193_v51 = vld [vmem:[%s12003_s1 + $0x178] sm:$0xff]   ;;  %v9195_v53 = vld [vmem:[%s12002_s0 + $0x10] ss:$24 sps:$4 sm:$0xff]  }
  0x1f   : > { %8275 = vmatprep.subr.bf16.mxu1 %v9159_v18  ;;  %v9190_v48 = vld [vmem:[%s12003_s1 + $0x128] sm:$0xff]   ;;  %v9192_v50 = vld [vmem:[%s12003_s1 + $0x130] sm:$0xff]   ;;  %v9194_v52 = vld [vmem:[%s12003_s1 + $0x138] sm:$0xff]  }
  0x20   : > { %8254 = vmatpush3.bf16.msra.mxu0 %v9158_v17  ;;  %v530_v55 = vld [vmem:[%s12004_s2] sm:$0xff]  ;;  %v531_v60 = vld [vmem:[%s12004_s2 + $0x8] sm:$0xff] }
  0x21   : > { %8255 = vmatprep.subr.bf16.mxu0 %v9161_v20 }
  0x22   : > { %8276 = vmatpush3.bf16.msra.mxu1 %v9160_v19 }
  0x23   : > { %8277 = vmatprep.subr.bf16.mxu1 %v9163_v22 }
  0x24   : > { %8256 = vmatpush3.bf16.msra.mxu0 %v9162_v21 }
  0x25   : > { %8257 = vmatprep.subr.bf16.mxu0 %v9165_v24 }
  0x26   : > { %8278 = vmatpush3.bf16.msra.mxu1 %v9164_v23 }
  0x27   : > { %8279 = vmatprep.subr.bf16.mxu1 %v9167_v26 }
  0x28   : > { %8258 = vmatpush3.bf16.msra.mxu0 %v9166_v25 }
  0x29   : > { %8259 = vmatprep.subr.bf16.mxu0 %v9169_v28 }
  0x2a   : > { %8280 = vmatpush3.bf16.msra.mxu1 %v9168_v27 }
  0x2b   : > { %8281 = vmatprep.subr.bf16.mxu1 %v9171_v30 }
  0x2c   : > { %8260 = vmatpush3.bf16.msra.mxu0 %v9170_v29 }
  0x2d   : > { %8289 = vmatprep.subr.bf16.mxu0 %v9176_v34 }
  0x2e   : > { %8282 = vmatpush3.bf16.msra.mxu1 %v9175_v33 }
  0x2f   : > { %883 = vmatmul.mubr.bf16.vlgmr.msra.gmra.mrb[0].mxu0 %v9172_v31 }
  0x30   : > { %8290 = vmatpush3.bf16.msra.mxu0 %v9180_v37  ;;  %964 = vmatprep.mubr.bf16.mxu0 %v9197_v47 }
  0x31   : > { %924 = vmatmul.mubr.bf16.vlgmr.msra.gmra.mrb[0].mxu1 %v9177_v35  ;;  %8291 = vmatprep.subr.bf16.mxu0 %v9181_v38 }
  0x34   : > { %8292 = vmatpush3.bf16.msra.mxu0 %v9182_v39 }
  0x35   : > { %8293 = vmatprep.subr.bf16.mxu0 %v9183_v40 }
  0x38   : > { %8294 = vmatpush3.bf16.msra.mxu0 %v9184_v41 }
  0x39   : > { %8295 = vmatprep.subr.bf16.mxu0 %v9185_v42 }
  0x3c   : > { %8296 = vmatpush3.bf16.msra.mxu0 %v9186_v43 }
  0x3d   : > { %8297 = vmatprep.subr.bf16.mxu0 %v9187_v44 }
  0x40   : > { %8298 = vmatpush3.bf16.msra.mxu0 %v9188_v45 }
  0x41   : > { %8299 = vmatprep.subr.bf16.mxu0 %v9189_v46 }
  0x44   : > { %8300 = vmatpush3.bf16.msra.mxu0 %v9190_v48 }
  0x45   : > { %8301 = vmatprep.subr.bf16.mxu0 %v9191_v49 }
  0x48   : > { %8302 = vmatpush3.bf16.msra.mxu0 %v9192_v50 }
  0x49   : > { %8303 = vmatprep.subr.bf16.mxu0 %v9193_v51 }
  0x4c   : > { %8304 = vmatpush3.bf16.msra.mxu0 %v9194_v52 }
  0x4f   : > { %965 = vmatmul.mubr.bf16.vlgmr.msra.gmra.mrb[4].mxu0 %v9195_v53 }
 0x102   : > { %v8261_v54 = vpop.f32.mrb[0].mxu0 }
 0x103   : > { %v8262_v56 = vpop.f32.mrb[1].mxu0 }
 0x104   : > { %v8263_v57 = vadd.f32 %v8262_v56, %v8261_v54  ;;  %v8264_v58 = vpop.f32.mrb[2].mxu0  ;;  %v8283_v59 = vpop.f32.mrb[0].mxu1 }
 0x105   : > { %v8265_v61 = vpop.f32.mrb[3].mxu0  ;;  %v8284_v0 = vpop.f32.mrb[1].mxu1 }
 0x106   : > { %v885_v62 = vadd.f32 %v8263_v57, %v530_v55  ;;  %v8266_v63 = vadd.f32 %v8265_v61, %v8264_v58  ;;  %v8285_v1 = vadd.f32 %v8284_v0, %v8283_v59  ;;  %v8286_v2 = vpop.f32.mrb[2].mxu1 }
 0x107   : > { %v8287_v4 = vpop.f32.mrb[3].mxu1 }
 0x108   : > { %v888_v3 = vadd.f32 %v8266_v63, %v531_v60  ;;  %v926_v5 = vadd.f32 %v8285_v1, %v885_v62  ;;  %v8288_v6 = vadd.f32 %v8287_v4, %v8286_v2 }
 0x10a   : > { %v929_v7 = vadd.f32 %v8288_v6, %v888_v3 }
 0x122   : > { %v8305_v8 = vpop.f32.mrb[4].mxu0 }
 0x123   : > { %v8306_v9 = vpop.f32.mrb[5].mxu0 }
 0x124   : > { %v8307_v10 = vadd.f32 %v8306_v9, %v8305_v8  ;;  %v8308_v11 = vpop.f32.mrb[6].mxu0 }
 0x125   : > { %v8309_v12 = vpop.f32.mrb[7].mxu0 }
 0x126   : > { %v967_v13 = vadd.f32 %v8307_v10, %v926_v5  ;;  %v8310_v14 = vadd.f32 %v8309_v12, %v8308_v11 }
 0x128   : > { %973 = vst [vmem:[%s12011_s9] sm:$0xff] %v967_v13  ;;  %v970_v15 = vadd.f32 %v8310_v14, %v929_v7 }
 0x12a   : > { %974 = vst [vmem:[%s12011_s9 + $0x8] sm:$0xff] %v970_v15 }
 0x12b PF: > { %v9198_v17 = vld [vmem:[%s10025_s23 + $0x4] ss:$12 sps:$4 sm:$0xff]   ;;  %v9200_v18 = vld [vmem:[%s10025_s23] ss:$12 sps:$4 sm:$0xff]   ;;  %v9950_v19 = vmov 0.0   ;;  %v9951_v44 = vmov 0   ;;  %v1010_v51 = vlaneseq }
 0x12c   : > { %8647 = vmatprep.subr.bf16.mxu1 %v9950_v19  ;;  %v9201_v20 = vld [vmem:[%s10025_s23 + $0x8] ss:$12 sps:$4 sm:$0xff]   ;;  %v9204_v22 = vld [vmem:[%s10025_s23 + $0x18] ss:$12 sps:$4 sm:$0xff]   ;;  %1181 = vmatprep.subr.bf16.mxu0 %v9198_v17  ;;  %v9205_v23 = vld [vmem:[%s10025_s23 + $0x20] ss:$12 sps:$4 sm:$0xff]  }
 0x12d   : > { %v9202_v21 = vld [vmem:[%s10025_s23 + $0x1c] ss:$12 sps:$4 sm:$0xff]   ;;  %v9206_v24 = vld [vmem:[%s10025_s23 + $0x34] ss:$12 sps:$4 sm:$0xff]   ;;  %1182 = vmatpush1.bf16.msra.mxu0 %v9200_v18  ;;  %8648 = vmatpush3.bf16.msra.mxu1 %v9201_v20  ;;  %v9209_v32 = vld [vmem:[%s10025_s23 + $0x38] ss:$12 sps:$4 sm:$0xff]  }
 0x12e   : > { %1183 = vmatprep.subr.bf16.mxu0 %v9202_v21  ;;  %8649 = vmatprep.subr.bf16.mxu1 %v9950_v19  ;;  %v7479_v26 = vld [vmem:[%s12005_s3 + $0x60] ss:$0 sm:$0xff]  ;;  %v9208_v31 = vld [vmem:[%s10025_s23 + $0x30] ss:$12 sps:$4 sm:$0xff]   ;;  %v9210_v33 = vld [vmem:[%s10025_s23 + $0x4c] ss:$12 sps:$4 sm:$0xff]  }
 0x12f   : > { %v989_v16 = vld [vmem:[%s12011_s9] sm:$0xff]  ;;  %v9212_v34 = vld [vmem:[%s10025_s23 + $0x48] ss:$12 sps:$4 sm:$0xff]   ;;  %v9213_v35 = vld [vmem:[%s10025_s23 + $0x50] ss:$12 sps:$4 sm:$0xff]   ;;  %1213 = vmatprep.mubr.bf16.mxu0 %v9951_v44  ;;  %vm9952_vm0 = vmmov 0  }
 0x130   : > { %994 = vadd.xlane.f32.xlu0 %v989_v16  ;;  %v9214_v36 = vld [vmem:[%s10025_s23 + $0x64] ss:$12 sps:$4 sm:$0xff]   ;;  %v9216_v37 = vld [vmem:[%s10025_s23 + $0x60] ss:$12 sps:$4 sm:$0xff]   ;;  %v9217_v38 = vld [vmem:[%s10025_s23 + $0x68] ss:$12 sps:$4 sm:$0xff]   ;;  %8663 = vmatprep.mubr.msk.bf16.mxu1 %vm9952_vm0, %v9950_v19 }
 0x131   : > { %1184 = vmatpush1.bf16.msra.mxu0 %v9204_v22  ;;  %8650 = vmatpush3.bf16.msra.mxu1 %v9205_v23  ;;  %v9218_v39 = vld [vmem:[%s10025_s23 + $0x7c] ss:$12 sps:$4 sm:$0xff]   ;;  %v9220_v40 = vld [vmem:[%s10025_s23 + $0x78] ss:$12 sps:$4 sm:$0xff]   ;;  %v9221_v41 = vld [vmem:[%s10025_s23 + $0x80] ss:$12 sps:$4 sm:$0xff]  }
 0x132   : > { %1185 = vmatprep.subr.bf16.mxu0 %v9206_v24  ;;  %8651 = vmatprep.subr.bf16.mxu1 %v9950_v19  ;;  %v9222_v42 = vld [vmem:[%s10025_s23 + $0x94] ss:$12 sps:$4 sm:$0xff]   ;;  %v9224_v43 = vld [vmem:[%s10025_s23 + $0x90] ss:$12 sps:$4 sm:$0xff]   ;;  %v9225_v45 = vld [vmem:[%s10025_s23 + $0x98] ss:$12 sps:$4 sm:$0xff]  }
 0x133   : > { %v9226_v46 = vld [vmem:[%s10025_s23 + $0xac] ss:$12 sps:$4 sm:$0xff]   ;;  %v9228_v47 = vld [vmem:[%s10025_s23 + $0xa8] ss:$12 sps:$4 sm:$0xff]   ;;  %v9229_v48 = vld [vmem:[%s10025_s23 + $0xb0] ss:$12 sps:$4 sm:$0xff]  }
 0x134   : > { %v10253_v53 = vshrl.u32 %v1010_v51, 7  ;;  %v10259_v55 = vld [vmem:[%s10020_s20] sm:$0xff]  ;;  %v10262_v56 = vld [vmem:[%s10020_s20 + $0x8] sm:$0xff]  ;;  %v10290_v9 = vld [vmem:[%s12005_s3 + $0x10] sm:$0xff]  ;;  %vm1427_vm1 = vcmask 64512  }
 0x135   : > { %1186 = vmatpush1.bf16.msra.mxu0 %v9208_v31  ;;  %8652 = vmatpush3.bf16.msra.mxu1 %v9209_v32  ;;  %v10279_v0 = vld [vmem:[%s12005_s3] sm:$0xff]  ;;  %v10285_v6 = vld [vmem:[%s12005_s3 + $0x8] sm:$0xff]  ;;  %v10297_v14 = vld [vmem:[%s12005_s3 + $0x18] sm:$0xff] }
 0x136   : > { %8653 = vmatprep.subr.bf16.mxu1 %v9950_v19  ;;  %1187 = vmatprep.subr.bf16.mxu0 %v9210_v33  ;;  %v10256_v54 = vsub.s32 0, %v10253_v53  ;;  %v10302_v15 = vld [vmem:[%s12005_s3 + $0x20] sm:$0xff]  ;;  %v10309_v18 = vld [vmem:[%s12005_s3 + $0x28] sm:$0xff]  ;;  %v10314_v20 = vld [vmem:[%s12005_s3 + $0x30] sm:$0xff] }
 0x137   : > { %v10321_v23 = vld [vmem:[%s12005_s3 + $0x38] sm:$0xff]  ;;  %v10326_v24 = vld [vmem:[%s12005_s3 + $0x40] sm:$0xff] }
 0x138   : > { %v10266_v57 = vrot.slane %v10259_v55, %v10256_v54  ;;  %v10270_v60 = vrot.slane %v10262_v56, %v10256_v54  ;;  %v10345_v31 = vld [vmem:[%s12005_s3 + $0x58] sm:$0xff] }
 0x139   : > { %1188 = vmatpush1.bf16.msra.mxu0 %v9212_v34  ;;  %8654 = vmatpush3.bf16.msra.mxu1 %v9213_v35 }
 0x13a   : > { %8655 = vmatprep.subr.bf16.mxu1 %v9950_v19  ;;  %1189 = vmatprep.subr.bf16.mxu0 %v9214_v36  ;;  %v7504_v36 = vld [vmem:[%s12005_s3 + $0x61] ss:$0 sm:$0xff] }
 0x13d   : > { %1190 = vmatpush1.bf16.msra.mxu0 %v9216_v37  ;;  %8656 = vmatpush3.bf16.msra.mxu1 %v9217_v38 }
 0x13e   : > { %1191 = vmatprep.subr.bf16.mxu0 %v9218_v39  ;;  %8657 = vmatprep.subr.bf16.mxu1 %v9950_v19 }
 0x141   : > { %1192 = vmatpush1.bf16.msra.mxu0 %v9220_v40  ;;  %8658 = vmatpush3.bf16.msra.mxu1 %v9221_v41 }
 0x142   : > { %1193 = vmatprep.subr.bf16.mxu0 %v9222_v42  ;;  %8659 = vmatprep.subr.bf16.mxu1 %v9950_v19 }
 0x145   : > { %1194 = vmatpush1.bf16.msra.mxu0 %v9224_v43  ;;  %8660 = vmatpush3.bf16.msra.mxu1 %v9225_v45 }
 0x146   : > { %1195 = vmatprep.subr.bf16.mxu0 %v9226_v46  ;;  %8661 = vmatprep.subr.bf16.mxu1 %v9950_v19 }
 0x149   : > { %1196 = vmatpush1.bf16.msra.mxu0 %v9228_v47  ;;  %8662 = vmatpush3.bf16.msra.mxu1 %v9229_v48 }
 0x14a   : > { %8707 = vmatprep.subr.bf16.mxu0 %v9950_v19 }
 0x1bd   : > { %v995_v25 = vpop.xlane.xlu0 %994 }
 0x1be   : > { %v996_v27 = vmul.f32 0.010416667, %v995_v25 }
 0x1c0   : > { %v997_v28 = vsub.f32 %v989_v16, %v996_v27  ;;  %v10333_v27 = vld [vmem:[%s12005_s3 + $0x48] sm:$0xff] }
 0x1c2   : > { %v1002_v29 = vmul.f32 %v7479_v26, %v997_v28  ;;  %v10338_v28 = vld [vmem:[%s12005_s3 + $0x50] sm:$0xff] }
 0x1c4   : > { %v1003_v30 = vmul.f32 %v1002_v29, %v1002_v29 }
 0x1c6   : > { %1004 = vadd.xlane.f32.xlu0 %v1003_v30 }
 0x253   : > { %v1005_v49 = vpop.xlane.xlu0 %1004 }
 0x254   : > { %v1006_v50 = vmul.f32 0.010416667, %v1005_v49 }
 0x256   : > { %v1007_v52 = vadd.f32 1e-05, %v1006_v50 }
 0x258   : > { %9582 = vrsqrt.f32 %v1007_v52 }
 0x262   : > { %v9583_v58 = vpop.eup %9582 }
 0x263   : > { %v1009_v59 = vmul.f32 %v9583_v58, %v1002_v29 }
 0x265   : > { %v1014_v61 = vmul.f32 %v10266_v57, %v1009_v59 }
 0x267   : > { %v1019_v62 = vadd.f32 %v10270_v60, %v1014_v61 }
 0x269   : > { %v1020_v63 = vpack.c.bf16 %v1019_v62, %v1019_v62 }
 0x26b   : > { %1214 = vmatmul.mubr.bf16.vlgmr.msra.gmra.mrb[0].mxu0 %v1020_v63  ;;  %8664 = vmatmul.mubr.bf16.vlgmr.msra.gmra.mrb[0].mxu1 %v1020_v63 }
 0x26c   : > { %8723 = vmatprep.mubr.msk.bf16.mxu0 %vm9952_vm0, %v9950_v19 }
 0x33e   : > { %v1215_v1 = vpop.f32.mrb[0].mxu0  ;;  %v1256_v2 = vpop.f32.mrb[0].mxu1 }
 0x33f   : > { %v1217_v3 = vpop.f32.mrb[1].mxu0  ;;  %v8665_v4 = vpop.f32.mrb[1].mxu1  ;;  %v1262_v5 = vmul.f32 %v1215_v1, %v10279_v0  ;;  %v1263_v12 = vmul.f32 %v1215_v1, %v10285_v6  ;;  %v1264_v13 = vmul.f32 %v1215_v1, %v10290_v9  ;;  %v1265_v16 = vmul.f32 %v1215_v1, %v10297_v14 }
 0x340   : > { %v1219_v7 = vpop.f32.mrb[2].mxu0  ;;  %v1259_v8 = vpop.f32.mrb[2].mxu1  ;;  %8667 = vmatprep.subr.mxu1 %v1217_v3  ;;  %v1266_v17 = vmul.f32 %v1215_v1, %v10302_v15  ;;  %v1267_v21 = vmul.f32 %v1215_v1, %v10309_v18  ;;  %v1268_v22 = vmul.f32 %v1215_v1, %v10314_v20  ;;  %v1269_v25 = vmul.f32 %v1215_v1, %v10321_v23 }
 0x341   : > { %v1220_v10 = vpop.f32.mrb[3].mxu0  ;;  %v8666_v11 = vpop.f32.mrb[3].mxu1  ;;  %8668 = vmatpush3.xpose.msra.mxu1 %v1217_v3  ;;  %8669 = vmatprep.mubr.f32.mxu1 %v1262_v5  ;;  %v1270_v26 = vmul.f32 %v1215_v1, %v10326_v24  ;;  %v1271_v29 = vmul.f32 %v1215_v1, %v10333_v27  ;;  %v1272_v30 = vmul.f32 %v1215_v1, %v10338_v28 }
 0x342   : > { %8687 = vmatprep.subr.mxu1 %v1256_v2  ;;  %v1273_v32 = vmul.f32 %v1215_v1, %v10345_v31 }
 0x344   : > { %8670 = vmatmul.mubr.f32.vlgmr.msra.gmra.mrb[4].mxu1 %v1263_v12 }
 0x345   : > { %8672 = vmatprep.mubr.f32.mxu1 %v1264_v13  ;;  %8688 = vmatpush3.msra.mxu1 %v1256_v2 }
 0x348   : > { %8673 = vmatmul.mubr.f32.gmra.mrb[6].mxu1 %v1265_v16 }
 0x349   : > { %8675 = vmatprep.mubr.f32.mxu1 %v1266_v17 }
 0x34c   : > { %8676 = vmatmul.mubr.f32.gmra.mrb[8].mxu1 %v1267_v21 }
 0x34d   : > { %8678 = vmatprep.mubr.f32.mxu1 %v1268_v22 }
 0x350   : > { %8679 = vmatmul.mubr.f32.gmra.mrb[10].mxu1 %v1269_v25 }
 0x351   : > { %8681 = vmatprep.mubr.f32.mxu1 %v1270_v26 }
 0x354   : > { %8682 = vmatmul.mubr.f32.gmra.mrb[12].mxu1 %v1271_v29 }
 0x355   : > { %8684 = vmatprep.mubr.f32.mxu1 %v1272_v30 }
 0x358   : > { %8685 = vmatmul.mubr.f32.gmra.mrb[14].mxu1 %v1273_v32 }
 0x417   : > { %v8671_v33 = vpop.f32.mrb[4].mxu1 }
 0x418   : > { %v1400_v34 = vmul.f32 0.35355338, %v8671_v33  ;;  %v1340_v35 = vpop.f32.mrb[5].mxu1 }
 0x419   : > { %v1399_v37 = vmul.f32 0.35355338, %v1340_v35 }
 0x41a   : > { %v1416_v41 = vadd.f32 %v7504_v36, %v1400_v34 }
 0x41b   : > { %v8674_v38 = vpop.f32.mrb[6].mxu1  ;;  %v1415_v39 = vadd.f32 %v7504_v36, %v1399_v37 }
 0x41c   : > { %v1350_v40 = vpop.f32.mrb[7].mxu1  ;;  %v1402_v42 = vmul.f32 0.35355338, %v8674_v38  ;;  %v1431_v49 = vsel %vm1427_vm1, %v1416_v41, -inf }
 0x41d   : > { %v1401_v43 = vmul.f32 0.35355338, %v1350_v40  ;;  %v1428_v45 = vsel %vm1427_vm1, %v1415_v39, -inf }
 0x41e   : > { %1429 = vmax.xlane.f32.xlu1 %v1428_v45  ;;  %v1418_v58 = vadd.f32 %v7504_v36, %v1402_v42 }
 0x41f   : > { %v8677_v46 = vpop.f32.mrb[8].mxu1  ;;  %v1417_v47 = vadd.f32 %v7504_v36, %v1401_v43 }
 0x420   : > { %v1360_v48 = vpop.f32.mrb[9].mxu1  ;;  %v1404_v50 = vmul.f32 0.35355338, %v8677_v46  ;;  %v1437_v2 = vsel %vm1427_vm1, %v1418_v58, -inf }
 0x421   : > { %v1403_v51 = vmul.f32 0.35355338, %v1360_v48  ;;  %v1434_v52 = vsel %vm1427_vm1, %v1417_v47, -inf }
 0x422   : > { %1432 = vmax.xlane.f32.xlu1 %v1431_v49  ;;  %1435 = vmax.xlane.f32.xlu0 %v1434_v52  ;;  %v1420_v4 = vadd.f32 %v7504_v36, %v1404_v50 }
 0x423   : > { %v8680_v59 = vpop.f32.mrb[10].mxu1  ;;  %v1419_v61 = vadd.f32 %v7504_v36, %v1403_v51 }
 0x424   : > { %v1406_v62 = vmul.f32 0.35355338, %v8680_v59  ;;  %v1370_v63 = vpop.f32.mrb[11].mxu1  ;;  %v1443_v13 = vsel %vm1427_vm1, %v1420_v4, -inf }
 0x425   : > { %v1405_v1 = vmul.f32 0.35355338, %v1370_v63  ;;  %v1440_v3 = vsel %vm1427_vm1, %v1419_v61, -inf }
 0x426   : > { %1438 = vmax.xlane.f32.xlu1 %v1437_v2  ;;  %1441 = vmax.xlane.f32.xlu0 %v1440_v3  ;;  %v1422_v10 = vadd.f32 %v7504_v36, %v1406_v62 }
 0x427   : > { %v8683_v5 = vpop.f32.mrb[12].mxu1  ;;  %v1421_v7 = vadd.f32 %v7504_v36, %v1405_v1 }
 0x428   : > { %v1380_v8 = vpop.f32.mrb[13].mxu1  ;;  %v1408_v11 = vmul.f32 0.35355338, %v8683_v5  ;;  %v1449_v25 = vsel %vm1427_vm1, %v1422_v10, -inf }
 0x429   : > { %v1407_v12 = vmul.f32 0.35355338, %v1380_v8  ;;  %v1446_v16 = vsel %vm1427_vm1, %v1421_v7, -inf }
 0x42a   : > { %1444 = vmax.xlane.f32.xlu1 %v1443_v13  ;;  %1447 = vmax.xlane.f32.xlu0 %v1446_v16  ;;  %v1424_v32 = vadd.f32 %v7504_v36, %v1408_v11 }
 0x42b   : > { %v8686_v17 = vpop.f32.mrb[14].mxu1  ;;  %v1423_v21 = vadd.f32 %v7504_v36, %v1407_v12 }
 0x42c   : > { %v1390_v22 = vpop.f32.mrb[15].mxu1  ;;  %v1410_v26 = vmul.f32 0.35355338, %v8686_v17  ;;  %v1455_v34 = vsel %vm1427_vm1, %v1424_v32, -inf }
 0x42d   : > { %v1409_v29 = vmul.f32 0.35355338, %v1390_v22  ;;  %v1452_v30 = vsel %vm1427_vm1, %v1423_v21, -inf }
 0x42e   : > { %1450 = vmax.xlane.f32.xlu1 %v1449_v25  ;;  %1453 = vmax.xlane.f32.xlu0 %v1452_v30  ;;  %v10362_v37 = vadd.f32 %v7504_v36, %v1410_v26 }
 0x42f   : > { %v1425_v33 = vadd.f32 %v7504_v36, %v1409_v29 }
 0x430   : > { %v1461_v38 = vsel %vm1427_vm1, %v10362_v37, -inf }
 0x431   : > { %v1458_v35 = vsel %vm1427_vm1, %v1425_v33, -inf }
 0x432   : > { %1456 = vmax.xlane.f32.xlu1 %v1455_v34  ;;  %1459 = vmax.xlane.f32.xlu0 %v1458_v35 }
 0x436   : > { %1462 = vmax.xlane.f32.xlu1 %v1461_v38 }
 0x4ab   : > { %v1430_v40 = vpop.xlane.xlu1 %1429 }
 0x4ac   : > { %v1464_v42 = vsub.f32 %v1415_v39, %v1430_v40 }
 0x4ae   : > { %v1476_v43 = vmul.f32 1.442695, %v1464_v42 }
 0x4af   : > { %v1433_v45 = vpop.xlane.xlu1 %1432  ;;  %v1436_v46 = vpop.xlane.xlu0 %1435 }
 0x4b0   : > { %9584 = vpow2.f32 %v1476_v43  ;;  %v1465_v48 = vsub.f32 %v1416_v41, %v1433_v45  ;;  %v1466_v49 = vsub.f32 %v1417_v47, %v1436_v46 }
 0x4b2   : > { %v1478_v50 = vmul.f32 1.442695, %v1465_v48  ;;  %v1480_v51 = vmul.f32 1.442695, %v1466_v49 }
 0x4b3   : > { %v1439_v52 = vpop.xlane.xlu1 %1438  ;;  %v1442_v59 = vpop.xlane.xlu0 %1441 }
 0x4b4   : > { %9586 = vpow2.f32 %v1478_v50  ;;  %v1467_v36 = vsub.f32 %v1418_v58, %v1439_v52  ;;  %v1468_v62 = vsub.f32 %v1419_v61, %v1442_v59 }
 0x4b5   : > { %9588 = vpow2.f32 %v1480_v51 }
 0x4b6   : > { %v1482_v63 = vmul.f32 1.442695, %v1467_v36  ;;  %v1484_v1 = vmul.f32 1.442695, %v1468_v62 }
 0x4b7   : > { %v1445_v2 = vpop.xlane.xlu1 %1444  ;;  %v1448_v3 = vpop.xlane.xlu0 %1447 }
 0x4b8   : > { %9590 = vpow2.f32 %v1482_v63  ;;  %v1469_v39 = vsub.f32 %v1420_v4, %v1445_v2  ;;  %v1470_v5 = vsub.f32 %v1421_v7, %v1448_v3  ;;  %v9230_v3 = vld [vmem:[%s10015_s17] sm:$0xff]  }
 0x4b9   : > { %9592 = vpow2.f32 %v1484_v1  ;;  %8708 = vmatpush3.bf16.msra.mxu0 %v9230_v3 }
 0x4ba   : > { %v10366_v8 = vpop.eup %9584  ;;  %v1486_v41 = vmul.f32 1.442695, %v1469_v39  ;;  %v1488_v47 = vmul.f32 1.442695, %v1470_v5  ;;  %8709 = vmatprep.subr.bf16.mxu0 %v9950_v19 }
 0x4bb   : > { %v1451_v11 = vpop.xlane.xlu1 %1450  ;;  %v1454_v12 = vpop.xlane.xlu0 %1453  ;;  %v1500_v13 = vsel %vm1427_vm1, %v10366_v8, 0.0 }
 0x4bc   : > { %9594 = vpow2.f32 %v1486_v41  ;;  %v1471_v58 = vsub.f32 %v1422_v10, %v1451_v11  ;;  %v1472_v61 = vsub.f32 %v1423_v21, %v1454_v12  ;;  %1501 = vadd.xlane.f32.xlu0 %v1500_v13 }
 0x4bd   : > { %9596 = vpow2.f32 %v1488_v47 }
 0x4be   : > { %v10370_v16 = vpop.eup %9586  ;;  %v1490_v17 = vmul.f32 1.442695, %v1471_v58  ;;  %v1492_v4 = vmul.f32 1.442695, %v1472_v61 }
 0x4bf   : > { %v10372_v7 = vpop.eup %9588  ;;  %v1457_v22 = vpop.xlane.xlu1 %1456  ;;  %v1503_v26 = vsel %vm1427_vm1, %v10370_v16, 0.0 }
 0x4c0   : > { %v1460_v25 = vpop.xlane.xlu0 %1459  ;;  %9598 = vpow2.f32 %v1490_v17  ;;  %v1473_v29 = vsub.f32 %v1424_v32, %v1457_v22  ;;  %1504 = vadd.xlane.f32.xlu1 %v1503_v26  ;;  %v1506_v10 = vsel %vm1427_vm1, %v10372_v7, 0.0 }
 0x4c1   : > { %v1474_v30 = vsub.f32 %v1425_v33, %v1460_v25  ;;  %9600 = vpow2.f32 %v1492_v4  ;;  %1507 = vadd.xlane.f32.xlu0 %v1506_v10 }
 0x4c2   : > { %v10378_v21 = vpop.eup %9590  ;;  %v1494_v34 = vmul.f32 1.442695, %v1473_v29 }
 0x4c3   : > { %v1496_v35 = vmul.f32 1.442695, %v1474_v30  ;;  %v10380_v38 = vpop.eup %9592  ;;  %v1463_v40 = vpop.xlane.xlu1 %1462  ;;  %v1509_v42 = vsel %vm1427_vm1, %v10378_v21, 0.0 }
 0x4c4   : > { %9602 = vpow2.f32 %v1494_v34  ;;  %v1475_v32 = vsub.f32 %v10362_v37, %v1463_v40  ;;  %1510 = vadd.xlane.f32.xlu1 %v1509_v42  ;;  %v1512_v33 = vsel %vm1427_vm1, %v10380_v38, 0.0 }
 0x4c5   : > { %9604 = vpow2.f32 %v1496_v35  ;;  %1513 = vadd.xlane.f32.xlu0 %v1512_v33 }
 0x4c6   : > { %v10387_v43 = vpop.eup %9594  ;;  %v1498_v45 = vmul.f32 1.442695, %v1475_v32 }
 0x4c7   : > { %v10389_v46 = vpop.eup %9596  ;;  %v1515_v48 = vsel %vm1427_vm1, %v10387_v43, 0.0 }
 0x4c8   : > { %9606 = vpow2.f32 %v1498_v45  ;;  %1516 = vadd.xlane.f32.xlu1 %v1515_v48  ;;  %v1518_v49 = vsel %vm1427_vm1, %v10389_v46, 0.0 }
 0x4c9   : > { %1519 = vadd.xlane.f32.xlu0 %v1518_v49 }
 0x4ca   : > { %v10395_v37 = vpop.eup %9598 }
 0x4cb   : > { %v10397_v50 = vpop.eup %9600  ;;  %v1521_v51 = vsel %vm1427_vm1, %v10395_v37, 0.0 }
 0x4cc   : > { %1522 = vadd.xlane.f32.xlu1 %v1521_v51  ;;  %v1524_v52 = vsel %vm1427_vm1, %v10397_v50, 0.0 }
 0x4cd   : > { %1525 = vadd.xlane.f32.xlu0 %v1524_v52 }
 0x4ce   : > { %v10403_v59 = vpop.eup %9602 }
 0x4cf   : > { %v10405_v36 = vpop.eup %9604  ;;  %v1527_v62 = vsel %vm1427_vm1, %v10403_v59, 0.0 }
 0x4d0   : > { %1528 = vadd.xlane.f32.xlu1 %v1527_v62  ;;  %v1530_v63 = vsel %vm1427_vm1, %v10405_v36, 0.0  ;;  %v9234_v62 = vld [vmem:[%s10015_s17 + $0x20] sm:$0xff]  }
 0x4d1   : > { %1531 = vadd.xlane.f32.xlu0 %v1530_v63  ;;  %v9235_v63 = vld [vmem:[%s10015_s17 + $0x28] sm:$0xff]  }
 0x4d2   : > { %v10411_v1 = vpop.eup %9606 }
 0x4d3   : > { %v1533_v2 = vsel %vm1427_vm1, %v10411_v1, 0.0 }
 0x4d4   : > { %1534 = vadd.xlane.f32.xlu1 %v1533_v2  ;;  %v9237_v2 = vld [vmem:[%s10015_s17 + $0x38] sm:$0xff]  }
 0x549   : > { %v1502_v39 = vpop.xlane.xlu0 %1501 }
 0x54a   : > { %9608 = vrcp.f32 %v1502_v39 }
 0x54d   : > { %v1505_v5 = vpop.xlane.xlu1 %1504 }
 0x54e   : > { %9610 = vrcp.f32 %v1505_v5  ;;  %v1508_v41 = vpop.xlane.xlu0 %1507 }
 0x54f   : > { %9612 = vrcp.f32 %v1508_v41 }
 0x551   : > { %v1511_v47 = vpop.xlane.xlu1 %1510 }
 0x552   : > { %9614 = vrcp.f32 %v1511_v47  ;;  %v1514_v11 = vpop.xlane.xlu0 %1513 }
 0x553   : > { %9616 = vrcp.f32 %v1514_v11 }
 0x554   : > { %v9609_v12 = vpop.eup %9608 }
 0x555   : > { %v1517_v13 = vpop.xlane.xlu1 %1516  ;;  %v1548_v58 = vmul.f32 %v9609_v12, %v10366_v8 }
 0x556   : > { %9618 = vrcp.f32 %v1517_v13  ;;  %v1520_v61 = vpop.xlane.xlu0 %1519 }
 0x557   : > { %9620 = vrcp.f32 %v1520_v61  ;;  %8689 = vmatprep.mubr.msk.f32.mxu1 %vm1427_vm1, %v1548_v58 }
 0x558   : > { %v9611_v17 = vpop.eup %9610 }
 0x559   : > { %v9613_v4 = vpop.eup %9612  ;;  %v1549_v22 = vmul.f32 %v9611_v17, %v10370_v16  ;;  %v1523_v25 = vpop.xlane.xlu1 %1522 }
 0x55a   : > { %9622 = vrcp.f32 %v1523_v25  ;;  %v1526_v26 = vpop.xlane.xlu0 %1525  ;;  %v1550_v29 = vmul.f32 %v9613_v4, %v10372_v7 }
 0x55b   : > { %9624 = vrcp.f32 %v1526_v26  ;;  %8690 = vmatmul.mubr.msk.f32.vlgmr.msra.gmra.mrb[16].mxu1 %vm1427_vm1, %v1549_v22 }
 0x55c   : > { %v9615_v30 = vpop.eup %9614  ;;  %8692 = vmatprep.mubr.msk.f32.mxu1 %vm1427_vm1, %v1550_v29 }
 0x55d   : > { %v9617_v8 = vpop.eup %9616  ;;  %v1529_v10 = vpop.xlane.xlu1 %1528  ;;  %v1551_v34 = vmul.f32 %v9615_v30, %v10378_v21 }
 0x55e   : > { %9626 = vrcp.f32 %v1529_v10  ;;  %v1532_v35 = vpop.xlane.xlu0 %1531  ;;  %v1552_v40 = vmul.f32 %v9617_v8, %v10380_v38 }
 0x55f   : > { %9628 = vrcp.f32 %v1532_v35  ;;  %8693 = vmatmul.mubr.msk.f32.gmra.mrb[18].mxu1 %vm1427_vm1, %v1551_v34 }
 0x560   : > { %v9619_v16 = vpop.eup %9618  ;;  %8695 = vmatprep.mubr.msk.f32.mxu1 %vm1427_vm1, %v1552_v40 }
 0x561   : > { %v9621_v7 = vpop.eup %9620  ;;  %v1535_v42 = vpop.xlane.xlu1 %1534  ;;  %v1553_v32 = vmul.f32 %v9619_v16, %v10387_v43 }
 0x562   : > { %9630 = vrcp.f32 %v1535_v42  ;;  %v1554_v33 = vmul.f32 %v9621_v7, %v10389_v46 }
 0x563   : > { %8696 = vmatmul.mubr.msk.f32.gmra.mrb[20].mxu1 %vm1427_vm1, %v1553_v32 }
 0x564   : > { %v9623_v21 = vpop.eup %9622  ;;  %8698 = vmatprep.mubr.msk.f32.mxu1 %vm1427_vm1, %v1554_v33 }
 0x565   : > { %v9625_v38 = vpop.eup %9624  ;;  %v1555_v45 = vmul.f32 %v9623_v21, %v10395_v37 }
 0x566   : > { %v1556_v48 = vmul.f32 %v9625_v38, %v10397_v50  ;;  %v9231_v50 = vld [vmem:[%s10015_s17 + $0x8] sm:$0xff]  }
 0x567   : > { %8699 = vmatmul.mubr.msk.f32.gmra.mrb[22].mxu1 %vm1427_vm1, %v1555_v45  ;;  %8710 = vmatpush3.bf16.msra.mxu0 %v9231_v50  ;;  %v9241_v50 = vld [vmem:[%s10030_s26 + $0x8] ss:$12 sps:$4 sm:$0xff]  }
 0x568   : > { %v9627_v49 = vpop.eup %9626  ;;  %8701 = vmatprep.mubr.msk.f32.mxu1 %vm1427_vm1, %v1556_v48  ;;  %8711 = vmatprep.subr.bf16.mxu0 %v9950_v19 }
 0x569   : > { %v9629_v43 = vpop.eup %9628  ;;  %v1557_v46 = vmul.f32 %v9627_v49, %v10403_v59  ;;  %v9232_v59 = vld [vmem:[%s10015_s17 + $0x10] sm:$0xff]   ;;  %v9894_v49 = vld [vmem:[%s12011_s9] sm:$0xff] }
 0x56a   : > { %v1558_v51 = vmul.f32 %v9629_v43, %v10405_v36  ;;  %v9233_v36 = vld [vmem:[%s10015_s17 + $0x18] sm:$0xff]  }
 0x56b   : > { %8702 = vmatmul.mubr.msk.f32.gmra.mrb[24].mxu1 %vm1427_vm1, %v1557_v46  ;;  %8712 = vmatpush3.bf16.msra.mxu0 %v9232_v59  ;;  %v9244_v59 = vld [vmem:[%s10030_s26 + $0x1c] ss:$12 sps:$4 sm:$0xff]  }
 0x56c   : > { %v9631_v52 = vpop.eup %9630  ;;  %8704 = vmatprep.mubr.msk.f32.mxu1 %vm1427_vm1, %v1558_v51  ;;  %8713 = vmatprep.subr.bf16.mxu0 %v9950_v19 }
 0x56d   : > { %v1559_v37 = vmul.f32 %v9631_v52, %v10411_v1  ;;  %v9236_v1 = vld [vmem:[%s10015_s17 + $0x30] sm:$0xff]   ;;  %v9238_v52 = vld [vmem:[%s10030_s26] ss:$12 sps:$4 sm:$0xff]  }
 0x56f   : > { %8705 = vmatmul.mubr.msk.f32.gmra.mrb[26].mxu1 %vm1427_vm1, %v1559_v37  ;;  %8714 = vmatpush3.bf16.msra.mxu0 %v9233_v36  ;;  %v9240_v37 = vld [vmem:[%s10030_s26 + $0x4] ss:$12 sps:$4 sm:$0xff]   ;;  %v9245_v36 = vld [vmem:[%s10030_s26 + $0x20] ss:$12 sps:$4 sm:$0xff]  }
 0x570   : > { %2088 = vmatprep.mubr.bf16.mxu1 %v9951_v44  ;;  %8715 = vmatprep.subr.bf16.mxu0 %v9950_v19 }
 0x571   : > { %2056 = vmatprep.subr.bf16.mxu1 %v9240_v37  ;;  %v9276_v37 = vld [vmem:[%s10035_s29 + $0x90] sm:$0xff]  }
 0x572   : > { %2057 = vmatpush1.bf16.msra.mxu1 %v9238_v52  ;;  %v9275_v52 = vld [vmem:[%s10035_s29 + $0x8] sm:$0xff]  }
 0x573   : > { %8716 = vmatpush3.bf16.msra.mxu0 %v9234_v62  ;;  %v9242_v62 = vld [vmem:[%s10030_s26 + $0x18] ss:$12 sps:$4 sm:$0xff]   ;;  %2058 = vmatprep.subr.bf16.mxu1 %v9244_v59  ;;  %v9278_v59 = vld [vmem:[%s10035_s29 + $0x10] sm:$0xff]  }
 0x574   : > { %8717 = vmatprep.subr.bf16.mxu0 %v9950_v19 }
 0x576   : > { %2059 = vmatpush1.bf16.msra.mxu1 %v9242_v62  ;;  %v9280_v62 = vld [vmem:[%s10035_s29 + $0x58] sm:$0xff]  }
 0x577   : > { %8718 = vmatpush3.bf16.msra.mxu0 %v9235_v63  ;;  %v9248_v63 = vld [vmem:[%s10030_s26 + $0x34] ss:$12 sps:$4 sm:$0xff]  }
 0x578   : > { %8719 = vmatprep.subr.bf16.mxu0 %v9950_v19  ;;  %2060 = vmatprep.subr.bf16.mxu1 %v9248_v63  ;;  %v9281_v63 = vld [vmem:[%s10035_s29 + $0x18] sm:$0xff]  }
 0x57b   : > { %8720 = vmatpush3.bf16.msra.mxu0 %v9236_v1  ;;  %v9246_v1 = vld [vmem:[%s10030_s26 + $0x30] ss:$12 sps:$4 sm:$0xff]  }
 0x57c   : > { %8721 = vmatprep.subr.bf16.mxu0 %v9950_v19  ;;  %2061 = vmatpush1.bf16.msra.mxu1 %v9246_v1  ;;  %v9282_v1 = vld [vmem:[%s10035_s29 + $0xa0] sm:$0xff]  }
 0x57f   : > { %8722 = vmatpush3.bf16.msra.mxu0 %v9237_v2 }
 0x580   : > { %8727 = vmatprep.subr.bf16.mxu0 %v9950_v19 }
 0x62e   : > { %v8691_v3 = vpop.f32.mrb[16].mxu1 }
 0x62f   : > { %v1722_v39 = vmul.f32 %v8691_v3, %v10285_v6  ;;  %v1662_v5 = vpop.f32.mrb[17].mxu1 }
 0x630   : > { %v1721_v41 = vmul.f32 %v1662_v5, %v10279_v0 }
 0x632   : > { %v1733_v47 = vadd.f32 %v1722_v39, %v1721_v41  ;;  %v8694_v11 = vpop.f32.mrb[18].mxu1 }
 0x633   : > { %v1672_v12 = vpop.f32.mrb[19].mxu1  ;;  %v1724_v58 = vmul.f32 %v8694_v11, %v10297_v14  ;;  %v10502_v11 = vld [vmem:[%s12005_s3 + $0x60] ss:$0 sm:$0xff] }
 0x634   : > { %v1723_v13 = vmul.f32 %v1672_v12, %v10290_v9 }
 0x636   : > { %v1734_v61 = vadd.f32 %v1733_v47, %v1723_v13  ;;  %v8697_v17 = vpop.f32.mrb[20].mxu1 }
 0x637   : > { %v1682_v4 = vpop.f32.mrb[21].mxu1  ;;  %v1726_v26 = vmul.f32 %v8697_v17, %v10309_v18  ;;  %v9249_v17 = vld [vmem:[%s10030_s26 + $0x38] ss:$12 sps:$4 sm:$0xff]  }
 0x638   : > { %v1725_v22 = vmul.f32 %v1682_v4, %v10302_v15  ;;  %v1735_v25 = vadd.f32 %v1734_v61, %v1724_v58  ;;  %v9252_v4 = vld [vmem:[%s10030_s26 + $0x4c] ss:$12 sps:$4 sm:$0xff]  }
 0x639   : > { %2062 = vmatprep.subr.bf16.mxu1 %v9252_v4  ;;  %v10567_v4 = vsub.s32 2, %v10253_v53 }
 0x63a   : > { %v1736_v29 = vadd.f32 %v1735_v25, %v1725_v22  ;;  %v8700_v6 = vpop.f32.mrb[22].mxu1  ;;  %v9250_v22 = vld [vmem:[%s10030_s26 + $0x48] ss:$12 sps:$4 sm:$0xff]   ;;  %v9253_v25 = vld [vmem:[%s10030_s26 + $0x50] ss:$12 sps:$4 sm:$0xff]  }
 0x63b   : > { %v1692_v30 = vpop.f32.mrb[23].mxu1  ;;  %v1728_v10 = vmul.f32 %v8700_v6, %v10321_v23  ;;  %2063 = vmatpush1.bf16.msra.mxu1 %v9250_v22  ;;  %v9257_v6 = vld [vmem:[%s10030_s26 + $0x68] ss:$12 sps:$4 sm:$0xff]   ;;  %v1919_v22 = vrot.slane %v10259_v55, %v10567_v4 }
 0x63c   : > { %v1727_v0 = vmul.f32 %v1692_v30, %v10314_v20  ;;  %v1737_v8 = vadd.f32 %v1736_v29, %v1726_v26  ;;  %v9256_v26 = vld [vmem:[%s10030_s26 + $0x64] ss:$12 sps:$4 sm:$0xff]   ;;  %v9254_v29 = vld [vmem:[%s10030_s26 + $0x60] ss:$12 sps:$4 sm:$0xff]   ;;  %v9260_v30 = vld [vmem:[%s10030_s26 + $0x7c] ss:$12 sps:$4 sm:$0xff]  }
 0x63d   : > { %2064 = vmatprep.subr.bf16.mxu1 %v9256_v26  ;;  %v1923_v26 = vrot.slane %v10262_v56, %v10567_v4 }
 0x63e   : > { %v1738_v34 = vadd.f32 %v1737_v8, %v1727_v0  ;;  %v8703_v9 = vpop.f32.mrb[24].mxu1  ;;  %v9258_v0 = vld [vmem:[%s10030_s26 + $0x78] ss:$12 sps:$4 sm:$0xff]   ;;  %v9261_v8 = vld [vmem:[%s10030_s26 + $0x80] ss:$12 sps:$4 sm:$0xff]  }
 0x63f   : > { %v1702_v14 = vpop.f32.mrb[25].mxu1  ;;  %v1730_v15 = vmul.f32 %v8703_v9, %v10333_v27  ;;  %2065 = vmatpush1.bf16.msra.mxu1 %v9254_v29  ;;  %v9265_v9 = vld [vmem:[%s10030_s26 + $0x98] ss:$12 sps:$4 sm:$0xff]  }
 0x640   : > { %v1729_v35 = vmul.f32 %v1702_v14, %v10326_v24  ;;  %v1739_v40 = vadd.f32 %v1738_v34, %v1728_v10  ;;  %v10471_v24 = vld [vmem:[%s10020_s20 + $0x10] sm:$0xff]  ;;  %2066 = vmatprep.subr.bf16.mxu1 %v9260_v30  ;;  %v9268_v14 = vld [vmem:[%s10030_s26 + $0xac] ss:$12 sps:$4 sm:$0xff]  }
 0x641   : > { %v1764_v27 = vrot.slane %v10471_v24, %v10256_v54  ;;  %v9264_v10 = vld [vmem:[%s10030_s26 + $0x94] ss:$12 sps:$4 sm:$0xff]   ;;  %v9262_v34 = vld [vmem:[%s10030_s26 + $0x90] ss:$12 sps:$4 sm:$0xff]  }
 0x642   : > { %v1740_v16 = vadd.f32 %v1739_v40, %v1729_v35  ;;  %v8706_v7 = vpop.f32.mrb[26].mxu1  ;;  %v9266_v35 = vld [vmem:[%s10030_s26 + $0xa8] ss:$12 sps:$4 sm:$0xff]   ;;  %v9269_v40 = vld [vmem:[%s10030_s26 + $0xb0] ss:$12 sps:$4 sm:$0xff]  }
 0x643   : > { %v1712_v18 = vpop.f32.mrb[27].mxu1  ;;  %v1732_v20 = vmul.f32 %v8706_v7, %v10345_v31  ;;  %2067 = vmatpush1.bf16.msra.mxu1 %v9258_v0 }
 0x644   : > { %v1731_v42 = vmul.f32 %v1712_v18, %v10338_v28  ;;  %v1741_v32 = vadd.f32 %v1740_v16, %v1730_v15  ;;  %v990_v28 = vld [vmem:[%s12011_s9 + $0x8] sm:$0xff]  ;;  %2068 = vmatprep.subr.bf16.mxu1 %v9264_v10 }
 0x646   : > { %v1742_v33 = vadd.f32 %v1741_v32, %v1731_v42 }
 0x647   : > { %2069 = vmatpush1.bf16.msra.mxu1 %v9262_v34 }
 0x648   : > { %v1743_v21 = vadd.f32 %v1742_v33, %v1732_v20  ;;  %2070 = vmatprep.subr.bf16.mxu1 %v9268_v14 }
 0x64a   : > { %v1744_v23 = vpack.c.bf16 %v1743_v21, %v1743_v21 }
 0x64b   : > { %2071 = vmatpush1.bf16.msra.mxu1 %v9266_v35 }
 0x64c   : > { %8724 = vmatmul.mubr.bf16.vlgmr.msra.gmra.mrb[4].mxu0 %v1744_v23 }
 0x64d   : > { %8743 = vmatprep.mubr.msk.bf16.mxu0 %vm9952_vm0, %v9950_v19  ;;  %8728 = vmatpush3.bf16.msra.mxu0 %v9241_v50  ;;  %v9277_v50 = vld [vmem:[%s10035_s29 + $0x50] sm:$0xff]  }
 0x64e   : > { %8729 = vmatprep.subr.bf16.mxu0 %v9950_v19 }
 0x651   : > { %8730 = vmatpush3.bf16.msra.mxu0 %v9245_v36  ;;  %v9279_v36 = vld [vmem:[%s10035_s29 + $0x98] sm:$0xff]  }
 0x652   : > { %8731 = vmatprep.subr.bf16.mxu0 %v9950_v19 }
 0x655   : > { %8732 = vmatpush3.bf16.msra.mxu0 %v9249_v17  ;;  %v9293_v17 = vld [vmem:[%s10035_s29 + $0x38] sm:$0xff]  }
 0x656   : > { %8733 = vmatprep.subr.bf16.mxu0 %v9950_v19 }
 0x659   : > { %8734 = vmatpush3.bf16.msra.mxu0 %v9253_v25  ;;  %v1927_v25 = vrot.slane %v10471_v24, %v10567_v4 }
 0x65a   : > { %8735 = vmatprep.subr.bf16.mxu0 %v9950_v19 }
 0x65d   : > { %8736 = vmatpush3.bf16.msra.mxu0 %v9257_v6 }
 0x65e   : > { %8737 = vmatprep.subr.bf16.mxu0 %v9950_v19 }
 0x661   : > { %8738 = vmatpush3.bf16.msra.mxu0 %v9261_v8 }
 0x662   : > { %8739 = vmatprep.subr.bf16.mxu0 %v9950_v19 }
 0x665   : > { %8740 = vmatpush3.bf16.msra.mxu0 %v9265_v9 }
 0x666   : > { %8741 = vmatprep.subr.bf16.mxu0 %v9950_v19 }
 0x669   : > { %8742 = vmatpush3.bf16.msra.mxu0 %v9269_v40 }
 0x66a   : > { %8747 = vmatprep.subr.bf16.mxu0 %v9950_v19 }
 0x71f   : > { %v1847_v31 = vpop.f32.mrb[4].mxu0 }
 0x720   : > { %v1848_v38 = vadd.f32 %v1847_v31, %v1764_v27  ;;  %v8725_v45 = vpop.f32.mrb[5].mxu0 }
 0x721   : > { %v1850_v48 = vpop.f32.mrb[6].mxu0 }
 0x722   : > { %v10481_v43 = vadd.f32 %v9894_v49, %v1848_v38  ;;  %v10483_v46 = vadd.f32 %v1848_v38, %v990_v28  ;;  %v8726_v51 = vpop.f32.mrb[7].mxu0  ;;  %v9270_v48 = vld [vmem:[%s10035_s29 + $0x80] sm:$0xff]  }
 0x723   : > { %v9271_v49 = vld [vmem:[%s10035_s29 + $0x40] sm:$0xff]  }
 0x724   : > { %1857 = vadd.xlane.f32.xlu1 %v10483_v46  ;;  %1855 = vadd.xlane.f32.xlu0 %v10481_v43  ;;  %v9272_v51 = vld [vmem:[%s10035_s29] sm:$0xff]  }
 0x725   : > { %8364 = vmatprep.subr.bf16.mxu1 %v9271_v49 }
 0x7b1   : > { %v1858_v2 = vpop.xlane.xlu1 %1857  ;;  %v1856_v3 = vpop.xlane.xlu0 %1855 }
 0x7b2   : > { %v1860_v39 = vmul.f32 0.010416667, %v1858_v2  ;;  %v1859_v5 = vmul.f32 0.010416667, %v1856_v3  ;;  %v9283_v2 = vld [vmem:[%s10035_s29 + $0x60] sm:$0xff]  }
 0x7b3   : > { %v9284_v3 = vld [vmem:[%s10035_s29 + $0x20] sm:$0xff]  }
 0x7b4   : > { %v1862_v41 = vsub.f32 %v10483_v46, %v1860_v39  ;;  %v1861_v47 = vsub.f32 %v10481_v43, %v1859_v5  ;;  %v9285_v39 = vld [vmem:[%s10035_s29 + $0xa8] sm:$0xff]  }
 0x7b5   : > { %v9286_v5 = vld [vmem:[%s10035_s29 + $0x68] sm:$0xff]  }
 0x7b6   : > { %v1864_v12 = vmul.f32 %v10502_v11, %v1862_v41  ;;  %v1863_v13 = vmul.f32 %v10502_v11, %v1861_v47  ;;  %v9287_v41 = vld [vmem:[%s10035_s29 + $0x28] sm:$0xff]   ;;  %v9288_v47 = vld [vmem:[%s10035_s29 + $0xb0] sm:$0xff]  }
 0x7b8   : > { %v1866_v58 = vmul.f32 %v1864_v12, %v1864_v12  ;;  %v1865_v61 = vmul.f32 %v1863_v13, %v1863_v13 }
 0x7ba   : > { %1869 = vadd.xlane.f32.xlu1 %v1866_v58  ;;  %1867 = vadd.xlane.f32.xlu0 %v1865_v61  ;;  %v9291_v58 = vld [vmem:[%s10035_s29 + $0xb8] sm:$0xff]  }
 0x7bb   : > { %v9292_v61 = vld [vmem:[%s10035_s29 + $0x78] sm:$0xff]  }
 0x847   : > { %v1870_v15 = vpop.xlane.xlu1 %1869  ;;  %v1868_v16 = vpop.xlane.xlu0 %1867 }
 0x848   : > { %v1872_v7 = vmul.f32 0.010416667, %v1870_v15  ;;  %v1871_v18 = vmul.f32 0.010416667, %v1868_v16 }
 0x84a   : > { %v1874_v42 = vadd.f32 1e-05, %v1872_v7  ;;  %v1873_v32 = vadd.f32 1e-05, %v1871_v18 }
 0x84c   : > { %9632 = vrsqrt.f32 %v1874_v42 }
 0x84d   : > { %9634 = vrsqrt.f32 %v1873_v32 }
 0x856   : > { %v9633_v20 = vpop.eup %9632 }
 0x857   : > { %v9635_v33 = vpop.eup %9634  ;;  %v1878_v21 = vmul.f32 %v9633_v20, %v1864_v12  ;;  %v9289_v12 = vld [vmem:[%s10035_s29 + $0x70] sm:$0xff]  }
 0x858   : > { %v1877_v23 = vmul.f32 %v9635_v33, %v1863_v13  ;;  %v9290_v13 = vld [vmem:[%s10035_s29 + $0x30] sm:$0xff]  }
 0x859   : > { %v1880_v27 = vmul.f32 %v1878_v21, %v10266_v57 }
 0x85a   : > { %v1879_v28 = vmul.f32 %v1877_v23, %v10266_v57  ;;  %v9273_v57 = vld [vmem:[%s10035_s29 + $0x88] sm:$0xff]  }
 0x85b   : > { %v1882_v31 = vadd.f32 %v1880_v27, %v10270_v60 }
 0x85c   : > { %v1881_v38 = vadd.f32 %v1879_v28, %v10270_v60  ;;  %v9274_v60 = vld [vmem:[%s10035_s29 + $0x48] sm:$0xff]  }
 0x85e   : > { %v1883_v45 = vpack.c.bf16 %v1882_v31, %v1881_v38 }
 0x860   : > { %2089 = vmatmul.mubr.bf16.vlgmr.msra.gmra.mrb[28].mxu1 %v1883_v45  ;;  %8744 = vmatmul.mubr.bf16.vlgmr.msra.gmra.mrb[8].mxu0 %v1883_v45 }
 0x861   : > { %8763 = vmatprep.mubr.msk.bf16.mxu0 %vm9952_vm0, %v9950_v19  ;;  %8748 = vmatpush3.bf16.msra.mxu0 %v9270_v48 }
 0x862   : > { %8749 = vmatprep.subr.bf16.mxu0 %v9950_v19  ;;  %8365 = vmatpush3.bf16.msra.mxu1 %v9272_v51 }
 0x863   : > { %8366 = vmatprep.subr.bf16.mxu1 %v9274_v60 }
 0x865   : > { %8750 = vmatpush3.bf16.msra.mxu0 %v9273_v57 }
 0x866   : > { %8751 = vmatprep.subr.bf16.mxu0 %v9950_v19  ;;  %8367 = vmatpush3.bf16.msra.mxu1 %v9275_v52 }
 0x867   : > { %8368 = vmatprep.subr.bf16.mxu1 %v9277_v50 }
 0x869   : > { %8752 = vmatpush3.bf16.msra.mxu0 %v9276_v37 }
 0x86a   : > { %8753 = vmatprep.subr.bf16.mxu0 %v9950_v19  ;;  %8369 = vmatpush3.bf16.msra.mxu1 %v9278_v59 }
 0x86b   : > { %8370 = vmatprep.subr.bf16.mxu1 %v9280_v62 }
 0x86d   : > { %8754 = vmatpush3.bf16.msra.mxu0 %v9279_v36 }
 0x86e   : > { %8755 = vmatprep.subr.bf16.mxu0 %v9950_v19  ;;  %8371 = vmatpush3.bf16.msra.mxu1 %v9281_v63 }
 0x86f   : > { %8372 = vmatprep.subr.bf16.mxu1 %v9283_v2 }
 0x871   : > { %8756 = vmatpush3.bf16.msra.mxu0 %v9282_v1 }
 0x872   : > { %8757 = vmatprep.subr.bf16.mxu0 %v9950_v19  ;;  %8373 = vmatpush3.bf16.msra.mxu1 %v9284_v3 }
 0x873   : > { %8374 = vmatprep.subr.bf16.mxu1 %v9286_v5 }
 0x875   : > { %8758 = vmatpush3.bf16.msra.mxu0 %v9285_v39 }
 0x876   : > { %8759 = vmatprep.subr.bf16.mxu0 %v9950_v19  ;;  %8375 = vmatpush3.bf16.msra.mxu1 %v9287_v41 }
 0x877   : > { %8376 = vmatprep.subr.bf16.mxu1 %v9289_v12 }
 0x879   : > { %8760 = vmatpush3.bf16.msra.mxu0 %v9288_v47 }
 0x87a   : > { %8761 = vmatprep.subr.bf16.mxu0 %v9950_v19  ;;  %8377 = vmatpush3.bf16.msra.mxu1 %v9290_v13 }
 0x87b   : > { %8378 = vmatprep.subr.bf16.mxu1 %v9292_v61 }
 0x87d   : > { %8762 = vmatpush3.bf16.msra.mxu0 %v9291_v58 }
 0x87e   : > { %8767 = vmatprep.subr.bf16.mxu0 %v9950_v19  ;;  %8379 = vmatpush3.bf16.msra.mxu1 %v9293_v17 }
 0x933   : > { %v2090_v29 = vpop.f32.mrb[28].mxu1  ;;  %v2133_v6 = vpop.f32.mrb[8].mxu0 }
 0x934   : > { %v10575_v30 = vadd.f32 %v2090_v29, %v1919_v22  ;;  %v10577_v0 = vadd.f32 %v2133_v6, %v1927_v25  ;;  %v2092_v8 = vpop.f32.mrb[29].mxu1  ;;  %v8745_v10 = vpop.f32.mrb[9].mxu0 }
 0x935   : > { %v10579_v34 = vadd.f32 %v2092_v8, %v1923_v26  ;;  %v2094_v9 = vpop.f32.mrb[30].mxu1  ;;  %v2136_v14 = vpop.f32.mrb[10].mxu0 }
 0x936   : > { %v10582_v55 = vmul.f32 0.70710677, %v10575_v30  ;;  %v10585_v24 = vmul.f32 0.70710677, %v10577_v0  ;;  %v2096_v35 = vpop.f32.mrb[31].mxu1  ;;  %v8746_v40 = vpop.f32.mrb[11].mxu0  ;;  %v10593_v18 = vadd.f32 %v2094_v9, %v1919_v22  ;;  %v10595_v20 = vadd.f32 %v2136_v14, %v1927_v25 }
 0x937   : > { %v10588_v56 = vmul.f32 0.70710677, %v10579_v34  ;;  %v10605_v51 = vadd.f32 %v2096_v35, %v1923_v26 }
 0x938   : > { %v2164_v15 = vand.u32 2147483647, %v10582_v55  ;;  %v2166_v16 = vand.u32 2147483647, %v10585_v24  ;;  %v10598_v27 = vmul.f32 0.70710677, %v10593_v18 }
 0x939   : > { %v2165_v7 = vand.u32 2147483647, %v10588_v56  ;;  %v10601_v31 = vmul.f32 0.70710677, %v10595_v20  ;;  %v10608_v37 = vmul.f32 0.70710677, %v10605_v51 }
 0x93a   : > { %v2170_v42 = vmul.f32 0.3275911, %v2164_v15  ;;  %v2172_v32 = vmul.f32 0.3275911, %v2166_v16  ;;  %v2167_v38 = vand.u32 2147483647, %v10598_v27 }
 0x93b   : > { %v2171_v33 = vmul.f32 0.3275911, %v2165_v7  ;;  %v2169_v45 = vand.u32 2147483647, %v10601_v31  ;;  %v2242_v60 = vsub.f32 0.0, %v2164_v15  ;;  %v2244_v50 = vsub.f32 0.0, %v2166_v16 }
 0x93c   : > { %v2176_v21 = vadd.f32 1.0, %v2170_v42  ;;  %v2178_v23 = vadd.f32 1.0, %v2172_v32  ;;  %v2173_v48 = vmul.f32 0.3275911, %v2167_v38  ;;  %v2168_v59 = vand.u32 2147483647, %v10608_v37 }
 0x93d   : > { %v2177_v28 = vadd.f32 1.0, %v2171_v33  ;;  %v2175_v49 = vmul.f32 0.3275911, %v2169_v45  ;;  %v2243_v36 = vsub.f32 0.0, %v2165_v7  ;;  %v2248_v63 = vmul.f32 %v2242_v60, %v2164_v15 }
 0x93e   : > { %9636 = vrcp.f32 %v2176_v21  ;;  %v2179_v57 = vadd.f32 1.0, %v2173_v48  ;;  %v2174_v1 = vmul.f32 0.3275911, %v2168_v59  ;;  %v2250_v39 = vmul.f32 %v2244_v50, %v2166_v16 }
 0x93f   : > { %9638 = vrcp.f32 %v2178_v23  ;;  %v2181_v52 = vadd.f32 1.0, %v2175_v49  ;;  %v2245_v41 = vsub.f32 0.0, %v2167_v38  ;;  %v2249_v13 = vmul.f32 %v2243_v36, %v2165_v7 }
 0x940   : > { %9640 = vrcp.f32 %v2177_v28  ;;  %v2180_v47 = vadd.f32 1.0, %v2174_v1  ;;  %v2254_v61 = vmul.f32 1.442695, %v2248_v63  ;;  %v2247_v22 = vsub.f32 0.0, %v2169_v45 }
 0x941   : > { %9642 = vrcp.f32 %v2179_v57  ;;  %v2258_v26 = vmul.f32 1.442695, %v2250_v39  ;;  %v2251_v8 = vmul.f32 %v2245_v41, %v2167_v38  ;;  %v2256_v35 = vmul.f32 1.442695, %v2249_v13 }
 0x942   : > { %9644 = vrcp.f32 %v2181_v52  ;;  %v2253_v7 = vmul.f32 %v2247_v22, %v2169_v45  ;;  %v2246_v38 = vsub.f32 0.0, %v2168_v59  ;;  %vm2152_vm2 = vcmp.ge.f32.partialorder %v10582_v55, 0.0 }
 0x943   : > { %9646 = vrcp.f32 %v2180_v47  ;;  %v2260_v28 = vmul.f32 1.442695, %v2251_v8  ;;  %vm2154_vm3 = vcmp.ge.f32.partialorder %v10585_v24, 0.0  ;;  %vm2155_vm4 = vcmp.ge.f32.partialorder %v10598_v27, 0.0 }
 0x944   : > { %9648 = vpow2.f32 %v2254_v61  ;;  %v2264_v50 = vmul.f32 1.442695, %v2253_v7  ;;  %vm2157_vm5 = vcmp.ge.f32.partialorder %v10601_v31, 0.0  ;;  %vm2153_vm6 = vcmp.ge.f32.partialorder %v10588_v56, 0.0 }
 0x945   : > { %9650 = vpow2.f32 %v2258_v26  ;;  %vm2156_vm7 = vcmp.ge.f32.partialorder %v10608_v37, 0.0  ;;  %v2141_v56 = vmul.f32 0.5, %v10579_v34  ;;  %v10663_v34 = vsub.s32 1, %v10253_v53 }
 0x946   : > { %9652 = vpow2.f32 %v2256_v35 }
 0x947   : > { %9654 = vpow2.f32 %v2260_v28 }
 0x948   : > { %v9637_v62 = vpop.eup %9636  ;;  %9656 = vpow2.f32 %v2264_v50 }
 0x949   : > { %v9639_v2 = vpop.eup %9638  ;;  %v2188_v3 = vmul.f32 1.0614054, %v9637_v62 }
 0x94a   : > { %v2190_v5 = vmul.f32 1.0614054, %v9639_v2  ;;  %v10611_v58 = vpop.eup %9640 }
 0x94b   : > { %v2194_v12 = vadd.f32 -1.4531521, %v2188_v3  ;;  %v2189_v29 = vmul.f32 1.0614054, %v10611_v58  ;;  %v10614_v10 = vpop.eup %9642 }
 0x94c   : > { %v2196_v17 = vadd.f32 -1.4531521, %v2190_v5  ;;  %v10616_v40 = vpop.eup %9644  ;;  %v2191_v16 = vmul.f32 1.0614054, %v10614_v10 }
 0x94d   : > { %v2200_v25 = vmul.f32 %v9637_v62, %v2194_v12  ;;  %v2195_v14 = vadd.f32 -1.4531521, %v2189_v29  ;;  %v2193_v33 = vmul.f32 1.0614054, %v10616_v40  ;;  %v10624_v1 = vpop.eup %9646  ;;  %v2252_v12 = vmul.f32 %v2246_v38, %v2168_v59 }
 0x94e   : > { %v2202_v6 = vmul.f32 %v9639_v2, %v2196_v17  ;;  %v2197_v23 = vadd.f32 -1.4531521, %v2191_v16  ;;  %v2192_v17 = vmul.f32 1.0614054, %v10624_v1  ;;  %v9649_v29 = vpop.eup %9648 }
 0x94f   : > { %v2206_v9 = vadd.f32 1.4214138, %v2200_v25  ;;  %v2201_v32 = vmul.f32 %v10611_v58, %v2195_v14  ;;  %v2199_v57 = vadd.f32 -1.4531521, %v2193_v33  ;;  %v9651_v14 = vpop.eup %9650  ;;  %v2262_v59 = vmul.f32 1.442695, %v2252_v12 }
 0x950   : > { %v2208_v15 = vadd.f32 1.4214138, %v2202_v6  ;;  %v2203_v52 = vmul.f32 %v10614_v10, %v2197_v23  ;;  %v9653_v28 = vpop.eup %9652 }
 0x951   : > { %v2212_v42 = vmul.f32 %v9637_v62, %v2206_v9  ;;  %v2207_v49 = vadd.f32 1.4214138, %v2201_v32  ;;  %v2205_v63 = vmul.f32 %v10616_v40, %v2199_v57  ;;  %v2198_v9 = vadd.f32 -1.4531521, %v2192_v17 }
 0x952   : > { %v2214_v21 = vmul.f32 %v9639_v2, %v2208_v15  ;;  %v2209_v39 = vadd.f32 1.4214138, %v2203_v52  ;;  %9658 = vpow2.f32 %v2262_v59  ;;  %v9953_v57 = vmov -1.0  }
 0x953   : > { %v2218_v48 = vadd.f32 -0.28449672, %v2212_v42  ;;  %v2213_v45 = vmul.f32 %v10611_v58, %v2207_v49  ;;  %v2211_v47 = vadd.f32 1.4214138, %v2205_v63  ;;  %v2204_v32 = vmul.f32 %v10624_v1, %v2198_v9  ;;  %v9655_v49 = vpop.eup %9654 }
 0x954   : > { %v2220_v60 = vadd.f32 -0.28449672, %v2214_v21  ;;  %v2215_v61 = vmul.f32 %v10614_v10, %v2209_v39  ;;  %v2160_v24 = vsel %vm2154_vm3, 1.0, %v9953_v57  ;;  %v9657_v50 = vpop.eup %9656  ;;  %v2163_v27 = vsel %vm2157_vm5, 1.0, %v9953_v57 }
 0x955   : > { %v2224_v36 = vmul.f32 %v9637_v62, %v2218_v48  ;;  %v2219_v41 = vadd.f32 -0.28449672, %v2213_v45  ;;  %v2217_v26 = vmul.f32 %v10616_v40, %v2211_v47  ;;  %v2210_v23 = vadd.f32 1.4214138, %v2204_v32 }
 0x956   : > { %v2226_v3 = vmul.f32 %v9639_v2, %v2220_v60  ;;  %v2221_v8 = vadd.f32 -0.28449672, %v2215_v61  ;;  %v2158_v60 = vsel %vm2152_vm2, 1.0, %v9953_v57  ;;  %v2161_v47 = vsel %vm2155_vm4, 1.0, %v9953_v57 }
 0x957   : > { %v2230_v5 = vadd.f32 0.2548296, %v2224_v36  ;;  %v2225_v25 = vmul.f32 %v10611_v58, %v2219_v41  ;;  %v2223_v16 = vadd.f32 -0.28449672, %v2217_v26  ;;  %v2216_v55 = vmul.f32 %v10624_v1, %v2210_v23 }
 0x958   : > { %v2232_v13 = vadd.f32 0.2548296, %v2226_v3  ;;  %v2227_v42 = vmul.f32 %v10614_v10, %v2221_v8  ;;  %v2140_v17 = vmul.f32 0.5, %v10575_v30  ;;  %v2142_v26 = vmul.f32 0.5, %v10577_v0 }
 0x959   : > { %v2236_v22 = vmul.f32 %v9637_v62, %v2230_v5  ;;  %v2231_v15 = vadd.f32 0.2548296, %v2225_v25  ;;  %v2229_v62 = vmul.f32 %v10616_v40, %v2223_v16  ;;  %v2222_v3 = vadd.f32 -0.28449672, %v2216_v55 }
 0x95a   : > { %v2238_v6 = vmul.f32 %v9639_v2, %v2232_v13  ;;  %v2233_v21 = vadd.f32 0.2548296, %v2227_v42 }
 0x95b   : > { %v2266_v35 = vmul.f32 %v9649_v29, %v2236_v22  ;;  %v2237_v2 = vmul.f32 %v10611_v58, %v2231_v15  ;;  %v2235_v48 = vadd.f32 0.2548296, %v2229_v62  ;;  %v2143_v29 = vmul.f32 0.5, %v10593_v18 }
 0x95c   : > { %v2268_v7 = vmul.f32 %v9651_v14, %v2238_v6  ;;  %v2239_v52 = vmul.f32 %v10614_v10, %v2233_v21  ;;  %v2228_v10 = vmul.f32 %v10624_v1, %v2222_v3  ;;  %v9659_v9 = vpop.eup %9658  ;;  %v2159_v14 = vsel %vm2153_vm6, 1.0, %v9953_v57 }
 0x95d   : > { %v2272_v33 = vsub.f32 1.0, %v2266_v35  ;;  %v2241_v58 = vmul.f32 %v10616_v40, %v2235_v48  ;;  %v2267_v45 = vmul.f32 %v9653_v28, %v2237_v2  ;;  %v2145_v35 = vmul.f32 0.5, %v10595_v20 }
 0x95e   : > { %v2274_v38 = vsub.f32 1.0, %v2268_v7  ;;  %v2269_v63 = vmul.f32 %v9655_v49, %v2239_v52  ;;  %v2234_v61 = vadd.f32 0.2548296, %v2228_v10  ;;  %v2144_v20 = vmul.f32 0.5, %v10605_v51  ;;  %v9896_v52 = vld [vmem:[%s10020_s20] sm:$0xff] }
 0x95f   : > { %v2278_v36 = vmul.f32 %v2272_v33, %v2158_v60  ;;  %v2271_v5 = vmul.f32 %v9657_v50, %v2241_v58  ;;  %v2273_v13 = vsub.f32 1.0, %v2267_v45  ;;  %v2350_v55 = vrot.slane %v9896_v52, %v10663_v34  ;;  %v9296_v10 = vld [vmem:[%s10025_s23 + $0xc4] ss:$12 sps:$4 sm:$0xff]  }
 0x960   : > { %v2280_v39 = vmul.f32 %v2274_v38, %v2160_v24  ;;  %v2275_v41 = vsub.f32 1.0, %v2269_v63  ;;  %v2240_v8 = vmul.f32 %v10624_v1, %v2234_v61  ;;  %v2162_v1 = vsel %vm2156_vm7, 1.0, %v9953_v57  ;;  %2767 = vmatprep.subr.bf16.mxu1 %v9296_v10  ;;  %v10728_v52 = vld [vmem:[%s12005_s3] sm:$0xff] }
 0x961   : > { %v2277_v12 = vsub.f32 1.0, %v2271_v5  ;;  %v2284_v31 = vadd.f32 1.0, %v2278_v36  ;;  %v2279_v16 = vmul.f32 %v2273_v13, %v2159_v14  ;;  %v9304_v13 = vld [vmem:[%s10025_s23 + $0xf4] ss:$12 sps:$4 sm:$0xff]  }
 0x962   : > { %v2281_v40 = vmul.f32 %v2275_v41, %v2161_v47  ;;  %v2286_v22 = vadd.f32 1.0, %v2280_v39  ;;  %v2270_v7 = vmul.f32 %v9659_v9, %v2240_v8  ;;  %v9294_v41 = vld [vmem:[%s10025_s23 + $0xc0] ss:$12 sps:$4 sm:$0xff]   ;;  %v9297_v47 = vld [vmem:[%s10025_s23 + $0xc8] ss:$12 sps:$4 sm:$0xff]  }
 0x963   : > { %v2283_v25 = vmul.f32 %v2277_v12, %v2163_v27  ;;  %v2290_v30 = vmul.f32 %v2284_v31, %v2140_v17  ;;  %v2285_v33 = vadd.f32 1.0, %v2279_v16  ;;  %v9300_v27 = vld [vmem:[%s10025_s23 + $0xdc] ss:$12 sps:$4 sm:$0xff]   ;;  %v9301_v12 = vld [vmem:[%s10025_s23 + $0xe0] ss:$12 sps:$4 sm:$0xff]  }
 0x964   : > { %v2287_v6 = vadd.f32 1.0, %v2281_v40  ;;  %v2292_v0 = vmul.f32 %v2286_v22, %v2142_v26  ;;  %v2276_v32 = vsub.f32 1.0, %v2270_v7  ;;  %v9298_v31 = vld [vmem:[%s10025_s23 + $0xd8] ss:$12 sps:$4 sm:$0xff]   ;;  %v9309_v8 = vld [vmem:[%s10025_s23 + $0x110] ss:$12 sps:$4 sm:$0xff]  }
 0x965   : > { %v2289_v15 = vadd.f32 1.0, %v2283_v25  ;;  %v2291_v21 = vmul.f32 %v2285_v33, %v2141_v56  ;;  %v9305_v26 = vld [vmem:[%s10025_s23 + $0xf8] ss:$12 sps:$4 sm:$0xff]   ;;  %v9310_v9 = vld [vmem:[%s10025_s23 + $0x120] ss:$12 sps:$4 sm:$0xff]  }
 0x966   : > { %v2293_v59 = vmul.f32 %v2287_v6, %v2143_v29  ;;  %v2282_v2 = vmul.f32 %v2276_v32, %v2162_v1  ;;  %v9308_v29 = vld [vmem:[%s10025_s23 + $0x10c] ss:$12 sps:$4 sm:$0xff]   ;;  %v9306_v6 = vld [vmem:[%s10025_s23 + $0x108] ss:$12 sps:$4 sm:$0xff]  }
 0x967   : > { %v2295_v42 = vmul.f32 %v2289_v15, %v2145_v35  ;;  %v9313_v14 = vld [vmem:[%s10025_s23 + $0x128] ss:$12 sps:$4 sm:$0xff]   ;;  %v9314_v15 = vld [vmem:[%s10025_s23 + $0x138] ss:$12 sps:$4 sm:$0xff]  }
 0x968   : > { %v2296_v18 = vpack.c.bf16 %v2293_v59, %v2290_v30  ;;  %v2288_v37 = vadd.f32 1.0, %v2282_v2  ;;  %v9316_v35 = vld [vmem:[%s10025_s23 + $0x13c] ss:$12 sps:$4 sm:$0xff]   ;;  %v9317_v30 = vld [vmem:[%s10025_s23 + $0x140] ss:$12 sps:$4 sm:$0xff]  }
 0x969   : > { %v2298_v62 = vpack.c.bf16 %v2295_v42, %v2292_v0  ;;  %v9320_v16 = vld [vmem:[%s10025_s23 + $0x154] ss:$12 sps:$4 sm:$0xff]   ;;  %v9318_v59 = vld [vmem:[%s10025_s23 + $0x150] ss:$12 sps:$4 sm:$0xff]   ;;  %v9321_v7 = vld [vmem:[%s10025_s23 + $0x158] ss:$12 sps:$4 sm:$0xff]  }
 0x96a   : > { %v2294_v23 = vmul.f32 %v2288_v37, %v2144_v20  ;;  %v9324_v0 = vld [vmem:[%s10025_s23 + $0x16c] ss:$12 sps:$4 sm:$0xff]   ;;  %v9322_v42 = vld [vmem:[%s10025_s23 + $0x168] ss:$12 sps:$4 sm:$0xff]   ;;  %v10711_v2 = vld [vmem:[%s10020_s20 + $0x20] sm:$0xff] }
 0x96b   : > { %8764 = vmatmul.mubr.bf16.vlgmr.msra.gmra.mrb[12].mxu0 %v2298_v62  ;;  %v10708_v33 = vld [vmem:[%s10020_s20 + $0x18] sm:$0xff] }
 0x96c   : > { %8783 = vmatprep.mubr.msk.bf16.mxu0 %vm9952_vm0, %v9950_v19  ;;  %v2297_v28 = vpack.c.bf16 %v2294_v23, %v2291_v21  ;;  %8768 = vmatpush3.bf16.msra.mxu0 %v9297_v47  ;;  %v10715_v56 = vrot.slane %v10708_v33, %v10256_v54  ;;  %v10719_v21 = vrot.slane %v10711_v2, %v10256_v54  ;;  %v10752_v47 = vld [vmem:[%s12005_s3 + $0x20] sm:$0xff] }
 0x96d   : > { %8769 = vmatprep.subr.bf16.mxu0 %v9950_v19 }
 0x96e   : > { %2527 = vmatprep.mubr.bf16.mxu1 %v2297_v28 }
 0x96f   : > { %2528 = vmatmul.mubr.bf16.vlgmr.msra.gmra.mrb[32].mxu1 %v2296_v18  ;;  %v9325_v18 = vld [vmem:[%s10025_s23 + $0x170] ss:$12 sps:$4 sm:$0xff]  }
 0x970   : > { %2799 = vmatprep.mubr.bf16.mxu1 %v9951_v44  ;;  %2768 = vmatpush1.bf16.msra.mxu1 %v9294_v41  ;;  %v10746_v41 = vld [vmem:[%s12005_s3 + $0x18] sm:$0xff] }
 0x971   : > { %2769 = vmatprep.subr.bf16.mxu1 %v9300_v27  ;;  %8770 = vmatpush3.bf16.msra.mxu0 %v9301_v12  ;;  %v10758_v12 = vld [vmem:[%s12005_s3 + $0x28] sm:$0xff] }
 0x972   : > { %8771 = vmatprep.subr.bf16.mxu0 %v9950_v19 }
 0x974   : > { %2770 = vmatpush1.bf16.msra.mxu1 %v9298_v31 }
 0x975   : > { %2771 = vmatprep.subr.bf16.mxu1 %v9304_v13  ;;  %8772 = vmatpush3.bf16.msra.mxu0 %v9305_v26  ;;  %v10764_v13 = vld [vmem:[%s12005_s3 + $0x30] sm:$0xff] }
 0x976   : > { %8773 = vmatprep.subr.bf16.mxu0 %v9950_v19 }
 0x979   : > { %8774 = vmatpush3.bf16.msra.mxu0 %v9309_v8  ;;  %v10794_v8 = vld [vmem:[%s12005_s3 + $0x58] sm:$0xff] }
 0x97a   : > { %8775 = vmatprep.subr.bf16.mxu0 %v9950_v19 }
 0x97d   : > { %8776 = vmatpush3.bf16.msra.mxu0 %v9313_v14 }
 0x97e   : > { %8777 = vmatprep.subr.bf16.mxu0 %v9950_v19 }
 0x981   : > { %8778 = vmatpush3.bf16.msra.mxu0 %v9317_v30  ;;  %v9909_v30 = vld [vmem:[%s12005_s3 + $0x61] ss:$0 sm:$0xff] }
 0x982   : > { %8779 = vmatprep.subr.bf16.mxu0 %v9950_v19 }
 0x985   : > { %8780 = vmatpush3.bf16.msra.mxu0 %v9321_v7 }
 0x986   : > { %8781 = vmatprep.subr.bf16.mxu0 %v9950_v19 }
 0x989   : > { %8782 = vmatpush3.bf16.msra.mxu0 %v9325_v18 }
 0x98a   : > { %8827 = vmatprep.subr.bf16.mxu0 %v9950_v19 }
 0xa3e   : > { %v2570_v38 = vpop.f32.mrb[12].mxu0 }
 0xa3f   : > { %v8765_v48 = vpop.f32.mrb[13].mxu0 }
 0xa40   : > { %v2573_v49 = vpop.f32.mrb[14].mxu0 }
 0xa41   : > { %v8766_v60 = vpop.f32.mrb[15].mxu0 }
 0xa42   : > { %v8380_v51 = vpop.f32.mrb[32].mxu1 }
 0xa43   : > { %v8381_v24 = vpop.f32.mrb[33].mxu1 }
 0xa44   : > { %v8382_v58 = vadd.f32 %v8381_v24, %v8380_v51  ;;  %v8383_v50 = vpop.f32.mrb[34].mxu1 }
 0xa45   : > { %v8384_v36 = vpop.f32.mrb[35].mxu1 }
 0xa46   : > { %v2530_v45 = vadd.f32 %v8382_v58, %v2350_v55  ;;  %v8385_v63 = vadd.f32 %v8384_v36, %v8383_v50 }
 0xa48   : > { %v2571_v3 = vadd.f32 %v2570_v38, %v2530_v45  ;;  %v2533_v39 = vadd.f32 %v8385_v63, %v2350_v55  ;;  %v10734_v45 = vld [vmem:[%s12005_s3 + $0x8] sm:$0xff] }
 0xa4a   : > { %v10667_v53 = vadd.f32 %v2573_v49, %v2533_v39  ;;  %v10670_v5 = vadd.f32 %v2571_v3, %v10481_v43  ;;  %v9302_v43 = vld [vmem:[%s10025_s23 + $0xf0] ss:$12 sps:$4 sm:$0xff]  }
 0xa4b   : > { %2772 = vmatpush1.bf16.msra.mxu1 %v9302_v43  ;;  %v10740_v3 = vld [vmem:[%s12005_s3 + $0x10] sm:$0xff] }
 0xa4c   : > { %2583 = vadd.xlane.f32.xlu0 %v10670_v5  ;;  %2773 = vmatprep.subr.bf16.mxu1 %v9308_v29  ;;  %v10788_v29 = vld [vmem:[%s12005_s3 + $0x50] sm:$0xff] }
 0xa4f   : > { %2774 = vmatpush1.bf16.msra.mxu1 %v9306_v6 }
 0xad9   : > { %v2584_v40 = vpop.xlane.xlu0 %2583 }
 0xada   : > { %v2585_v61 = vmul.f32 0.010416667, %v2584_v40  ;;  %v10770_v40 = vld [vmem:[%s12005_s3 + $0x38] sm:$0xff] }
 0xadc   : > { %v2586_v17 = vsub.f32 %v10670_v5, %v2585_v61 }
 0xade   : > { %v2587_v22 = vmul.f32 %v10502_v11, %v2586_v17  ;;  %v9312_v11 = vld [vmem:[%s10025_s23 + $0x124] ss:$12 sps:$4 sm:$0xff]  }
 0xadf   : > { %2775 = vmatprep.subr.bf16.mxu1 %v9312_v11  ;;  %v10776_v17 = vld [vmem:[%s12005_s3 + $0x40] sm:$0xff] }
 0xae0   : > { %v2588_v25 = vmul.f32 %v2587_v22, %v2587_v22  ;;  %2776 = vmatpush1.bf16.msra.mxu1 %v9310_v9 }
 0xae1   : > { %2777 = vmatprep.subr.bf16.mxu1 %v9316_v35 }
 0xae2   : > { %2589 = vadd.xlane.f32.xlu1 %v2588_v25  ;;  %v10782_v25 = vld [vmem:[%s12005_s3 + $0x48] sm:$0xff] }
 0xae4   : > { %2778 = vmatpush1.bf16.msra.mxu1 %v9314_v15 }
 0xae5   : > { %2779 = vmatprep.subr.bf16.mxu1 %v9320_v16 }
 0xae8   : > { %2780 = vmatpush1.bf16.msra.mxu1 %v9318_v59 }
 0xae9   : > { %2781 = vmatprep.subr.bf16.mxu1 %v9324_v0 }
 0xaec   : > { %2782 = vmatpush1.bf16.msra.mxu1 %v9322_v42 }
 0xb6f   : > { %v2590_v32 = vpop.xlane.xlu1 %2589 }
 0xb70   : > { %v2591_v62 = vmul.f32 0.010416667, %v2590_v32 }
 0xb72   : > { %v2592_v1 = vadd.f32 1e-05, %v2591_v62 }
 0xb74   : > { %9660 = vrsqrt.f32 %v2592_v1 }
 0xb7e   : > { %v9661_v20 = vpop.eup %9660 }
 0xb7f   : > { %v2594_v37 = vmul.f32 %v9661_v20, %v2587_v22 }
 0xb81   : > { %v2599_v23 = vmul.f32 %v10715_v56, %v2594_v37 }
 0xb83   : > { %v2604_v28 = vadd.f32 %v10719_v21, %v2599_v23 }
 0xb85   : > { %v2605_v38 = vpack.c.bf16 %v2604_v28, %v2604_v28 }
 0xb87   : > { %2800 = vmatmul.mubr.bf16.vlgmr.msra.gmra.mrb[36].mxu1 %v2605_v38  ;;  %8784 = vmatmul.mubr.bf16.vlgmr.msra.gmra.mrb[16].mxu0 %v2605_v38 }
 0xb88   : > { %8843 = vmatprep.mubr.msk.bf16.mxu0 %vm9952_vm0, %v9950_v19 }
 0xc5a   : > { %v2801_v48 = vpop.f32.mrb[36].mxu1  ;;  %v2842_v49 = vpop.f32.mrb[16].mxu0 }
 0xc5b   : > { %v2803_v60 = vpop.f32.mrb[37].mxu1  ;;  %v8785_v51 = vpop.f32.mrb[17].mxu0  ;;  %v2848_v55 = vmul.f32 %v10728_v52, %v2801_v48  ;;  %v2849_v63 = vmul.f32 %v10734_v45, %v2801_v48  ;;  %v2850_v39 = vmul.f32 %v10740_v3, %v2801_v48  ;;  %v2851_v10 = vmul.f32 %v10746_v41, %v2801_v48 }
 0xc5c   : > { %v2805_v24 = vpop.f32.mrb[38].mxu1  ;;  %v2845_v58 = vpop.f32.mrb[18].mxu0  ;;  %8787 = vmatprep.subr.mxu1 %v2803_v60  ;;  %v2852_v27 = vmul.f32 %v10752_v47, %v2801_v48  ;;  %v2853_v31 = vmul.f32 %v10758_v12, %v2801_v48  ;;  %v2854_v43 = vmul.f32 %v10764_v13, %v2801_v48  ;;  %v2855_v61 = vmul.f32 %v10770_v40, %v2801_v48 }
 0xc5d   : > { %v2806_v50 = vpop.f32.mrb[39].mxu1  ;;  %v8786_v36 = vpop.f32.mrb[19].mxu0  ;;  %8788 = vmatpush3.xpose.msra.mxu1 %v2803_v60  ;;  %8789 = vmatprep.mubr.f32.mxu1 %v2848_v55  ;;  %v2856_v22 = vmul.f32 %v10776_v17, %v2801_v48  ;;  %v2857_v26 = vmul.f32 %v10782_v25, %v2801_v48  ;;  %v2858_v6 = vmul.f32 %v10788_v29, %v2801_v48 }
 0xc5e   : > { %8807 = vmatprep.subr.mxu1 %v2842_v49  ;;  %v2859_v9 = vmul.f32 %v10794_v8, %v2801_v48 }
 0xc60   : > { %8790 = vmatmul.mubr.f32.vlgmr.msra.gmra.mrb[40].mxu1 %v2849_v63 }
 0xc61   : > { %8792 = vmatprep.mubr.f32.mxu1 %v2850_v39  ;;  %8808 = vmatpush3.msra.mxu1 %v2842_v49 }
 0xc64   : > { %8793 = vmatmul.mubr.f32.gmra.mrb[42].mxu1 %v2851_v10 }
 0xc65   : > { %8795 = vmatprep.mubr.f32.mxu1 %v2852_v27 }
 0xc68   : > { %8796 = vmatmul.mubr.f32.gmra.mrb[44].mxu1 %v2853_v31 }
 0xc69   : > { %8798 = vmatprep.mubr.f32.mxu1 %v2854_v43 }
 0xc6c   : > { %8799 = vmatmul.mubr.f32.gmra.mrb[46].mxu1 %v2855_v61 }
 0xc6d   : > { %8801 = vmatprep.mubr.f32.mxu1 %v2856_v22 }
 0xc70   : > { %8802 = vmatmul.mubr.f32.gmra.mrb[48].mxu1 %v2857_v26 }
 0xc71   : > { %8804 = vmatprep.mubr.f32.mxu1 %v2858_v6 }
 0xc74   : > { %8805 = vmatmul.mubr.f32.gmra.mrb[50].mxu1 %v2859_v9 }
 0xd33   : > { %v8791_v11 = vpop.f32.mrb[40].mxu1 }
 0xd34   : > { %v2986_v14 = vmul.f32 0.35355338, %v8791_v11  ;;  %v2926_v35 = vpop.f32.mrb[41].mxu1 }
 0xd35   : > { %v2985_v15 = vmul.f32 0.35355338, %v2926_v35 }
 0xd36   : > { %v2998_v16 = vadd.f32 %v9909_v30, %v2986_v14 }
 0xd37   : > { %v8794_v59 = vpop.f32.mrb[42].mxu1  ;;  %v2997_v7 = vadd.f32 %v9909_v30, %v2985_v15 }
 0xd38   : > { %v2988_v0 = vmul.f32 0.35355338, %v8794_v59  ;;  %v2936_v42 = vpop.f32.mrb[43].mxu1  ;;  %v3012_v18 = vsel %vm1427_vm1, %v2998_v16, -inf }
 0xd39   : > { %v2987_v32 = vmul.f32 0.35355338, %v2936_v42  ;;  %3013 = vmax.xlane.f32.xlu1 %v3012_v18  ;;  %v3009_v62 = vsel %vm1427_vm1, %v2997_v7, -inf }
 0xd3a   : > { %3010 = vmax.xlane.f32.xlu0 %v3009_v62  ;;  %v3000_v1 = vadd.f32 %v9909_v30, %v2988_v0 }
 0xd3b   : > { %v8797_v20 = vpop.f32.mrb[44].mxu1  ;;  %v2999_v37 = vadd.f32 %v9909_v30, %v2987_v32 }
 0xd3c   : > { %v2990_v23 = vmul.f32 0.35355338, %v8797_v20  ;;  %v2946_v28 = vpop.f32.mrb[45].mxu1  ;;  %v3018_v38 = vsel %vm1427_vm1, %v3000_v1, -inf }
 0xd3d   : > { %v2989_v48 = vmul.f32 0.35355338, %v2946_v28  ;;  %3019 = vmax.xlane.f32.xlu1 %v3018_v38  ;;  %v3015_v49 = vsel %vm1427_vm1, %v2999_v37, -inf }
 0xd3e   : > { %3016 = vmax.xlane.f32.xlu0 %v3015_v49  ;;  %v3002_v60 = vadd.f32 %v9909_v30, %v2990_v23 }
 0xd3f   : > { %v8800_v51 = vpop.f32.mrb[46].mxu1  ;;  %v3001_v55 = vadd.f32 %v9909_v30, %v2989_v48 }
 0xd40   : > { %v2992_v24 = vmul.f32 0.35355338, %v8800_v51  ;;  %v2956_v58 = vpop.f32.mrb[47].mxu1  ;;  %v3024_v50 = vsel %vm1427_vm1, %v3002_v60, -inf }
 0xd41   : > { %v2991_v36 = vmul.f32 0.35355338, %v2956_v58  ;;  %3025 = vmax.xlane.f32.xlu1 %v3024_v50  ;;  %v3021_v63 = vsel %vm1427_vm1, %v3001_v55, -inf }
 0xd42   : > { %3022 = vmax.xlane.f32.xlu0 %v3021_v63  ;;  %v3004_v39 = vadd.f32 %v9909_v30, %v2992_v24 }
 0xd43   : > { %v8803_v10 = vpop.f32.mrb[48].mxu1  ;;  %v3003_v27 = vadd.f32 %v9909_v30, %v2991_v36 }
 0xd44   : > { %v2994_v31 = vmul.f32 0.35355338, %v8803_v10  ;;  %v2966_v43 = vpop.f32.mrb[49].mxu1  ;;  %v3030_v61 = vsel %vm1427_vm1, %v3004_v39, -inf }
 0xd45   : > { %v2993_v22 = vmul.f32 0.35355338, %v2966_v43  ;;  %3031 = vmax.xlane.f32.xlu1 %v3030_v61  ;;  %v3027_v26 = vsel %vm1427_vm1, %v3003_v27, -inf }
 0xd46   : > { %3028 = vmax.xlane.f32.xlu0 %v3027_v26  ;;  %v3006_v6 = vadd.f32 %v9909_v30, %v2994_v31 }
 0xd47   : > { %v8806_v9 = vpop.f32.mrb[50].mxu1  ;;  %v3005_v11 = vadd.f32 %v9909_v30, %v2993_v22 }
 0xd48   : > { %v2996_v14 = vmul.f32 0.35355338, %v8806_v9  ;;  %v2976_v35 = vpop.f32.mrb[51].mxu1  ;;  %v3036_v15 = vsel %vm1427_vm1, %v3006_v6, -inf }
 0xd49   : > { %v2995_v59 = vmul.f32 0.35355338, %v2976_v35  ;;  %3037 = vmax.xlane.f32.xlu1 %v3036_v15  ;;  %v3033_v0 = vsel %vm1427_vm1, %v3005_v11, -inf }
 0xd4a   : > { %3034 = vmax.xlane.f32.xlu0 %v3033_v0  ;;  %v10810_v42 = vadd.f32 %v9909_v30, %v2996_v14 }
 0xd4b   : > { %v10812_v18 = vadd.f32 %v9909_v30, %v2995_v59 }
 0xd4c   : > { %v3042_v32 = vsel %vm1427_vm1, %v10810_v42, -inf }
 0xd4d   : > { %3043 = vmax.xlane.f32.xlu1 %v3042_v32  ;;  %v3039_v62 = vsel %vm1427_vm1, %v10812_v18, -inf }
 0xd4e   : > { %3040 = vmax.xlane.f32.xlu0 %v3039_v62 }
 0xdc6   : > { %v3014_v20 = vpop.xlane.xlu1 %3013 }
 0xdc7   : > { %v3046_v23 = vsub.f32 %v2998_v16, %v3014_v20  ;;  %v3011_v28 = vpop.xlane.xlu0 %3010 }
 0xdc8   : > { %v3045_v38 = vsub.f32 %v2997_v7, %v3011_v28 }
 0xdc9   : > { %v3059_v48 = vmul.f32 1.442695, %v3046_v23 }
 0xdca   : > { %v3057_v49 = vmul.f32 1.442695, %v3045_v38  ;;  %v3020_v51 = vpop.xlane.xlu1 %3019 }
 0xdcb   : > { %9662 = vpow2.f32 %v3059_v48  ;;  %v3048_v24 = vsub.f32 %v3000_v1, %v3020_v51  ;;  %v3017_v58 = vpop.xlane.xlu0 %3016 }
 0xdcc   : > { %9664 = vpow2.f32 %v3057_v49  ;;  %v3047_v30 = vsub.f32 %v2999_v37, %v3017_v58 }
 0xdcd   : > { %v3063_v50 = vmul.f32 1.442695, %v3048_v24 }
 0xdce   : > { %v3061_v36 = vmul.f32 1.442695, %v3047_v30  ;;  %v3026_v63 = vpop.xlane.xlu1 %3025 }
 0xdcf   : > { %9666 = vpow2.f32 %v3063_v50  ;;  %v3050_v10 = vsub.f32 %v3002_v60, %v3026_v63  ;;  %v3023_v31 = vpop.xlane.xlu0 %3022 }
 0xdd0   : > { %9668 = vpow2.f32 %v3061_v36  ;;  %v3049_v43 = vsub.f32 %v3001_v55, %v3023_v31 }
 0xdd1   : > { %v3067_v61 = vmul.f32 1.442695, %v3050_v10 }
 0xdd2   : > { %v3065_v16 = vmul.f32 1.442695, %v3049_v43  ;;  %v3032_v22 = vpop.xlane.xlu1 %3031 }
 0xdd3   : > { %9670 = vpow2.f32 %v3067_v61  ;;  %v3052_v7 = vsub.f32 %v3004_v39, %v3032_v22  ;;  %v3029_v26 = vpop.xlane.xlu0 %3028 }
 0xdd4   : > { %9672 = vpow2.f32 %v3065_v16  ;;  %v3051_v9 = vsub.f32 %v3003_v27, %v3029_v26 }
 0xdd5   : > { %v10818_v1 = vpop.eup %9662  ;;  %v3071_v14 = vmul.f32 1.442695, %v3052_v7 }
 0xdd6   : > { %v10820_v37 = vpop.eup %9664  ;;  %v3069_v35 = vmul.f32 1.442695, %v3051_v9  ;;  %v3038_v15 = vpop.xlane.xlu1 %3037  ;;  %v3084_v60 = vsel %vm1427_vm1, %v10818_v1, 0.0  ;;  %v9326_v9 = vld [vmem:[%s10015_s17 + $0x40] sm:$0xff]  }
 0xdd7   : > { %9674 = vpow2.f32 %v3071_v14  ;;  %v3054_v55 = vsub.f32 %v3006_v6, %v3038_v15  ;;  %v3035_v59 = vpop.xlane.xlu0 %3034  ;;  %3085 = vadd.xlane.f32.xlu1 %v3084_v60  ;;  %v3081_v39 = vsel %vm1427_vm1, %v10820_v37, 0.0  ;;  %8828 = vmatpush3.bf16.msra.mxu0 %v9326_v9 }
 0xdd8   : > { %9676 = vpow2.f32 %v3069_v35  ;;  %v3053_v0 = vsub.f32 %v3005_v11, %v3035_v59  ;;  %3082 = vadd.xlane.f32.xlu0 %v3081_v39  ;;  %8829 = vmatprep.subr.bf16.mxu0 %v9950_v19 }
 0xdd9   : > { %v10826_v27 = vpop.eup %9666  ;;  %v3075_v32 = vmul.f32 1.442695, %v3054_v55 }
 0xdda   : > { %v10828_v62 = vpop.eup %9668  ;;  %v3073_v20 = vmul.f32 1.442695, %v3053_v0  ;;  %v3044_v23 = vpop.xlane.xlu1 %3043  ;;  %v3090_v28 = vsel %vm1427_vm1, %v10826_v27, 0.0 }
 0xddb   : > { %9678 = vpow2.f32 %v3075_v32  ;;  %v3056_v6 = vsub.f32 %v10810_v42, %v3044_v23  ;;  %3091 = vadd.xlane.f32.xlu1 %v3090_v28  ;;  %v3041_v38 = vpop.xlane.xlu0 %3040  ;;  %v3087_v48 = vsel %vm1427_vm1, %v10828_v62, 0.0 }
 0xddc   : > { %9680 = vpow2.f32 %v3073_v20  ;;  %v3055_v11 = vsub.f32 %v10812_v18, %v3041_v38  ;;  %3088 = vadd.xlane.f32.xlu0 %v3087_v48 }
 0xddd   : > { %v10836_v49 = vpop.eup %9670  ;;  %v3079_v51 = vmul.f32 1.442695, %v3056_v6 }
 0xdde   : > { %v10838_v24 = vpop.eup %9672  ;;  %v3077_v58 = vmul.f32 1.442695, %v3055_v11  ;;  %v3096_v30 = vsel %vm1427_vm1, %v10836_v49, 0.0 }
 0xddf   : > { %9682 = vpow2.f32 %v3079_v51  ;;  %3097 = vadd.xlane.f32.xlu1 %v3096_v30  ;;  %v3093_v42 = vsel %vm1427_vm1, %v10838_v24, 0.0 }
 0xde0   : > { %9684 = vpow2.f32 %v3077_v58  ;;  %3094 = vadd.xlane.f32.xlu0 %v3093_v42 }
 0xde1   : > { %v10844_v50 = vpop.eup %9674 }
 0xde2   : > { %v10846_v18 = vpop.eup %9676  ;;  %v3102_v36 = vsel %vm1427_vm1, %v10844_v50, 0.0 }
 0xde3   : > { %3103 = vadd.xlane.f32.xlu1 %v3102_v36  ;;  %v3099_v63 = vsel %vm1427_vm1, %v10846_v18, 0.0 }
 0xde4   : > { %3100 = vadd.xlane.f32.xlu0 %v3099_v63 }
 0xde5   : > { %v10852_v10 = vpop.eup %9678 }
 0xde6   : > { %v10854_v31 = vpop.eup %9680  ;;  %v3108_v43 = vsel %vm1427_vm1, %v10852_v10, 0.0 }
 0xde7   : > { %3109 = vadd.xlane.f32.xlu1 %v3108_v43  ;;  %v3105_v61 = vsel %vm1427_vm1, %v10854_v31, 0.0 }
 0xde8   : > { %3106 = vadd.xlane.f32.xlu0 %v3105_v61 }
 0xde9   : > { %v10860_v16 = vpop.eup %9682 }
 0xdea   : > { %v10862_v22 = vpop.eup %9684  ;;  %v3114_v7 = vsel %vm1427_vm1, %v10860_v16, 0.0 }
 0xdeb   : > { %3115 = vadd.xlane.f32.xlu1 %v3114_v7  ;;  %v3111_v26 = vsel %vm1427_vm1, %v10862_v22, 0.0 }
 0xdec   : > { %3112 = vadd.xlane.f32.xlu0 %v3111_v26 }
 0xe64   : > { %v3086_v14 = vpop.xlane.xlu1 %3085 }
 0xe65   : > { %9686 = vrcp.f32 %v3086_v14  ;;  %v3083_v35 = vpop.xlane.xlu0 %3082 }
 0xe66   : > { %9688 = vrcp.f32 %v3083_v35  ;;  %v9331_v35 = vld [vmem:[%s10015_s17 + $0x68] sm:$0xff]  }
 0xe68   : > { %v3092_v15 = vpop.xlane.xlu1 %3091 }
 0xe69   : > { %9690 = vrcp.f32 %v3092_v15  ;;  %v3089_v60 = vpop.xlane.xlu0 %3088  ;;  %v9332_v15 = vld [vmem:[%s10015_s17 + $0x70] sm:$0xff]  }
 0xe6a   : > { %9692 = vrcp.f32 %v3089_v60  ;;  %v9333_v60 = vld [vmem:[%s10015_s17 + $0x78] sm:$0xff]  }
 0xe6c   : > { %v3098_v55 = vpop.xlane.xlu1 %3097 }
 0xe6d   : > { %9694 = vrcp.f32 %v3098_v55  ;;  %v3095_v59 = vpop.xlane.xlu0 %3094 }
 0xe6e   : > { %9696 = vrcp.f32 %v3095_v59 }
 0xe6f   : > { %v9687_v39 = vpop.eup %9686 }
 0xe70   : > { %v9689_v0 = vpop.eup %9688  ;;  %v3104_v32 = vpop.xlane.xlu1 %3103  ;;  %v3130_v28 = vmul.f32 %v9687_v39, %v10818_v1 }
 0xe71   : > { %9698 = vrcp.f32 %v3104_v32  ;;  %v3101_v20 = vpop.xlane.xlu0 %3100  ;;  %v3129_v23 = vmul.f32 %v9689_v0, %v10820_v37 }
 0xe72   : > { %9700 = vrcp.f32 %v3101_v20 }
 0xe73   : > { %v9691_v6 = vpop.eup %9690  ;;  %8809 = vmatprep.mubr.msk.f32.mxu1 %vm1427_vm1, %v3129_v23 }
 0xe74   : > { %v9693_v38 = vpop.eup %9692  ;;  %v3110_v48 = vpop.xlane.xlu1 %3109  ;;  %8810 = vmatmul.mubr.msk.f32.vlgmr.msra.gmra.mrb[52].mxu1 %vm1427_vm1, %v3130_v28  ;;  %v3132_v58 = vmul.f32 %v9691_v6, %v10826_v27 }
 0xe75   : > { %9702 = vrcp.f32 %v3110_v48  ;;  %v3107_v11 = vpop.xlane.xlu0 %3106  ;;  %v3131_v51 = vmul.f32 %v9693_v38, %v10828_v62 }
 0xe76   : > { %9704 = vrcp.f32 %v3107_v11 }
 0xe77   : > { %v9695_v30 = vpop.eup %9694  ;;  %8812 = vmatprep.mubr.msk.f32.mxu1 %vm1427_vm1, %v3131_v51 }
 0xe78   : > { %v9697_v37 = vpop.eup %9696  ;;  %v3116_v1 = vpop.xlane.xlu1 %3115  ;;  %8813 = vmatmul.mubr.msk.f32.gmra.mrb[54].mxu1 %vm1427_vm1, %v3132_v58  ;;  %v3134_v63 = vmul.f32 %v9695_v30, %v10836_v49 }
 0xe79   : > { %9706 = vrcp.f32 %v3116_v1  ;;  %v3113_v42 = vpop.xlane.xlu0 %3112  ;;  %v3133_v36 = vmul.f32 %v9697_v37, %v10838_v24 }
 0xe7a   : > { %9708 = vrcp.f32 %v3113_v42 }
 0xe7b   : > { %v9699_v43 = vpop.eup %9698  ;;  %8815 = vmatprep.mubr.msk.f32.mxu1 %vm1427_vm1, %v3133_v36 }
 0xe7c   : > { %v9701_v62 = vpop.eup %9700  ;;  %8816 = vmatmul.mubr.msk.f32.gmra.mrb[56].mxu1 %vm1427_vm1, %v3134_v63  ;;  %v3136_v61 = vmul.f32 %v9699_v43, %v10844_v50 }
 0xe7d   : > { %v3135_v27 = vmul.f32 %v9701_v62, %v10846_v18 }
 0xe7f   : > { %v9703_v7 = vpop.eup %9702  ;;  %8818 = vmatprep.mubr.msk.f32.mxu1 %vm1427_vm1, %v3135_v27 }
 0xe80   : > { %v9705_v26 = vpop.eup %9704  ;;  %8819 = vmatmul.mubr.msk.f32.gmra.mrb[58].mxu1 %vm1427_vm1, %v3136_v61  ;;  %v3138_v24 = vmul.f32 %v9703_v7, %v10852_v10  ;;  %v9327_v10 = vld [vmem:[%s10015_s17 + $0x48] sm:$0xff]  }
 0xe81   : > { %v3137_v49 = vmul.f32 %v9705_v26, %v10854_v31  ;;  %8830 = vmatpush3.bf16.msra.mxu0 %v9327_v10  ;;  %v9328_v31 = vld [vmem:[%s10015_s17 + $0x50] sm:$0xff]  }
 0xe82   : > { %8831 = vmatprep.subr.bf16.mxu0 %v9950_v19 }
 0xe83   : > { %v9707_v9 = vpop.eup %9706  ;;  %8821 = vmatprep.mubr.msk.f32.mxu1 %vm1427_vm1, %v3137_v49 }
 0xe84   : > { %v9709_v14 = vpop.eup %9708  ;;  %8822 = vmatmul.mubr.msk.f32.gmra.mrb[60].mxu1 %vm1427_vm1, %v3138_v24  ;;  %v3140_v18 = vmul.f32 %v9707_v9, %v10860_v16  ;;  %v9330_v16 = vld [vmem:[%s10015_s17 + $0x60] sm:$0xff]  }
 0xe85   : > { %v3139_v50 = vmul.f32 %v9709_v14, %v10862_v22  ;;  %8832 = vmatpush3.bf16.msra.mxu0 %v9328_v31  ;;  %v9329_v22 = vld [vmem:[%s10015_s17 + $0x58] sm:$0xff]  }
 0xe86   : > { %8833 = vmatprep.subr.bf16.mxu0 %v9950_v19 }
 0xe87   : > { %8824 = vmatprep.mubr.msk.f32.mxu1 %vm1427_vm1, %v3139_v50 }
 0xe88   : > { %8825 = vmatmul.mubr.msk.f32.gmra.mrb[62].mxu1 %vm1427_vm1, %v3140_v18 }
 0xe89   : > { %3671 = vmatprep.mubr.bf16.mxu1 %v9951_v44  ;;  %8834 = vmatpush3.bf16.msra.mxu0 %v9329_v22  ;;  %v9334_v22 = vld [vmem:[%s10030_s26 + $0xc0] ss:$12 sps:$4 sm:$0xff]  }
 0xe8a   : > { %8835 = vmatprep.subr.bf16.mxu0 %v9950_v19 }
 0xe8d   : > { %8836 = vmatpush3.bf16.msra.mxu0 %v9330_v16  ;;  %v9336_v16 = vld [vmem:[%s10030_s26 + $0xc4] ss:$12 sps:$4 sm:$0xff]  }
 0xe8e   : > { %8837 = vmatprep.subr.bf16.mxu0 %v9950_v19  ;;  %3639 = vmatprep.subr.bf16.mxu1 %v9336_v16  ;;  %v9368_v16 = vld [vmem:[%s10035_s29 + $0xc0] sm:$0xff]  }
 0xe8f   : > { %3640 = vmatpush1.bf16.msra.mxu1 %v9334_v22  ;;  %v9367_v22 = vld [vmem:[%s10035_s29 + $0x100] sm:$0xff]  }
 0xe91   : > { %8838 = vmatpush3.bf16.msra.mxu0 %v9331_v35  ;;  %v9337_v35 = vld [vmem:[%s10030_s26 + $0xc8] ss:$12 sps:$4 sm:$0xff]  }
 0xe92   : > { %8839 = vmatprep.subr.bf16.mxu0 %v9950_v19 }
 0xe95   : > { %8840 = vmatpush3.bf16.msra.mxu0 %v9332_v15  ;;  %v9338_v15 = vld [vmem:[%s10030_s26 + $0xd8] ss:$12 sps:$4 sm:$0xff]  }
 0xe96   : > { %8841 = vmatprep.subr.bf16.mxu0 %v9950_v19 }
 0xe99   : > { %8842 = vmatpush3.bf16.msra.mxu0 %v9333_v60  ;;  %v9342_v60 = vld [vmem:[%s10030_s26 + $0xf0] ss:$12 sps:$4 sm:$0xff]  }
 0xe9a   : > { %8847 = vmatprep.subr.bf16.mxu0 %v9950_v19 }
 0xf47   : > { %v8811_v55 = vpop.f32.mrb[52].mxu1 }
 0xf48   : > { %v3303_v59 = vmul.f32 %v10734_v45, %v8811_v55  ;;  %v3243_v39 = vpop.f32.mrb[53].mxu1 }
 0xf49   : > { %v3302_v0 = vmul.f32 %v10728_v52, %v3243_v39 }
 0xf4b   : > { %v3314_v32 = vadd.f32 %v3303_v59, %v3302_v0  ;;  %v8814_v20 = vpop.f32.mrb[54].mxu1 }
 0xf4c   : > { %v3253_v23 = vpop.f32.mrb[55].mxu1  ;;  %v3305_v6 = vmul.f32 %v10746_v41, %v8814_v20 }
 0xf4d   : > { %v3304_v28 = vmul.f32 %v10740_v3, %v3253_v23  ;;  %v10952_v23 = vld [vmem:[%s12005_s3 + $0x60] ss:$0 sm:$0xff] }
 0xf4f   : > { %v3315_v38 = vadd.f32 %v3314_v32, %v3304_v28  ;;  %v8817_v48 = vpop.f32.mrb[56].mxu1 }
 0xf50   : > { %v3263_v11 = vpop.f32.mrb[57].mxu1  ;;  %v3307_v30 = vmul.f32 %v10758_v12, %v8817_v48 }
 0xf51   : > { %v3306_v51 = vmul.f32 %v10752_v47, %v3263_v11  ;;  %v3316_v58 = vadd.f32 %v3315_v38, %v3305_v6  ;;  %v9345_v11 = vld [vmem:[%s10030_s26 + $0xf8] ss:$12 sps:$4 sm:$0xff]  }
 0xf53   : > { %v3317_v37 = vadd.f32 %v3316_v58, %v3306_v51  ;;  %v8820_v45 = vpop.f32.mrb[58].mxu1  ;;  %v9348_v51 = vld [vmem:[%s10030_s26 + $0x10c] ss:$12 sps:$4 sm:$0xff]   ;;  %v9346_v58 = vld [vmem:[%s10030_s26 + $0x108] ss:$12 sps:$4 sm:$0xff]  }
 0xf54   : > { %v3273_v1 = vpop.f32.mrb[59].mxu1  ;;  %v3309_v36 = vmul.f32 %v10770_v40, %v8820_v45  ;;  %v9350_v45 = vld [vmem:[%s10030_s26 + $0x120] ss:$12 sps:$4 sm:$0xff]  }
 0xf55   : > { %v3308_v52 = vmul.f32 %v10764_v13, %v3273_v1  ;;  %v3318_v42 = vadd.f32 %v3317_v37, %v3307_v30  ;;  %v9349_v30 = vld [vmem:[%s10030_s26 + $0x110] ss:$12 sps:$4 sm:$0xff]   ;;  %v9353_v1 = vld [vmem:[%s10030_s26 + $0x128] ss:$12 sps:$4 sm:$0xff]  }
 0xf56   : > { %v9352_v37 = vld [vmem:[%s10030_s26 + $0x124] ss:$12 sps:$4 sm:$0xff]  }
 0xf57   : > { %v3319_v63 = vadd.f32 %v3318_v42, %v3308_v52  ;;  %v8823_v3 = vpop.f32.mrb[60].mxu1  ;;  %v9356_v52 = vld [vmem:[%s10030_s26 + $0x13c] ss:$12 sps:$4 sm:$0xff]   ;;  %v9354_v42 = vld [vmem:[%s10030_s26 + $0x138] ss:$12 sps:$4 sm:$0xff]  }
 0xf58   : > { %v3283_v41 = vpop.f32.mrb[61].mxu1  ;;  %v3311_v47 = vmul.f32 %v10782_v25, %v8823_v3  ;;  %v9358_v3 = vld [vmem:[%s10030_s26 + $0x150] ss:$12 sps:$4 sm:$0xff]  }
 0xf59   : > { %v3310_v43 = vmul.f32 %v10776_v17, %v3283_v41  ;;  %v3320_v62 = vadd.f32 %v3319_v63, %v3309_v36  ;;  %v10924_v17 = vld [vmem:[%s10020_s20 + $0x28] sm:$0xff]  ;;  %v9360_v63 = vld [vmem:[%s10030_s26 + $0x154] ss:$12 sps:$4 sm:$0xff]   ;;  %v9361_v41 = vld [vmem:[%s10030_s26 + $0x158] ss:$12 sps:$4 sm:$0xff]  }
 0xf5a   : > { %v3346_v25 = vrot.slane %v10924_v17, %v10256_v54  ;;  %v9357_v36 = vld [vmem:[%s10030_s26 + $0x140] ss:$12 sps:$4 sm:$0xff]  }
 0xf5b   : > { %v3321_v27 = vadd.f32 %v3320_v62, %v3310_v43  ;;  %v8826_v61 = vpop.f32.mrb[62].mxu1  ;;  %v9364_v43 = vld [vmem:[%s10030_s26 + $0x16c] ss:$12 sps:$4 sm:$0xff]   ;;  %v9362_v62 = vld [vmem:[%s10030_s26 + $0x168] ss:$12 sps:$4 sm:$0xff]  }
 0xf5c   : > { %v3293_v12 = vpop.f32.mrb[63].mxu1  ;;  %v3313_v13 = vmul.f32 %v10794_v8, %v8826_v61  ;;  %v2578_v8 = vadd.f32 %v10667_v53, %v10483_v46  ;;  %v9340_v46 = vld [vmem:[%s10030_s26 + $0xdc] ss:$12 sps:$4 sm:$0xff]   ;;  %v9341_v53 = vld [vmem:[%s10030_s26 + $0xe0] ss:$12 sps:$4 sm:$0xff]  }
 0xf5d   : > { %v3312_v7 = vmul.f32 %v10788_v29, %v3293_v12  ;;  %v3322_v26 = vadd.f32 %v3321_v27, %v3311_v47  ;;  %3641 = vmatprep.subr.bf16.mxu1 %v9340_v46  ;;  %v9365_v47 = vld [vmem:[%s10030_s26 + $0x170] ss:$12 sps:$4 sm:$0xff]  }
 0xf5e   : > { %3642 = vmatpush1.bf16.msra.mxu1 %v9338_v15  ;;  %v9372_v46 = vld [vmem:[%s10035_s29 + $0x150] sm:$0xff]  }
 0xf5f   : > { %v3323_v49 = vadd.f32 %v3322_v26, %v3312_v7  ;;  %v9374_v15 = vld [vmem:[%s10035_s29 + $0xd0] sm:$0xff]  }
 0xf61   : > { %v3324_v24 = vadd.f32 %v3323_v49, %v3313_v13 }
 0xf63   : > { %v3325_v40 = vpack.c.bf16 %v3324_v24, %v3324_v24 }
 0xf65   : > { %8844 = vmatmul.mubr.bf16.vlgmr.msra.gmra.mrb[20].mxu0 %v3325_v40 }
 0xf66   : > { %8863 = vmatprep.mubr.msk.bf16.mxu0 %vm9952_vm0, %v9950_v19  ;;  %8848 = vmatpush3.bf16.msra.mxu0 %v9337_v35  ;;  %v9371_v35 = vld [vmem:[%s10035_s29 + $0xc8] sm:$0xff]  }
 0xf67   : > { %8849 = vmatprep.subr.bf16.mxu0 %v9950_v19 }
 0xf6a   : > { %8850 = vmatpush3.bf16.msra.mxu0 %v9341_v53  ;;  %v9373_v53 = vld [vmem:[%s10035_s29 + $0x110] sm:$0xff]  }
 0xf6b   : > { %8851 = vmatprep.subr.bf16.mxu0 %v9950_v19 }
 0xf6e   : > { %8852 = vmatpush3.bf16.msra.mxu0 %v9345_v11  ;;  %v9387_v11 = vld [vmem:[%s10035_s29 + $0x178] sm:$0xff]  }
 0xf6f   : > { %8853 = vmatprep.subr.bf16.mxu0 %v9950_v19 }
 0xf72   : > { %8854 = vmatpush3.bf16.msra.mxu0 %v9349_v30  ;;  %v3502_v30 = vrot.slane %v10708_v33, %v10567_v4 }
 0xf73   : > { %8855 = vmatprep.subr.bf16.mxu0 %v9950_v19 }
 0xf76   : > { %8856 = vmatpush3.bf16.msra.mxu0 %v9353_v1 }
 0xf77   : > { %8857 = vmatprep.subr.bf16.mxu0 %v9950_v19 }
 0xf7a   : > { %8858 = vmatpush3.bf16.msra.mxu0 %v9357_v36 }
 0xf7b   : > { %8859 = vmatprep.subr.bf16.mxu0 %v9950_v19 }
 0xf7e   : > { %8860 = vmatpush3.bf16.msra.mxu0 %v9361_v41 }
 0xf7f   : > { %8861 = vmatprep.subr.bf16.mxu0 %v9950_v19 }
 0xf82   : > { %8862 = vmatpush3.bf16.msra.mxu0 %v9365_v47 }
 0xf83   : > { %8867 = vmatprep.subr.bf16.mxu0 %v9950_v19 }
0x1038   : > { %v3429_v29 = vpop.f32.mrb[20].mxu0 }
0x1039   : > { %v3430_v9 = vadd.f32 %v3429_v29, %v3346_v25  ;;  %v8845_v14 = vpop.f32.mrb[21].mxu0 }
0x103a   : > { %v3432_v50 = vpop.f32.mrb[22].mxu0 }
0x103b   : > { %v10931_v18 = vadd.f32 %v3430_v9, %v10670_v5  ;;  %v10933_v10 = vadd.f32 %v3430_v9, %v2578_v8  ;;  %v8846_v31 = vpop.f32.mrb[23].mxu0  ;;  %v9344_v5 = vld [vmem:[%s10030_s26 + $0xf4] ss:$12 sps:$4 sm:$0xff]  }
0x103c   : > { %3643 = vmatprep.subr.bf16.mxu1 %v9344_v5  ;;  %v9366_v31 = vld [vmem:[%s10035_s29 + $0x140] sm:$0xff]   ;;  %v9375_v5 = vld [vmem:[%s10035_s29 + $0x158] sm:$0xff]  }
0x103d   : > { %3439 = vadd.xlane.f32.xlu1 %v10933_v10  ;;  %3437 = vadd.xlane.f32.xlu0 %v10931_v18 }
0x103e   : > { %3644 = vmatpush1.bf16.msra.mxu1 %v9342_v60  ;;  %v9376_v60 = vld [vmem:[%s10035_s29 + $0x118] sm:$0xff]  }
0x103f   : > { %3645 = vmatprep.subr.bf16.mxu1 %v9348_v51  ;;  %v9388_v51 = vld [vmem:[%s10035_s29 + $0x138] sm:$0xff]  }
0x1042   : > { %3646 = vmatpush1.bf16.msra.mxu1 %v9346_v58  ;;  %v9389_v58 = vld [vmem:[%s10035_s29 + $0xf8] sm:$0xff]  }
0x1043   : > { %3647 = vmatprep.subr.bf16.mxu1 %v9352_v37  ;;  %v3510_v37 = vrot.slane %v10924_v17, %v10567_v4 }
0x1046   : > { %3648 = vmatpush1.bf16.msra.mxu1 %v9350_v45  ;;  %v3506_v45 = vrot.slane %v10711_v2, %v10567_v4 }
0x1047   : > { %3649 = vmatprep.subr.bf16.mxu1 %v9356_v52 }
0x104a   : > { %3650 = vmatpush1.bf16.msra.mxu1 %v9354_v42 }
0x104b   : > { %3651 = vmatprep.subr.bf16.mxu1 %v9360_v63 }
0x104e   : > { %3652 = vmatpush1.bf16.msra.mxu1 %v9358_v3 }
0x104f   : > { %3653 = vmatprep.subr.bf16.mxu1 %v9364_v43 }
0x1052   : > { %3654 = vmatpush1.bf16.msra.mxu1 %v9362_v62 }
0x1053   : > { %8448 = vmatprep.subr.bf16.mxu1 %v9367_v22 }
0x10ca   : > { %v3440_v55 = vpop.xlane.xlu1 %3439  ;;  %v3438_v59 = vpop.xlane.xlu0 %3437 }
0x10cb   : > { %v3442_v39 = vmul.f32 0.010416667, %v3440_v55  ;;  %v3441_v0 = vmul.f32 0.010416667, %v3438_v59  ;;  %v9377_v55 = vld [vmem:[%s10035_s29 + $0xd8] sm:$0xff]   ;;  %v9378_v59 = vld [vmem:[%s10035_s29 + $0x160] sm:$0xff]  }
0x10cd   : > { %v3444_v32 = vsub.f32 %v10933_v10, %v3442_v39  ;;  %v3443_v20 = vsub.f32 %v10931_v18, %v3441_v0  ;;  %v9379_v39 = vld [vmem:[%s10035_s29 + $0x120] sm:$0xff]  }
0x10ce   : > { %v9380_v0 = vld [vmem:[%s10035_s29 + $0xe0] sm:$0xff]  }
0x10cf   : > { %v3446_v28 = vmul.f32 %v10952_v23, %v3444_v32  ;;  %v3445_v6 = vmul.f32 %v10952_v23, %v3443_v20  ;;  %v9381_v32 = vld [vmem:[%s10035_s29 + $0x168] sm:$0xff]  }
0x10d0   : > { %v9382_v20 = vld [vmem:[%s10035_s29 + $0x128] sm:$0xff]  }
0x10d1   : > { %v3448_v38 = vmul.f32 %v3446_v28, %v3446_v28  ;;  %v3447_v48 = vmul.f32 %v3445_v6, %v3445_v6 }
0x10d3   : > { %3451 = vadd.xlane.f32.xlu1 %v3448_v38  ;;  %3449 = vadd.xlane.f32.xlu0 %v3447_v48  ;;  %v9385_v38 = vld [vmem:[%s10035_s29 + $0x130] sm:$0xff]  }
0x10d4   : > { %v9386_v48 = vld [vmem:[%s10035_s29 + $0xf0] sm:$0xff]  }
0x1160   : > { %v3452_v27 = vpop.xlane.xlu1 %3451  ;;  %v3450_v61 = vpop.xlane.xlu0 %3449 }
0x1161   : > { %v3454_v12 = vmul.f32 0.010416667, %v3452_v27  ;;  %v3453_v7 = vmul.f32 0.010416667, %v3450_v61 }
0x1163   : > { %v3456_v26 = vadd.f32 1e-05, %v3454_v12  ;;  %v3455_v13 = vadd.f32 1e-05, %v3453_v7 }
0x1165   : > { %9710 = vrsqrt.f32 %v3456_v26 }
0x1166   : > { %9712 = vrsqrt.f32 %v3455_v13 }
0x116f   : > { %v9711_v49 = vpop.eup %9710 }
0x1170   : > { %v9713_v24 = vpop.eup %9712  ;;  %v3460_v40 = vmul.f32 %v9711_v49, %v3446_v28  ;;  %v9383_v28 = vld [vmem:[%s10035_s29 + $0xe8] sm:$0xff]  }
0x1171   : > { %v3459_v25 = vmul.f32 %v9713_v24, %v3445_v6  ;;  %v9384_v6 = vld [vmem:[%s10035_s29 + $0x170] sm:$0xff]  }
0x1172   : > { %v3462_v29 = vmul.f32 %v3460_v40, %v10715_v56 }
0x1173   : > { %v3461_v8 = vmul.f32 %v3459_v25, %v10715_v56  ;;  %v9369_v56 = vld [vmem:[%s10035_s29 + $0x148] sm:$0xff]  }
0x1174   : > { %v3464_v9 = vadd.f32 %v3462_v29, %v10719_v21 }
0x1175   : > { %v3463_v14 = vadd.f32 %v3461_v8, %v10719_v21  ;;  %v9370_v21 = vld [vmem:[%s10035_s29 + $0x108] sm:$0xff]  }
0x1177   : > { %v3465_v50 = vpack.c.bf16 %v3464_v9, %v3463_v14 }
0x1179   : > { %3672 = vmatmul.mubr.bf16.vlgmr.msra.gmra.mrb[64].mxu1 %v3465_v50  ;;  %8864 = vmatmul.mubr.bf16.vlgmr.msra.gmra.mrb[24].mxu0 %v3465_v50 }
0x117a   : > { %8883 = vmatprep.mubr.msk.bf16.mxu0 %vm9952_vm0, %v9950_v19  ;;  %8868 = vmatpush3.bf16.msra.mxu0 %v9366_v31 }
0x117b   : > { %8869 = vmatprep.subr.bf16.mxu0 %v9950_v19  ;;  %8449 = vmatpush3.bf16.msra.mxu1 %v9368_v16 }
0x117c   : > { %8450 = vmatprep.subr.bf16.mxu1 %v9370_v21 }
0x117e   : > { %8870 = vmatpush3.bf16.msra.mxu0 %v9369_v56 }
0x117f   : > { %8871 = vmatprep.subr.bf16.mxu0 %v9950_v19  ;;  %8451 = vmatpush3.bf16.msra.mxu1 %v9371_v35 }
0x1180   : > { %8452 = vmatprep.subr.bf16.mxu1 %v9373_v53 }
0x1182   : > { %8872 = vmatpush3.bf16.msra.mxu0 %v9372_v46 }
0x1183   : > { %8873 = vmatprep.subr.bf16.mxu0 %v9950_v19  ;;  %8453 = vmatpush3.bf16.msra.mxu1 %v9374_v15 }
0x1184   : > { %8454 = vmatprep.subr.bf16.mxu1 %v9376_v60 }
0x1186   : > { %8874 = vmatpush3.bf16.msra.mxu0 %v9375_v5 }
0x1187   : > { %8875 = vmatprep.subr.bf16.mxu0 %v9950_v19  ;;  %8455 = vmatpush3.bf16.msra.mxu1 %v9377_v55 }
0x1188   : > { %8456 = vmatprep.subr.bf16.mxu1 %v9379_v39 }
0x118a   : > { %8876 = vmatpush3.bf16.msra.mxu0 %v9378_v59 }
0x118b   : > { %8877 = vmatprep.subr.bf16.mxu0 %v9950_v19  ;;  %8457 = vmatpush3.bf16.msra.mxu1 %v9380_v0 }
0x118c   : > { %8458 = vmatprep.subr.bf16.mxu1 %v9382_v20 }
0x118e   : > { %8878 = vmatpush3.bf16.msra.mxu0 %v9381_v32 }
0x118f   : > { %8879 = vmatprep.subr.bf16.mxu0 %v9950_v19  ;;  %8459 = vmatpush3.bf16.msra.mxu1 %v9383_v28 }
0x1190   : > { %8460 = vmatprep.subr.bf16.mxu1 %v9385_v38 }
0x1192   : > { %8880 = vmatpush3.bf16.msra.mxu0 %v9384_v6 }
0x1193   : > { %8881 = vmatprep.subr.bf16.mxu0 %v9950_v19  ;;  %8461 = vmatpush3.bf16.msra.mxu1 %v9386_v48 }
0x1194   : > { %8462 = vmatprep.subr.bf16.mxu1 %v9388_v51 }
0x1196   : > { %8882 = vmatpush3.bf16.msra.mxu0 %v9387_v11 }
0x1197   : > { %8887 = vmatprep.subr.bf16.mxu0 %v9950_v19  ;;  %8463 = vmatpush3.bf16.msra.mxu1 %v9389_v58 }
0x124c   : > { %v3673_v1 = vpop.f32.mrb[64].mxu1  ;;  %v3716_v52 = vpop.f32.mrb[24].mxu0 }
0x124d   : > { %v11022_v42 = vadd.f32 %v3673_v1, %v3502_v30  ;;  %v11024_v36 = vadd.f32 %v3716_v52, %v3510_v37  ;;  %v3675_v63 = vpop.f32.mrb[65].mxu1  ;;  %v8865_v3 = vpop.f32.mrb[25].mxu0 }
0x124e   : > { %v11026_v41 = vadd.f32 %v3675_v63, %v3506_v45  ;;  %v3677_v43 = vpop.f32.mrb[66].mxu1  ;;  %v3719_v62 = vpop.f32.mrb[26].mxu0 }
0x124f   : > { %v11029_v33 = vmul.f32 0.70710677, %v11022_v42  ;;  %v11032_v17 = vmul.f32 0.70710677, %v11024_v36  ;;  %v3679_v47 = vpop.f32.mrb[67].mxu1  ;;  %v8866_v27 = vpop.f32.mrb[27].mxu0  ;;  %v11040_v26 = vadd.f32 %v3677_v43, %v3502_v30  ;;  %v11042_v24 = vadd.f32 %v3719_v62, %v3510_v37 }
0x1250   : > { %v11035_v2 = vmul.f32 0.70710677, %v11026_v41  ;;  %v11052_v56 = vadd.f32 %v3679_v47, %v3506_v45 }
0x1251   : > { %v3747_v61 = vand.u32 2147483647, %v11029_v33  ;;  %v3749_v12 = vand.u32 2147483647, %v11032_v17  ;;  %v11045_v8 = vmul.f32 0.70710677, %v11040_v26 }
0x1252   : > { %v3748_v7 = vand.u32 2147483647, %v11035_v2  ;;  %v11048_v14 = vmul.f32 0.70710677, %v11042_v24  ;;  %v11055_v53 = vmul.f32 0.70710677, %v11052_v56 }
0x1253   : > { %v3753_v13 = vmul.f32 0.3275911, %v3747_v61  ;;  %v3755_v49 = vmul.f32 0.3275911, %v3749_v12  ;;  %v3750_v50 = vand.u32 2147483647, %v11045_v8 }
0x1254   : > { %v3754_v40 = vmul.f32 0.3275911, %v3748_v7  ;;  %v3752_v31 = vand.u32 2147483647, %v11048_v14  ;;  %v3825_v35 = vsub.f32 0.0, %v3747_v61  ;;  %v3827_v15 = vsub.f32 0.0, %v3749_v12 }
0x1255   : > { %v3759_v25 = vadd.f32 1.0, %v3753_v13  ;;  %v3761_v29 = vadd.f32 1.0, %v3755_v49  ;;  %v3756_v22 = vmul.f32 0.3275911, %v3750_v50  ;;  %v3751_v5 = vand.u32 2147483647, %v11055_v53 }
0x1256   : > { %v3760_v9 = vadd.f32 1.0, %v3754_v40  ;;  %v3758_v16 = vmul.f32 0.3275911, %v3752_v31  ;;  %v3826_v60 = vsub.f32 0.0, %v3748_v7  ;;  %v3831_v59 = vmul.f32 %v3825_v35, %v3747_v61 }
0x1257   : > { %9714 = vrcp.f32 %v3759_v25  ;;  %v3762_v21 = vadd.f32 1.0, %v3756_v22  ;;  %v3757_v39 = vmul.f32 0.3275911, %v3751_v5  ;;  %v3833_v20 = vmul.f32 %v3827_v15, %v3749_v12 }
0x1258   : > { %9716 = vrcp.f32 %v3761_v29  ;;  %v3764_v46 = vadd.f32 1.0, %v3758_v16  ;;  %v3828_v6 = vsub.f32 0.0, %v3750_v50  ;;  %v3832_v11 = vmul.f32 %v3826_v60, %v3748_v7 }
0x1259   : > { %9718 = vrcp.f32 %v3760_v9  ;;  %v3763_v38 = vadd.f32 1.0, %v3757_v39  ;;  %v3837_v58 = vmul.f32 1.442695, %v3831_v59  ;;  %v3830_v37 = vsub.f32 0.0, %v3752_v31 }
0x125a   : > { %9720 = vrcp.f32 %v3762_v21  ;;  %v3841_v1 = vmul.f32 1.442695, %v3833_v20  ;;  %v3834_v3 = vmul.f32 %v3828_v6, %v3750_v50  ;;  %v3839_v27 = vmul.f32 1.442695, %v3832_v11 }
0x125b   : > { %9722 = vrcp.f32 %v3764_v46  ;;  %v3836_v13 = vmul.f32 %v3830_v37, %v3752_v31  ;;  %v3829_v22 = vsub.f32 0.0, %v3751_v5  ;;  %vm3735_vm8 = vcmp.ge.f32.partialorder %v11029_v33, 0.0 }
0x125c   : > { %9724 = vrcp.f32 %v3763_v38  ;;  %v3843_v50 = vmul.f32 1.442695, %v3834_v3  ;;  %vm3737_vm9 = vcmp.ge.f32.partialorder %v11032_v17, 0.0  ;;  %vm3738_vm10 = vcmp.ge.f32.partialorder %v11045_v8, 0.0 }
0x125d   : > { %9726 = vpow2.f32 %v3837_v58  ;;  %v3847_v60 = vmul.f32 1.442695, %v3836_v13  ;;  %v3835_v11 = vmul.f32 %v3829_v22, %v3751_v5  ;;  %v3743_v17 = vsel %vm3737_vm9, 1.0, %v9953_v57 }
0x125e   : > { %9728 = vpow2.f32 %v3841_v1  ;;  %vm3740_vm11 = vcmp.ge.f32.partialorder %v11048_v14, 0.0  ;;  %vm3736_vm12 = vcmp.ge.f32.partialorder %v11035_v2, 0.0  ;;  %vm3739_vm13 = vcmp.ge.f32.partialorder %v11055_v53, 0.0 }
0x125f   : > { %9730 = vpow2.f32 %v3839_v27  ;;  %v3845_v5 = vmul.f32 1.442695, %v3835_v11  ;;  %v3746_v8 = vsel %vm3740_vm11, 1.0, %v9953_v57  ;;  %v3724_v2 = vmul.f32 0.5, %v11026_v41 }
0x1260   : > { %9732 = vpow2.f32 %v3843_v50 }
0x1261   : > { %v9715_v55 = vpop.eup %9714  ;;  %9734 = vpow2.f32 %v3847_v60 }
0x1262   : > { %v9717_v0 = vpop.eup %9716  ;;  %v3771_v32 = vmul.f32 1.0614054, %v9715_v55  ;;  %9736 = vpow2.f32 %v3845_v5 }
0x1263   : > { %v3773_v28 = vmul.f32 1.0614054, %v9717_v0  ;;  %v11058_v51 = vpop.eup %9718 }
0x1264   : > { %v3777_v48 = vadd.f32 -1.4531521, %v3771_v32  ;;  %v3772_v52 = vmul.f32 1.0614054, %v11058_v51  ;;  %v11061_v43 = vpop.eup %9720 }
0x1265   : > { %v3779_v30 = vadd.f32 -1.4531521, %v3773_v28  ;;  %v11063_v61 = vpop.eup %9722  ;;  %v3774_v7 = vmul.f32 1.0614054, %v11061_v43 }
0x1266   : > { %v3783_v45 = vmul.f32 %v9715_v55, %v3777_v48  ;;  %v3778_v47 = vadd.f32 -1.4531521, %v3772_v52  ;;  %v3776_v25 = vmul.f32 1.0614054, %v11063_v61  ;;  %v11071_v32 = vpop.eup %9724 }
0x1267   : > { %v3785_v63 = vmul.f32 %v9717_v0, %v3779_v30  ;;  %v3780_v9 = vadd.f32 -1.4531521, %v3774_v7  ;;  %v3775_v37 = vmul.f32 1.0614054, %v11071_v32 }
0x1268   : > { %v3789_v62 = vadd.f32 1.4214138, %v3783_v45  ;;  %v3784_v40 = vmul.f32 %v11058_v51, %v3778_v47  ;;  %v3782_v35 = vadd.f32 -1.4531521, %v3776_v25 }
0x1269   : > { %v3791_v12 = vadd.f32 1.4214138, %v3785_v63  ;;  %v3786_v15 = vmul.f32 %v11061_v43, %v3780_v9  ;;  %v9727_v63 = vpop.eup %9726  ;;  %v3781_v47 = vadd.f32 -1.4531521, %v3775_v37  ;;  %v3723_v37 = vmul.f32 0.5, %v11022_v42 }
0x126a   : > { %v3795_v49 = vmul.f32 %v9715_v55, %v3789_v62  ;;  %v3790_v21 = vadd.f32 1.4214138, %v3784_v40  ;;  %v3788_v39 = vmul.f32 %v11063_v61, %v3782_v35  ;;  %v9729_v27 = vpop.eup %9728 }
0x126b   : > { %v3797_v29 = vmul.f32 %v9717_v0, %v3791_v12  ;;  %v3792_v28 = vadd.f32 1.4214138, %v3786_v15  ;;  %v3787_v25 = vmul.f32 %v11071_v32, %v3781_v47  ;;  %v9731_v22 = vpop.eup %9730 }
0x126c   : > { %v3801_v16 = vadd.f32 -0.28449672, %v3795_v49  ;;  %v3796_v31 = vmul.f32 %v11058_v51, %v3790_v21  ;;  %v3794_v48 = vadd.f32 1.4214138, %v3788_v39  ;;  %v9733_v35 = vpop.eup %9732 }
0x126d   : > { %v3803_v46 = vadd.f32 -0.28449672, %v3797_v29  ;;  %v3798_v30 = vmul.f32 %v11061_v43, %v3792_v28  ;;  %v3793_v50 = vadd.f32 1.4214138, %v3787_v25  ;;  %v9735_v60 = vpop.eup %9734 }
0x126e   : > { %v3807_v59 = vmul.f32 %v9715_v55, %v3801_v16  ;;  %v3802_v38 = vadd.f32 -0.28449672, %v3796_v31  ;;  %v3800_v52 = vmul.f32 %v11063_v61, %v3794_v48  ;;  %v3744_v48 = vsel %vm3738_vm10, 1.0, %v9953_v57  ;;  %v9737_v47 = vpop.eup %9736 }
0x126f   : > { %v3809_v20 = vmul.f32 %v9717_v0, %v3803_v46  ;;  %v3804_v62 = vadd.f32 -0.28449672, %v3798_v30  ;;  %v3741_v46 = vsel %vm3735_vm8, 1.0, %v9953_v57  ;;  %v3799_v33 = vmul.f32 %v11071_v32, %v3793_v50 }
0x1270   : > { %v3813_v6 = vadd.f32 0.2548296, %v3807_v59  ;;  %v3808_v1 = vmul.f32 %v11058_v51, %v3802_v38  ;;  %v3806_v13 = vadd.f32 -0.28449672, %v3800_v52  ;;  %v3725_v52 = vmul.f32 0.5, %v11024_v36 }
0x1271   : > { %v3815_v58 = vadd.f32 0.2548296, %v3809_v20  ;;  %v3810_v40 = vmul.f32 %v11061_v43, %v3804_v62  ;;  %v3805_v20 = vadd.f32 -0.28449672, %v3799_v33 }
0x1272   : > { %v3819_v45 = vmul.f32 %v9715_v55, %v3813_v6  ;;  %v3814_v7 = vadd.f32 0.2548296, %v3808_v1  ;;  %v3812_v55 = vmul.f32 %v11063_v61, %v3806_v13 }
0x1273   : > { %v3821_v3 = vmul.f32 %v9717_v0, %v3815_v58  ;;  %v3816_v9 = vadd.f32 0.2548296, %v3810_v40 }
0x1274   : > { %v3849_v12 = vmul.f32 %v9727_v63, %v3819_v45  ;;  %v3820_v0 = vmul.f32 %v11058_v51, %v3814_v7  ;;  %v3818_v21 = vadd.f32 0.2548296, %v3812_v55  ;;  %v3726_v63 = vmul.f32 0.5, %v11040_v26 }
0x1275   : > { %v3851_v49 = vmul.f32 %v9729_v27, %v3821_v3  ;;  %v3822_v15 = vmul.f32 %v11061_v43, %v3816_v9  ;;  %v3811_v43 = vmul.f32 %v11071_v32, %v3805_v20  ;;  %v3742_v27 = vsel %vm3736_vm12, 1.0, %v9953_v57 }
0x1276   : > { %v3855_v29 = vsub.f32 1.0, %v3849_v12  ;;  %v3824_v51 = vmul.f32 %v11063_v61, %v3818_v21  ;;  %v3850_v31 = vmul.f32 %v9731_v22, %v3820_v0  ;;  %v3728_v12 = vmul.f32 0.5, %v11042_v24 }
0x1277   : > { %v3857_v16 = vsub.f32 1.0, %v3851_v49  ;;  %v3852_v39 = vmul.f32 %v9733_v35, %v3822_v15  ;;  %v3817_v30 = vadd.f32 0.2548296, %v3811_v43  ;;  %v3727_v24 = vmul.f32 0.5, %v11052_v56  ;;  %v9911_v56 = vld [vmem:[%s10020_s20 + $0x18] sm:$0xff] }
0x1278   : > { %v3861_v59 = vmul.f32 %v3855_v29, %v3741_v46  ;;  %v3854_v6 = vmul.f32 %v9735_v60, %v3824_v51  ;;  %v3856_v58 = vsub.f32 1.0, %v3850_v31  ;;  %v3934_v15 = vrot.slane %v9911_v56, %v10663_v34  ;;  %v9392_v43 = vld [vmem:[%s10025_s23 + $0x184] ss:$12 sps:$4 sm:$0xff]  }
0x1279   : > { %v3863_v28 = vmul.f32 %v3857_v16, %v3743_v17  ;;  %v3858_v38 = vsub.f32 1.0, %v3852_v39  ;;  %v3823_v62 = vmul.f32 %v11071_v32, %v3817_v30  ;;  %v3745_v32 = vsel %vm3739_vm13, 1.0, %v9953_v57  ;;  %4351 = vmatprep.subr.bf16.mxu1 %v9392_v43  ;;  %v11172_v56 = vld [vmem:[%s12005_s3] sm:$0xff] }
0x127a   : > { %v3860_v11 = vsub.f32 1.0, %v3854_v6  ;;  %v3867_v14 = vadd.f32 1.0, %v3861_v59  ;;  %v3862_v13 = vmul.f32 %v3856_v58, %v3742_v27  ;;  %v9400_v58 = vld [vmem:[%s10025_s23 + $0x1b4] ss:$12 sps:$4 sm:$0xff]  }
0x127b   : > { %v3864_v61 = vmul.f32 %v3858_v38, %v3744_v48  ;;  %v3869_v45 = vadd.f32 1.0, %v3863_v28  ;;  %v3853_v49 = vmul.f32 %v9737_v47, %v3823_v62  ;;  %v9390_v38 = vld [vmem:[%s10025_s23 + $0x180] ss:$12 sps:$4 sm:$0xff]   ;;  %v9393_v48 = vld [vmem:[%s10025_s23 + $0x188] ss:$12 sps:$4 sm:$0xff]  }
0x127c   : > { %v3866_v1 = vmul.f32 %v3860_v11, %v3746_v8  ;;  %v3873_v42 = vmul.f32 %v3867_v14, %v3723_v37  ;;  %v3868_v29 = vadd.f32 1.0, %v3862_v13  ;;  %v9396_v8 = vld [vmem:[%s10025_s23 + $0x19c] ss:$12 sps:$4 sm:$0xff]   ;;  %v9397_v11 = vld [vmem:[%s10025_s23 + $0x1a0] ss:$12 sps:$4 sm:$0xff]  }
0x127d   : > { %v3870_v3 = vadd.f32 1.0, %v3864_v61  ;;  %v3875_v36 = vmul.f32 %v3869_v45, %v3725_v52  ;;  %v3859_v25 = vsub.f32 1.0, %v3853_v49  ;;  %v9394_v14 = vld [vmem:[%s10025_s23 + $0x198] ss:$12 sps:$4 sm:$0xff]   ;;  %v9405_v62 = vld [vmem:[%s10025_s23 + $0x1d0] ss:$12 sps:$4 sm:$0xff]  }
0x127e   : > { %v3872_v7 = vadd.f32 1.0, %v3866_v1  ;;  %v3874_v9 = vmul.f32 %v3868_v29, %v3724_v2  ;;  %v9401_v52 = vld [vmem:[%s10025_s23 + $0x1b8] ss:$12 sps:$4 sm:$0xff]   ;;  %v9406_v47 = vld [vmem:[%s10025_s23 + $0x1e0] ss:$12 sps:$4 sm:$0xff]   ;;  %v11152_v29 = vld [vmem:[%s10020_s20 + $0x30] sm:$0xff] }
0x127f   : > { %v3876_v5 = vmul.f32 %v3870_v3, %v3726_v63  ;;  %v3865_v0 = vmul.f32 %v3859_v25, %v3745_v32  ;;  %v9404_v63 = vld [vmem:[%s10025_s23 + $0x1cc] ss:$12 sps:$4 sm:$0xff]   ;;  %v9402_v3 = vld [vmem:[%s10025_s23 + $0x1c8] ss:$12 sps:$4 sm:$0xff]   ;;  %v11159_v2 = vrot.slane %v11152_v29, %v10256_v54 }
0x1280   : > { %v3878_v40 = vmul.f32 %v3872_v7, %v3728_v12  ;;  %v9409_v27 = vld [vmem:[%s10025_s23 + $0x1e8] ss:$12 sps:$4 sm:$0xff]   ;;  %v9410_v7 = vld [vmem:[%s10025_s23 + $0x1f8] ss:$12 sps:$4 sm:$0xff]  }
0x1281   : > { %v3879_v26 = vpack.c.bf16 %v3876_v5, %v3873_v42  ;;  %v3871_v53 = vadd.f32 1.0, %v3865_v0  ;;  %v9412_v12 = vld [vmem:[%s10025_s23 + $0x1fc] ss:$12 sps:$4 sm:$0xff]   ;;  %v9413_v42 = vld [vmem:[%s10025_s23 + $0x200] ss:$12 sps:$4 sm:$0xff]  }
0x1282   : > { %v3881_v55 = vpack.c.bf16 %v3878_v40, %v3875_v36  ;;  %v9416_v13 = vld [vmem:[%s10025_s23 + $0x214] ss:$12 sps:$4 sm:$0xff]   ;;  %v9414_v5 = vld [vmem:[%s10025_s23 + $0x210] ss:$12 sps:$4 sm:$0xff]   ;;  %v9417_v49 = vld [vmem:[%s10025_s23 + $0x218] ss:$12 sps:$4 sm:$0xff]  }
0x1283   : > { %v3877_v50 = vmul.f32 %v3871_v53, %v3727_v24  ;;  %v9420_v36 = vld [vmem:[%s10025_s23 + $0x22c] ss:$12 sps:$4 sm:$0xff]   ;;  %v9418_v40 = vld [vmem:[%s10025_s23 + $0x228] ss:$12 sps:$4 sm:$0xff]  }
0x1284   : > { %8884 = vmatmul.mubr.bf16.vlgmr.msra.gmra.mrb[28].mxu0 %v3881_v55  ;;  %v11155_v0 = vld [vmem:[%s10020_s20 + $0x38] sm:$0xff] }
0x1285   : > { %8903 = vmatprep.mubr.msk.bf16.mxu0 %vm9952_vm0, %v9950_v19  ;;  %v3880_v22 = vpack.c.bf16 %v3877_v50, %v3874_v9  ;;  %8888 = vmatpush3.bf16.msra.mxu0 %v9393_v48  ;;  %v11163_v9 = vrot.slane %v11155_v0, %v10256_v54  ;;  %v11196_v48 = vld [vmem:[%s12005_s3 + $0x20] sm:$0xff] }
0x1286   : > { %8889 = vmatprep.subr.bf16.mxu0 %v9950_v19 }
0x1287   : > { %4111 = vmatprep.mubr.bf16.mxu1 %v3880_v22 }
0x1288   : > { %4112 = vmatmul.mubr.bf16.vlgmr.msra.gmra.mrb[68].mxu1 %v3879_v26  ;;  %v9421_v26 = vld [vmem:[%s10025_s23 + $0x230] ss:$12 sps:$4 sm:$0xff]  }
0x1289   : > { %4383 = vmatprep.mubr.bf16.mxu1 %v9951_v44  ;;  %4352 = vmatpush1.bf16.msra.mxu1 %v9390_v38  ;;  %v11190_v38 = vld [vmem:[%s12005_s3 + $0x18] sm:$0xff] }
0x128a   : > { %4353 = vmatprep.subr.bf16.mxu1 %v9396_v8  ;;  %8890 = vmatpush3.bf16.msra.mxu0 %v9397_v11  ;;  %v11202_v11 = vld [vmem:[%s12005_s3 + $0x28] sm:$0xff] }
0x128b   : > { %8891 = vmatprep.subr.bf16.mxu0 %v9950_v19 }
0x128d   : > { %4354 = vmatpush1.bf16.msra.mxu1 %v9394_v14 }
0x128e   : > { %4355 = vmatprep.subr.bf16.mxu1 %v9400_v58  ;;  %8892 = vmatpush3.bf16.msra.mxu0 %v9401_v52  ;;  %v11208_v58 = vld [vmem:[%s12005_s3 + $0x30] sm:$0xff] }
0x128f   : > { %8893 = vmatprep.subr.bf16.mxu0 %v9950_v19 }
0x1292   : > { %8894 = vmatpush3.bf16.msra.mxu0 %v9405_v62  ;;  %v11238_v62 = vld [vmem:[%s12005_s3 + $0x58] sm:$0xff] }
0x1293   : > { %8895 = vmatprep.subr.bf16.mxu0 %v9950_v19 }
0x1296   : > { %8896 = vmatpush3.bf16.msra.mxu0 %v9409_v27 }
0x1297   : > { %8897 = vmatprep.subr.bf16.mxu0 %v9950_v19 }
0x129a   : > { %8898 = vmatpush3.bf16.msra.mxu0 %v9413_v42  ;;  %v9924_v42 = vld [vmem:[%s12005_s3 + $0x61] ss:$0 sm:$0xff] }
0x129b   : > { %8899 = vmatprep.subr.bf16.mxu0 %v9950_v19 }
0x129e   : > { %8900 = vmatpush3.bf16.msra.mxu0 %v9417_v49 }
0x129f   : > { %8901 = vmatprep.subr.bf16.mxu0 %v9950_v19 }
0x12a2   : > { %8902 = vmatpush3.bf16.msra.mxu0 %v9421_v26 }
0x12a3   : > { %8947 = vmatprep.subr.bf16.mxu0 %v9950_v19 }
0x1357   : > { %v4154_v16 = vpop.f32.mrb[28].mxu0 }
0x1358   : > { %v8885_v21 = vpop.f32.mrb[29].mxu0 }
0x1359   : > { %v4157_v35 = vpop.f32.mrb[30].mxu0 }
0x135a   : > { %v8886_v46 = vpop.f32.mrb[31].mxu0 }
0x135b   : > { %v8464_v41 = vpop.f32.mrb[68].mxu1 }
0x135c   : > { %v8465_v33 = vpop.f32.mrb[69].mxu1 }
0x135d   : > { %v8466_v17 = vadd.f32 %v8465_v33, %v8464_v41  ;;  %v8467_v51 = vpop.f32.mrb[70].mxu1 }
0x135e   : > { %v8468_v60 = vpop.f32.mrb[71].mxu1 }
0x135f   : > { %v4114_v59 = vadd.f32 %v8466_v17, %v3934_v15  ;;  %v8469_v31 = vadd.f32 %v8468_v60, %v8467_v51 }
0x1361   : > { %v4155_v39 = vadd.f32 %v4154_v16, %v4114_v59  ;;  %v4117_v20 = vadd.f32 %v8469_v31, %v3934_v15  ;;  %v11178_v59 = vld [vmem:[%s12005_s3 + $0x8] sm:$0xff] }
0x1363   : > { %v11111_v28 = vadd.f32 %v4157_v35, %v4117_v20  ;;  %v11114_v6 = vadd.f32 %v4155_v39, %v10931_v18  ;;  %v9398_v18 = vld [vmem:[%s10025_s23 + $0x1b0] ss:$12 sps:$4 sm:$0xff]  }
0x1364   : > { %4356 = vmatpush1.bf16.msra.mxu1 %v9398_v18  ;;  %v11184_v39 = vld [vmem:[%s12005_s3 + $0x10] sm:$0xff] }
0x1365   : > { %4167 = vadd.xlane.f32.xlu0 %v11114_v6  ;;  %4357 = vmatprep.subr.bf16.mxu1 %v9404_v63  ;;  %v11232_v63 = vld [vmem:[%s12005_s3 + $0x50] sm:$0xff] }
0x1368   : > { %4358 = vmatpush1.bf16.msra.mxu1 %v9402_v3 }
0x13f2   : > { %v4168_v61 = vpop.xlane.xlu0 %4167 }
0x13f3   : > { %v4169_v30 = vmul.f32 0.010416667, %v4168_v61  ;;  %v11214_v61 = vld [vmem:[%s12005_s3 + $0x38] sm:$0xff] }
0x13f5   : > { %v4170_v37 = vsub.f32 %v11114_v6, %v4169_v30 }
0x13f7   : > { %v4171_v45 = vmul.f32 %v10952_v23, %v4170_v37  ;;  %v9408_v23 = vld [vmem:[%s10025_s23 + $0x1e4] ss:$12 sps:$4 sm:$0xff]  }
0x13f8   : > { %4359 = vmatprep.subr.bf16.mxu1 %v9408_v23  ;;  %v11220_v37 = vld [vmem:[%s12005_s3 + $0x40] sm:$0xff] }
0x13f9   : > { %v4172_v1 = vmul.f32 %v4171_v45, %v4171_v45  ;;  %4360 = vmatpush1.bf16.msra.mxu1 %v9406_v47 }
0x13fa   : > { %4361 = vmatprep.subr.bf16.mxu1 %v9412_v12 }
0x13fb   : > { %4173 = vadd.xlane.f32.xlu1 %v4172_v1  ;;  %v11226_v1 = vld [vmem:[%s12005_s3 + $0x48] sm:$0xff] }
0x13fd   : > { %4362 = vmatpush1.bf16.msra.mxu1 %v9410_v7 }
0x13fe   : > { %4363 = vmatprep.subr.bf16.mxu1 %v9416_v13 }
0x1401   : > { %4364 = vmatpush1.bf16.msra.mxu1 %v9414_v5 }
0x1402   : > { %4365 = vmatprep.subr.bf16.mxu1 %v9420_v36 }
0x1405   : > { %4366 = vmatpush1.bf16.msra.mxu1 %v9418_v40 }
0x1488   : > { %v4174_v25 = vpop.xlane.xlu1 %4173 }
0x1489   : > { %v4175_v55 = vmul.f32 0.010416667, %v4174_v25 }
0x148b   : > { %v4176_v32 = vadd.f32 1e-05, %v4175_v55 }
0x148d   : > { %9738 = vrsqrt.f32 %v4176_v32 }
0x1497   : > { %v9739_v24 = vpop.eup %9738 }
0x1498   : > { %v4178_v53 = vmul.f32 %v9739_v24, %v4171_v45 }
0x149a   : > { %v4183_v50 = vmul.f32 %v11159_v2, %v4178_v53 }
0x149c   : > { %v4188_v22 = vadd.f32 %v11163_v9, %v4183_v50 }
0x149e   : > { %v4189_v16 = vpack.c.bf16 %v4188_v22, %v4188_v22 }
0x14a0   : > { %4384 = vmatmul.mubr.bf16.vlgmr.msra.gmra.mrb[72].mxu1 %v4189_v16  ;;  %8904 = vmatmul.mubr.bf16.vlgmr.msra.gmra.mrb[32].mxu0 %v4189_v16 }
0x14a1   : > { %8963 = vmatprep.mubr.msk.bf16.mxu0 %vm9952_vm0, %v9950_v19 }
0x1573   : > { %v4385_v21 = vpop.f32.mrb[72].mxu1  ;;  %v4426_v35 = vpop.f32.mrb[32].mxu0 }
0x1574   : > { %v4387_v46 = vpop.f32.mrb[73].mxu1  ;;  %v8905_v41 = vpop.f32.mrb[33].mxu0  ;;  %v4432_v15 = vmul.f32 %v11172_v56, %v4385_v21  ;;  %v4433_v31 = vmul.f32 %v11178_v59, %v4385_v21  ;;  %v4434_v20 = vmul.f32 %v11184_v39, %v4385_v21  ;;  %v4435_v43 = vmul.f32 %v11190_v38, %v4385_v21 }
0x1575   : > { %v4389_v33 = vpop.f32.mrb[74].mxu1  ;;  %v4429_v17 = vpop.f32.mrb[34].mxu0  ;;  %8907 = vmatprep.subr.mxu1 %v4387_v46  ;;  %v4436_v8 = vmul.f32 %v11196_v48, %v4385_v21  ;;  %v4437_v14 = vmul.f32 %v11202_v11, %v4385_v21  ;;  %v4438_v18 = vmul.f32 %v11208_v58, %v4385_v21  ;;  %v4439_v30 = vmul.f32 %v11214_v61, %v4385_v21 }
0x1576   : > { %v4390_v51 = vpop.f32.mrb[75].mxu1  ;;  %v8906_v60 = vpop.f32.mrb[35].mxu0  ;;  %8908 = vmatpush3.xpose.msra.mxu1 %v4387_v46  ;;  %8909 = vmatprep.mubr.f32.mxu1 %v4432_v15  ;;  %v4440_v45 = vmul.f32 %v11220_v37, %v4385_v21  ;;  %v4441_v52 = vmul.f32 %v11226_v1, %v4385_v21  ;;  %v4442_v3 = vmul.f32 %v11232_v63, %v4385_v21 }
0x1577   : > { %8927 = vmatprep.subr.mxu1 %v4426_v35  ;;  %v4443_v47 = vmul.f32 %v11238_v62, %v4385_v21 }
0x1579   : > { %8910 = vmatmul.mubr.f32.vlgmr.msra.gmra.mrb[76].mxu1 %v4433_v31 }
0x157a   : > { %8912 = vmatprep.mubr.f32.mxu1 %v4434_v20  ;;  %8928 = vmatpush3.msra.mxu1 %v4426_v35 }
0x157d   : > { %8913 = vmatmul.mubr.f32.gmra.mrb[78].mxu1 %v4435_v43 }
0x157e   : > { %8915 = vmatprep.mubr.f32.mxu1 %v4436_v8 }
0x1581   : > { %8916 = vmatmul.mubr.f32.gmra.mrb[80].mxu1 %v4437_v14 }
0x1582   : > { %8918 = vmatprep.mubr.f32.mxu1 %v4438_v18 }
0x1585   : > { %8919 = vmatmul.mubr.f32.gmra.mrb[82].mxu1 %v4439_v30 }
0x1586   : > { %8921 = vmatprep.mubr.f32.mxu1 %v4440_v45 }
0x1589   : > { %8922 = vmatmul.mubr.f32.gmra.mrb[84].mxu1 %v4441_v52 }
0x158a   : > { %8924 = vmatprep.mubr.f32.mxu1 %v4442_v3 }
0x158d   : > { %8925 = vmatmul.mubr.f32.gmra.mrb[86].mxu1 %v4443_v47 }
0x164c   : > { %v8911_v23 = vpop.f32.mrb[76].mxu1 }
0x164d   : > { %v4570_v27 = vmul.f32 0.35355338, %v8911_v23  ;;  %v4510_v12 = vpop.f32.mrb[77].mxu1 }
0x164e   : > { %v4569_v7 = vmul.f32 0.35355338, %v4510_v12 }
0x164f   : > { %v4582_v13 = vadd.f32 %v9924_v42, %v4570_v27 }
0x1650   : > { %v8914_v5 = vpop.f32.mrb[78].mxu1  ;;  %v4581_v49 = vadd.f32 %v9924_v42, %v4569_v7 }
0x1651   : > { %v4572_v36 = vmul.f32 0.35355338, %v8914_v5  ;;  %v4520_v40 = vpop.f32.mrb[79].mxu1  ;;  %v4596_v26 = vsel %vm1427_vm1, %v4582_v13, -inf }
0x1652   : > { %v4571_v25 = vmul.f32 0.35355338, %v4520_v40  ;;  %4597 = vmax.xlane.f32.xlu1 %v4596_v26  ;;  %v4593_v55 = vsel %vm1427_vm1, %v4581_v49, -inf }
0x1653   : > { %4594 = vmax.xlane.f32.xlu0 %v4593_v55  ;;  %v4584_v32 = vadd.f32 %v9924_v42, %v4572_v36 }
0x1654   : > { %v8917_v24 = vpop.f32.mrb[80].mxu1  ;;  %v4583_v53 = vadd.f32 %v9924_v42, %v4571_v25 }
0x1655   : > { %v4574_v50 = vmul.f32 0.35355338, %v8917_v24  ;;  %v4530_v22 = vpop.f32.mrb[81].mxu1  ;;  %v4602_v16 = vsel %vm1427_vm1, %v4584_v32, -inf }
0x1656   : > { %v4573_v21 = vmul.f32 0.35355338, %v4530_v22  ;;  %4603 = vmax.xlane.f32.xlu1 %v4602_v16  ;;  %v4599_v35 = vsel %vm1427_vm1, %v4583_v53, -inf }
0x1657   : > { %4600 = vmax.xlane.f32.xlu0 %v4599_v35  ;;  %v4586_v46 = vadd.f32 %v9924_v42, %v4574_v50 }
0x1658   : > { %v8920_v41 = vpop.f32.mrb[82].mxu1  ;;  %v4585_v15 = vadd.f32 %v9924_v42, %v4573_v21 }
0x1659   : > { %v4576_v33 = vmul.f32 0.35355338, %v8920_v41  ;;  %v4540_v17 = vpop.f32.mrb[83].mxu1  ;;  %v4608_v51 = vsel %vm1427_vm1, %v4586_v46, -inf }
0x165a   : > { %v4575_v60 = vmul.f32 0.35355338, %v4540_v17  ;;  %4609 = vmax.xlane.f32.xlu1 %v4608_v51  ;;  %v4605_v31 = vsel %vm1427_vm1, %v4585_v15, -inf }
0x165b   : > { %4606 = vmax.xlane.f32.xlu0 %v4605_v31  ;;  %v4588_v20 = vadd.f32 %v9924_v42, %v4576_v33 }
0x165c   : > { %v8923_v43 = vpop.f32.mrb[84].mxu1  ;;  %v4587_v8 = vadd.f32 %v9924_v42, %v4575_v60 }
0x165d   : > { %v4578_v14 = vmul.f32 0.35355338, %v8923_v43  ;;  %v4550_v18 = vpop.f32.mrb[85].mxu1  ;;  %v4614_v30 = vsel %vm1427_vm1, %v4588_v20, -inf }
0x165e   : > { %v4577_v45 = vmul.f32 0.35355338, %v4550_v18  ;;  %4615 = vmax.xlane.f32.xlu1 %v4614_v30  ;;  %v4611_v52 = vsel %vm1427_vm1, %v4587_v8, -inf }
0x165f   : > { %4612 = vmax.xlane.f32.xlu0 %v4611_v52  ;;  %v4590_v3 = vadd.f32 %v9924_v42, %v4578_v14 }
0x1660   : > { %v8926_v47 = vpop.f32.mrb[86].mxu1  ;;  %v4589_v23 = vadd.f32 %v9924_v42, %v4577_v45 }
0x1661   : > { %v4580_v27 = vmul.f32 0.35355338, %v8926_v47  ;;  %v4560_v12 = vpop.f32.mrb[87].mxu1  ;;  %v4620_v7 = vsel %vm1427_vm1, %v4590_v3, -inf }
0x1662   : > { %v4579_v5 = vmul.f32 0.35355338, %v4560_v12  ;;  %4621 = vmax.xlane.f32.xlu1 %v4620_v7  ;;  %v4617_v36 = vsel %vm1427_vm1, %v4589_v23, -inf }
0x1663   : > { %4618 = vmax.xlane.f32.xlu0 %v4617_v36  ;;  %v11254_v40 = vadd.f32 %v9924_v42, %v4580_v27 }
0x1664   : > { %v11256_v26 = vadd.f32 %v9924_v42, %v4579_v5 }
0x1665   : > { %v4626_v25 = vsel %vm1427_vm1, %v11254_v40, -inf }
0x1666   : > { %4627 = vmax.xlane.f32.xlu1 %v4626_v25  ;;  %v4623_v55 = vsel %vm1427_vm1, %v11256_v26, -inf }
0x1667   : > { %4624 = vmax.xlane.f32.xlu0 %v4623_v55 }
0x16df   : > { %v4598_v24 = vpop.xlane.xlu1 %4597 }
0x16e0   : > { %v4630_v50 = vsub.f32 %v4582_v13, %v4598_v24  ;;  %v4595_v22 = vpop.xlane.xlu0 %4594 }
0x16e1   : > { %v4629_v16 = vsub.f32 %v4581_v49, %v4595_v22 }
0x16e2   : > { %v4643_v21 = vmul.f32 1.442695, %v4630_v50 }
0x16e3   : > { %v4641_v35 = vmul.f32 1.442695, %v4629_v16  ;;  %v4604_v41 = vpop.xlane.xlu1 %4603 }
0x16e4   : > { %9740 = vpow2.f32 %v4643_v21  ;;  %v4632_v33 = vsub.f32 %v4584_v32, %v4604_v41  ;;  %v4601_v17 = vpop.xlane.xlu0 %4600 }
0x16e5   : > { %9742 = vpow2.f32 %v4641_v35  ;;  %v4631_v42 = vsub.f32 %v4583_v53, %v4601_v17 }
0x16e6   : > { %v4647_v51 = vmul.f32 1.442695, %v4632_v33 }
0x16e7   : > { %v4645_v60 = vmul.f32 1.442695, %v4631_v42  ;;  %v4610_v31 = vpop.xlane.xlu1 %4609 }
0x16e8   : > { %9744 = vpow2.f32 %v4647_v51  ;;  %v4634_v43 = vsub.f32 %v4586_v46, %v4610_v31  ;;  %v4607_v14 = vpop.xlane.xlu0 %4606 }
0x16e9   : > { %9746 = vpow2.f32 %v4645_v60  ;;  %v4633_v18 = vsub.f32 %v4585_v15, %v4607_v14 }
0x16ea   : > { %v4651_v30 = vmul.f32 1.442695, %v4634_v43 }
0x16eb   : > { %v4649_v13 = vmul.f32 1.442695, %v4633_v18  ;;  %v4616_v45 = vpop.xlane.xlu1 %4615 }
0x16ec   : > { %9748 = vpow2.f32 %v4651_v30  ;;  %v4636_v49 = vsub.f32 %v4588_v20, %v4616_v45  ;;  %v4613_v52 = vpop.xlane.xlu0 %4612 }
0x16ed   : > { %9750 = vpow2.f32 %v4649_v13  ;;  %v4635_v47 = vsub.f32 %v4587_v8, %v4613_v52 }
0x16ee   : > { %v11262_v32 = vpop.eup %9740  ;;  %v4655_v27 = vmul.f32 1.442695, %v4636_v49 }
0x16ef   : > { %v11264_v53 = vpop.eup %9742  ;;  %v4653_v12 = vmul.f32 1.442695, %v4635_v47  ;;  %v4622_v7 = vpop.xlane.xlu1 %4621  ;;  %v4668_v46 = vsel %vm1427_vm1, %v11262_v32, 0.0  ;;  %v9422_v47 = vld [vmem:[%s10015_s17 + $0x80] sm:$0xff]  }
0x16f0   : > { %9752 = vpow2.f32 %v4655_v27  ;;  %v4638_v15 = vsub.f32 %v4590_v3, %v4622_v7  ;;  %v4619_v5 = vpop.xlane.xlu0 %4618  ;;  %4669 = vadd.xlane.f32.xlu1 %v4668_v46  ;;  %v4665_v20 = vsel %vm1427_vm1, %v11264_v53, 0.0  ;;  %8948 = vmatpush3.bf16.msra.mxu0 %v9422_v47 }
0x16f1   : > { %9754 = vpow2.f32 %v4653_v12  ;;  %v4637_v36 = vsub.f32 %v4589_v23, %v4619_v5  ;;  %4666 = vadd.xlane.f32.xlu0 %v4665_v20  ;;  %8949 = vmatprep.subr.bf16.mxu0 %v9950_v19 }
0x16f2   : > { %v11270_v8 = vpop.eup %9744  ;;  %v4659_v25 = vmul.f32 1.442695, %v4638_v15 }
0x16f3   : > { %v11272_v55 = vpop.eup %9746  ;;  %v4657_v24 = vmul.f32 1.442695, %v4637_v36  ;;  %v4628_v50 = vpop.xlane.xlu1 %4627  ;;  %v4674_v22 = vsel %vm1427_vm1, %v11270_v8, 0.0 }
0x16f4   : > { %9756 = vpow2.f32 %v4659_v25  ;;  %v4640_v3 = vsub.f32 %v11254_v40, %v4628_v50  ;;  %4675 = vadd.xlane.f32.xlu1 %v4674_v22  ;;  %v4625_v16 = vpop.xlane.xlu0 %4624  ;;  %v4671_v21 = vsel %vm1427_vm1, %v11272_v55, 0.0 }
0x16f5   : > { %9758 = vpow2.f32 %v4657_v24  ;;  %v4639_v23 = vsub.f32 %v11256_v26, %v4625_v16  ;;  %4672 = vadd.xlane.f32.xlu0 %v4671_v21 }
0x16f6   : > { %v11280_v35 = vpop.eup %9748  ;;  %v4663_v41 = vmul.f32 1.442695, %v4640_v3 }
0x16f7   : > { %v11282_v33 = vpop.eup %9750  ;;  %v4661_v17 = vmul.f32 1.442695, %v4639_v23  ;;  %v4680_v42 = vsel %vm1427_vm1, %v11280_v35, 0.0 }
0x16f8   : > { %9760 = vpow2.f32 %v4663_v41  ;;  %4681 = vadd.xlane.f32.xlu1 %v4680_v42  ;;  %v4677_v40 = vsel %vm1427_vm1, %v11282_v33, 0.0 }
0x16f9   : > { %9762 = vpow2.f32 %v4661_v17  ;;  %4678 = vadd.xlane.f32.xlu0 %v4677_v40 }
0x16fa   : > { %v11288_v51 = vpop.eup %9752 }
0x16fb   : > { %v11290_v26 = vpop.eup %9754  ;;  %v4686_v60 = vsel %vm1427_vm1, %v11288_v51, 0.0 }
0x16fc   : > { %4687 = vadd.xlane.f32.xlu1 %v4686_v60  ;;  %v4683_v31 = vsel %vm1427_vm1, %v11290_v26, 0.0 }
0x16fd   : > { %4684 = vadd.xlane.f32.xlu0 %v4683_v31 }
0x16fe   : > { %v11296_v43 = vpop.eup %9756 }
0x16ff   : > { %v11298_v14 = vpop.eup %9758  ;;  %v4692_v18 = vsel %vm1427_vm1, %v11296_v43, 0.0 }
0x1700   : > { %4693 = vadd.xlane.f32.xlu1 %v4692_v18  ;;  %v4689_v30 = vsel %vm1427_vm1, %v11298_v14, 0.0 }
0x1701   : > { %4690 = vadd.xlane.f32.xlu0 %v4689_v30 }
0x1702   : > { %v11304_v13 = vpop.eup %9760 }
0x1703   : > { %v11306_v45 = vpop.eup %9762  ;;  %v4698_v49 = vsel %vm1427_vm1, %v11304_v13, 0.0 }
0x1704   : > { %4699 = vadd.xlane.f32.xlu1 %v4698_v49  ;;  %v4695_v52 = vsel %vm1427_vm1, %v11306_v45, 0.0 }
0x1705   : > { %4696 = vadd.xlane.f32.xlu0 %v4695_v52 }
0x177d   : > { %v4670_v27 = vpop.xlane.xlu1 %4669 }
0x177e   : > { %9764 = vrcp.f32 %v4670_v27  ;;  %v4667_v12 = vpop.xlane.xlu0 %4666 }
0x177f   : > { %9766 = vrcp.f32 %v4667_v12  ;;  %v9427_v12 = vld [vmem:[%s10015_s17 + $0xa8] sm:$0xff]  }
0x1781   : > { %v4676_v7 = vpop.xlane.xlu1 %4675 }
0x1782   : > { %9768 = vrcp.f32 %v4676_v7  ;;  %v4673_v46 = vpop.xlane.xlu0 %4672  ;;  %v9428_v7 = vld [vmem:[%s10015_s17 + $0xb0] sm:$0xff]  }
0x1783   : > { %9770 = vrcp.f32 %v4673_v46  ;;  %v9429_v46 = vld [vmem:[%s10015_s17 + $0xb8] sm:$0xff]  }
0x1785   : > { %v4682_v15 = vpop.xlane.xlu1 %4681 }
0x1786   : > { %9772 = vrcp.f32 %v4682_v15  ;;  %v4679_v5 = vpop.xlane.xlu0 %4678 }
0x1787   : > { %9774 = vrcp.f32 %v4679_v5 }
0x1788   : > { %v9765_v20 = vpop.eup %9764 }
0x1789   : > { %v9767_v36 = vpop.eup %9766  ;;  %v4688_v25 = vpop.xlane.xlu1 %4687  ;;  %v4714_v22 = vmul.f32 %v9765_v20, %v11262_v32 }
0x178a   : > { %9776 = vrcp.f32 %v4688_v25  ;;  %v4685_v24 = vpop.xlane.xlu0 %4684  ;;  %v4713_v50 = vmul.f32 %v9767_v36, %v11264_v53 }
0x178b   : > { %9778 = vrcp.f32 %v4685_v24 }
0x178c   : > { %v9769_v3 = vpop.eup %9768  ;;  %8929 = vmatprep.mubr.msk.f32.mxu1 %vm1427_vm1, %v4713_v50 }
0x178d   : > { %v9771_v16 = vpop.eup %9770  ;;  %v4694_v21 = vpop.xlane.xlu1 %4693  ;;  %8930 = vmatmul.mubr.msk.f32.vlgmr.msra.gmra.mrb[88].mxu1 %vm1427_vm1, %v4714_v22  ;;  %v4716_v17 = vmul.f32 %v9769_v3, %v11270_v8 }
0x178e   : > { %9780 = vrcp.f32 %v4694_v21  ;;  %v4691_v23 = vpop.xlane.xlu0 %4690  ;;  %v4715_v41 = vmul.f32 %v9771_v16, %v11272_v55 }
0x178f   : > { %9782 = vrcp.f32 %v4691_v23 }
0x1790   : > { %v9773_v42 = vpop.eup %9772  ;;  %8932 = vmatprep.mubr.msk.f32.mxu1 %vm1427_vm1, %v4715_v41 }
0x1791   : > { %v9775_v53 = vpop.eup %9774  ;;  %v4700_v32 = vpop.xlane.xlu1 %4699  ;;  %8933 = vmatmul.mubr.msk.f32.gmra.mrb[90].mxu1 %vm1427_vm1, %v4716_v17  ;;  %v4718_v31 = vmul.f32 %v9773_v42, %v11280_v35 }
0x1792   : > { %9784 = vrcp.f32 %v4700_v32  ;;  %v4697_v40 = vpop.xlane.xlu0 %4696  ;;  %v4717_v60 = vmul.f32 %v9775_v53, %v11282_v33 }
0x1793   : > { %9786 = vrcp.f32 %v4697_v40 }
0x1794   : > { %v9777_v18 = vpop.eup %9776  ;;  %8935 = vmatprep.mubr.msk.f32.mxu1 %vm1427_vm1, %v4717_v60 }
0x1795   : > { %v9779_v55 = vpop.eup %9778  ;;  %8936 = vmatmul.mubr.msk.f32.gmra.mrb[92].mxu1 %vm1427_vm1, %v4718_v31  ;;  %v4720_v30 = vmul.f32 %v9777_v18, %v11288_v51 }
0x1796   : > { %v4719_v8 = vmul.f32 %v9779_v55, %v11290_v26 }
0x1798   : > { %v9781_v49 = vpop.eup %9780  ;;  %8938 = vmatprep.mubr.msk.f32.mxu1 %vm1427_vm1, %v4719_v8 }
0x1799   : > { %v9783_v52 = vpop.eup %9782  ;;  %8939 = vmatmul.mubr.msk.f32.gmra.mrb[94].mxu1 %vm1427_vm1, %v4720_v30  ;;  %v4722_v33 = vmul.f32 %v9781_v49, %v11296_v43  ;;  %v9423_v43 = vld [vmem:[%s10015_s17 + $0x88] sm:$0xff]  }
0x179a   : > { %v4721_v35 = vmul.f32 %v9783_v52, %v11298_v14  ;;  %8950 = vmatpush3.bf16.msra.mxu0 %v9423_v43  ;;  %v9424_v14 = vld [vmem:[%s10015_s17 + $0x90] sm:$0xff]  }
0x179b   : > { %8951 = vmatprep.subr.bf16.mxu0 %v9950_v19 }
0x179c   : > { %v9785_v47 = vpop.eup %9784  ;;  %8941 = vmatprep.mubr.msk.f32.mxu1 %vm1427_vm1, %v4721_v35 }
0x179d   : > { %v9787_v27 = vpop.eup %9786  ;;  %8942 = vmatmul.mubr.msk.f32.gmra.mrb[96].mxu1 %vm1427_vm1, %v4722_v33  ;;  %v4724_v26 = vmul.f32 %v9785_v47, %v11304_v13  ;;  %v9426_v13 = vld [vmem:[%s10015_s17 + $0xa0] sm:$0xff]  }
0x179e   : > { %v4723_v51 = vmul.f32 %v9787_v27, %v11306_v45  ;;  %8952 = vmatpush3.bf16.msra.mxu0 %v9424_v14  ;;  %v9425_v45 = vld [vmem:[%s10015_s17 + $0x98] sm:$0xff]  }
0x179f   : > { %8953 = vmatprep.subr.bf16.mxu0 %v9950_v19 }
0x17a0   : > { %8944 = vmatprep.mubr.msk.f32.mxu1 %vm1427_vm1, %v4723_v51 }
0x17a1   : > { %8945 = vmatmul.mubr.msk.f32.gmra.mrb[98].mxu1 %vm1427_vm1, %v4724_v26 }
0x17a2   : > { %5255 = vmatprep.mubr.bf16.mxu1 %v9951_v44  ;;  %8954 = vmatpush3.bf16.msra.mxu0 %v9425_v45  ;;  %v9430_v45 = vld [vmem:[%s10030_s26 + $0x180] ss:$12 sps:$4 sm:$0xff]  }
0x17a3   : > { %8955 = vmatprep.subr.bf16.mxu0 %v9950_v19 }
0x17a6   : > { %8956 = vmatpush3.bf16.msra.mxu0 %v9426_v13  ;;  %v9432_v13 = vld [vmem:[%s10030_s26 + $0x184] ss:$12 sps:$4 sm:$0xff]  }
0x17a7   : > { %8957 = vmatprep.subr.bf16.mxu0 %v9950_v19  ;;  %5223 = vmatprep.subr.bf16.mxu1 %v9432_v13  ;;  %v9464_v13 = vld [vmem:[%s10035_s29 + $0x180] sm:$0xff]  }
0x17a8   : > { %5224 = vmatpush1.bf16.msra.mxu1 %v9430_v45  ;;  %v9463_v45 = vld [vmem:[%s10035_s29 + $0x1c0] sm:$0xff]  }
0x17aa   : > { %8958 = vmatpush3.bf16.msra.mxu0 %v9427_v12  ;;  %v9433_v12 = vld [vmem:[%s10030_s26 + $0x188] ss:$12 sps:$4 sm:$0xff]  }
0x17ab   : > { %8959 = vmatprep.subr.bf16.mxu0 %v9950_v19 }
0x17ae   : > { %8960 = vmatpush3.bf16.msra.mxu0 %v9428_v7  ;;  %v9434_v7 = vld [vmem:[%s10030_s26 + $0x198] ss:$12 sps:$4 sm:$0xff]  }
0x17af   : > { %8961 = vmatprep.subr.bf16.mxu0 %v9950_v19 }
0x17b2   : > { %8962 = vmatpush3.bf16.msra.mxu0 %v9429_v46  ;;  %v9438_v46 = vld [vmem:[%s10030_s26 + $0x1b0] ss:$12 sps:$4 sm:$0xff]  }
0x17b3   : > { %8967 = vmatprep.subr.bf16.mxu0 %v9950_v19 }
0x1860   : > { %v8931_v15 = vpop.f32.mrb[88].mxu1 }
0x1861   : > { %v4887_v5 = vmul.f32 %v11178_v59, %v8931_v15  ;;  %v4827_v20 = vpop.f32.mrb[89].mxu1 }
0x1862   : > { %v4886_v36 = vmul.f32 %v11172_v56, %v4827_v20 }
0x1864   : > { %v4898_v25 = vadd.f32 %v4887_v5, %v4886_v36  ;;  %v8934_v24 = vpop.f32.mrb[90].mxu1 }
0x1865   : > { %v4837_v50 = vpop.f32.mrb[91].mxu1  ;;  %v4889_v3 = vmul.f32 %v11190_v38, %v8934_v24 }
0x1866   : > { %v4888_v22 = vmul.f32 %v11184_v39, %v4837_v50  ;;  %v11396_v50 = vld [vmem:[%s12005_s3 + $0x60] ss:$0 sm:$0xff] }
0x1868   : > { %v4899_v16 = vadd.f32 %v4898_v25, %v4888_v22  ;;  %v8937_v21 = vpop.f32.mrb[92].mxu1 }
0x1869   : > { %v4847_v23 = vpop.f32.mrb[93].mxu1  ;;  %v4891_v42 = vmul.f32 %v11202_v11, %v8937_v21 }
0x186a   : > { %v4890_v41 = vmul.f32 %v11196_v48, %v4847_v23  ;;  %v4900_v17 = vadd.f32 %v4899_v16, %v4889_v3  ;;  %v9441_v23 = vld [vmem:[%s10030_s26 + $0x1b8] ss:$12 sps:$4 sm:$0xff]  }
0x186c   : > { %v4901_v53 = vadd.f32 %v4900_v17, %v4890_v41  ;;  %v8940_v59 = vpop.f32.mrb[94].mxu1  ;;  %v9444_v41 = vld [vmem:[%s10030_s26 + $0x1cc] ss:$12 sps:$4 sm:$0xff]   ;;  %v9442_v17 = vld [vmem:[%s10030_s26 + $0x1c8] ss:$12 sps:$4 sm:$0xff]  }
0x186d   : > { %v4857_v32 = vpop.f32.mrb[95].mxu1  ;;  %v4893_v60 = vmul.f32 %v11214_v61, %v8940_v59  ;;  %v9446_v59 = vld [vmem:[%s10030_s26 + $0x1e0] ss:$12 sps:$4 sm:$0xff]  }
0x186e   : > { %v4892_v56 = vmul.f32 %v11208_v58, %v4857_v32  ;;  %v4902_v40 = vadd.f32 %v4901_v53, %v4891_v42  ;;  %v9445_v42 = vld [vmem:[%s10030_s26 + $0x1d0] ss:$12 sps:$4 sm:$0xff]   ;;  %v9449_v32 = vld [vmem:[%s10030_s26 + $0x1e8] ss:$12 sps:$4 sm:$0xff]  }
0x186f   : > { %v9448_v53 = vld [vmem:[%s10030_s26 + $0x1e4] ss:$12 sps:$4 sm:$0xff]  }
0x1870   : > { %v4903_v31 = vadd.f32 %v4902_v40, %v4892_v56  ;;  %v8943_v39 = vpop.f32.mrb[96].mxu1  ;;  %v9452_v56 = vld [vmem:[%s10030_s26 + $0x1fc] ss:$12 sps:$4 sm:$0xff]   ;;  %v9450_v40 = vld [vmem:[%s10030_s26 + $0x1f8] ss:$12 sps:$4 sm:$0xff]  }
0x1871   : > { %v4867_v38 = vpop.f32.mrb[97].mxu1  ;;  %v4895_v48 = vmul.f32 %v11226_v1, %v8943_v39  ;;  %v9454_v39 = vld [vmem:[%s10030_s26 + $0x210] ss:$12 sps:$4 sm:$0xff]  }
0x1872   : > { %v4894_v18 = vmul.f32 %v11220_v37, %v4867_v38  ;;  %v4904_v55 = vadd.f32 %v4903_v31, %v4893_v60  ;;  %v11368_v37 = vld [vmem:[%s10020_s20 + $0x40] sm:$0xff] }
0x1873   : > { %v4930_v1 = vrot.slane %v11368_v37, %v10256_v54  ;;  %v9453_v60 = vld [vmem:[%s10030_s26 + $0x200] ss:$12 sps:$4 sm:$0xff]   ;;  %v9457_v38 = vld [vmem:[%s10030_s26 + $0x218] ss:$12 sps:$4 sm:$0xff]  }
0x1874   : > { %v4905_v8 = vadd.f32 %v4904_v55, %v4894_v18  ;;  %v8946_v30 = vpop.f32.mrb[98].mxu1  ;;  %v9456_v31 = vld [vmem:[%s10030_s26 + $0x214] ss:$12 sps:$4 sm:$0xff]   ;;  %v9460_v18 = vld [vmem:[%s10030_s26 + $0x22c] ss:$12 sps:$4 sm:$0xff]  }
0x1875   : > { %v4877_v11 = vpop.f32.mrb[99].mxu1  ;;  %v4897_v58 = vmul.f32 %v11238_v62, %v8946_v30  ;;  %v4162_v62 = vadd.f32 %v11111_v28, %v10933_v10  ;;  %v9436_v10 = vld [vmem:[%s10030_s26 + $0x19c] ss:$12 sps:$4 sm:$0xff]   ;;  %v9437_v28 = vld [vmem:[%s10030_s26 + $0x1a0] ss:$12 sps:$4 sm:$0xff]  }
0x1876   : > { %v4896_v49 = vmul.f32 %v11232_v63, %v4877_v11  ;;  %v4906_v52 = vadd.f32 %v4905_v8, %v4895_v48  ;;  %5225 = vmatprep.subr.bf16.mxu1 %v9436_v10  ;;  %v9458_v55 = vld [vmem:[%s10030_s26 + $0x228] ss:$12 sps:$4 sm:$0xff]   ;;  %v9461_v48 = vld [vmem:[%s10030_s26 + $0x230] ss:$12 sps:$4 sm:$0xff]  }
0x1877   : > { %5226 = vmatpush1.bf16.msra.mxu1 %v9434_v7  ;;  %v9468_v10 = vld [vmem:[%s10035_s29 + $0x210] sm:$0xff]  }
0x1878   : > { %v4907_v35 = vadd.f32 %v4906_v52, %v4896_v49  ;;  %v9470_v7 = vld [vmem:[%s10035_s29 + $0x190] sm:$0xff]  }
0x187a   : > { %v4908_v33 = vadd.f32 %v4907_v35, %v4897_v58 }
0x187c   : > { %v4909_v61 = vpack.c.bf16 %v4908_v33, %v4908_v33 }
0x187e   : > { %8964 = vmatmul.mubr.bf16.vlgmr.msra.gmra.mrb[36].mxu0 %v4909_v61 }
0x187f   : > { %8983 = vmatprep.mubr.msk.bf16.mxu0 %vm9952_vm0, %v9950_v19  ;;  %8968 = vmatpush3.bf16.msra.mxu0 %v9433_v12  ;;  %v9467_v12 = vld [vmem:[%s10035_s29 + $0x188] sm:$0xff]  }
0x1880   : > { %8969 = vmatprep.subr.bf16.mxu0 %v9950_v19 }
0x1883   : > { %8970 = vmatpush3.bf16.msra.mxu0 %v9437_v28  ;;  %v9469_v28 = vld [vmem:[%s10035_s29 + $0x1d0] sm:$0xff]  }
0x1884   : > { %8971 = vmatprep.subr.bf16.mxu0 %v9950_v19 }
0x1887   : > { %8972 = vmatpush3.bf16.msra.mxu0 %v9441_v23  ;;  %v9483_v23 = vld [vmem:[%s10035_s29 + $0x238] sm:$0xff]  }
0x1888   : > { %8973 = vmatprep.subr.bf16.mxu0 %v9950_v19 }
0x188b   : > { %8974 = vmatpush3.bf16.msra.mxu0 %v9445_v42  ;;  %v5086_v42 = vrot.slane %v11152_v29, %v10567_v4 }
0x188c   : > { %8975 = vmatprep.subr.bf16.mxu0 %v9950_v19 }
0x188f   : > { %8976 = vmatpush3.bf16.msra.mxu0 %v9449_v32 }
0x1890   : > { %8977 = vmatprep.subr.bf16.mxu0 %v9950_v19 }
0x1893   : > { %8978 = vmatpush3.bf16.msra.mxu0 %v9453_v60 }
0x1894   : > { %8979 = vmatprep.subr.bf16.mxu0 %v9950_v19 }
0x1897   : > { %8980 = vmatpush3.bf16.msra.mxu0 %v9457_v38 }
0x1898   : > { %8981 = vmatprep.subr.bf16.mxu0 %v9950_v19 }
0x189b   : > { %8982 = vmatpush3.bf16.msra.mxu0 %v9461_v48 }
0x189c   : > { %8987 = vmatprep.subr.bf16.mxu0 %v9950_v19 }
0x1951   : > { %v5013_v63 = vpop.f32.mrb[36].mxu0 }
0x1952   : > { %v5014_v47 = vadd.f32 %v5013_v63, %v4930_v1  ;;  %v8965_v27 = vpop.f32.mrb[37].mxu0 }
0x1953   : > { %v5016_v51 = vpop.f32.mrb[38].mxu0 }
0x1954   : > { %v11375_v26 = vadd.f32 %v5014_v47, %v11114_v6  ;;  %v11377_v43 = vadd.f32 %v5014_v47, %v4162_v62  ;;  %v8966_v14 = vpop.f32.mrb[39].mxu0  ;;  %v9440_v6 = vld [vmem:[%s10030_s26 + $0x1b4] ss:$12 sps:$4 sm:$0xff]  }
0x1955   : > { %5227 = vmatprep.subr.bf16.mxu1 %v9440_v6  ;;  %v9462_v14 = vld [vmem:[%s10035_s29 + $0x200] sm:$0xff]   ;;  %v9471_v6 = vld [vmem:[%s10035_s29 + $0x218] sm:$0xff]  }
0x1956   : > { %5023 = vadd.xlane.f32.xlu1 %v11377_v43  ;;  %5021 = vadd.xlane.f32.xlu0 %v11375_v26 }
0x1957   : > { %5228 = vmatpush1.bf16.msra.mxu1 %v9438_v46  ;;  %v9472_v46 = vld [vmem:[%s10035_s29 + $0x1d8] sm:$0xff]  }
0x1958   : > { %5229 = vmatprep.subr.bf16.mxu1 %v9444_v41  ;;  %v9484_v41 = vld [vmem:[%s10035_s29 + $0x1f8] sm:$0xff]  }
0x195b   : > { %5230 = vmatpush1.bf16.msra.mxu1 %v9442_v17  ;;  %v9485_v17 = vld [vmem:[%s10035_s29 + $0x1b8] sm:$0xff]  }
0x195c   : > { %5231 = vmatprep.subr.bf16.mxu1 %v9448_v53  ;;  %v5094_v53 = vrot.slane %v11368_v37, %v10567_v4 }
0x195f   : > { %5232 = vmatpush1.bf16.msra.mxu1 %v9446_v59  ;;  %v5090_v59 = vrot.slane %v11155_v0, %v10567_v4 }
0x1960   : > { %5233 = vmatprep.subr.bf16.mxu1 %v9452_v56 }
0x1963   : > { %5234 = vmatpush1.bf16.msra.mxu1 %v9450_v40 }
0x1964   : > { %5235 = vmatprep.subr.bf16.mxu1 %v9456_v31 }
0x1967   : > { %5236 = vmatpush1.bf16.msra.mxu1 %v9454_v39 }
0x1968   : > { %5237 = vmatprep.subr.bf16.mxu1 %v9460_v18 }
0x196b   : > { %5238 = vmatpush1.bf16.msra.mxu1 %v9458_v55 }
0x196c   : > { %8532 = vmatprep.subr.bf16.mxu1 %v9463_v45 }
0x19e3   : > { %v5024_v15 = vpop.xlane.xlu1 %5023  ;;  %v5022_v5 = vpop.xlane.xlu0 %5021 }
0x19e4   : > { %v5026_v20 = vmul.f32 0.010416667, %v5024_v15  ;;  %v5025_v36 = vmul.f32 0.010416667, %v5022_v5  ;;  %v9473_v15 = vld [vmem:[%s10035_s29 + $0x198] sm:$0xff]   ;;  %v9474_v5 = vld [vmem:[%s10035_s29 + $0x220] sm:$0xff]  }
0x19e6   : > { %v5028_v25 = vsub.f32 %v11377_v43, %v5026_v20  ;;  %v5027_v24 = vsub.f32 %v11375_v26, %v5025_v36  ;;  %v9475_v20 = vld [vmem:[%s10035_s29 + $0x1e0] sm:$0xff]  }
0x19e7   : > { %v9476_v36 = vld [vmem:[%s10035_s29 + $0x1a0] sm:$0xff]  }
0x19e8   : > { %v5030_v22 = vmul.f32 %v11396_v50, %v5028_v25  ;;  %v5029_v3 = vmul.f32 %v11396_v50, %v5027_v24  ;;  %v9477_v25 = vld [vmem:[%s10035_s29 + $0x228] sm:$0xff]  }
0x19e9   : > { %v9478_v24 = vld [vmem:[%s10035_s29 + $0x1e8] sm:$0xff]  }
0x19ea   : > { %v5032_v16 = vmul.f32 %v5030_v22, %v5030_v22  ;;  %v5031_v21 = vmul.f32 %v5029_v3, %v5029_v3 }
0x19ec   : > { %5035 = vadd.xlane.f32.xlu1 %v5032_v16  ;;  %5033 = vadd.xlane.f32.xlu0 %v5031_v21  ;;  %v9481_v16 = vld [vmem:[%s10035_s29 + $0x1f0] sm:$0xff]  }
0x19ed   : > { %v9482_v21 = vld [vmem:[%s10035_s29 + $0x1b0] sm:$0xff]  }
0x1a79   : > { %v5036_v8 = vpop.xlane.xlu1 %5035  ;;  %v5034_v30 = vpop.xlane.xlu0 %5033 }
0x1a7a   : > { %v5038_v11 = vmul.f32 0.010416667, %v5036_v8  ;;  %v5037_v49 = vmul.f32 0.010416667, %v5034_v30 }
0x1a7c   : > { %v5040_v52 = vadd.f32 1e-05, %v5038_v11  ;;  %v5039_v58 = vadd.f32 1e-05, %v5037_v49 }
0x1a7e   : > { %9788 = vrsqrt.f32 %v5040_v52 }
0x1a7f   : > { %9790 = vrsqrt.f32 %v5039_v58 }
0x1a88   : > { %v9789_v35 = vpop.eup %9788 }
0x1a89   : > { %v9791_v33 = vpop.eup %9790  ;;  %v5044_v61 = vmul.f32 %v9789_v35, %v5030_v22  ;;  %v9479_v22 = vld [vmem:[%s10035_s29 + $0x1a8] sm:$0xff]  }
0x1a8a   : > { %v5043_v1 = vmul.f32 %v9791_v33, %v5029_v3  ;;  %v9480_v3 = vld [vmem:[%s10035_s29 + $0x230] sm:$0xff]  }
0x1a8b   : > { %v5046_v63 = vmul.f32 %v5044_v61, %v11159_v2 }
0x1a8c   : > { %v5045_v62 = vmul.f32 %v5043_v1, %v11159_v2  ;;  %v9465_v2 = vld [vmem:[%s10035_s29 + $0x208] sm:$0xff]  }
0x1a8d   : > { %v5048_v47 = vadd.f32 %v5046_v63, %v11163_v9 }
0x1a8e   : > { %v5047_v27 = vadd.f32 %v5045_v62, %v11163_v9  ;;  %v9466_v9 = vld [vmem:[%s10035_s29 + $0x1c8] sm:$0xff]  }
0x1a90   : > { %v5049_v51 = vpack.c.bf16 %v5048_v47, %v5047_v27 }
0x1a92   : > { %5256 = vmatmul.mubr.bf16.vlgmr.msra.gmra.mrb[100].mxu1 %v5049_v51  ;;  %8984 = vmatmul.mubr.bf16.vlgmr.msra.gmra.mrb[40].mxu0 %v5049_v51 }
0x1a93   : > { %9003 = vmatprep.mubr.msk.bf16.mxu0 %vm9952_vm0, %v9950_v19  ;;  %8988 = vmatpush3.bf16.msra.mxu0 %v9462_v14 }
0x1a94   : > { %8989 = vmatprep.subr.bf16.mxu0 %v9950_v19  ;;  %8533 = vmatpush3.bf16.msra.mxu1 %v9464_v13 }
0x1a95   : > { %8534 = vmatprep.subr.bf16.mxu1 %v9466_v9 }
0x1a97   : > { %8990 = vmatpush3.bf16.msra.mxu0 %v9465_v2 }
0x1a98   : > { %8991 = vmatprep.subr.bf16.mxu0 %v9950_v19  ;;  %8535 = vmatpush3.bf16.msra.mxu1 %v9467_v12 }
0x1a99   : > { %8536 = vmatprep.subr.bf16.mxu1 %v9469_v28 }
0x1a9b   : > { %8992 = vmatpush3.bf16.msra.mxu0 %v9468_v10 }
0x1a9c   : > { %8993 = vmatprep.subr.bf16.mxu0 %v9950_v19  ;;  %8537 = vmatpush3.bf16.msra.mxu1 %v9470_v7 }
0x1a9d   : > { %8538 = vmatprep.subr.bf16.mxu1 %v9472_v46 }
0x1a9f   : > { %8994 = vmatpush3.bf16.msra.mxu0 %v9471_v6 }
0x1aa0   : > { %8995 = vmatprep.subr.bf16.mxu0 %v9950_v19  ;;  %8539 = vmatpush3.bf16.msra.mxu1 %v9473_v15 }
0x1aa1   : > { %8540 = vmatprep.subr.bf16.mxu1 %v9475_v20 }
0x1aa3   : > { %8996 = vmatpush3.bf16.msra.mxu0 %v9474_v5 }
0x1aa4   : > { %8997 = vmatprep.subr.bf16.mxu0 %v9950_v19  ;;  %8541 = vmatpush3.bf16.msra.mxu1 %v9476_v36 }
0x1aa5   : > { %8542 = vmatprep.subr.bf16.mxu1 %v9478_v24 }
0x1aa7   : > { %8998 = vmatpush3.bf16.msra.mxu0 %v9477_v25 }
0x1aa8   : > { %8999 = vmatprep.subr.bf16.mxu0 %v9950_v19  ;;  %8543 = vmatpush3.bf16.msra.mxu1 %v9479_v22 }
0x1aa9   : > { %8544 = vmatprep.subr.bf16.mxu1 %v9481_v16 }
0x1aab   : > { %9000 = vmatpush3.bf16.msra.mxu0 %v9480_v3 }
0x1aac   : > { %9001 = vmatprep.subr.bf16.mxu0 %v9950_v19  ;;  %8545 = vmatpush3.bf16.msra.mxu1 %v9482_v21 }
0x1aad   : > { %8546 = vmatprep.subr.bf16.mxu1 %v9484_v41 }
0x1aaf   : > { %9002 = vmatpush3.bf16.msra.mxu0 %v9483_v23 }
0x1ab0   : > { %9007 = vmatprep.subr.bf16.mxu0 %v9950_v19  ;;  %8547 = vmatpush3.bf16.msra.mxu1 %v9485_v17 }
0x1b65   : > { %v5257_v32 = vpop.f32.mrb[100].mxu1  ;;  %v5300_v56 = vpop.f32.mrb[40].mxu0 }
0x1b66   : > { %v11466_v40 = vadd.f32 %v5257_v32, %v5086_v42  ;;  %v11468_v60 = vadd.f32 %v5300_v56, %v5094_v53  ;;  %v5259_v31 = vpop.f32.mrb[101].mxu1  ;;  %v8985_v39 = vpop.f32.mrb[41].mxu0 }
0x1b67   : > { %v11470_v38 = vadd.f32 %v5259_v31, %v5090_v59  ;;  %v5261_v18 = vpop.f32.mrb[102].mxu1  ;;  %v5303_v55 = vpop.f32.mrb[42].mxu0 }
0x1b68   : > { %v11473_v29 = vmul.f32 0.70710677, %v11466_v40  ;;  %v11476_v37 = vmul.f32 0.70710677, %v11468_v60  ;;  %v5263_v48 = vpop.f32.mrb[103].mxu1  ;;  %v8986_v8 = vpop.f32.mrb[43].mxu0  ;;  %v11484_v52 = vadd.f32 %v5261_v18, %v5086_v42  ;;  %v11486_v33 = vadd.f32 %v5303_v55, %v5094_v53 }
0x1b69   : > { %v11479_v0 = vmul.f32 0.70710677, %v11470_v38  ;;  %v11496_v2 = vadd.f32 %v5263_v48, %v5090_v59 }
0x1b6a   : > { %v5331_v30 = vand.u32 2147483647, %v11473_v29  ;;  %v5333_v11 = vand.u32 2147483647, %v11476_v37  ;;  %v11489_v62 = vmul.f32 0.70710677, %v11484_v52 }
0x1b6b   : > { %v5332_v49 = vand.u32 2147483647, %v11479_v0  ;;  %v11492_v27 = vmul.f32 0.70710677, %v11486_v33  ;;  %v11499_v28 = vmul.f32 0.70710677, %v11496_v2 }
0x1b6c   : > { %v5337_v58 = vmul.f32 0.3275911, %v5331_v30  ;;  %v5339_v35 = vmul.f32 0.3275911, %v5333_v11  ;;  %v5334_v51 = vand.u32 2147483647, %v11489_v62 }
0x1b6d   : > { %v5338_v61 = vmul.f32 0.3275911, %v5332_v49  ;;  %v5336_v14 = vand.u32 2147483647, %v11492_v27  ;;  %v5409_v12 = vsub.f32 0.0, %v5331_v30  ;;  %v5411_v7 = vsub.f32 0.0, %v5333_v11 }
0x1b6e   : > { %v5343_v1 = vadd.f32 1.0, %v5337_v58  ;;  %v5345_v63 = vadd.f32 1.0, %v5339_v35  ;;  %v5340_v45 = vmul.f32 0.3275911, %v5334_v51  ;;  %v5335_v6 = vand.u32 2147483647, %v11499_v28 }
0x1b6f   : > { %v5344_v47 = vadd.f32 1.0, %v5338_v61  ;;  %v5342_v13 = vmul.f32 0.3275911, %v5336_v14  ;;  %v5410_v46 = vsub.f32 0.0, %v5332_v49  ;;  %v5415_v5 = vmul.f32 %v5409_v12, %v5331_v30 }
0x1b70   : > { %9792 = vrcp.f32 %v5343_v1  ;;  %v5346_v9 = vadd.f32 1.0, %v5340_v45  ;;  %v5341_v20 = vmul.f32 0.3275911, %v5335_v6  ;;  %v5417_v24 = vmul.f32 %v5411_v7, %v5333_v11 }
0x1b71   : > { %9794 = vrcp.f32 %v5345_v63  ;;  %v5348_v10 = vadd.f32 1.0, %v5342_v13  ;;  %v5412_v3 = vsub.f32 0.0, %v5334_v51  ;;  %v5416_v23 = vmul.f32 %v5410_v46, %v5332_v49 }
0x1b72   : > { %9796 = vrcp.f32 %v5344_v47  ;;  %v5347_v16 = vadd.f32 1.0, %v5341_v20  ;;  %v5421_v17 = vmul.f32 1.442695, %v5415_v5  ;;  %v5414_v53 = vsub.f32 0.0, %v5336_v14 }
0x1b73   : > { %9798 = vrcp.f32 %v5346_v9  ;;  %v5425_v32 = vmul.f32 1.442695, %v5417_v24  ;;  %v5418_v39 = vmul.f32 %v5412_v3, %v5334_v51  ;;  %v5423_v8 = vmul.f32 1.442695, %v5416_v23 }
0x1b74   : > { %9800 = vrcp.f32 %v5348_v10  ;;  %v5420_v58 = vmul.f32 %v5414_v53, %v5336_v14  ;;  %v5413_v45 = vsub.f32 0.0, %v5335_v6  ;;  %vm5319_vm14 = vcmp.ge.f32.partialorder %v11473_v29, 0.0 }
0x1b75   : > { %9802 = vrcp.f32 %v5347_v16  ;;  %v5427_v51 = vmul.f32 1.442695, %v5418_v39  ;;  %vm5321_vm15 = vcmp.ge.f32.partialorder %v11476_v37, 0.0  ;;  %vm5322_vm2 = vcmp.ge.f32.partialorder %v11489_v62, 0.0 }
0x1b76   : > { %9804 = vpow2.f32 %v5421_v17  ;;  %v5431_v46 = vmul.f32 1.442695, %v5420_v58  ;;  %v5419_v23 = vmul.f32 %v5413_v45, %v5335_v6  ;;  %v5327_v37 = vsel %vm5321_vm15, 1.0, %v9953_v57 }
0x1b77   : > { %9806 = vpow2.f32 %v5425_v32  ;;  %vm5324_vm3 = vcmp.ge.f32.partialorder %v11492_v27, 0.0  ;;  %vm5320_vm4 = vcmp.ge.f32.partialorder %v11479_v0, 0.0  ;;  %vm5323_vm5 = vcmp.ge.f32.partialorder %v11499_v28, 0.0 }
0x1b78   : > { %9808 = vpow2.f32 %v5423_v8  ;;  %v5429_v6 = vmul.f32 1.442695, %v5419_v23  ;;  %v5330_v62 = vsel %vm5324_vm3, 1.0, %v9953_v57  ;;  %v5308_v0 = vmul.f32 0.5, %v11470_v38 }
0x1b79   : > { %9810 = vpow2.f32 %v5427_v51 }
0x1b7a   : > { %v9793_v15 = vpop.eup %9792  ;;  %9812 = vpow2.f32 %v5431_v46 }
0x1b7b   : > { %v9795_v36 = vpop.eup %9794  ;;  %v5355_v25 = vmul.f32 1.0614054, %v9793_v15  ;;  %9814 = vpow2.f32 %v5429_v6 }
0x1b7c   : > { %v5357_v22 = vmul.f32 1.0614054, %v9795_v36  ;;  %v11502_v41 = vpop.eup %9796 }
0x1b7d   : > { %v5361_v21 = vadd.f32 -1.4531521, %v5355_v25  ;;  %v5356_v56 = vmul.f32 1.0614054, %v11502_v41  ;;  %v11505_v18 = vpop.eup %9798 }
0x1b7e   : > { %v5363_v42 = vadd.f32 -1.4531521, %v5357_v22  ;;  %v11507_v30 = vpop.eup %9800  ;;  %v5358_v49 = vmul.f32 1.0614054, %v11505_v18 }
0x1b7f   : > { %v5367_v59 = vmul.f32 %v9793_v15, %v5361_v21  ;;  %v5362_v48 = vadd.f32 -1.4531521, %v5356_v56  ;;  %v5360_v1 = vmul.f32 1.0614054, %v11507_v30  ;;  %v11515_v25 = vpop.eup %9802 }
0x1b80   : > { %v5369_v31 = vmul.f32 %v9795_v36, %v5363_v42  ;;  %v5364_v47 = vadd.f32 -1.4531521, %v5358_v49  ;;  %v5359_v53 = vmul.f32 1.0614054, %v11515_v25 }
0x1b81   : > { %v5373_v55 = vadd.f32 1.4214138, %v5367_v59  ;;  %v5368_v61 = vmul.f32 %v11502_v41, %v5362_v48  ;;  %v5366_v12 = vadd.f32 -1.4531521, %v5360_v1 }
0x1b82   : > { %v5375_v11 = vadd.f32 1.4214138, %v5369_v31  ;;  %v5370_v7 = vmul.f32 %v11505_v18, %v5364_v47  ;;  %v9805_v31 = vpop.eup %9804  ;;  %v5365_v48 = vadd.f32 -1.4531521, %v5359_v53  ;;  %v5307_v53 = vmul.f32 0.5, %v11466_v40 }
0x1b83   : > { %v5379_v35 = vmul.f32 %v9793_v15, %v5373_v55  ;;  %v5374_v9 = vadd.f32 1.4214138, %v5368_v61  ;;  %v5372_v20 = vmul.f32 %v11507_v30, %v5366_v12  ;;  %v9807_v8 = vpop.eup %9806 }
0x1b84   : > { %v5381_v63 = vmul.f32 %v9795_v36, %v5375_v11  ;;  %v5376_v22 = vadd.f32 1.4214138, %v5370_v7  ;;  %v5371_v1 = vmul.f32 %v11515_v25, %v5365_v48  ;;  %v9809_v45 = vpop.eup %9808 }
0x1b85   : > { %v5385_v13 = vadd.f32 -0.28449672, %v5379_v35  ;;  %v5380_v14 = vmul.f32 %v11502_v41, %v5374_v9  ;;  %v5378_v21 = vadd.f32 1.4214138, %v5372_v20  ;;  %v9811_v12 = vpop.eup %9810 }
0x1b86   : > { %v5387_v10 = vadd.f32 -0.28449672, %v5381_v63  ;;  %v5382_v42 = vmul.f32 %v11505_v18, %v5376_v22  ;;  %v5377_v51 = vadd.f32 1.4214138, %v5371_v1  ;;  %v9813_v46 = vpop.eup %9812 }
0x1b87   : > { %v5391_v5 = vmul.f32 %v9793_v15, %v5385_v13  ;;  %v5386_v16 = vadd.f32 -0.28449672, %v5380_v14  ;;  %v5384_v56 = vmul.f32 %v11507_v30, %v5378_v21  ;;  %v5328_v21 = vsel %vm5322_vm2, 1.0, %v9953_v57  ;;  %v9815_v48 = vpop.eup %9814 }
0x1b88   : > { %v5393_v24 = vmul.f32 %v9795_v36, %v5387_v10  ;;  %v5388_v55 = vadd.f32 -0.28449672, %v5382_v42  ;;  %v5325_v10 = vsel %vm5319_vm14, 1.0, %v9953_v57  ;;  %v5383_v29 = vmul.f32 %v11515_v25, %v5377_v51 }
0x1b89   : > { %v5397_v3 = vadd.f32 0.2548296, %v5391_v5  ;;  %v5392_v32 = vmul.f32 %v11502_v41, %v5386_v16  ;;  %v5390_v58 = vadd.f32 -0.28449672, %v5384_v56  ;;  %v5309_v56 = vmul.f32 0.5, %v11468_v60 }
0x1b8a   : > { %v5399_v17 = vadd.f32 0.2548296, %v5393_v24  ;;  %v5394_v61 = vmul.f32 %v11505_v18, %v5388_v55  ;;  %v5389_v24 = vadd.f32 -0.28449672, %v5383_v29 }
0x1b8b   : > { %v5403_v59 = vmul.f32 %v9793_v15, %v5397_v3  ;;  %v5398_v49 = vadd.f32 0.2548296, %v5392_v32  ;;  %v5396_v15 = vmul.f32 %v11507_v30, %v5390_v58 }
0x1b8c   : > { %v5405_v39 = vmul.f32 %v9795_v36, %v5399_v17  ;;  %v5400_v47 = vadd.f32 0.2548296, %v5394_v61 }
0x1b8d   : > { %v5433_v11 = vmul.f32 %v9805_v31, %v5403_v59  ;;  %v5404_v36 = vmul.f32 %v11502_v41, %v5398_v49  ;;  %v5402_v9 = vadd.f32 0.2548296, %v5396_v15  ;;  %v5310_v31 = vmul.f32 0.5, %v11484_v52 }
0x1b8e   : > { %v5435_v35 = vmul.f32 %v9807_v8, %v5405_v39  ;;  %v5406_v7 = vmul.f32 %v11505_v18, %v5400_v47  ;;  %v5395_v18 = vmul.f32 %v11515_v25, %v5389_v24  ;;  %v5326_v8 = vsel %vm5320_vm4, 1.0, %v9953_v57 }
0x1b8f   : > { %v5439_v63 = vsub.f32 1.0, %v5433_v11  ;;  %v5408_v41 = vmul.f32 %v11507_v30, %v5402_v9  ;;  %v5434_v14 = vmul.f32 %v9809_v45, %v5404_v36  ;;  %v5312_v11 = vmul.f32 0.5, %v11486_v33 }
0x1b90   : > { %v5441_v13 = vsub.f32 1.0, %v5435_v35  ;;  %v5436_v20 = vmul.f32 %v9811_v12, %v5406_v7  ;;  %v5401_v42 = vadd.f32 0.2548296, %v5395_v18  ;;  %v5311_v33 = vmul.f32 0.5, %v11496_v2  ;;  %v9926_v2 = vld [vmem:[%s10020_s20 + $0x30] sm:$0xff] }
0x1b91   : > { %v5445_v5 = vmul.f32 %v5439_v63, %v5325_v10  ;;  %v5438_v3 = vmul.f32 %v9813_v46, %v5408_v41  ;;  %v5440_v17 = vsub.f32 1.0, %v5434_v14  ;;  %v5518_v7 = vrot.slane %v9926_v2, %v10663_v34  ;;  %v9488_v18 = vld [vmem:[%s10025_s23 + $0x244] ss:$12 sps:$4 sm:$0xff]  }
0x1b92   : > { %v5447_v22 = vmul.f32 %v5441_v13, %v5327_v37  ;;  %v5442_v16 = vsub.f32 1.0, %v5436_v20  ;;  %v5407_v55 = vmul.f32 %v11515_v25, %v5401_v42  ;;  %v5329_v25 = vsel %vm5323_vm5, 1.0, %v9953_v57  ;;  %5935 = vmatprep.subr.bf16.mxu1 %v9488_v18  ;;  %v11616_v2 = vld [vmem:[%s12005_s3] sm:$0xff] }
0x1b93   : > { %v5444_v23 = vsub.f32 1.0, %v5438_v3  ;;  %v5451_v27 = vadd.f32 1.0, %v5445_v5  ;;  %v5446_v58 = vmul.f32 %v5440_v17, %v5326_v8  ;;  %v9496_v17 = vld [vmem:[%s10025_s23 + $0x274] ss:$12 sps:$4 sm:$0xff]  }
0x1b94   : > { %v5448_v30 = vmul.f32 %v5442_v16, %v5328_v21  ;;  %v5453_v59 = vadd.f32 1.0, %v5447_v22  ;;  %v5437_v35 = vmul.f32 %v9815_v48, %v5407_v55  ;;  %v9486_v16 = vld [vmem:[%s10025_s23 + $0x240] ss:$12 sps:$4 sm:$0xff]   ;;  %v9489_v21 = vld [vmem:[%s10025_s23 + $0x248] ss:$12 sps:$4 sm:$0xff]  }
0x1b95   : > { %v5450_v32 = vmul.f32 %v5444_v23, %v5330_v62  ;;  %v5457_v40 = vmul.f32 %v5451_v27, %v5307_v53  ;;  %v5452_v63 = vadd.f32 1.0, %v5446_v58  ;;  %v9492_v62 = vld [vmem:[%s10025_s23 + $0x25c] ss:$12 sps:$4 sm:$0xff]   ;;  %v9493_v23 = vld [vmem:[%s10025_s23 + $0x260] ss:$12 sps:$4 sm:$0xff]  }
0x1b96   : > { %v5454_v39 = vadd.f32 1.0, %v5448_v30  ;;  %v5459_v60 = vmul.f32 %v5453_v59, %v5309_v56  ;;  %v5443_v1 = vsub.f32 1.0, %v5437_v35  ;;  %v9490_v27 = vld [vmem:[%s10025_s23 + $0x258] ss:$12 sps:$4 sm:$0xff]   ;;  %v9501_v55 = vld [vmem:[%s10025_s23 + $0x290] ss:$12 sps:$4 sm:$0xff]  }
0x1b97   : > { %v5456_v49 = vadd.f32 1.0, %v5450_v32  ;;  %v5458_v47 = vmul.f32 %v5452_v63, %v5308_v0  ;;  %v9497_v56 = vld [vmem:[%s10025_s23 + $0x278] ss:$12 sps:$4 sm:$0xff]   ;;  %v9502_v48 = vld [vmem:[%s10025_s23 + $0x2a0] ss:$12 sps:$4 sm:$0xff]  }
0x1b98   : > { %v5460_v6 = vmul.f32 %v5454_v39, %v5310_v31  ;;  %v5449_v36 = vmul.f32 %v5443_v1, %v5329_v25  ;;  %v9500_v31 = vld [vmem:[%s10025_s23 + $0x28c] ss:$12 sps:$4 sm:$0xff]   ;;  %v9498_v39 = vld [vmem:[%s10025_s23 + $0x288] ss:$12 sps:$4 sm:$0xff]  }
0x1b99   : > { %v5462_v61 = vmul.f32 %v5456_v49, %v5312_v11  ;;  %v9505_v8 = vld [vmem:[%s10025_s23 + $0x2a8] ss:$12 sps:$4 sm:$0xff]   ;;  %v9506_v49 = vld [vmem:[%s10025_s23 + $0x2b8] ss:$12 sps:$4 sm:$0xff]  }
0x1b9a   : > { %v5463_v52 = vpack.c.bf16 %v5460_v6, %v5457_v40  ;;  %v5455_v28 = vadd.f32 1.0, %v5449_v36  ;;  %v9508_v11 = vld [vmem:[%s10025_s23 + $0x2bc] ss:$12 sps:$4 sm:$0xff]   ;;  %v9509_v40 = vld [vmem:[%s10025_s23 + $0x2c0] ss:$12 sps:$4 sm:$0xff]   ;;  %v11599_v36 = vld [vmem:[%s10020_s20 + $0x50] sm:$0xff] }
0x1b9b   : > { %v5465_v15 = vpack.c.bf16 %v5462_v61, %v5459_v60  ;;  %v9512_v58 = vld [vmem:[%s10025_s23 + $0x2d4] ss:$12 sps:$4 sm:$0xff]   ;;  %v9510_v6 = vld [vmem:[%s10025_s23 + $0x2d0] ss:$12 sps:$4 sm:$0xff]   ;;  %v9513_v35 = vld [vmem:[%s10025_s23 + $0x2d8] ss:$12 sps:$4 sm:$0xff]  }
0x1b9c   : > { %v5461_v51 = vmul.f32 %v5455_v28, %v5311_v33  ;;  %v9516_v60 = vld [vmem:[%s10025_s23 + $0x2ec] ss:$12 sps:$4 sm:$0xff]   ;;  %v9514_v61 = vld [vmem:[%s10025_s23 + $0x2e8] ss:$12 sps:$4 sm:$0xff]  }
0x1b9d   : > { %9004 = vmatmul.mubr.bf16.vlgmr.msra.gmra.mrb[44].mxu0 %v5465_v15  ;;  %v11596_v63 = vld [vmem:[%s10020_s20 + $0x48] sm:$0xff] }
0x1b9e   : > { %9023 = vmatprep.mubr.msk.bf16.mxu0 %vm9952_vm0, %v9950_v19  ;;  %v5464_v45 = vpack.c.bf16 %v5461_v51, %v5458_v47  ;;  %9008 = vmatpush3.bf16.msra.mxu0 %v9489_v21  ;;  %v11603_v0 = vrot.slane %v11596_v63, %v10256_v54  ;;  %v11607_v47 = vrot.slane %v11599_v36, %v10256_v54  ;;  %v11640_v21 = vld [vmem:[%s12005_s3 + $0x20] sm:$0xff] }
0x1b9f   : > { %9009 = vmatprep.subr.bf16.mxu0 %v9950_v19 }
0x1ba0   : > { %5695 = vmatprep.mubr.bf16.mxu1 %v5464_v45 }
0x1ba1   : > { %5696 = vmatmul.mubr.bf16.vlgmr.msra.gmra.mrb[104].mxu1 %v5463_v52  ;;  %v9517_v52 = vld [vmem:[%s10025_s23 + $0x2f0] ss:$12 sps:$4 sm:$0xff]  }
0x1ba2   : > { %5967 = vmatprep.mubr.bf16.mxu1 %v9951_v44  ;;  %5936 = vmatpush1.bf16.msra.mxu1 %v9486_v16  ;;  %v11634_v16 = vld [vmem:[%s12005_s3 + $0x18] sm:$0xff] }
0x1ba3   : > { %5937 = vmatprep.subr.bf16.mxu1 %v9492_v62  ;;  %9010 = vmatpush3.bf16.msra.mxu0 %v9493_v23  ;;  %v11646_v23 = vld [vmem:[%s12005_s3 + $0x28] sm:$0xff] }
0x1ba4   : > { %9011 = vmatprep.subr.bf16.mxu0 %v9950_v19 }
0x1ba6   : > { %5938 = vmatpush1.bf16.msra.mxu1 %v9490_v27 }
0x1ba7   : > { %5939 = vmatprep.subr.bf16.mxu1 %v9496_v17  ;;  %9012 = vmatpush3.bf16.msra.mxu0 %v9497_v56  ;;  %v11652_v17 = vld [vmem:[%s12005_s3 + $0x30] sm:$0xff] }
0x1ba8   : > { %9013 = vmatprep.subr.bf16.mxu0 %v9950_v19 }
0x1bab   : > { %9014 = vmatpush3.bf16.msra.mxu0 %v9501_v55  ;;  %v11682_v55 = vld [vmem:[%s12005_s3 + $0x58] sm:$0xff] }
0x1bac   : > { %9015 = vmatprep.subr.bf16.mxu0 %v9950_v19 }
0x1baf   : > { %9016 = vmatpush3.bf16.msra.mxu0 %v9505_v8 }
0x1bb0   : > { %9017 = vmatprep.subr.bf16.mxu0 %v9950_v19 }
0x1bb3   : > { %9018 = vmatpush3.bf16.msra.mxu0 %v9509_v40  ;;  %v9939_v40 = vld [vmem:[%s12005_s3 + $0x61] ss:$0 sm:$0xff] }
0x1bb4   : > { %9019 = vmatprep.subr.bf16.mxu0 %v9950_v19 }
0x1bb7   : > { %9020 = vmatpush3.bf16.msra.mxu0 %v9513_v35 }
0x1bb8   : > { %9021 = vmatprep.subr.bf16.mxu0 %v9950_v19 }
0x1bbb   : > { %9022 = vmatpush3.bf16.msra.mxu0 %v9517_v52 }
0x1bbc   : > { %9067 = vmatprep.subr.bf16.mxu0 %v9950_v19 }
0x1c70   : > { %v5738_v13 = vpop.f32.mrb[44].mxu0 }
0x1c71   : > { %v9005_v9 = vpop.f32.mrb[45].mxu0 }
0x1c72   : > { %v5741_v12 = vpop.f32.mrb[46].mxu0 }
0x1c73   : > { %v9006_v10 = vpop.f32.mrb[47].mxu0 }
0x1c74   : > { %v8548_v38 = vpop.f32.mrb[104].mxu1 }
0x1c75   : > { %v8549_v29 = vpop.f32.mrb[105].mxu1 }
0x1c76   : > { %v8550_v37 = vadd.f32 %v8549_v29, %v8548_v38  ;;  %v8551_v41 = vpop.f32.mrb[106].mxu1 }
0x1c77   : > { %v8552_v46 = vpop.f32.mrb[107].mxu1 }
0x1c78   : > { %v5698_v5 = vadd.f32 %v8550_v37, %v5518_v7  ;;  %v8553_v14 = vadd.f32 %v8552_v46, %v8551_v41 }
0x1c7a   : > { %v5739_v20 = vadd.f32 %v5738_v13, %v5698_v5  ;;  %v5701_v24 = vadd.f32 %v8553_v14, %v5518_v7  ;;  %v11622_v5 = vld [vmem:[%s12005_s3 + $0x8] sm:$0xff] }
0x1c7c   : > { %v11555_v22 = vadd.f32 %v5741_v12, %v5701_v24  ;;  %v11558_v3 = vadd.f32 %v5739_v20, %v11375_v26  ;;  %v9494_v26 = vld [vmem:[%s10025_s23 + $0x270] ss:$12 sps:$4 sm:$0xff]  }
0x1c7d   : > { %5940 = vmatpush1.bf16.msra.mxu1 %v9494_v26  ;;  %v11628_v20 = vld [vmem:[%s12005_s3 + $0x10] sm:$0xff] }
0x1c7e   : > { %5751 = vadd.xlane.f32.xlu0 %v11558_v3  ;;  %5941 = vmatprep.subr.bf16.mxu1 %v9500_v31  ;;  %v11676_v31 = vld [vmem:[%s12005_s3 + $0x50] sm:$0xff] }
0x1c81   : > { %5942 = vmatpush1.bf16.msra.mxu1 %v9498_v39 }
0x1d0b   : > { %v5752_v30 = vpop.xlane.xlu0 %5751 }
0x1d0c   : > { %v5753_v42 = vmul.f32 0.010416667, %v5752_v30  ;;  %v11658_v30 = vld [vmem:[%s12005_s3 + $0x38] sm:$0xff] }
0x1d0e   : > { %v5754_v53 = vsub.f32 %v11558_v3, %v5753_v42 }
0x1d10   : > { %v5755_v59 = vmul.f32 %v11396_v50, %v5754_v53  ;;  %v9504_v50 = vld [vmem:[%s10025_s23 + $0x2a4] ss:$12 sps:$4 sm:$0xff]  }
0x1d11   : > { %5943 = vmatprep.subr.bf16.mxu1 %v9504_v50  ;;  %v11664_v53 = vld [vmem:[%s12005_s3 + $0x40] sm:$0xff] }
0x1d12   : > { %v5756_v32 = vmul.f32 %v5755_v59, %v5755_v59  ;;  %5944 = vmatpush1.bf16.msra.mxu1 %v9502_v48 }
0x1d13   : > { %5945 = vmatprep.subr.bf16.mxu1 %v9508_v11 }
0x1d14   : > { %5757 = vadd.xlane.f32.xlu1 %v5756_v32  ;;  %v11670_v32 = vld [vmem:[%s12005_s3 + $0x48] sm:$0xff] }
0x1d16   : > { %5946 = vmatpush1.bf16.msra.mxu1 %v9506_v49 }
0x1d17   : > { %5947 = vmatprep.subr.bf16.mxu1 %v9512_v58 }
0x1d1a   : > { %5948 = vmatpush1.bf16.msra.mxu1 %v9510_v6 }
0x1d1b   : > { %5949 = vmatprep.subr.bf16.mxu1 %v9516_v60 }
0x1d1e   : > { %5950 = vmatpush1.bf16.msra.mxu1 %v9514_v61 }
0x1da1   : > { %v5758_v1 = vpop.xlane.xlu1 %5757 }
0x1da2   : > { %v5759_v15 = vmul.f32 0.010416667, %v5758_v1 }
0x1da4   : > { %v5760_v25 = vadd.f32 1e-05, %v5759_v15 }
0x1da6   : > { %9816 = vrsqrt.f32 %v5760_v25 }
0x1db0   : > { %v9817_v33 = vpop.eup %9816 }
0x1db1   : > { %v5762_v28 = vmul.f32 %v9817_v33, %v5755_v59 }
0x1db3   : > { %v5767_v51 = vmul.f32 %v11603_v0, %v5762_v28 }
0x1db5   : > { %v5772_v45 = vadd.f32 %v11607_v47, %v5767_v51 }
0x1db7   : > { %v5773_v13 = vpack.c.bf16 %v5772_v45, %v5772_v45 }
0x1db9   : > { %5968 = vmatmul.mubr.bf16.vlgmr.msra.gmra.mrb[108].mxu1 %v5773_v13  ;;  %9024 = vmatmul.mubr.bf16.vlgmr.msra.gmra.mrb[48].mxu0 %v5773_v13 }
0x1dba   : > { %9083 = vmatprep.mubr.msk.bf16.mxu0 %vm9952_vm0, %v9950_v19 }
0x1e8c   : > { %v5969_v9 = vpop.f32.mrb[108].mxu1  ;;  %v6010_v12 = vpop.f32.mrb[48].mxu0 }
0x1e8d   : > { %v5971_v10 = vpop.f32.mrb[109].mxu1  ;;  %v9025_v38 = vpop.f32.mrb[49].mxu0  ;;  %v6016_v7 = vmul.f32 %v11616_v2, %v5969_v9  ;;  %v6017_v14 = vmul.f32 %v11622_v5, %v5969_v9  ;;  %v6018_v24 = vmul.f32 %v11628_v20, %v5969_v9  ;;  %v6019_v18 = vmul.f32 %v11634_v16, %v5969_v9 }
0x1e8e   : > { %v5973_v29 = vpop.f32.mrb[110].mxu1  ;;  %v6013_v37 = vpop.f32.mrb[50].mxu0  ;;  %9027 = vmatprep.subr.mxu1 %v5971_v10  ;;  %v6020_v62 = vmul.f32 %v11640_v21, %v5969_v9  ;;  %v6021_v27 = vmul.f32 %v11646_v23, %v5969_v9  ;;  %v6022_v26 = vmul.f32 %v11652_v17, %v5969_v9  ;;  %v6023_v42 = vmul.f32 %v11658_v30, %v5969_v9 }
0x1e8f   : > { %v5974_v41 = vpop.f32.mrb[111].mxu1  ;;  %v9026_v46 = vpop.f32.mrb[51].mxu0  ;;  %9028 = vmatpush3.xpose.msra.mxu1 %v5971_v10  ;;  %9029 = vmatprep.mubr.f32.mxu1 %v6016_v7  ;;  %v6024_v59 = vmul.f32 %v11664_v53, %v5969_v9  ;;  %v6025_v56 = vmul.f32 %v11670_v32, %v5969_v9  ;;  %v6026_v39 = vmul.f32 %v11676_v31, %v5969_v9 }
0x1e90   : > { %9047 = vmatprep.subr.mxu1 %v6010_v12  ;;  %v6027_v48 = vmul.f32 %v11682_v55, %v5969_v9 }
0x1e92   : > { %9030 = vmatmul.mubr.f32.vlgmr.msra.gmra.mrb[112].mxu1 %v6017_v14 }
0x1e93   : > { %9032 = vmatprep.mubr.f32.mxu1 %v6018_v24  ;;  %9048 = vmatpush3.msra.mxu1 %v6010_v12 }
0x1e96   : > { %9033 = vmatmul.mubr.f32.gmra.mrb[114].mxu1 %v6019_v18 }
0x1e97   : > { %9035 = vmatprep.mubr.f32.mxu1 %v6020_v62 }
0x1e9a   : > { %9036 = vmatmul.mubr.f32.gmra.mrb[116].mxu1 %v6021_v27 }
0x1e9b   : > { %9038 = vmatprep.mubr.f32.mxu1 %v6022_v26 }
0x1e9e   : > { %9039 = vmatmul.mubr.f32.gmra.mrb[118].mxu1 %v6023_v42 }
0x1e9f   : > { %9041 = vmatprep.mubr.f32.mxu1 %v6024_v59 }
0x1ea2   : > { %9042 = vmatmul.mubr.f32.gmra.mrb[120].mxu1 %v6025_v56 }
0x1ea3   : > { %9044 = vmatprep.mubr.f32.mxu1 %v6026_v39 }
0x1ea6   : > { %9045 = vmatmul.mubr.f32.gmra.mrb[122].mxu1 %v6027_v48 }
0x1f65   : > { %v9031_v50 = vpop.f32.mrb[112].mxu1 }
0x1f66   : > { %v6154_v8 = vmul.f32 0.35355338, %v9031_v50  ;;  %v6094_v11 = vpop.f32.mrb[113].mxu1 }
0x1f67   : > { %v6153_v49 = vmul.f32 0.35355338, %v6094_v11 }
0x1f68   : > { %v6166_v58 = vadd.f32 %v9939_v40, %v6154_v8 }
0x1f69   : > { %v9034_v6 = vpop.f32.mrb[114].mxu1  ;;  %v6165_v35 = vadd.f32 %v9939_v40, %v6153_v49 }
0x1f6a   : > { %v6156_v60 = vmul.f32 0.35355338, %v9034_v6  ;;  %v6104_v61 = vpop.f32.mrb[115].mxu1  ;;  %v6180_v52 = vsel %vm1427_vm1, %v6166_v58, -inf }
0x1f6b   : > { %v6155_v1 = vmul.f32 0.35355338, %v6104_v61  ;;  %6181 = vmax.xlane.f32.xlu1 %v6180_v52  ;;  %v6177_v15 = vsel %vm1427_vm1, %v6165_v35, -inf }
0x1f6c   : > { %6178 = vmax.xlane.f32.xlu0 %v6177_v15  ;;  %v6168_v25 = vadd.f32 %v9939_v40, %v6156_v60 }
0x1f6d   : > { %v9037_v33 = vpop.f32.mrb[116].mxu1  ;;  %v6167_v28 = vadd.f32 %v9939_v40, %v6155_v1 }
0x1f6e   : > { %v6158_v51 = vmul.f32 0.35355338, %v9037_v33  ;;  %v6114_v45 = vpop.f32.mrb[117].mxu1  ;;  %v6186_v13 = vsel %vm1427_vm1, %v6168_v25, -inf }
0x1f6f   : > { %v6157_v9 = vmul.f32 0.35355338, %v6114_v45  ;;  %6187 = vmax.xlane.f32.xlu1 %v6186_v13  ;;  %v6183_v12 = vsel %vm1427_vm1, %v6167_v28, -inf }
0x1f70   : > { %6184 = vmax.xlane.f32.xlu0 %v6183_v12  ;;  %v6170_v10 = vadd.f32 %v9939_v40, %v6158_v51 }
0x1f71   : > { %v9040_v38 = vpop.f32.mrb[118].mxu1  ;;  %v6169_v7 = vadd.f32 %v9939_v40, %v6157_v9 }
0x1f72   : > { %v6160_v29 = vmul.f32 0.35355338, %v9040_v38  ;;  %v6124_v37 = vpop.f32.mrb[119].mxu1  ;;  %v6192_v41 = vsel %vm1427_vm1, %v6170_v10, -inf }
0x1f73   : > { %v6159_v46 = vmul.f32 0.35355338, %v6124_v37  ;;  %6193 = vmax.xlane.f32.xlu1 %v6192_v41  ;;  %v6189_v14 = vsel %vm1427_vm1, %v6169_v7, -inf }
0x1f74   : > { %v6172_v24 = vadd.f32 %v9939_v40, %v6160_v29  ;;  %6190 = vmax.xlane.f32.xlu0 %v6189_v14 }
0x1f75   : > { %v6171_v18 = vadd.f32 %v9939_v40, %v6159_v46  ;;  %v9043_v62 = vpop.f32.mrb[120].mxu1 }
0x1f76   : > { %v6162_v27 = vmul.f32 0.35355338, %v9043_v62  ;;  %v6134_v26 = vpop.f32.mrb[121].mxu1  ;;  %v6198_v42 = vsel %vm1427_vm1, %v6172_v24, -inf }
0x1f77   : > { %v6161_v59 = vmul.f32 0.35355338, %v6134_v26  ;;  %6199 = vmax.xlane.f32.xlu1 %v6198_v42  ;;  %v6195_v56 = vsel %vm1427_vm1, %v6171_v18, -inf }
0x1f78   : > { %v6174_v39 = vadd.f32 %v9939_v40, %v6162_v27  ;;  %6196 = vmax.xlane.f32.xlu0 %v6195_v56 }
0x1f79   : > { %v6173_v48 = vadd.f32 %v9939_v40, %v6161_v59  ;;  %v9046_v50 = vpop.f32.mrb[122].mxu1 }
0x1f7a   : > { %v6164_v8 = vmul.f32 0.35355338, %v9046_v50  ;;  %v6144_v11 = vpop.f32.mrb[123].mxu1  ;;  %v6204_v49 = vsel %vm1427_vm1, %v6174_v39, -inf }
0x1f7b   : > { %v6163_v6 = vmul.f32 0.35355338, %v6144_v11  ;;  %6205 = vmax.xlane.f32.xlu1 %v6204_v49  ;;  %v6201_v60 = vsel %vm1427_vm1, %v6173_v48, -inf }
0x1f7c   : > { %v11698_v61 = vadd.f32 %v9939_v40, %v6164_v8  ;;  %6202 = vmax.xlane.f32.xlu0 %v6201_v60 }
0x1f7d   : > { %v11700_v52 = vadd.f32 %v9939_v40, %v6163_v6 }
0x1f7e   : > { %v6210_v1 = vsel %vm1427_vm1, %v11698_v61, -inf }
0x1f7f   : > { %6211 = vmax.xlane.f32.xlu1 %v6210_v1  ;;  %v6207_v15 = vsel %vm1427_vm1, %v11700_v52, -inf }
0x1f80   : > { %6208 = vmax.xlane.f32.xlu0 %v6207_v15 }
0x1ff8   : > { %v6182_v33 = vpop.xlane.xlu1 %6181 }
0x1ff9   : > { %v6214_v51 = vsub.f32 %v6166_v58, %v6182_v33  ;;  %v6179_v45 = vpop.xlane.xlu0 %6178 }
0x1ffa   : > { %v6213_v13 = vsub.f32 %v6165_v35, %v6179_v45 }
0x1ffb   : > { %v6227_v9 = vmul.f32 1.442695, %v6214_v51 }
0x1ffc   : > { %v6225_v12 = vmul.f32 1.442695, %v6213_v13  ;;  %v6188_v38 = vpop.xlane.xlu1 %6187 }
0x1ffd   : > { %9818 = vpow2.f32 %v6227_v9  ;;  %v6216_v29 = vsub.f32 %v6168_v25, %v6188_v38  ;;  %v6185_v37 = vpop.xlane.xlu0 %6184 }
0x1ffe   : > { %9820 = vpow2.f32 %v6225_v12  ;;  %v6215_v40 = vsub.f32 %v6167_v28, %v6185_v37 }
0x1fff   : > { %v6231_v41 = vmul.f32 1.442695, %v6216_v29 }
0x2000   : > { %v6229_v46 = vmul.f32 1.442695, %v6215_v40  ;;  %v6194_v14 = vpop.xlane.xlu1 %6193 }
0x2001   : > { %9822 = vpow2.f32 %v6231_v41  ;;  %v6218_v62 = vsub.f32 %v6170_v10, %v6194_v14  ;;  %v6191_v27 = vpop.xlane.xlu0 %6190 }
0x2002   : > { %9824 = vpow2.f32 %v6229_v46  ;;  %v6217_v26 = vsub.f32 %v6169_v7, %v6191_v27 }
0x2003   : > { %v6235_v42 = vmul.f32 1.442695, %v6218_v62 }
0x2004   : > { %v6233_v58 = vmul.f32 1.442695, %v6217_v26  ;;  %v6200_v59 = vpop.xlane.xlu1 %6199 }
0x2005   : > { %9826 = vpow2.f32 %v6235_v42  ;;  %v6220_v35 = vsub.f32 %v6172_v24, %v6200_v59  ;;  %v6197_v56 = vpop.xlane.xlu0 %6196 }
0x2006   : > { %9828 = vpow2.f32 %v6233_v58  ;;  %v6219_v50 = vsub.f32 %v6171_v18, %v6197_v56 }
0x2007   : > { %v11706_v25 = vpop.eup %9818  ;;  %v6239_v8 = vmul.f32 1.442695, %v6220_v35 }
0x2008   : > { %v11708_v28 = vpop.eup %9820  ;;  %v6237_v11 = vmul.f32 1.442695, %v6219_v50  ;;  %v6206_v49 = vpop.xlane.xlu1 %6205  ;;  %v6252_v10 = vsel %vm1427_vm1, %v11706_v25, 0.0  ;;  %v9518_v50 = vld [vmem:[%s10015_s17 + $0xc0] sm:$0xff]  }
0x2009   : > { %9830 = vpow2.f32 %v6239_v8  ;;  %v6222_v7 = vsub.f32 %v6174_v39, %v6206_v49  ;;  %v6203_v6 = vpop.xlane.xlu0 %6202  ;;  %6253 = vadd.xlane.f32.xlu1 %v6252_v10  ;;  %v6249_v24 = vsel %vm1427_vm1, %v11708_v28, 0.0  ;;  %9068 = vmatpush3.bf16.msra.mxu0 %v9518_v50 }
0x200a   : > { %9832 = vpow2.f32 %v6237_v11  ;;  %v6221_v60 = vsub.f32 %v6173_v48, %v6203_v6  ;;  %6250 = vadd.xlane.f32.xlu0 %v6249_v24  ;;  %9069 = vmatprep.subr.bf16.mxu0 %v9950_v19 }
0x200b   : > { %v11714_v18 = vpop.eup %9822  ;;  %v6243_v1 = vmul.f32 1.442695, %v6222_v7 }
0x200c   : > { %v11716_v15 = vpop.eup %9824  ;;  %v6241_v33 = vmul.f32 1.442695, %v6221_v60  ;;  %v6212_v51 = vpop.xlane.xlu1 %6211  ;;  %v6258_v45 = vsel %vm1427_vm1, %v11714_v18, 0.0 }
0x200d   : > { %9834 = vpow2.f32 %v6243_v1  ;;  %v6224_v39 = vsub.f32 %v11698_v61, %v6212_v51  ;;  %6259 = vadd.xlane.f32.xlu1 %v6258_v45  ;;  %v6209_v13 = vpop.xlane.xlu0 %6208  ;;  %v6255_v9 = vsel %vm1427_vm1, %v11716_v15, 0.0 }
0x200e   : > { %9836 = vpow2.f32 %v6241_v33  ;;  %v6223_v48 = vsub.f32 %v11700_v52, %v6209_v13  ;;  %6256 = vadd.xlane.f32.xlu0 %v6255_v9 }
0x200f   : > { %v11724_v12 = vpop.eup %9826  ;;  %v6247_v38 = vmul.f32 1.442695, %v6224_v39 }
0x2010   : > { %v11726_v29 = vpop.eup %9828  ;;  %v6245_v37 = vmul.f32 1.442695, %v6223_v48  ;;  %v6264_v40 = vsel %vm1427_vm1, %v11724_v12, 0.0 }
0x2011   : > { %9838 = vpow2.f32 %v6247_v38  ;;  %6265 = vadd.xlane.f32.xlu1 %v6264_v40  ;;  %v6261_v61 = vsel %vm1427_vm1, %v11726_v29, 0.0 }
0x2012   : > { %9840 = vpow2.f32 %v6245_v37  ;;  %6262 = vadd.xlane.f32.xlu0 %v6261_v61 }
0x2013   : > { %v11732_v41 = vpop.eup %9830 }
0x2014   : > { %v11734_v52 = vpop.eup %9832  ;;  %v6270_v46 = vsel %vm1427_vm1, %v11732_v41, 0.0 }
0x2015   : > { %6271 = vadd.xlane.f32.xlu1 %v6270_v46  ;;  %v6267_v14 = vsel %vm1427_vm1, %v11734_v52, 0.0 }
0x2016   : > { %6268 = vadd.xlane.f32.xlu0 %v6267_v14 }
0x2017   : > { %v11740_v62 = vpop.eup %9834 }
0x2018   : > { %v11742_v27 = vpop.eup %9836  ;;  %v6276_v26 = vsel %vm1427_vm1, %v11740_v62, 0.0 }
0x2019   : > { %6277 = vadd.xlane.f32.xlu1 %v6276_v26  ;;  %v6273_v42 = vsel %vm1427_vm1, %v11742_v27, 0.0 }
0x201a   : > { %6274 = vadd.xlane.f32.xlu0 %v6273_v42 }
0x201b   : > { %v11748_v58 = vpop.eup %9838 }
0x201c   : > { %v11750_v59 = vpop.eup %9840  ;;  %v6282_v35 = vsel %vm1427_vm1, %v11748_v58, 0.0 }
0x201d   : > { %6283 = vadd.xlane.f32.xlu1 %v6282_v35  ;;  %v6279_v56 = vsel %vm1427_vm1, %v11750_v59, 0.0 }
0x201e   : > { %6280 = vadd.xlane.f32.xlu0 %v6279_v56 }
0x2096   : > { %v6254_v8 = vpop.xlane.xlu1 %6253 }
0x2097   : > { %9842 = vrcp.f32 %v6254_v8  ;;  %v6251_v11 = vpop.xlane.xlu0 %6250 }
0x2098   : > { %9844 = vrcp.f32 %v6251_v11  ;;  %v9523_v11 = vld [vmem:[%s10015_s17 + $0xe8] sm:$0xff]  }
0x209a   : > { %v6260_v49 = vpop.xlane.xlu1 %6259 }
0x209b   : > { %9846 = vrcp.f32 %v6260_v49  ;;  %v6257_v10 = vpop.xlane.xlu0 %6256  ;;  %v9525_v49 = vld [vmem:[%s10015_s17 + $0xf8] sm:$0xff]  }
0x209c   : > { %9848 = vrcp.f32 %v6257_v10 }
0x209e   : > { %v6266_v7 = vpop.xlane.xlu1 %6265 }
0x209f   : > { %9850 = vrcp.f32 %v6266_v7  ;;  %v6263_v6 = vpop.xlane.xlu0 %6262 }
0x20a0   : > { %9852 = vrcp.f32 %v6263_v6 }
0x20a1   : > { %v9843_v24 = vpop.eup %9842 }
0x20a2   : > { %v9845_v60 = vpop.eup %9844  ;;  %v6272_v1 = vpop.xlane.xlu1 %6271  ;;  %v6298_v45 = vmul.f32 %v9843_v24, %v11706_v25 }
0x20a3   : > { %9854 = vrcp.f32 %v6272_v1  ;;  %v6269_v33 = vpop.xlane.xlu0 %6268  ;;  %v6297_v51 = vmul.f32 %v9845_v60, %v11708_v28 }
0x20a4   : > { %9856 = vrcp.f32 %v6269_v33 }
0x20a5   : > { %v9847_v39 = vpop.eup %9846  ;;  %9049 = vmatprep.mubr.msk.f32.mxu1 %vm1427_vm1, %v6297_v51 }
0x20a6   : > { %v9849_v13 = vpop.eup %9848  ;;  %v6278_v9 = vpop.xlane.xlu1 %6277  ;;  %9050 = vmatmul.mubr.msk.f32.vlgmr.msra.gmra.mrb[124].mxu1 %vm1427_vm1, %v6298_v45  ;;  %v6300_v37 = vmul.f32 %v9847_v39, %v11714_v18 }
0x20a7   : > { %9858 = vrcp.f32 %v6278_v9  ;;  %v6275_v48 = vpop.xlane.xlu0 %6274  ;;  %v6299_v38 = vmul.f32 %v9849_v13, %v11716_v15 }
0x20a8   : > { %9860 = vrcp.f32 %v6275_v48 }
0x20a9   : > { %v9851_v40 = vpop.eup %9850  ;;  %9052 = vmatprep.mubr.msk.f32.mxu1 %vm1427_vm1, %v6299_v38 }
0x20aa   : > { %v9853_v28 = vpop.eup %9852  ;;  %v6284_v25 = vpop.xlane.xlu1 %6283  ;;  %9053 = vmatmul.mubr.msk.f32.gmra.mrb[126].mxu1 %vm1427_vm1, %v6300_v37  ;;  %v6302_v14 = vmul.f32 %v9851_v40, %v11724_v12 }
0x20ab   : > { %9862 = vrcp.f32 %v6284_v25  ;;  %v6281_v61 = vpop.xlane.xlu0 %6280  ;;  %v6301_v46 = vmul.f32 %v9853_v28, %v11726_v29 }
0x20ac   : > { %9864 = vrcp.f32 %v6281_v61 }
0x20ad   : > { %v9855_v26 = vpop.eup %9854  ;;  %9055 = vmatprep.mubr.msk.f32.mxu1 %vm1427_vm1, %v6301_v46 }
0x20ae   : > { %v9857_v15 = vpop.eup %9856  ;;  %9056 = vmatmul.mubr.msk.f32.gmra.mrb[128].mxu1 %vm1427_vm1, %v6302_v14  ;;  %v6304_v42 = vmul.f32 %v9855_v26, %v11732_v41 }
0x20af   : > { %v6303_v18 = vmul.f32 %v9857_v15, %v11734_v52 }
0x20b1   : > { %v9859_v35 = vpop.eup %9858  ;;  %9058 = vmatprep.mubr.msk.f32.mxu1 %vm1427_vm1, %v6303_v18 }
0x20b2   : > { %v9861_v56 = vpop.eup %9860  ;;  %9059 = vmatmul.mubr.msk.f32.gmra.mrb[130].mxu1 %vm1427_vm1, %v6304_v42  ;;  %v6306_v29 = vmul.f32 %v9859_v35, %v11740_v62  ;;  %v9519_v62 = vld [vmem:[%s10015_s17 + $0xc8] sm:$0xff]  }
0x20b3   : > { %v6305_v12 = vmul.f32 %v9861_v56, %v11742_v27  ;;  %9070 = vmatpush3.bf16.msra.mxu0 %v9519_v62  ;;  %v9520_v27 = vld [vmem:[%s10015_s17 + $0xd0] sm:$0xff]  }
0x20b4   : > { %9071 = vmatprep.subr.bf16.mxu0 %v9950_v19 }
0x20b5   : > { %v9863_v50 = vpop.eup %9862  ;;  %9061 = vmatprep.mubr.msk.f32.mxu1 %vm1427_vm1, %v6305_v12 }
0x20b6   : > { %v9865_v8 = vpop.eup %9864  ;;  %9062 = vmatmul.mubr.msk.f32.gmra.mrb[132].mxu1 %vm1427_vm1, %v6306_v29  ;;  %v6308_v52 = vmul.f32 %v9863_v50, %v11748_v58  ;;  %v9522_v58 = vld [vmem:[%s10015_s17 + $0xe0] sm:$0xff]  }
0x20b7   : > { %v6307_v41 = vmul.f32 %v9865_v8, %v11750_v59  ;;  %9072 = vmatpush3.bf16.msra.mxu0 %v9520_v27  ;;  %v9521_v59 = vld [vmem:[%s10015_s17 + $0xd8] sm:$0xff]   ;;  %v9528_v27 = vld [vmem:[%s10030_s26 + $0x244] ss:$12 sps:$4 sm:$0xff]  }
0x20b8   : > { %9073 = vmatprep.subr.bf16.mxu0 %v9950_v19  ;;  %6807 = vmatprep.subr.bf16.mxu1 %v9528_v27  ;;  %v9564_v27 = vld [vmem:[%s10035_s29 + $0x2d0] sm:$0xff]  }
0x20b9   : > { %9064 = vmatprep.mubr.msk.f32.mxu1 %vm1427_vm1, %v6307_v41 }
0x20ba   : > { %9065 = vmatmul.mubr.msk.f32.gmra.mrb[134].mxu1 %vm1427_vm1, %v6308_v52 }
0x20bb   : > { %6839 = vmatprep.mubr.bf16.mxu1 %v9951_v44  ;;  %9074 = vmatpush3.bf16.msra.mxu0 %v9521_v59  ;;  %v9524_v44 = vld [vmem:[%s10015_s17 + $0xf0] sm:$0xff]  }
0x20bc   : > { %9075 = vmatprep.subr.bf16.mxu0 %v9950_v19  ;;  %v9529_v59 = vld [vmem:[%s10030_s26 + $0x248] ss:$12 sps:$4 sm:$0xff]  }
0x20bf   : > { %9076 = vmatpush3.bf16.msra.mxu0 %v9522_v58  ;;  %v9530_v58 = vld [vmem:[%s10030_s26 + $0x258] ss:$12 sps:$4 sm:$0xff]  }
0x20c0   : > { %9077 = vmatprep.subr.bf16.mxu0 %v9950_v19 }
0x20c3   : > { %9078 = vmatpush3.bf16.msra.mxu0 %v9523_v11  ;;  %v9534_v11 = vld [vmem:[%s10030_s26 + $0x270] ss:$12 sps:$4 sm:$0xff]  }
0x20c4   : > { %9079 = vmatprep.subr.bf16.mxu0 %v9950_v19 }
0x20c7   : > { %9080 = vmatpush3.bf16.msra.mxu0 %v9524_v44 }
0x20c8   : > { %9081 = vmatprep.subr.bf16.mxu0 %v9950_v19 }
0x20cb   : > { %9082 = vmatpush3.bf16.msra.mxu0 %v9525_v49 }
0x20cc   : > { %9087 = vmatprep.subr.bf16.mxu0 %v9950_v19 }
0x2179   : > { %v9051_v10 = vpop.f32.mrb[124].mxu1 }
0x217a   : > { %v6471_v7 = vmul.f32 %v11622_v5, %v9051_v10  ;;  %v6411_v6 = vpop.f32.mrb[125].mxu1 }
0x217b   : > { %v6470_v24 = vmul.f32 %v11616_v2, %v6411_v6 }
0x217d   : > { %v6482_v60 = vadd.f32 %v6471_v7, %v6470_v24  ;;  %v9054_v1 = vpop.f32.mrb[126].mxu1 }
0x217e   : > { %v6421_v33 = vpop.f32.mrb[127].mxu1  ;;  %v6473_v45 = vmul.f32 %v11634_v16, %v9054_v1 }
0x217f   : > { %v6472_v51 = vmul.f32 %v11628_v20, %v6421_v33 }
0x2181   : > { %v6483_v39 = vadd.f32 %v6482_v60, %v6472_v51  ;;  %v9057_v13 = vpop.f32.mrb[128].mxu1  ;;  %v9940_v60 = vld [vmem:[%s12005_s3 + $0x60] ss:$0 sm:$0xff] }
0x2182   : > { %v6431_v9 = vpop.f32.mrb[129].mxu1  ;;  %v6475_v37 = vmul.f32 %v11646_v23, %v9057_v13  ;;  %v9540_v13 = vld [vmem:[%s10030_s26 + $0x28c] ss:$12 sps:$4 sm:$0xff]  }
0x2183   : > { %v6474_v48 = vmul.f32 %v11640_v21, %v6431_v9  ;;  %v6484_v38 = vadd.f32 %v6483_v39, %v6473_v45  ;;  %v9537_v39 = vld [vmem:[%s10030_s26 + $0x278] ss:$12 sps:$4 sm:$0xff]   ;;  %v9538_v9 = vld [vmem:[%s10030_s26 + $0x288] ss:$12 sps:$4 sm:$0xff]  }
0x2185   : > { %v6485_v40 = vadd.f32 %v6484_v38, %v6474_v48  ;;  %v9060_v5 = vpop.f32.mrb[130].mxu1  ;;  %v9541_v48 = vld [vmem:[%s10030_s26 + $0x290] ss:$12 sps:$4 sm:$0xff]  }
0x2186   : > { %v6441_v28 = vpop.f32.mrb[131].mxu1  ;;  %v6477_v61 = vmul.f32 %v11658_v30, %v9060_v5  ;;  %v9544_v38 = vld [vmem:[%s10030_s26 + $0x2a4] ss:$12 sps:$4 sm:$0xff]   ;;  %v9548_v5 = vld [vmem:[%s10030_s26 + $0x2bc] ss:$12 sps:$4 sm:$0xff]  }
0x2187   : > { %v6476_v2 = vmul.f32 %v11652_v17, %v6441_v28  ;;  %v6486_v25 = vadd.f32 %v6485_v40, %v6475_v37  ;;  %v9542_v37 = vld [vmem:[%s10030_s26 + $0x2a0] ss:$12 sps:$4 sm:$0xff]   ;;  %v9545_v40 = vld [vmem:[%s10030_s26 + $0x2a8] ss:$12 sps:$4 sm:$0xff]   ;;  %v9546_v28 = vld [vmem:[%s10030_s26 + $0x2b8] ss:$12 sps:$4 sm:$0xff]  }
0x2189   : > { %v6487_v46 = vadd.f32 %v6486_v25, %v6476_v2  ;;  %v9063_v20 = vpop.f32.mrb[132].mxu1  ;;  %v9549_v2 = vld [vmem:[%s10030_s26 + $0x2c0] ss:$12 sps:$4 sm:$0xff]  }
0x218a   : > { %v6451_v16 = vpop.f32.mrb[133].mxu1  ;;  %v6479_v21 = vmul.f32 %v11670_v32, %v9063_v20  ;;  %v9552_v25 = vld [vmem:[%s10030_s26 + $0x2d4] ss:$12 sps:$4 sm:$0xff]   ;;  %v9556_v20 = vld [vmem:[%s10030_s26 + $0x2ec] ss:$12 sps:$4 sm:$0xff]  }
0x218b   : > { %v6478_v14 = vmul.f32 %v11664_v53, %v6451_v16  ;;  %v6488_v26 = vadd.f32 %v6487_v46, %v6477_v61  ;;  %v11812_v53 = vld [vmem:[%s10020_s20 + $0x58] sm:$0xff]  ;;  %v9554_v16 = vld [vmem:[%s10030_s26 + $0x2e8] ss:$12 sps:$4 sm:$0xff]  }
0x218c   : > { %v6514_v32 = vrot.slane %v11812_v53, %v10256_v54  ;;  %v9526_v54 = vld [vmem:[%s10030_s26 + $0x240] ss:$12 sps:$4 sm:$0xff]   ;;  %v9550_v61 = vld [vmem:[%s10030_s26 + $0x2d0] ss:$12 sps:$4 sm:$0xff]   ;;  %v9553_v46 = vld [vmem:[%s10030_s26 + $0x2d8] ss:$12 sps:$4 sm:$0xff]  }
0x218d   : > { %v6489_v15 = vadd.f32 %v6488_v26, %v6478_v14  ;;  %v9066_v18 = vpop.f32.mrb[134].mxu1  ;;  %6808 = vmatpush1.bf16.msra.mxu1 %v9526_v54  ;;  %v9557_v14 = vld [vmem:[%s10030_s26 + $0x2f0] ss:$12 sps:$4 sm:$0xff]   ;;  %v9563_v54 = vld [vmem:[%s10035_s29 + $0x248] sm:$0xff]  }
0x218e   : > { %v6461_v23 = vpop.f32.mrb[135].mxu1  ;;  %v6481_v17 = vmul.f32 %v11682_v55, %v9066_v18  ;;  %v5746_v55 = vadd.f32 %v11555_v22, %v11377_v43  ;;  %v9532_v43 = vld [vmem:[%s10030_s26 + $0x25c] ss:$12 sps:$4 sm:$0xff]   ;;  %v9533_v22 = vld [vmem:[%s10030_s26 + $0x260] ss:$12 sps:$4 sm:$0xff]  }
0x218f   : > { %v6480_v42 = vmul.f32 %v11676_v31, %v6461_v23  ;;  %v6490_v35 = vadd.f32 %v6489_v15, %v6479_v21  ;;  %6809 = vmatprep.subr.bf16.mxu1 %v9532_v43  ;;  %v9566_v43 = vld [vmem:[%s10035_s29 + $0x250] sm:$0xff]  }
0x2191   : > { %v6491_v56 = vadd.f32 %v6490_v35, %v6480_v42  ;;  %6810 = vmatpush1.bf16.msra.mxu1 %v9530_v58  ;;  %v9568_v58 = vld [vmem:[%s10035_s29 + $0x298] sm:$0xff]  }
0x2193   : > { %v6492_v12 = vadd.f32 %v6491_v56, %v6481_v17 }
0x2195   : > { %v6493_v30 = vpack.c.bf16 %v6492_v12, %v6492_v12 }
0x2197   : > { %9084 = vmatmul.mubr.bf16.vlgmr.msra.gmra.mrb[52].mxu0 %v6493_v30 }
0x2198   : > { %9103 = vmatprep.mubr.msk.bf16.mxu0 %vm9952_vm0, %v9950_v19  ;;  %9088 = vmatpush3.bf16.msra.mxu0 %v9529_v59  ;;  %v9565_v59 = vld [vmem:[%s10035_s29 + $0x290] sm:$0xff]  }
0x2199   : > { %9089 = vmatprep.subr.bf16.mxu0 %v9950_v19 }
0x219c   : > { %9090 = vmatpush3.bf16.msra.mxu0 %v9533_v22  ;;  %v9567_v22 = vld [vmem:[%s10035_s29 + $0x2d8] sm:$0xff]  }
0x219d   : > { %9091 = vmatprep.subr.bf16.mxu0 %v9950_v19 }
0x21a0   : > { %9092 = vmatpush3.bf16.msra.mxu0 %v9537_v39  ;;  %v6670_v39 = vrot.slane %v11596_v63, %v10567_v4 }
0x21a1   : > { %9093 = vmatprep.subr.bf16.mxu0 %v9950_v19 }
0x21a4   : > { %9094 = vmatpush3.bf16.msra.mxu0 %v9541_v48 }
0x21a5   : > { %9095 = vmatprep.subr.bf16.mxu0 %v9950_v19 }
0x21a8   : > { %9096 = vmatpush3.bf16.msra.mxu0 %v9545_v40 }
0x21a9   : > { %9097 = vmatprep.subr.bf16.mxu0 %v9950_v19 }
0x21ac   : > { %9098 = vmatpush3.bf16.msra.mxu0 %v9549_v2 }
0x21ad   : > { %9099 = vmatprep.subr.bf16.mxu0 %v9950_v19 }
0x21b0   : > { %9100 = vmatpush3.bf16.msra.mxu0 %v9553_v46 }
0x21b1   : > { %9101 = vmatprep.subr.bf16.mxu0 %v9950_v19 }
0x21b4   : > { %9102 = vmatpush3.bf16.msra.mxu0 %v9557_v14 }
0x21b5   : > { %9107 = vmatprep.subr.bf16.mxu0 %v9950_v19 }
0x226a   : > { %v6597_v31 = vpop.f32.mrb[52].mxu0 }
0x226b   : > { %v6598_v29 = vadd.f32 %v6597_v31, %v6514_v32  ;;  %v9085_v50 = vpop.f32.mrb[53].mxu0 }
0x226c   : > { %v6600_v8 = vpop.f32.mrb[54].mxu0  ;;  %v9558_v50 = vld [vmem:[%s10035_s29 + $0x2c0] sm:$0xff]  }
0x226d   : > { %v11819_v41 = vadd.f32 %v6598_v29, %v11558_v3  ;;  %v11821_v52 = vadd.f32 %v6598_v29, %v5746_v55  ;;  %v9086_v62 = vpop.f32.mrb[55].mxu0  ;;  %v9536_v3 = vld [vmem:[%s10030_s26 + $0x274] ss:$12 sps:$4 sm:$0xff]  }
0x226e   : > { %6811 = vmatprep.subr.bf16.mxu1 %v9536_v3  ;;  %v9559_v8 = vld [vmem:[%s10035_s29 + $0x280] sm:$0xff]   ;;  %v9569_v3 = vld [vmem:[%s10035_s29 + $0x258] sm:$0xff]  }
0x226f   : > { %6607 = vadd.xlane.f32.xlu1 %v11821_v52  ;;  %6605 = vadd.xlane.f32.xlu0 %v11819_v41  ;;  %v9560_v62 = vld [vmem:[%s10035_s29 + $0x240] sm:$0xff]  }
0x2270   : > { %6812 = vmatpush1.bf16.msra.mxu1 %v9534_v11  ;;  %v9570_v11 = vld [vmem:[%s10035_s29 + $0x2e0] sm:$0xff]  }
0x2271   : > { %6813 = vmatprep.subr.bf16.mxu1 %v9540_v13  ;;  %v6678_v13 = vrot.slane %v11812_v53, %v10567_v4 }
0x2274   : > { %6814 = vmatpush1.bf16.msra.mxu1 %v9538_v9  ;;  %v6674_v9 = vrot.slane %v11599_v36, %v10567_v4 }
0x2275   : > { %6815 = vmatprep.subr.bf16.mxu1 %v9544_v38 }
0x2278   : > { %6816 = vmatpush1.bf16.msra.mxu1 %v9542_v37 }
0x2279   : > { %6817 = vmatprep.subr.bf16.mxu1 %v9548_v5 }
0x227c   : > { %6818 = vmatpush1.bf16.msra.mxu1 %v9546_v28 }
0x227d   : > { %6819 = vmatprep.subr.bf16.mxu1 %v9552_v25 }
0x2280   : > { %6820 = vmatpush1.bf16.msra.mxu1 %v9550_v61 }
0x2281   : > { %6821 = vmatprep.subr.bf16.mxu1 %v9556_v20 }
0x2284   : > { %6822 = vmatpush1.bf16.msra.mxu1 %v9554_v16 }
0x2285   : > { %8616 = vmatprep.subr.bf16.mxu1 %v9559_v8 }
0x22fc   : > { %v6608_v44 = vpop.xlane.xlu1 %6607  ;;  %v6606_v49 = vpop.xlane.xlu0 %6605 }
0x22fd   : > { %v6610_v10 = vmul.f32 0.010416667, %v6608_v44  ;;  %v6609_v7 = vmul.f32 0.010416667, %v6606_v49  ;;  %v9571_v44 = vld [vmem:[%s10035_s29 + $0x2a0] sm:$0xff]  }
0x22fe   : > { %v9572_v49 = vld [vmem:[%s10035_s29 + $0x260] sm:$0xff]  }
0x22ff   : > { %v6612_v6 = vsub.f32 %v11821_v52, %v6610_v10  ;;  %v6611_v24 = vsub.f32 %v11819_v41, %v6609_v7  ;;  %v9573_v10 = vld [vmem:[%s10035_s29 + $0x2e8] sm:$0xff]  }
0x2300   : > { %v9574_v7 = vld [vmem:[%s10035_s29 + $0x2a8] sm:$0xff]  }
0x2301   : > { %v6614_v1 = vmul.f32 %v9940_v60, %v6612_v6  ;;  %v6613_v33 = vmul.f32 %v9940_v60, %v6611_v24  ;;  %v9575_v6 = vld [vmem:[%s10035_s29 + $0x268] sm:$0xff]   ;;  %v9576_v24 = vld [vmem:[%s10035_s29 + $0x2f0] sm:$0xff]  }
0x2302   : > { %v9577_v60 = vld [vmem:[%s10035_s29 + $0x2b0] sm:$0xff]  }
0x2303   : > { %v6616_v51 = vmul.f32 %v6614_v1, %v6614_v1  ;;  %v6615_v45 = vmul.f32 %v6613_v33, %v6613_v33 }
0x2305   : > { %6619 = vadd.xlane.f32.xlu1 %v6616_v51  ;;  %6617 = vadd.xlane.f32.xlu0 %v6615_v45  ;;  %v9580_v51 = vld [vmem:[%s10035_s29 + $0x2b8] sm:$0xff]  }
0x2306   : > { %v9581_v45 = vld [vmem:[%s10035_s29 + $0x278] sm:$0xff]  }
0x2392   : > { %v6620_v26 = vpop.xlane.xlu1 %6619  ;;  %v6618_v21 = vpop.xlane.xlu0 %6617 }
0x2393   : > { %v6622_v15 = vmul.f32 0.010416667, %v6620_v26  ;;  %v6621_v18 = vmul.f32 0.010416667, %v6618_v21 }
0x2395   : > { %v6624_v23 = vadd.f32 1e-05, %v6622_v15  ;;  %v6623_v42 = vadd.f32 1e-05, %v6621_v18 }
0x2397   : > { %9866 = vrsqrt.f32 %v6624_v23 }
0x2398   : > { %9868 = vrsqrt.f32 %v6623_v42 }
0x23a1   : > { %v9867_v35 = vpop.eup %9866 }
0x23a2   : > { %v9869_v17 = vpop.eup %9868  ;;  %v6628_v56 = vmul.f32 %v9867_v35, %v6614_v1  ;;  %v9578_v1 = vld [vmem:[%s10035_s29 + $0x270] sm:$0xff]  }
0x23a3   : > { %v6627_v12 = vmul.f32 %v9869_v17, %v6613_v33  ;;  %v9579_v33 = vld [vmem:[%s10035_s29 + $0x2f8] sm:$0xff]  }
0x23a4   : > { %v6630_v30 = vmul.f32 %v6628_v56, %v11603_v0 }
0x23a5   : > { %v6629_v32 = vmul.f32 %v6627_v12, %v11603_v0  ;;  %v9561_v0 = vld [vmem:[%s10035_s29 + $0x2c8] sm:$0xff]  }
0x23a6   : > { %v6632_v31 = vadd.f32 %v6630_v30, %v11607_v47 }
0x23a7   : > { %v6631_v55 = vadd.f32 %v6629_v32, %v11607_v47  ;;  %v9562_v47 = vld [vmem:[%s10035_s29 + $0x288] sm:$0xff]  }
0x23a9   : > { %v6633_v29 = vpack.c.bf16 %v6632_v31, %v6631_v55 }
0x23ab   : > { %6840 = vmatmul.mubr.bf16.vlgmr.msra.gmra.mrb[136].mxu1 %v6633_v29  ;;  %9104 = vmatmul.mubr.bf16.vlgmr.msra.gmra.mrb[56].mxu0 %v6633_v29 }
0x23ac   : > { %9123 = vmatprep.mubr.msk.bf16.mxu0 %vm9952_vm0, %v9950_v19  ;;  %9108 = vmatpush3.bf16.msra.mxu0 %v9558_v50 }
0x23ad   : > { %9109 = vmatprep.subr.bf16.mxu0 %v9950_v19  ;;  %8617 = vmatpush3.bf16.msra.mxu1 %v9560_v62 }
0x23ae   : > { %8618 = vmatprep.subr.bf16.mxu1 %v9562_v47 }
0x23b0   : > { %9110 = vmatpush3.bf16.msra.mxu0 %v9561_v0 }
0x23b1   : > { %9111 = vmatprep.subr.bf16.mxu0 %v9950_v19  ;;  %8619 = vmatpush3.bf16.msra.mxu1 %v9563_v54 }
0x23b2   : > { %8620 = vmatprep.subr.bf16.mxu1 %v9565_v59 }
0x23b4   : > { %9112 = vmatpush3.bf16.msra.mxu0 %v9564_v27 }
0x23b5   : > { %9113 = vmatprep.subr.bf16.mxu0 %v9950_v19  ;;  %8621 = vmatpush3.bf16.msra.mxu1 %v9566_v43 }
0x23b6   : > { %8622 = vmatprep.subr.bf16.mxu1 %v9568_v58 }
0x23b8   : > { %9114 = vmatpush3.bf16.msra.mxu0 %v9567_v22 }
0x23b9   : > { %9115 = vmatprep.subr.bf16.mxu0 %v9950_v19  ;;  %8623 = vmatpush3.bf16.msra.mxu1 %v9569_v3 }
0x23ba   : > { %8624 = vmatprep.subr.bf16.mxu1 %v9571_v44 }
0x23bc   : > { %9116 = vmatpush3.bf16.msra.mxu0 %v9570_v11 }
0x23bd   : > { %9117 = vmatprep.subr.bf16.mxu0 %v9950_v19  ;;  %8625 = vmatpush3.bf16.msra.mxu1 %v9572_v49 }
0x23be   : > { %8626 = vmatprep.subr.bf16.mxu1 %v9574_v7 }
0x23c0   : > { %9118 = vmatpush3.bf16.msra.mxu0 %v9573_v10 }
0x23c1   : > { %9119 = vmatprep.subr.bf16.mxu0 %v9950_v19  ;;  %8627 = vmatpush3.bf16.msra.mxu1 %v9575_v6 }
0x23c2   : > { %8628 = vmatprep.subr.bf16.mxu1 %v9577_v60 }
0x23c4   : > { %9120 = vmatpush3.bf16.msra.mxu0 %v9576_v24 }
0x23c5   : > { %9121 = vmatprep.subr.bf16.mxu0 %v9950_v19  ;;  %8629 = vmatpush3.bf16.msra.mxu1 %v9578_v1 }
0x23c6   : > { %8630 = vmatprep.subr.bf16.mxu1 %v9580_v51 }
0x23c8   : > { %9122 = vmatpush3.bf16.msra.mxu0 %v9579_v33 }
0x23c9   : > { %8631 = vmatpush3.bf16.msra.mxu1 %v9581_v45 }
0x247e   : > { %v6841_v48 = vpop.f32.mrb[136].mxu1  ;;  %v6884_v38 = vpop.f32.mrb[56].mxu0 }
0x247f   : > { %v11905_v37 = vadd.f32 %v6841_v48, %v6670_v39  ;;  %v11907_v19 = vadd.f32 %v6884_v38, %v6678_v13  ;;  %v6843_v40 = vpop.f32.mrb[137].mxu1  ;;  %v9105_v5 = vpop.f32.mrb[57].mxu0 }
0x2480   : > { %v11909_v28 = vadd.f32 %v6843_v40, %v6674_v9  ;;  %v6845_v2 = vpop.f32.mrb[138].mxu1  ;;  %v6887_v25 = vpop.f32.mrb[58].mxu0 }
0x2481   : > { %v11912_v63 = vmul.f32 0.70710677, %v11905_v37  ;;  %v11915_v53 = vmul.f32 0.70710677, %v11907_v19  ;;  %v6847_v36 = vpop.f32.mrb[139].mxu1  ;;  %v9106_v61 = vpop.f32.mrb[59].mxu0  ;;  %v11923_v14 = vadd.f32 %v6845_v2, %v6670_v39  ;;  %v11925_v15 = vadd.f32 %v6887_v25, %v6678_v13 }
0x2482   : > { %v11918_v4 = vmul.f32 0.70710677, %v11909_v28  ;;  %v11935_v55 = vadd.f32 %v6847_v36, %v6674_v9 }
0x2483   : > { %v6915_v46 = vand.u32 2147483647, %v11912_v63  ;;  %v6917_v20 = vand.u32 2147483647, %v11915_v53  ;;  %v11928_v35 = vmul.f32 0.70710677, %v11923_v14 }
0x2484   : > { %v6916_v16 = vand.u32 2147483647, %v11918_v4  ;;  %v11931_v56 = vmul.f32 0.70710677, %v11925_v15  ;;  %v11938_v62 = vmul.f32 0.70710677, %v11935_v55 }
0x2485   : > { %v6921_v26 = vmul.f32 0.3275911, %v6915_v46  ;;  %v6923_v21 = vmul.f32 0.3275911, %v6917_v20  ;;  %v6918_v12 = vand.u32 2147483647, %v11928_v35 }
0x2486   : > { %v6922_v18 = vmul.f32 0.3275911, %v6916_v16  ;;  %v6920_v30 = vand.u32 2147483647, %v11931_v56  ;;  %v6993_v50 = vsub.f32 0.0, %v6915_v46  ;;  %v6995_v0 = vsub.f32 0.0, %v6917_v20 }
0x2487   : > { %v6927_v23 = vadd.f32 1.0, %v6921_v26  ;;  %v6929_v42 = vadd.f32 1.0, %v6923_v21  ;;  %v6924_v32 = vmul.f32 0.3275911, %v6918_v12  ;;  %v6919_v47 = vand.u32 2147483647, %v11938_v62 }
0x2488   : > { %v6928_v17 = vadd.f32 1.0, %v6922_v18  ;;  %v6926_v31 = vmul.f32 0.3275911, %v6920_v30  ;;  %v6994_v54 = vsub.f32 0.0, %v6916_v16  ;;  %v6999_v59 = vmul.f32 %v6993_v50, %v6915_v46 }
0x2489   : > { %9870 = vrcp.f32 %v6927_v23  ;;  %v6930_v29 = vadd.f32 1.0, %v6924_v32  ;;  %v6925_v43 = vmul.f32 0.3275911, %v6919_v47  ;;  %v7001_v3 = vmul.f32 %v6995_v0, %v6917_v20 }
0x248a   : > { %9872 = vrcp.f32 %v6929_v42  ;;  %v6932_v8 = vadd.f32 1.0, %v6926_v31  ;;  %v6996_v44 = vsub.f32 0.0, %v6918_v12  ;;  %v7000_v7 = vmul.f32 %v6994_v54, %v6916_v16 }
0x248b   : > { %9874 = vrcp.f32 %v6928_v17  ;;  %v6931_v49 = vadd.f32 1.0, %v6925_v43  ;;  %v7005_v24 = vmul.f32 1.442695, %v6999_v59  ;;  %v6998_v1 = vsub.f32 0.0, %v6920_v30 }
0x248c   : > { %9876 = vrcp.f32 %v6930_v29  ;;  %v7009_v51 = vmul.f32 1.442695, %v7001_v3  ;;  %v7002_v13 = vmul.f32 %v6996_v44, %v6918_v12  ;;  %v7007_v40 = vmul.f32 1.442695, %v7000_v7 }
0x248d   : > { %9878 = vrcp.f32 %v6932_v8  ;;  %v7004_v36 = vmul.f32 %v6998_v1, %v6920_v30  ;;  %v6997_v18 = vsub.f32 0.0, %v6919_v47  ;;  %vm6903_vm0 = vcmp.ge.f32.partialorder %v11912_v63, 0.0 }
0x248e   : > { %9880 = vrcp.f32 %v6931_v49  ;;  %v7011_v21 = vmul.f32 1.442695, %v7002_v13  ;;  %vm6905_vm1 = vcmp.ge.f32.partialorder %v11915_v53, 0.0  ;;  %vm6906_vm6 = vcmp.ge.f32.partialorder %v11928_v35, 0.0 }
0x248f   : > { %9882 = vpow2.f32 %v7005_v24  ;;  %v7015_v31 = vmul.f32 1.442695, %v7004_v36  ;;  %v7003_v3 = vmul.f32 %v6997_v18, %v6919_v47  ;;  %v6911_v53 = vsel %vm6905_vm1, 1.0, %v9953_v57 }
0x2490   : > { %9884 = vpow2.f32 %v7009_v51  ;;  %vm6908_vm7 = vcmp.ge.f32.partialorder %v11931_v56, 0.0  ;;  %vm6904_vm8 = vcmp.ge.f32.partialorder %v11918_v4, 0.0  ;;  %vm6907_vm9 = vcmp.ge.f32.partialorder %v11938_v62, 0.0 }
0x2491   : > { %9886 = vpow2.f32 %v7007_v40  ;;  %v7013_v47 = vmul.f32 1.442695, %v7003_v3  ;;  %v6914_v35 = vsel %vm6908_vm7, 1.0, %v9953_v57 }
0x2492   : > { %9888 = vpow2.f32 %v7011_v21  ;;  %v6909_v21 = vsel %vm6903_vm0, 1.0, %v9953_v57 }
0x2493   : > { %v9871_v27 = vpop.eup %9870  ;;  %9890 = vpow2.f32 %v7015_v31 }
0x2494   : > { %v9873_v22 = vpop.eup %9872  ;;  %v6939_v58 = vmul.f32 1.0614054, %v9871_v27  ;;  %9892 = vpow2.f32 %v7013_v47 }
0x2495   : > { %v6941_v11 = vmul.f32 1.0614054, %v9873_v22  ;;  %v11941_v6 = vpop.eup %9874 }
0x2496   : > { %v6945_v10 = vadd.f32 -1.4531521, %v6939_v58  ;;  %v6940_v45 = vmul.f32 1.0614054, %v11941_v6  ;;  %v11944_v9 = vpop.eup %9876 }
0x2497   : > { %v6947_v60 = vadd.f32 -1.4531521, %v6941_v11  ;;  %v11946_v5 = vpop.eup %9878  ;;  %v6942_v25 = vmul.f32 1.0614054, %v11944_v9 }
0x2498   : > { %v6951_v33 = vmul.f32 %v9871_v27, %v6945_v10  ;;  %v6946_v38 = vadd.f32 -1.4531521, %v6940_v45  ;;  %v6944_v20 = vmul.f32 1.0614054, %v11946_v5  ;;  %v11954_v8 = vpop.eup %9880 }
0x2499   : > { %v6953_v39 = vmul.f32 %v9873_v22, %v6947_v60  ;;  %v6948_v26 = vadd.f32 -1.4531521, %v6942_v25  ;;  %v6943_v49 = vmul.f32 1.0614054, %v11954_v8  ;;  %v9883_v60 = vpop.eup %9882 }
0x249a   : > { %v6957_v48 = vadd.f32 1.4214138, %v6951_v33  ;;  %v6952_v46 = vmul.f32 %v11941_v6, %v6946_v38  ;;  %v6950_v17 = vadd.f32 -1.4531521, %v6944_v20  ;;  %v9885_v45 = vpop.eup %9884 }
0x249b   : > { %v6959_v2 = vadd.f32 1.4214138, %v6953_v39  ;;  %v6954_v32 = vmul.f32 %v11944_v9, %v6948_v26  ;;  %v6949_v51 = vadd.f32 -1.4531521, %v6943_v49 }
0x249c   : > { %v6963_v61 = vmul.f32 %v9871_v27, %v6957_v48  ;;  %v6958_v42 = vadd.f32 1.4214138, %v6952_v46  ;;  %v6956_v50 = vmul.f32 %v11946_v5, %v6950_v17  ;;  %v9887_v46 = vpop.eup %9886 }
0x249d   : > { %v6965_v16 = vmul.f32 %v9873_v22, %v6959_v2  ;;  %v6960_v54 = vadd.f32 1.4214138, %v6954_v32  ;;  %v6955_v2 = vmul.f32 %v11954_v8, %v6949_v51  ;;  %v9889_v26 = vpop.eup %9888 }
0x249e   : > { %v6969_v23 = vadd.f32 -0.28449672, %v6963_v61  ;;  %v6964_v30 = vmul.f32 %v11941_v6, %v6958_v42  ;;  %v6962_v58 = vadd.f32 1.4214138, %v6956_v50  ;;  %v6912_v50 = vsel %vm6906_vm6, 1.0, %v9953_v57 }
0x249f   : > { %v6971_v12 = vadd.f32 -0.28449672, %v6965_v16  ;;  %v6966_v44 = vmul.f32 %v11944_v9, %v6960_v54  ;;  %v6961_v61 = vadd.f32 1.4214138, %v6955_v2 }
0x24a0   : > { %v6975_v29 = vmul.f32 %v9871_v27, %v6969_v23  ;;  %v6970_v43 = vadd.f32 -0.28449672, %v6964_v30  ;;  %v6968_v24 = vmul.f32 %v11946_v5, %v6962_v58  ;;  %v9891_v23 = vpop.eup %9890 }
0x24a1   : > { %v6977_v0 = vmul.f32 %v9873_v22, %v6971_v12  ;;  %v6972_v33 = vadd.f32 -0.28449672, %v6966_v44  ;;  %v6967_v63 = vmul.f32 %v11954_v8, %v6961_v61  ;;  %v6894_v44 = vmul.f32 0.5, %v11923_v14 }
0x24a2   : > { %v6981_v59 = vadd.f32 0.2548296, %v6975_v29  ;;  %v6976_v7 = vmul.f32 %v11941_v6, %v6970_v43  ;;  %v6974_v48 = vadd.f32 -0.28449672, %v6968_v24  ;;  %v6891_v43 = vmul.f32 0.5, %v11905_v37 }
0x24a3   : > { %v6983_v11 = vadd.f32 0.2548296, %v6977_v0  ;;  %v6978_v40 = vmul.f32 %v11944_v9, %v6972_v33  ;;  %v6973_v32 = vadd.f32 -0.28449672, %v6967_v63  ;;  %v6910_v24 = vsel %vm6904_vm8, 1.0, %v9953_v57 }
0x24a4   : > { %v6987_v10 = vmul.f32 %v9871_v27, %v6981_v59  ;;  %v6982_v13 = vadd.f32 0.2548296, %v6976_v7  ;;  %v6980_v27 = vmul.f32 %v11946_v5, %v6974_v48  ;;  %v9893_v7 = vpop.eup %9892 }
0x24a5   : > { %v6989_v1 = vmul.f32 %v9873_v22, %v6983_v11  ;;  %v6984_v36 = vadd.f32 0.2548296, %v6978_v40  ;;  %v6893_v11 = vmul.f32 0.5, %v11907_v19 }
0x24a6   : > { %v7017_v39 = vmul.f32 %v9883_v60, %v6987_v10  ;;  %v6988_v22 = vmul.f32 %v11941_v6, %v6982_v13  ;;  %v6986_v16 = vadd.f32 0.2548296, %v6980_v27  ;;  %v6896_v60 = vmul.f32 0.5, %v11925_v15 }
0x24a7   : > { %v7019_v38 = vmul.f32 %v9885_v45, %v6989_v1  ;;  %v6990_v18 = vmul.f32 %v11944_v9, %v6984_v36  ;;  %v6979_v9 = vmul.f32 %v11954_v8, %v6973_v32  ;;  %v6892_v15 = vmul.f32 0.5, %v11909_v28 }
0x24a8   : > { %v7023_v25 = vsub.f32 1.0, %v7017_v39  ;;  %v6992_v6 = vmul.f32 %v11946_v5, %v6986_v16  ;;  %v7018_v17 = vmul.f32 %v9887_v46, %v6988_v22 }
0x24a9   : > { %v7025_v20 = vsub.f32 1.0, %v7019_v38  ;;  %v7020_v12 = vmul.f32 %v9889_v26, %v6990_v18  ;;  %v6985_v59 = vadd.f32 0.2548296, %v6979_v9  ;;  %v6895_v38 = vmul.f32 0.5, %v11935_v55 }
0x24aa   : > { %v7029_v42 = vmul.f32 %v7023_v25, %v6909_v21  ;;  %v7022_v29 = vmul.f32 %v9891_v23, %v6992_v6  ;;  %v7024_v54 = vsub.f32 1.0, %v7018_v17 }
0x24ab   : > { %v7031_v31 = vmul.f32 %v7025_v20, %v6911_v53  ;;  %v7026_v30 = vsub.f32 1.0, %v7020_v12  ;;  %v6991_v10 = vmul.f32 %v11954_v8, %v6985_v59  ;;  %v6913_v8 = vsel %vm6907_vm9, 1.0, %v9953_v57  ;;  %v9941_v57 = vld [vmem:[%s10020_s20 + $0x48] sm:$0xff] }
0x24ac   : > { %v7028_v0 = vsub.f32 1.0, %v7022_v29  ;;  %v7035_v56 = vadd.f32 1.0, %v7029_v42  ;;  %v7030_v33 = vmul.f32 %v7024_v54, %v6910_v24  ;;  %v7102_v20 = vrot.slane %v9941_v57, %v10663_v34 }
0x24ad   : > { %v7032_v5 = vmul.f32 %v7026_v30, %v6912_v50  ;;  %v7037_v58 = vadd.f32 1.0, %v7031_v31  ;;  %v7021_v45 = vmul.f32 %v9893_v7, %v6991_v10 }
0x24ae   : > { %v7034_v3 = vmul.f32 %v7028_v0, %v6914_v35  ;;  %v7041_v37 = vmul.f32 %v7035_v56, %v6891_v43  ;;  %v7036_v47 = vadd.f32 1.0, %v7030_v33 }
0x24af   : > { %v7038_v49 = vadd.f32 1.0, %v7032_v5  ;;  %v7043_v19 = vmul.f32 %v7037_v58, %v6893_v11  ;;  %v7027_v13 = vsub.f32 1.0, %v7021_v45 }
0x24b0   : > { %v7040_v1 = vadd.f32 1.0, %v7034_v3  ;;  %v7042_v40 = vmul.f32 %v7036_v47, %v6892_v15 }
0x24b1   : > { %v7044_v51 = vmul.f32 %v7038_v49, %v6894_v44  ;;  %v7033_v4 = vmul.f32 %v7027_v13, %v6913_v8 }
0x24b2   : > { %v7046_v39 = vmul.f32 %v7040_v1, %v6896_v60 }
0x24b3   : > { %v7047_v14 = vpack.c.bf16 %v7044_v51, %v7041_v37  ;;  %v7039_v62 = vadd.f32 1.0, %v7033_v4 }
0x24b4   : > { %v7049_v48 = vpack.c.bf16 %v7046_v39, %v7043_v19 }
0x24b5   : > { %v7045_v2 = vmul.f32 %v7039_v62, %v6895_v38 }
0x24b6   : > { %9124 = vmatmul.mubr.bf16.vlgmr.msra.gmra.mrb[60].mxu0 %v7049_v48 }
0x24b7   : > { %v7048_v27 = vpack.c.bf16 %v7045_v2, %v7042_v40 }
0x24b9   : > { %7279 = vmatprep.mubr.bf16.mxu1 %v7048_v27 }
0x24ba   : > { %7280 = vmatmul.mubr.bf16.vlgmr.msra.gmra.mrb[140].mxu1 %v7047_v14 }
0x2589   : > { %v7322_v25 = vpop.f32.mrb[60].mxu0 }
0x258a   : > { %v9125_v22 = vpop.f32.mrb[61].mxu0 }
0x258b   : > { %v7325_v36 = vpop.f32.mrb[62].mxu0 }
0x258c   : > { %v9126_v61 = vpop.f32.mrb[63].mxu0 }
0x258d   : > { %v8632_v46 = vpop.f32.mrb[140].mxu1 }
0x258e   : > { %v8633_v16 = vpop.f32.mrb[141].mxu1 }
0x258f   : > { %v8634_v26 = vadd.f32 %v8633_v16, %v8632_v46  ;;  %v8635_v21 = vpop.f32.mrb[142].mxu1 }
0x2590   : > { %v8636_v28 = vpop.f32.mrb[143].mxu1 }
0x2591   : > { %v7282_v18 = vadd.f32 %v8634_v26, %v7102_v20  ;;  %v8637_v55 = vadd.f32 %v8636_v28, %v8635_v21 }
0x2593   : > { %v7323_v63 = vadd.f32 %v7322_v25, %v7282_v18  ;;  %v7285_v53 = vadd.f32 %v8637_v55, %v7102_v20 }
0x2595   : > { %v7329_v6 = vadd.f32 %v7323_v63, %v11819_v41  ;;  %v7326_v23 = vadd.f32 %v7325_v36, %v7285_v53 }
0x2597   : > { %7331 = vst [vmem:[%s12011_s9] sm:$0xff] %v7329_v6  ;;  %v7330_v42 = vadd.f32 %v7326_v23, %v11821_v52 }
0x2599   : > { %7332 = vst [vmem:[%s12011_s9 + $0x8] sm:$0xff] %v7330_v42 }
0x259a PF: > { %s19_s30 = sadd.s32 1, %s9948_s30  }
0x259b   : > { %p16_p5 = scmp.ge.s32.totalorder %s19_s30, 5  }
0x259d   :  { %18 = sbr.rel (!%p16_p5) target bundleno = 1 (0x1), region = 113 }

</bundles_post_ra>
